<compile_context>
chip_gen: v7x
topology: tpu7x:2x2x1
jax: 0.10.0
libtpu: 0.0.40
codegen_flags: <defaults>
</compile_context>

<pallas_src>
import jax
import jax.numpy as jnp
from jax.experimental import pallas as pl
from jax.experimental.pallas import tpu as pltpu


INPUT_UNITS = 3072
H1, H2, OUT = 800, 800, 10
H_PAD = 896     # 800 -> 7*128 lane-aligned hidden width
OUT_PAD = 128   # 10  -> 128 lane-aligned output width


def _round_up(x, m):
    return (x + m - 1) // m * m


def mlp_kernel(x_ref, w1_ref, b1_ref, w2_ref, b2_ref, w3_ref, b3_ref, o_ref):
    # Layer 1: (TM, 3072)bf16 @ (3072, 896)bf16 -> f32 acc; bias + ReLU in f32.
    h = jnp.dot(x_ref[...], w1_ref[...], preferred_element_type=jnp.float32)
    h = jnp.maximum(h + b1_ref[...], 0.0).astype(jnp.bfloat16)
    # Layer 2: (TM, 896) @ (896, 896)
    h = jnp.dot(h, w2_ref[...], preferred_element_type=jnp.float32)
    h = jnp.maximum(h + b2_ref[...], 0.0).astype(jnp.bfloat16)
    # Dropout(0.5): identity in eval mode.
    # Layer 3: (TM, 896) @ (896, 128) -- 128-wide output => unmasked lane-dense stores.
    out = jnp.dot(h, w3_ref[...], preferred_element_type=jnp.float32)
    o_ref[...] = (out + b3_ref[...]).astype(o_ref.dtype)


def pack_params(raw):
    """Pack raw f32 (in,out)-layout params into bf16 lane-padded kernel params."""
    w1, b1, w2, b2, w3, b3 = raw
    w1p = jnp.zeros((INPUT_UNITS, H_PAD), jnp.bfloat16).at[:, :H1].set(w1.astype(jnp.bfloat16))
    b1p = jnp.zeros((1, H_PAD), jnp.float32).at[:, :H1].set(b1.reshape(1, -1))
    w2p = jnp.zeros((H_PAD, H_PAD), jnp.bfloat16).at[:H1, :H2].set(w2.astype(jnp.bfloat16))
    b2p = jnp.zeros((1, H_PAD), jnp.float32).at[:, :H2].set(b2.reshape(1, -1))
    w3p = jnp.zeros((H_PAD, OUT_PAD), jnp.bfloat16).at[:H2, :OUT].set(w3.astype(jnp.bfloat16))
    b3p = jnp.zeros((1, OUT_PAD), jnp.float32).at[:, :OUT].set(b3.reshape(1, -1))
    return (w1p, b1p, w2p, b2p, w3p, b3p)


def mlp_forward(x_nchw, packed, *, tm=256):
    """x_nchw: (N, C, H, W) with C*H*W == 3072. Returns (N, 10) float32 logits."""
    n = x_nchw.shape[0]
    x = x_nchw.reshape(n, -1).astype(jnp.bfloat16)  # == torch x.view(N, -1)
    w1, b1, w2, b2, w3, b3 = packed

    # Batch tile: multiple of 8 sublanes, capped at tm; pad N up to a tile multiple.
    tm = min(tm, _round_up(n, 8))
    n_pad = _round_up(n, tm)
    if n_pad != n:
        x = jnp.pad(x, ((0, n_pad - n), (0, 0)))
    grid = (n_pad // tm,)

    resident = lambda i: (0, 0)  # weights/biases: same block every iteration

    flops = 2 * n_pad * (INPUT_UNITS * H_PAD + H_PAD * H_PAD + H_PAD * OUT_PAD)
    bytes_accessed = (
        x.size * x.dtype.itemsize
        + sum(a.size * a.dtype.itemsize for a in packed)
        + n_pad * OUT_PAD * 4
    )

    out = pl.pallas_call(
        mlp_kernel,
        out_shape=jax.ShapeDtypeStruct((n_pad, OUT_PAD), jnp.float32),
        grid_spec=pltpu.PrefetchScalarGridSpec(
            num_scalar_prefetch=0,
            grid=grid,
            in_specs=[
                pl.BlockSpec((tm, INPUT_UNITS), lambda i: (i, 0)),
                pl.BlockSpec((INPUT_UNITS, H_PAD), resident),
                pl.BlockSpec((1, H_PAD), resident),
                pl.BlockSpec((H_PAD, H_PAD), resident),
                pl.BlockSpec((1, H_PAD), resident),
                pl.BlockSpec((H_PAD, OUT_PAD), resident),
                pl.BlockSpec((1, OUT_PAD), resident),
            ],
            out_specs=pl.BlockSpec((tm, OUT_PAD), lambda i: (i, 0)),
        ),
        compiler_params=pltpu.CompilerParams(
            dimension_semantics=("parallel",),
            vmem_limit_bytes=32 << 20,
        ),
        cost_estimate=pl.CostEstimate(
            flops=flops, transcendentals=0, bytes_accessed=bytes_accessed),
    )(x, w1, b1, w2, b2, w3, b3)

    return out[:n, :OUT]


def init_params(key):
    """Raw f32 params mimicking nn.Linear's U(-1/sqrt(fan_in), +1/sqrt(fan_in)).

    Weights are stored transposed relative to PyTorch: (in_features, out_features).
    """
    ks = jax.random.split(key, 6)

    def lin(kw, kb, fan_in, fan_out):
        bound = 1.0 / (fan_in ** 0.5)
        w = jax.random.uniform(kw, (fan_in, fan_out), jnp.float32, -bound, bound)
        b = jax.random.uniform(kb, (fan_out,), jnp.float32, -bound, bound)
        return w, b

    w1, b1 = lin(ks[0], ks[1], INPUT_UNITS, H1)
    w2, b2 = lin(ks[2], ks[3], H1, H2)
    w3, b3 = lin(ks[4], ks[5], H2, OUT)
    return (w1, b1, w2, b2, w3, b3)


if __name__ == "__main__":
    key = jax.random.PRNGKey(0)
    k_x, k_p = jax.random.split(key)

    # CIFAR-like input: (N=4, C=3, H=32, W=32) -> 3072 features.
    x = jax.random.normal(k_x, (4, 3, 32, 32), jnp.float32)
    raw = init_params(k_p)
    packed = pack_params(raw)

    out = mlp_forward(x, packed)
    out = jax.block_until_ready(out)
    assert out.shape == (4, OUT)

    # Reference with the same bf16-weight / f32-accumulation numerics as the kernel.
    w1, b1, w2, b2, w3, b3 = raw
    xb = x.reshape(x.shape[0], -1).astype(jnp.bfloat16)
    h = jnp.dot(xb, w1.astype(jnp.bfloat16), preferred_element_type=jnp.float32) + b1
    h = jnp.maximum(h, 0.0).astype(jnp.bfloat16)
    h = jnp.dot(h, w2.astype(jnp.bfloat16), preferred_element_type=jnp.float32) + b2
    h = jnp.maximum(h, 0.0).astype(jnp.bfloat16)
    ref = jnp.dot(h, w3.astype(jnp.bfloat16), preferred_element_type=jnp.float32) + b3

    assert jnp.allclose(out, ref, atol=1e-2, rtol=1e-2)

    print("KERNEL_OK")
</pallas_src>

<mosaic_0001>
module attributes {stable_mosaic.version = 11 : i64} {
  func.func @mlp_kernel(%arg0: i32, %arg1: memref<8x3072xbf16, #tpu.memory_space<vmem>>, %arg2: memref<3072x896xbf16, #tpu.memory_space<vmem>>, %arg3: memref<1x896xf32, #tpu.memory_space<vmem>>, %arg4: memref<896x896xbf16, #tpu.memory_space<vmem>>, %arg5: memref<1x896xf32, #tpu.memory_space<vmem>>, %arg6: memref<896x128xbf16, #tpu.memory_space<vmem>>, %arg7: memref<1x128xf32, #tpu.memory_space<vmem>>, %arg8: memref<8x128xf32, #tpu.memory_space<vmem>>) attributes {dimension_semantics = [#tpu.dimension_semantics<parallel>], iteration_bounds = array<i64: 1>, scalar_prefetch = 0 : i64, scratch_operands = 0 : i64, tpu.core_type = #tpu.core_type<tc>, window_params = [{transform_indices = @transform_0, window_bounds = array<i64: 8, 3072>}, {pipeline_mode = #tpu.pipeline_mode<synchronous>, transform_indices = @transform_1, window_bounds = array<i64: 3072, 896>}, {pipeline_mode = #tpu.pipeline_mode<synchronous>, transform_indices = @transform_2, window_bounds = array<i64: 1, 896>}, {pipeline_mode = #tpu.pipeline_mode<synchronous>, transform_indices = @transform_3, window_bounds = array<i64: 896, 896>}, {pipeline_mode = #tpu.pipeline_mode<synchronous>, transform_indices = @transform_4, window_bounds = array<i64: 1, 896>}, {pipeline_mode = #tpu.pipeline_mode<synchronous>, transform_indices = @transform_5, window_bounds = array<i64: 896, 128>}, {pipeline_mode = #tpu.pipeline_mode<synchronous>, transform_indices = @transform_6, window_bounds = array<i64: 1, 128>}, {transform_indices = @transform_7, window_bounds = array<i64: 8, 128>}]} {
    %c0 = arith.constant 0 : index
    %c0_0 = arith.constant 0 : index
    %0 = vector.load %arg1[%c0, %c0_0] : memref<8x3072xbf16, #tpu.memory_space<vmem>>, vector<8x3072xbf16>
    %c0_1 = arith.constant 0 : index
    %c0_2 = arith.constant 0 : index
    %1 = vector.load %arg2[%c0_1, %c0_2] : memref<3072x896xbf16, #tpu.memory_space<vmem>>, vector<3072x896xbf16>
    %cst = arith.constant dense<0.000000e+00> : vector<8x896xf32>
    %2 = tpu.matmul %0, %1, %cst {dimension_numbers = #tpu.dot_dimension_numbers<[1], [0], [0], [1], [0, 0, 1, 1], [], []>} : vector<8x3072xbf16>, vector<3072x896xbf16>, vector<8x896xf32> -> vector<8x896xf32>
    %c0_3 = arith.constant 0 : index
    %c0_4 = arith.constant 0 : index
    %3 = vector.load %arg3[%c0_3, %c0_4] : memref<1x896xf32, #tpu.memory_space<vmem>>, vector<1x896xf32>
    %4 = vector.broadcast %3 : vector<1x896xf32> to vector<8x896xf32>
    %5 = arith.addf %2, %4 : vector<8x896xf32>
    %cst_5 = arith.constant 0.000000e+00 : f32
    %6 = vector.broadcast %cst_5 : f32 to vector<8x896xf32>
    %7 = arith.maximumf %5, %6 : vector<8x896xf32>
    %8 = arith.truncf %7 : vector<8x896xf32> to vector<8x896xbf16>
    %c0_6 = arith.constant 0 : index
    %c0_7 = arith.constant 0 : index
    %9 = vector.load %arg4[%c0_6, %c0_7] : memref<896x896xbf16, #tpu.memory_space<vmem>>, vector<896x896xbf16>
    %cst_8 = arith.constant dense<0.000000e+00> : vector<8x896xf32>
    %10 = tpu.matmul %8, %9, %cst_8 {dimension_numbers = #tpu.dot_dimension_numbers<[1], [0], [0], [1], [0, 0, 1, 1], [], []>} : vector<8x896xbf16>, vector<896x896xbf16>, vector<8x896xf32> -> vector<8x896xf32>
    %c0_9 = arith.constant 0 : index
    %c0_10 = arith.constant 0 : index
    %11 = vector.load %arg5[%c0_9, %c0_10] : memref<1x896xf32, #tpu.memory_space<vmem>>, vector<1x896xf32>
    %12 = vector.broadcast %11 : vector<1x896xf32> to vector<8x896xf32>
    %13 = arith.addf %10, %12 : vector<8x896xf32>
    %cst_11 = arith.constant 0.000000e+00 : f32
    %14 = vector.broadcast %cst_11 : f32 to vector<8x896xf32>
    %15 = arith.maximumf %13, %14 : vector<8x896xf32>
    %16 = arith.truncf %15 : vector<8x896xf32> to vector<8x896xbf16>
    %c0_12 = arith.constant 0 : index
    %c0_13 = arith.constant 0 : index
    %17 = vector.load %arg6[%c0_12, %c0_13] : memref<896x128xbf16, #tpu.memory_space<vmem>>, vector<896x128xbf16>
    %cst_14 = arith.constant dense<0.000000e+00> : vector<8x128xf32>
    %18 = tpu.matmul %16, %17, %cst_14 {dimension_numbers = #tpu.dot_dimension_numbers<[1], [0], [0], [1], [0, 0, 1, 1], [], []>} : vector<8x896xbf16>, vector<896x128xbf16>, vector<8x128xf32> -> vector<8x128xf32>
    %c0_15 = arith.constant 0 : index
    %c0_16 = arith.constant 0 : index
    %19 = vector.load %arg7[%c0_15, %c0_16] : memref<1x128xf32, #tpu.memory_space<vmem>>, vector<1x128xf32>
    %20 = vector.broadcast %19 : vector<1x128xf32> to vector<8x128xf32>
    %21 = arith.addf %18, %20 : vector<8x128xf32>
    %c0_17 = arith.constant 0 : index
    %c0_18 = arith.constant 0 : index
    %22 = vector.load %arg8[%c0_17, %c0_18] : memref<8x128xf32, #tpu.memory_space<vmem>>, vector<8x128xf32>
    tpu.vector_store %arg8[%c0_17, %c0_18], %21 {strides = array<i32>} : memref<8x128xf32, #tpu.memory_space<vmem>>, vector<8x128xf32>,
    return
  }
  func.func @transform_0(%arg0: i32) -> (i32, i32) {
    %c0_i32 = arith.constant 0 : i32
    %c0_i32_0 = arith.constant 0 : i32
    return %arg0, %c0_i32 : i32, i32
  }
  func.func @transform_1(%arg0: i32) -> (i32, i32) {
    %c0_i32 = arith.constant 0 : i32
    %c0_i32_0 = arith.constant 0 : i32
    %c0_i32_1 = arith.constant 0 : i32
    return %c0_i32, %c0_i32_0 : i32, i32
  }
  func.func @transform_2(%arg0: i32) -> (i32, i32) {
    %c0_i32 = arith.constant 0 : i32
    %c0_i32_0 = arith.constant 0 : i32
    %c0_i32_1 = arith.constant 0 : i32
    return %c0_i32, %c0_i32_0 : i32, i32
  }
  func.func @transform_3(%arg0: i32) -> (i32, i32) {
    %c0_i32 = arith.constant 0 : i32
    %c0_i32_0 = arith.constant 0 : i32
    %c0_i32_1 = arith.constant 0 : i32
    return %c0_i32, %c0_i32_0 : i32, i32
  }
  func.func @transform_4(%arg0: i32) -> (i32, i32) {
    %c0_i32 = arith.constant 0 : i32
    %c0_i32_0 = arith.constant 0 : i32
    %c0_i32_1 = arith.constant 0 : i32
    return %c0_i32, %c0_i32_0 : i32, i32
  }
  func.func @transform_5(%arg0: i32) -> (i32, i32) {
    %c0_i32 = arith.constant 0 : i32
    %c0_i32_0 = arith.constant 0 : i32
    %c0_i32_1 = arith.constant 0 : i32
    return %c0_i32, %c0_i32_0 : i32, i32
  }
  func.func @transform_6(%arg0: i32) -> (i32, i32) {
    %c0_i32 = arith.constant 0 : i32
    %c0_i32_0 = arith.constant 0 : i32
    %c0_i32_1 = arith.constant 0 : i32
    return %c0_i32, %c0_i32_0 : i32, i32
  }
  func.func @transform_7(%arg0: i32) -> (i32, i32) {
    %c0_i32 = arith.constant 0 : i32
    %c0_i32_0 = arith.constant 0 : i32
    return %arg0, %c0_i32 : i32, i32
  }
}

</mosaic_0001>

<bundles_post_ra>
// kernel: tpu_custom_call.1
= control target key start
LH: loop header
LB: loop body
LE: loop exit
PB: predicated region body
PF: predicated region fallthrough
CT: control target
= control target key end

     0   :  { %12 = vsyncpa [#allocation3], 0  ;;  %s20186_s0 = inlined_call_operand.hbm [shape: bf16[8,3072], index: 0, kind: input, shape index: {}]   ;;  %s20187_s1 = inlined_call_operand.hbm [shape: bf16[3072,896], index: 1, kind: input, shape index: {}]   ;;  %s20188_s2 = inlined_call_operand.hbm [shape: f32[1,896], index: 2, kind: input, shape index: {}]   ;;  %s20189_s3 = inlined_call_operand.hbm [shape: bf16[896,896], index: 3, kind: input, shape index: {}]   ;;  %s20190_s4 = inlined_call_operand.hbm [shape: f32[1,896], index: 4, kind: input, shape index: {}]   ;;  %s20191_s5 = inlined_call_operand.hbm [shape: bf16[896,128], index: 5, kind: input, shape index: {}]   ;;  %s20192_s6 = inlined_call_operand.hbm [shape: f32[1,128], index: 6, kind: input, shape index: {}]   ;;  %s20193_s7 = inlined_call_operand.hbm [shape: f32[8,128], index: 7, kind: output, shape index: {}]  }
   0x1   :  { %13 = vsyncpa [#allocation6], 0 }
   0x2   :  { %14 = vsyncpa [#allocation9], 0 }
   0x3   :  { %15 = vsyncpa [#allocation12], 0 }
   0x4   :  { %16 = vsyncpa [#allocation4], 0  ;;  %s19680_s24 = smov [#allocation5]   ;;  %s19494_s28 = scalar_lea.hbm %s20187_s1, 172032 }
   0x5   :  { %s32_s25 = sshll.u32 %s19680_s24, 4  ;;  %p19495_p0 = scmp.ne.s32.totalorder %s20187_s1, %s19494_s28  ;;  %s33_s25 = int_to_ptr.vmem [resolvable:$true] %s32_s25 }
   0x6   :  { %p19498_p1 = scmp.lt.u32.totalorder %s19494_s28, %s20187_s1 }
   0x8   :  { %p19500_p2 = pnand %p19498_p1, %p19495_p0 }
   0xa   :  { %19503 = shalt.err (!%p19500_p2)
}
   0xb   :  { %s19504_s10 = scalar_lea.vmem %s33_s25, 172032  ;;  %p19509_p4 = scmp.lt.s32.totalorder %s33_s25, %s33_s25 }
   0xc   :  { %p19505_p3 = scmp.ne.s32.totalorder %s33_s25, %s19504_s10  ;;  %p19510_p5 = scmp.lt.s32.totalorder %s19504_s10, %s19504_s10 }
   0xe   :  { %p19511_p6 = por %p19510_p5, %p19509_p4 }
  0x10   :  { %p19512_p7 = pnand %p19511_p6, %p19505_p3 }
  0x12   :  { %19515 = shalt.err (!%p19512_p7)
}
  0x13   :  { %s19681_s11 = smov 448   ;;  %s19682_s12 = smov 28  }
  0x14   :  { %38 = dma.hbm_to_vmem [thread:$0]  %s20187_s1, 172032, %s33_s25, [#allocation6], %s19681_s11, %s19681_s11, %s19682_s12  }
  0x15   :  { %s19683_s15 = smov [#allocation8]   ;;  %s19684_s17 = smov [#allocation11]  }
  0x16   :  { %s54_s16 = sshll.u32 %s19683_s15, 4  ;;  %s76_s18 = sshll.u32 %s19684_s17, 4  ;;  %s55_s16 = int_to_ptr.vmem [resolvable:$true] %s54_s16  ;;  %s77_s18 = int_to_ptr.vmem [resolvable:$true] %s76_s18 }
  0x17   :  { %s19516_s21 = scalar_lea.hbm %s20189_s3, 50176 }
  0x18   :  { %p19517_p8 = scmp.ne.s32.totalorder %s20189_s3, %s19516_s21  ;;  %p19520_p9 = scmp.lt.u32.totalorder %s19516_s21, %s20189_s3 }
  0x1a   :  { %p19522_p10 = pnand %p19520_p9, %p19517_p8 }
  0x1c   :  { %19525 = shalt.err (!%p19522_p10)
}
  0x1d   :  { %s19526_s1 = scalar_lea.vmem %s55_s16, 50176  ;;  %p19531_p12 = scmp.lt.s32.totalorder %s55_s16, %s55_s16 }
  0x1e   :  { %p19527_p11 = scmp.ne.s32.totalorder %s55_s16, %s19526_s1  ;;  %p19532_p13 = scmp.lt.s32.totalorder %s19526_s1, %s19526_s1 }
  0x20   :  { %p19533_p0 = por %p19532_p13, %p19531_p12 }
  0x22   :  { %p19534_p1 = pnand %p19533_p0, %p19527_p11 }
  0x24   :  { %19537 = shalt.err (!%p19534_p1)
}
  0x25   :  { %60 = dma.hbm_to_vmem [thread:$0]  %s20189_s3, 50176, %s55_s16, [#allocation9], %s19681_s11, %s19681_s11, %s19682_s12  }
  0x26   :  { %s19538_s30 = scalar_lea.hbm %s20191_s5, 7168 }
  0x27   :  { %p19539_p2 = scmp.ne.s32.totalorder %s20191_s5, %s19538_s30  ;;  %p19542_p3 = scmp.lt.u32.totalorder %s19538_s30, %s20191_s5 }
  0x29   :  { %p19544_p4 = pnand %p19542_p3, %p19539_p2 }
  0x2b   :  { %19547 = shalt.err (!%p19544_p4)
}
  0x2c   :  { %s19548_s14 = scalar_lea.vmem %s77_s18, 7168  ;;  %p19553_p6 = scmp.lt.s32.totalorder %s77_s18, %s77_s18 }
  0x2d   :  { %p19549_p5 = scmp.ne.s32.totalorder %s77_s18, %s19548_s14  ;;  %p19554_p7 = scmp.lt.s32.totalorder %s19548_s14, %s19548_s14 }
  0x2f   :  { %p19555_p8 = por %p19554_p7, %p19553_p6 }
  0x31   :  { %p19556_p9 = pnand %p19555_p8, %p19549_p5 }
  0x33   :  { %19559 = shalt.err (!%p19556_p9)
}
  0x34   :  { %s19685_s3 = smov 64   ;;  %s19686_s11 = smov 4  }
  0x35   :  { %82 = dma.hbm_to_vmem [thread:$0]  %s20191_s5, 7168, %s77_s18, [#allocation12], %s19685_s3, %s19685_s3, %s19686_s11  }
  0x36   :  { %s19687_s16 = smov [#allocation2]   ;;  %s19688_s19 = smov [#allocation7]  }
  0x37   :  { %s23_s17 = sshll.u32 %s19687_s16, 4  ;;  %s45_s20 = sshll.u32 %s19688_s19, 4  ;;  %s24_s17 = int_to_ptr.vmem [resolvable:$true] %s23_s17  ;;  %s46_s20 = int_to_ptr.vmem [resolvable:$true] %s45_s20 }
  0x38   :  { %s19560_s23 = scalar_lea.hbm %s20186_s0, 1536 }
  0x39   :  { %p19561_p10 = scmp.ne.s32.totalorder %s20186_s0, %s19560_s23  ;;  %p19564_p11 = scmp.lt.u32.totalorder %s19560_s23, %s20186_s0 }
  0x3b   :  { %p19566_p12 = pnand %p19564_p11, %p19561_p10 }
  0x3d   :  { %19569 = shalt.err (!%p19566_p12)
}
  0x3e   :  { %s19570_s5 = scalar_lea.vmem %s24_s17, 1536  ;;  %p19575_p0 = scmp.lt.s32.totalorder %s24_s17, %s24_s17 }
  0x3f   :  { %p19571_p13 = scmp.ne.s32.totalorder %s24_s17, %s19570_s5  ;;  %p19576_p1 = scmp.lt.s32.totalorder %s19570_s5, %s19570_s5 }
  0x41   :  { %p19577_p2 = por %p19576_p1, %p19575_p0 }
  0x43   :  { %p19578_p3 = pnand %p19577_p2, %p19571_p13 }
  0x45   :  { %19581 = shalt.err (!%p19578_p3)
}
  0x46   :  { %26 = dma.hbm_to_vmem [thread:$0]  %s20186_s0, 1536, %s24_s17, [#allocation3]  }
  0x47   :  { %s19582_s30 = scalar_lea.hbm %s20188_s2, 112 }
  0x48   :  { %p19583_p4 = scmp.ne.s32.totalorder %s20188_s2, %s19582_s30  ;;  %p19586_p5 = scmp.lt.u32.totalorder %s19582_s30, %s20188_s2 }
  0x4a   :  { %p19588_p6 = pnand %p19586_p5, %p19583_p4 }
  0x4c   :  { %19591 = shalt.err (!%p19588_p6)
}
  0x4d   :  { %s19592_s14 = scalar_lea.vmem %s46_s20, 112  ;;  %s19596_s3 = scalar_lea.vmem %s46_s20, 128 }
  0x4e   :  { %p19593_p7 = scmp.ne.s32.totalorder %s46_s20, %s19592_s14  ;;  %p19597_p8 = scmp.lt.s32.totalorder %s46_s20, %s46_s20 }
  0x4f   :  { %p19598_p9 = scmp.lt.s32.totalorder %s19596_s3, %s19592_s14 }
  0x51   :  { %p19599_p10 = por %p19598_p9, %p19597_p8 }
  0x53   :  { %p19600_p11 = pnand %p19599_p10, %p19593_p7 }
  0x55   :  { %19603 = shalt.err (!%p19600_p11)
}
  0x56   :  { %48 = dma.hbm_to_vmem [thread:$0]  %s20188_s2, 112, %s46_s20, [#allocation6]  }
  0x57   :  { %s19689_s12 = smov [#allocation10]   ;;  %s19690_s16 = smov [#allocation13]  }
  0x58   :  { %s67_s15 = sshll.u32 %s19689_s12, 4  ;;  %s89_s17 = sshll.u32 %s19690_s16, 4  ;;  %s68_s15 = int_to_ptr.vmem [resolvable:$true] %s67_s15  ;;  %s90_s17 = int_to_ptr.vmem [resolvable:$true] %s89_s17 }
  0x59   :  { %s19604_s22 = scalar_lea.hbm %s20190_s4, 112 }
  0x5a   :  { %p19605_p12 = scmp.ne.s32.totalorder %s20190_s4, %s19604_s22  ;;  %p19608_p13 = scmp.lt.u32.totalorder %s19604_s22, %s20190_s4 }
  0x5c   :  { %p19610_p0 = pnand %p19608_p13, %p19605_p12 }
  0x5e   :  { %19613 = shalt.err (!%p19610_p0)
}
  0x5f   :  { %s19614_s2 = scalar_lea.vmem %s68_s15, 112  ;;  %s19618_s20 = scalar_lea.vmem %s68_s15, 128 }
  0x60   :  { %p19615_p1 = scmp.ne.s32.totalorder %s68_s15, %s19614_s2  ;;  %p19619_p2 = scmp.lt.s32.totalorder %s68_s15, %s68_s15 }
  0x61   :  { %p19620_p3 = scmp.lt.s32.totalorder %s19618_s20, %s19614_s2 }
  0x63   :  { %p19621_p4 = por %p19620_p3, %p19619_p2 }
  0x65   :  { %p19622_p5 = pnand %p19621_p4, %p19615_p1 }
  0x67   :  { %19625 = shalt.err (!%p19622_p5)
}
  0x68   :  { %70 = dma.hbm_to_vmem [thread:$0]  %s20190_s4, 112, %s68_s15, [#allocation9]  }
  0x69   :  { %s19626_s28 = scalar_lea.hbm %s20192_s6, 16 }
  0x6a   :  { %p19627_p6 = scmp.ne.s32.totalorder %s20192_s6, %s19626_s28  ;;  %p19630_p7 = scmp.lt.u32.totalorder %s19626_s28, %s20192_s6 }
  0x6c   :  { %p19632_p8 = pnand %p19630_p7, %p19627_p6 }
  0x6e   :  { %19635 = shalt.err (!%p19632_p8)
}
  0x6f   :  { %s19636_s10 = scalar_lea.vmem %s90_s17, 16  ;;  %s19640_s13 = scalar_lea.vmem %s90_s17, 32 }
  0x70   :  { %p19637_p9 = scmp.ne.s32.totalorder %s90_s17, %s19636_s10  ;;  %p19641_p10 = scmp.lt.s32.totalorder %s90_s17, %s90_s17 }
  0x71   :  { %p19642_p11 = scmp.lt.s32.totalorder %s19640_s13, %s19636_s10 }
  0x73   :  { %p19643_p12 = por %p19642_p11, %p19641_p10 }
  0x75   :  { %p19644_p13 = pnand %p19643_p12, %p19637_p9 }
  0x77   :  { %19647 = shalt.err (!%p19644_p13)
}
  0x78   :  { %92 = dma.hbm_to_vmem [thread:$0]  %s20192_s6, 16, %s90_s17, [#allocation12]  }
  0x79   :  { %19670 = dma.done.wait [#allocation3], 1536  }
  0x7a   :  { %19671 = vsyncadd [#allocation3], 4294965760 }
  0x7b   :  { %19672 = dma.done.wait [#allocation6], 172144  }
  0x7c   :  { %19673 = vsyncadd [#allocation6], 4294795152 }
  0x7d   :  { %19674 = dma.done.wait [#allocation9], 50288  }
  0x7e   :  { %19675 = vsyncadd [#allocation9], 4294917008 }
  0x7f   :  { %19676 = dma.done.wait [#allocation12], 7184  }
  0x80   :  { %19677 = vsyncadd [#allocation12], 4294960112  ;;  %v16933_v0 = vld [vmem:[#allocation5 + $0x4] ss:$28 sps:$4 sm:$0xff]   ;;  %v16935_v1 = vld [vmem:[#allocation5 + $0xc] ss:$28 sps:$4 sm:$0xff]  }
  0x81   :  { %8696 = vmatprep.subr.bf16.mxu0 %v16933_v0  ;;  %v16937_v2 = vld [vmem:[#allocation5] ss:$28 sps:$4 sm:$0xff]   ;;  %v16938_v3 = vld [vmem:[#allocation5 + $0x8] ss:$28 sps:$4 sm:$0xff]   ;;  %9188 = vmatprep.subr.bf16.mxu1 %v16935_v1  ;;  %v16943_v6 = vld [vmem:[#allocation5 + $0x38] ss:$28 sps:$4 sm:$0xff]  }
  0x82   :  { %v16939_v4 = vld [vmem:[#allocation5 + $0x3c] ss:$28 sps:$4 sm:$0xff]   ;;  %8697 = vmatpush1.bf16.msra.mxu0 %v16937_v2  ;;  %9189 = vmatpush1.bf16.msra.mxu1 %v16938_v3  ;;  %v16941_v5 = vld [vmem:[#allocation5 + $0x44] ss:$28 sps:$4 sm:$0xff]   ;;  %v16945_v8 = vld [vmem:[#allocation5 + $0x74] ss:$28 sps:$4 sm:$0xff]  }
  0x83   :  { %8698 = vmatprep.subr.bf16.mxu0 %v16939_v4  ;;  %v16944_v7 = vld [vmem:[#allocation5 + $0x40] ss:$28 sps:$4 sm:$0xff]   ;;  %9190 = vmatprep.subr.bf16.mxu1 %v16941_v5  ;;  %v16949_v10 = vld [vmem:[#allocation5 + $0x70] ss:$28 sps:$4 sm:$0xff]   ;;  %v16950_v11 = vld [vmem:[#allocation5 + $0x78] ss:$28 sps:$4 sm:$0xff]  }
  0x84   :  { %v16947_v9 = vld [vmem:[#allocation5 + $0x7c] ss:$28 sps:$4 sm:$0xff]   ;;  %v16951_v12 = vld [vmem:[#allocation5 + $0xac] ss:$28 sps:$4 sm:$0xff]   ;;  %v16953_v13 = vld [vmem:[#allocation5 + $0xb4] ss:$28 sps:$4 sm:$0xff]  }
  0x85   :  { %v16955_v14 = vld [vmem:[#allocation5 + $0xa8] ss:$28 sps:$4 sm:$0xff]   ;;  %v16956_v15 = vld [vmem:[#allocation5 + $0xb0] ss:$28 sps:$4 sm:$0xff]   ;;  %v16961_v18 = vld [vmem:[#allocation5 + $0xe0] ss:$28 sps:$4 sm:$0xff]  }
  0x86   :  { %8699 = vmatpush1.bf16.msra.mxu0 %v16943_v6  ;;  %9191 = vmatpush1.bf16.msra.mxu1 %v16944_v7  ;;  %v16957_v16 = vld [vmem:[#allocation5 + $0xe4] ss:$28 sps:$4 sm:$0xff]   ;;  %v16959_v17 = vld [vmem:[#allocation5 + $0xec] ss:$28 sps:$4 sm:$0xff]   ;;  %v16963_v20 = vld [vmem:[#allocation5 + $0x11c] ss:$28 sps:$4 sm:$0xff]  }
  0x87   :  { %8700 = vmatprep.subr.bf16.mxu0 %v16945_v8  ;;  %9192 = vmatprep.subr.bf16.mxu1 %v16947_v9  ;;  %v16962_v19 = vld [vmem:[#allocation5 + $0xe8] ss:$28 sps:$4 sm:$0xff]   ;;  %v16967_v22 = vld [vmem:[#allocation5 + $0x118] ss:$28 sps:$4 sm:$0xff]   ;;  %v16968_v23 = vld [vmem:[#allocation5 + $0x120] ss:$28 sps:$4 sm:$0xff]  }
  0x88   :  { %v16965_v21 = vld [vmem:[#allocation5 + $0x124] ss:$28 sps:$4 sm:$0xff]   ;;  %v16969_v24 = vld [vmem:[#allocation5 + $0x154] ss:$28 sps:$4 sm:$0xff]   ;;  %v16971_v25 = vld [vmem:[#allocation5 + $0x15c] ss:$28 sps:$4 sm:$0xff]  }
  0x89   :  { %v16973_v26 = vld [vmem:[#allocation5 + $0x150] ss:$28 sps:$4 sm:$0xff]   ;;  %v16974_v27 = vld [vmem:[#allocation5 + $0x158] ss:$28 sps:$4 sm:$0xff]   ;;  %v16979_v30 = vld [vmem:[#allocation5 + $0x188] ss:$28 sps:$4 sm:$0xff]  }
  0x8a   :  { %8701 = vmatpush1.bf16.msra.mxu0 %v16949_v10  ;;  %9193 = vmatpush1.bf16.msra.mxu1 %v16950_v11  ;;  %v16975_v28 = vld [vmem:[#allocation5 + $0x18c] ss:$28 sps:$4 sm:$0xff]   ;;  %v16977_v29 = vld [vmem:[#allocation5 + $0x194] ss:$28 sps:$4 sm:$0xff]   ;;  %v16981_v32 = vld [vmem:[#allocation5 + $0x1c4] ss:$28 sps:$4 sm:$0xff]  }
  0x8b   :  { %8702 = vmatprep.subr.bf16.mxu0 %v16951_v12  ;;  %9194 = vmatprep.subr.bf16.mxu1 %v16953_v13  ;;  %v16980_v31 = vld [vmem:[#allocation5 + $0x190] ss:$28 sps:$4 sm:$0xff]   ;;  %v16985_v34 = vld [vmem:[#allocation5 + $0x1c0] ss:$28 sps:$4 sm:$0xff]   ;;  %v16986_v35 = vld [vmem:[#allocation5 + $0x1c8] ss:$28 sps:$4 sm:$0xff]  }
  0x8c   :  { %v16983_v33 = vld [vmem:[#allocation5 + $0x1cc] ss:$28 sps:$4 sm:$0xff]   ;;  %v16987_v36 = vld [vmem:[#allocation5 + $0x1fc] ss:$28 sps:$4 sm:$0xff]   ;;  %v16989_v37 = vld [vmem:[#allocation5 + $0x204] ss:$28 sps:$4 sm:$0xff]  }
  0x8d   :  { %v16991_v38 = vld [vmem:[#allocation5 + $0x1f8] ss:$28 sps:$4 sm:$0xff]   ;;  %v16992_v39 = vld [vmem:[#allocation5 + $0x200] ss:$28 sps:$4 sm:$0xff]   ;;  %v16997_v42 = vld [vmem:[#allocation5 + $0x230] ss:$28 sps:$4 sm:$0xff]  }
  0x8e   :  { %8703 = vmatpush1.bf16.msra.mxu0 %v16955_v14  ;;  %9195 = vmatpush1.bf16.msra.mxu1 %v16956_v15  ;;  %v16993_v40 = vld [vmem:[#allocation5 + $0x234] ss:$28 sps:$4 sm:$0xff]   ;;  %v16995_v41 = vld [vmem:[#allocation5 + $0x23c] ss:$28 sps:$4 sm:$0xff]   ;;  %v16999_v44 = vld [vmem:[#allocation5 + $0x26c] ss:$28 sps:$4 sm:$0xff]  }
  0x8f   :  { %8704 = vmatprep.subr.bf16.mxu0 %v16957_v16  ;;  %9196 = vmatprep.subr.bf16.mxu1 %v16959_v17  ;;  %v16998_v43 = vld [vmem:[#allocation5 + $0x238] ss:$28 sps:$4 sm:$0xff]   ;;  %v115_v46 = vld [vmem:[#allocation2] sm:$0xff]  ;;  %v17004_v49 = vld [vmem:[#allocation5 + $0x270] ss:$28 sps:$4 sm:$0xff]   ;;  %vm19693_vm0 = vmmov 0  }
  0x90   :  { %v17001_v45 = vld [vmem:[#allocation5 + $0x274] ss:$28 sps:$4 sm:$0xff]   ;;  %v17003_v47 = vld [vmem:[#allocation5 + $0x268] ss:$28 sps:$4 sm:$0xff]   ;;  %v19819_v48 = vcombine.high %v115_v46, %v115_v46  ;;  %v17009_v52 = vld [vmem:[#allocation5 + $0x2a0] ss:$28 sps:$4 sm:$0xff]   ;;  %v19823_v5 = vcombine.low %v115_v46, %v115_v46 }
  0x91   :  { %v17005_v50 = vld [vmem:[#allocation5 + $0x2a4] ss:$28 sps:$4 sm:$0xff]   ;;  %v17007_v51 = vld [vmem:[#allocation5 + $0x2ac] ss:$28 sps:$4 sm:$0xff]   ;;  %v17011_v54 = vld [vmem:[#allocation5 + $0x2dc] ss:$28 sps:$4 sm:$0xff]  }
  0x92   :  { %8705 = vmatpush1.bf16.msra.mxu0 %v16961_v18  ;;  %9197 = vmatpush1.bf16.msra.mxu1 %v16962_v19  ;;  %v17010_v53 = vld [vmem:[#allocation5 + $0x2a8] ss:$28 sps:$4 sm:$0xff]   ;;  %v17015_v56 = vld [vmem:[#allocation5 + $0x2d8] ss:$28 sps:$4 sm:$0xff]   ;;  %v17016_v57 = vld [vmem:[#allocation5 + $0x2e0] ss:$28 sps:$4 sm:$0xff]  }
  0x93   :  { %8706 = vmatprep.subr.bf16.mxu0 %v16963_v20  ;;  %9198 = vmatprep.subr.bf16.mxu1 %v16965_v21  ;;  %v17013_v55 = vld [vmem:[#allocation5 + $0x2e4] ss:$28 sps:$4 sm:$0xff]   ;;  %v17017_v58 = vld [vmem:[#allocation5 + $0x314] ss:$28 sps:$4 sm:$0xff]   ;;  %v17019_v59 = vld [vmem:[#allocation5 + $0x31c] ss:$28 sps:$4 sm:$0xff]  }
  0x94   :  { %8728 = vmatprep.mubr.bf16.mxu0 %v19819_v48  ;;  %9220 = vmatprep.mubr.bf16.mxu1 %v19819_v48  ;;  %v17021_v60 = vld [vmem:[#allocation5 + $0x310] ss:$28 sps:$4 sm:$0xff]   ;;  %v17022_v61 = vld [vmem:[#allocation5 + $0x318] ss:$28 sps:$4 sm:$0xff]   ;;  %v17027_v0 = vld [vmem:[#allocation5 + $0x348] ss:$28 sps:$4 sm:$0xff]  }
  0x95   :  { %v17023_v62 = vld [vmem:[#allocation5 + $0x34c] ss:$28 sps:$4 sm:$0xff]   ;;  %v17025_v63 = vld [vmem:[#allocation5 + $0x354] ss:$28 sps:$4 sm:$0xff]   ;;  %v17032_v2 = vld [vmem:[#allocation5 + $0x384] ss:$28 sps:$4 sm:$0xff]  }
  0x96   :  { %8707 = vmatpush1.bf16.msra.mxu0 %v16967_v22  ;;  %9199 = vmatpush1.bf16.msra.mxu1 %v16968_v23  ;;  %v17028_v1 = vld [vmem:[#allocation5 + $0x350] ss:$28 sps:$4 sm:$0xff]   ;;  %v17030_v4 = vld [vmem:[#allocation5 + $0x380] ss:$28 sps:$4 sm:$0xff]   ;;  %v17033_v6 = vld [vmem:[#allocation5 + $0x388] ss:$28 sps:$4 sm:$0xff]  }
  0x97   :  { %8708 = vmatprep.subr.bf16.mxu0 %v16969_v24  ;;  %9200 = vmatprep.subr.bf16.mxu1 %v16971_v25  ;;  %v17035_v3 = vld [vmem:[#allocation5 + $0x38c] ss:$28 sps:$4 sm:$0xff]   ;;  %v17039_v7 = vld [vmem:[#allocation5 + $0x3bc] ss:$28 sps:$4 sm:$0xff]   ;;  %v17042_v8 = vld [vmem:[#allocation5 + $0x3c4] ss:$28 sps:$4 sm:$0xff]  }
  0x98   :  { %v17037_v9 = vld [vmem:[#allocation5 + $0x3b8] ss:$28 sps:$4 sm:$0xff]   ;;  %v17040_v10 = vld [vmem:[#allocation5 + $0x3c0] ss:$28 sps:$4 sm:$0xff]   ;;  %v17043_v13 = vld [vmem:[#allocation5 + $0x3f0] ss:$28 sps:$4 sm:$0xff]  }
  0x99   :  { %v17045_v11 = vld [vmem:[#allocation5 + $0x3f4] ss:$28 sps:$4 sm:$0xff]   ;;  %v17048_v12 = vld [vmem:[#allocation5 + $0x3fc] ss:$28 sps:$4 sm:$0xff]   ;;  %v17051_v15 = vld [vmem:[#allocation5 + $0x42c] ss:$28 sps:$4 sm:$0xff]  }
  0x9a   :  { %8709 = vmatpush1.bf16.msra.mxu0 %v16973_v26  ;;  %9201 = vmatpush1.bf16.msra.mxu1 %v16974_v27  ;;  %v17046_v14 = vld [vmem:[#allocation5 + $0x3f8] ss:$28 sps:$4 sm:$0xff]   ;;  %v17049_v17 = vld [vmem:[#allocation5 + $0x428] ss:$28 sps:$4 sm:$0xff]   ;;  %v17052_v18 = vld [vmem:[#allocation5 + $0x430] ss:$28 sps:$4 sm:$0xff]  }
  0x9b   :  { %8710 = vmatprep.subr.bf16.mxu0 %v16975_v28  ;;  %9202 = vmatprep.subr.bf16.mxu1 %v16977_v29  ;;  %v17054_v16 = vld [vmem:[#allocation5 + $0x434] ss:$28 sps:$4 sm:$0xff]   ;;  %v17057_v19 = vld [vmem:[#allocation5 + $0x464] ss:$28 sps:$4 sm:$0xff]   ;;  %v17060_v20 = vld [vmem:[#allocation5 + $0x46c] ss:$28 sps:$4 sm:$0xff]  }
  0x9c   :  { %v17055_v21 = vld [vmem:[#allocation5 + $0x460] ss:$28 sps:$4 sm:$0xff]   ;;  %v17058_v22 = vld [vmem:[#allocation5 + $0x468] ss:$28 sps:$4 sm:$0xff]   ;;  %v17061_v25 = vld [vmem:[#allocation5 + $0x498] ss:$28 sps:$4 sm:$0xff]  }
  0x9d   :  { %v17063_v23 = vld [vmem:[#allocation5 + $0x49c] ss:$28 sps:$4 sm:$0xff]   ;;  %v17066_v24 = vld [vmem:[#allocation5 + $0x4a4] ss:$28 sps:$4 sm:$0xff]   ;;  %v17069_v27 = vld [vmem:[#allocation5 + $0x4d4] ss:$28 sps:$4 sm:$0xff]  }
  0x9e   :  { %8711 = vmatpush1.bf16.msra.mxu0 %v16979_v30  ;;  %9203 = vmatpush1.bf16.msra.mxu1 %v16980_v31  ;;  %v17064_v26 = vld [vmem:[#allocation5 + $0x4a0] ss:$28 sps:$4 sm:$0xff]   ;;  %v19827_v29 = vld [vmem:[#allocation2 + $0x8] sm:$0xff]  ;;  %s19694_s6 = smov [#allocation14]  }
  0x9f   :  { %8712 = vmatprep.subr.bf16.mxu0 %v16981_v32  ;;  %9204 = vmatprep.subr.bf16.mxu1 %v16983_v33  ;;  %v17072_v28 = vld [vmem:[#allocation5 + $0x4dc] ss:$28 sps:$4 sm:$0xff]   ;;  %v19831_v30 = vcombine.high %v19827_v29, %v19827_v29  ;;  %v17067_v31 = vld [vmem:[#allocation5 + $0x4d0] ss:$28 sps:$4 sm:$0xff]   ;;  %s14455_s3 = sshll.u32 %s19694_s6, 4  ;;  %s14456_s3 = int_to_ptr.vmem [resolvable:$true] %s14455_s3 }
  0xa0   :  { %v17070_v32 = vld [vmem:[#allocation5 + $0x4d8] ss:$28 sps:$4 sm:$0xff]   ;;  %v17075_v33 = vld [vmem:[#allocation5 + $0x50c] ss:$28 sps:$4 sm:$0xff]   ;;  %s19648_s0 = scalar_lea.vmem %s14456_s3, 128  ;;  %p19653_p1 = scmp.lt.s32.totalorder %s14456_s3, %s14456_s3 }
  0xa1   :  { %v17096_v46 = vld [vmem:[#allocation5 + $0x5bc] ss:$28 sps:$4 sm:$0xff]   ;;  %p19649_p0 = scmp.ne.s32.totalorder %s14456_s3, %s19648_s0  ;;  %p19654_p2 = scmp.lt.s32.totalorder %s19648_s0, %s19648_s0 }
  0xa2   :  { %8713 = vmatpush1.bf16.msra.mxu0 %v16985_v34  ;;  %9205 = vmatpush1.bf16.msra.mxu1 %v16986_v35  ;;  %v17078_v34 = vld [vmem:[#allocation5 + $0x514] ss:$28 sps:$4 sm:$0xff]   ;;  %v17073_v35 = vld [vmem:[#allocation5 + $0x508] ss:$28 sps:$4 sm:$0xff]  }
  0xa3   :  { %8714 = vmatprep.subr.bf16.mxu0 %v16987_v36  ;;  %9206 = vmatprep.subr.bf16.mxu1 %v16989_v37  ;;  %v17076_v36 = vld [vmem:[#allocation5 + $0x510] ss:$28 sps:$4 sm:$0xff]   ;;  %v17081_v37 = vld [vmem:[#allocation5 + $0x544] ss:$28 sps:$4 sm:$0xff]   ;;  %p19655_p3 = por %p19654_p2, %p19653_p1 }
  0xa5   :  { %p19656_p4 = pnand %p19655_p3, %p19649_p0 }
  0xa6   :  { %8715 = vmatpush1.bf16.msra.mxu0 %v16991_v38  ;;  %9207 = vmatpush1.bf16.msra.mxu1 %v16992_v39  ;;  %v17084_v38 = vld [vmem:[#allocation5 + $0x54c] ss:$28 sps:$4 sm:$0xff]   ;;  %v17079_v39 = vld [vmem:[#allocation5 + $0x540] ss:$28 sps:$4 sm:$0xff]  }
  0xa7   :  { %8716 = vmatprep.subr.bf16.mxu0 %v16993_v40  ;;  %9208 = vmatprep.subr.bf16.mxu1 %v16995_v41  ;;  %v17082_v40 = vld [vmem:[#allocation5 + $0x548] ss:$28 sps:$4 sm:$0xff]   ;;  %v17087_v41 = vld [vmem:[#allocation5 + $0x57c] ss:$28 sps:$4 sm:$0xff]  }
  0xaa   :  { %8717 = vmatpush1.bf16.msra.mxu0 %v16997_v42  ;;  %9209 = vmatpush1.bf16.msra.mxu1 %v16998_v43  ;;  %v17090_v42 = vld [vmem:[#allocation5 + $0x584] ss:$28 sps:$4 sm:$0xff]   ;;  %v17085_v43 = vld [vmem:[#allocation5 + $0x578] ss:$28 sps:$4 sm:$0xff]  }
  0xab   :  { %8718 = vmatprep.subr.bf16.mxu0 %v16999_v44  ;;  %9210 = vmatprep.subr.bf16.mxu1 %v17001_v45  ;;  %v17088_v44 = vld [vmem:[#allocation5 + $0x580] ss:$28 sps:$4 sm:$0xff]   ;;  %v17093_v45 = vld [vmem:[#allocation5 + $0x5b4] ss:$28 sps:$4 sm:$0xff]  }
  0xae   :  { %8719 = vmatpush1.bf16.msra.mxu0 %v17003_v47  ;;  %9211 = vmatpush1.bf16.msra.mxu1 %v17004_v49  ;;  %v17091_v47 = vld [vmem:[#allocation5 + $0x5b0] ss:$28 sps:$4 sm:$0xff]   ;;  %v17094_v49 = vld [vmem:[#allocation5 + $0x5b8] ss:$28 sps:$4 sm:$0xff]  }
  0xaf   :  { %8720 = vmatprep.subr.bf16.mxu0 %v17005_v50  ;;  %9212 = vmatprep.subr.bf16.mxu1 %v17007_v51  ;;  %v17099_v50 = vld [vmem:[#allocation5 + $0x5ec] ss:$28 sps:$4 sm:$0xff]   ;;  %v17102_v51 = vld [vmem:[#allocation5 + $0x5f4] ss:$28 sps:$4 sm:$0xff]  }
  0xb2   :  { %8721 = vmatpush1.bf16.msra.mxu0 %v17009_v52  ;;  %9213 = vmatpush1.bf16.msra.mxu1 %v17010_v53  ;;  %v17097_v52 = vld [vmem:[#allocation5 + $0x5e8] ss:$28 sps:$4 sm:$0xff]   ;;  %v17100_v53 = vld [vmem:[#allocation5 + $0x5f0] ss:$28 sps:$4 sm:$0xff]  }
  0xb3   :  { %8722 = vmatprep.subr.bf16.mxu0 %v17011_v54  ;;  %9214 = vmatprep.subr.bf16.mxu1 %v17013_v55  ;;  %v17105_v54 = vld [vmem:[#allocation5 + $0x624] ss:$28 sps:$4 sm:$0xff]   ;;  %v17108_v55 = vld [vmem:[#allocation5 + $0x62c] ss:$28 sps:$4 sm:$0xff]  }
  0xb6   :  { %8723 = vmatpush1.bf16.msra.mxu0 %v17015_v56  ;;  %9215 = vmatpush1.bf16.msra.mxu1 %v17016_v57  ;;  %v17103_v56 = vld [vmem:[#allocation5 + $0x620] ss:$28 sps:$4 sm:$0xff]   ;;  %v17106_v57 = vld [vmem:[#allocation5 + $0x628] ss:$28 sps:$4 sm:$0xff]  }
  0xb7   :  { %8724 = vmatprep.subr.bf16.mxu0 %v17017_v58  ;;  %9216 = vmatprep.subr.bf16.mxu1 %v17019_v59  ;;  %v17111_v58 = vld [vmem:[#allocation5 + $0x65c] ss:$28 sps:$4 sm:$0xff]   ;;  %v17114_v59 = vld [vmem:[#allocation5 + $0x664] ss:$28 sps:$4 sm:$0xff]  }
  0xba   :  { %8725 = vmatpush1.bf16.msra.mxu0 %v17021_v60  ;;  %9217 = vmatpush1.bf16.msra.mxu1 %v17022_v61  ;;  %v17109_v60 = vld [vmem:[#allocation5 + $0x658] ss:$28 sps:$4 sm:$0xff]   ;;  %v17112_v61 = vld [vmem:[#allocation5 + $0x660] ss:$28 sps:$4 sm:$0xff]  }
  0xbb   :  { %8726 = vmatprep.subr.bf16.mxu0 %v17023_v62  ;;  %9218 = vmatprep.subr.bf16.mxu1 %v17025_v63  ;;  %v17117_v62 = vld [vmem:[#allocation5 + $0x694] ss:$28 sps:$4 sm:$0xff]   ;;  %v17120_v63 = vld [vmem:[#allocation5 + $0x69c] ss:$28 sps:$4 sm:$0xff]  }
  0xbe   :  { %8727 = vmatpush1.bf16.msra.mxu0 %v17027_v0  ;;  %9219 = vmatpush1.bf16.msra.mxu1 %v17028_v1  ;;  %v17115_v0 = vld [vmem:[#allocation5 + $0x690] ss:$28 sps:$4 sm:$0xff]   ;;  %v17118_v1 = vld [vmem:[#allocation5 + $0x698] ss:$28 sps:$4 sm:$0xff]  }
  0xbf   :  { %8737 = vmatprep.subr.bf16.mxu0 %v17032_v2  ;;  %9229 = vmatprep.subr.bf16.mxu1 %v17035_v3  ;;  %v17123_v2 = vld [vmem:[#allocation5 + $0x6cc] ss:$28 sps:$4 sm:$0xff]   ;;  %v17126_v3 = vld [vmem:[#allocation5 + $0x6d4] ss:$28 sps:$4 sm:$0xff]  }
  0xc1   :  { %8729 = vmatmul.mubr.bf16.vlgmr.msra.gmra.mrb[0].mxu0 %v19823_v5  ;;  %9221 = vmatmul.mubr.bf16.vlgmr.msra.gmra.mrb[0].mxu1 %v19823_v5 }
  0xc2   :  { %8738 = vmatpush1.bf16.msra.mxu0 %v17030_v4  ;;  %9230 = vmatpush1.bf16.msra.mxu1 %v17033_v6  ;;  %v17121_v4 = vld [vmem:[#allocation5 + $0x6c8] ss:$28 sps:$4 sm:$0xff]   ;;  %v17124_v6 = vld [vmem:[#allocation5 + $0x6d0] ss:$28 sps:$4 sm:$0xff]  }
  0xc3   :  { %8739 = vmatprep.subr.bf16.mxu0 %v17039_v7  ;;  %9231 = vmatprep.subr.bf16.mxu1 %v17042_v8  ;;  %v17130_v7 = vld [vmem:[#allocation5 + $0x704] ss:$28 sps:$4 sm:$0xff]   ;;  %v17133_v8 = vld [vmem:[#allocation5 + $0x70c] ss:$28 sps:$4 sm:$0xff]  }
  0xc4   :  { %8769 = vmatprep.mubr.bf16.mxu0 %v19831_v30  ;;  %9261 = vmatprep.mubr.bf16.mxu1 %v19831_v30 }
  0xc6   :  { %8740 = vmatpush1.bf16.msra.mxu0 %v17037_v9  ;;  %9232 = vmatpush1.bf16.msra.mxu1 %v17040_v10  ;;  %v17128_v9 = vld [vmem:[#allocation5 + $0x700] ss:$28 sps:$4 sm:$0xff]   ;;  %v19837_v10 = vcombine.low %v19827_v29, %v19827_v29  ;;  %v17156_v29 = vld [vmem:[#allocation5 + $0x7e8] ss:$28 sps:$4 sm:$0xff]  }
  0xc7   :  { %8741 = vmatprep.subr.bf16.mxu0 %v17045_v11  ;;  %9233 = vmatprep.subr.bf16.mxu1 %v17048_v12  ;;  %v17131_v11 = vld [vmem:[#allocation5 + $0x708] ss:$28 sps:$4 sm:$0xff]   ;;  %v17137_v12 = vld [vmem:[#allocation5 + $0x73c] ss:$28 sps:$4 sm:$0xff]  }
  0xca   :  { %8742 = vmatpush1.bf16.msra.mxu0 %v17043_v13  ;;  %9234 = vmatpush1.bf16.msra.mxu1 %v17046_v14  ;;  %v19839_v13 = vld [vmem:[#allocation2 + $0x10] sm:$0xff]  ;;  %v17140_v14 = vld [vmem:[#allocation5 + $0x744] ss:$28 sps:$4 sm:$0xff]  }
  0xcb   :  { %8743 = vmatprep.subr.bf16.mxu0 %v17051_v15  ;;  %9235 = vmatprep.subr.bf16.mxu1 %v17054_v16  ;;  %v19843_v15 = vcombine.high %v19839_v13, %v19839_v13  ;;  %v17135_v16 = vld [vmem:[#allocation5 + $0x738] ss:$28 sps:$4 sm:$0xff]  }
  0xce   :  { %8744 = vmatpush1.bf16.msra.mxu0 %v17049_v17  ;;  %9236 = vmatpush1.bf16.msra.mxu1 %v17052_v18  ;;  %v17138_v17 = vld [vmem:[#allocation5 + $0x740] ss:$28 sps:$4 sm:$0xff]   ;;  %v17143_v18 = vld [vmem:[#allocation5 + $0x774] ss:$28 sps:$4 sm:$0xff]  }
  0xcf   :  { %8745 = vmatprep.subr.bf16.mxu0 %v17057_v19  ;;  %9237 = vmatprep.subr.bf16.mxu1 %v17060_v20  ;;  %v17146_v19 = vld [vmem:[#allocation5 + $0x77c] ss:$28 sps:$4 sm:$0xff]   ;;  %v17141_v20 = vld [vmem:[#allocation5 + $0x770] ss:$28 sps:$4 sm:$0xff]  }
  0xd2   :  { %8746 = vmatpush1.bf16.msra.mxu0 %v17055_v21  ;;  %9238 = vmatpush1.bf16.msra.mxu1 %v17058_v22  ;;  %v17144_v21 = vld [vmem:[#allocation5 + $0x778] ss:$28 sps:$4 sm:$0xff]   ;;  %v17149_v22 = vld [vmem:[#allocation5 + $0x7ac] ss:$28 sps:$4 sm:$0xff]  }
  0xd3   :  { %8747 = vmatprep.subr.bf16.mxu0 %v17063_v23  ;;  %9239 = vmatprep.subr.bf16.mxu1 %v17066_v24  ;;  %v17152_v23 = vld [vmem:[#allocation5 + $0x7b4] ss:$28 sps:$4 sm:$0xff]   ;;  %v17147_v24 = vld [vmem:[#allocation5 + $0x7a8] ss:$28 sps:$4 sm:$0xff]  }
  0xd6   :  { %8748 = vmatpush1.bf16.msra.mxu0 %v17061_v25  ;;  %9240 = vmatpush1.bf16.msra.mxu1 %v17064_v26  ;;  %v17150_v25 = vld [vmem:[#allocation5 + $0x7b0] ss:$28 sps:$4 sm:$0xff]   ;;  %v17155_v26 = vld [vmem:[#allocation5 + $0x7e4] ss:$28 sps:$4 sm:$0xff]  }
  0xd7   :  { %8749 = vmatprep.subr.bf16.mxu0 %v17069_v27  ;;  %9241 = vmatprep.subr.bf16.mxu1 %v17072_v28  ;;  %v17158_v27 = vld [vmem:[#allocation5 + $0x7ec] ss:$28 sps:$4 sm:$0xff]   ;;  %v17153_v28 = vld [vmem:[#allocation5 + $0x7e0] ss:$28 sps:$4 sm:$0xff]  }
  0xda   :  { %8750 = vmatpush1.bf16.msra.mxu0 %v17067_v31  ;;  %9242 = vmatpush1.bf16.msra.mxu1 %v17070_v32  ;;  %v17161_v31 = vld [vmem:[#allocation5 + $0x81c] ss:$28 sps:$4 sm:$0xff]   ;;  %v17164_v32 = vld [vmem:[#allocation5 + $0x824] ss:$28 sps:$4 sm:$0xff]  }
  0xdb   :  { %8751 = vmatprep.subr.bf16.mxu0 %v17075_v33  ;;  %9243 = vmatprep.subr.bf16.mxu1 %v17078_v34  ;;  %v17159_v33 = vld [vmem:[#allocation5 + $0x818] ss:$28 sps:$4 sm:$0xff]   ;;  %v17162_v34 = vld [vmem:[#allocation5 + $0x820] ss:$28 sps:$4 sm:$0xff]  }
  0xde   :  { %8752 = vmatpush1.bf16.msra.mxu0 %v17073_v35  ;;  %9244 = vmatpush1.bf16.msra.mxu1 %v17076_v36  ;;  %v17167_v35 = vld [vmem:[#allocation5 + $0x854] ss:$28 sps:$4 sm:$0xff]   ;;  %v17170_v36 = vld [vmem:[#allocation5 + $0x85c] ss:$28 sps:$4 sm:$0xff]  }
  0xdf   :  { %8753 = vmatprep.subr.bf16.mxu0 %v17081_v37  ;;  %9245 = vmatprep.subr.bf16.mxu1 %v17084_v38  ;;  %v17165_v37 = vld [vmem:[#allocation5 + $0x850] ss:$28 sps:$4 sm:$0xff]   ;;  %v17168_v38 = vld [vmem:[#allocation5 + $0x858] ss:$28 sps:$4 sm:$0xff]  }
  0xe2   :  { %8754 = vmatpush1.bf16.msra.mxu0 %v17079_v39  ;;  %9246 = vmatpush1.bf16.msra.mxu1 %v17082_v40  ;;  %v17173_v39 = vld [vmem:[#allocation5 + $0x88c] ss:$28 sps:$4 sm:$0xff]   ;;  %v17176_v40 = vld [vmem:[#allocation5 + $0x894] ss:$28 sps:$4 sm:$0xff]  }
  0xe3   :  { %8755 = vmatprep.subr.bf16.mxu0 %v17087_v41  ;;  %9247 = vmatprep.subr.bf16.mxu1 %v17090_v42  ;;  %v17171_v41 = vld [vmem:[#allocation5 + $0x888] ss:$28 sps:$4 sm:$0xff]   ;;  %v17174_v42 = vld [vmem:[#allocation5 + $0x890] ss:$28 sps:$4 sm:$0xff]  }
  0xe6   :  { %8756 = vmatpush1.bf16.msra.mxu0 %v17085_v43  ;;  %9248 = vmatpush1.bf16.msra.mxu1 %v17088_v44  ;;  %v17179_v43 = vld [vmem:[#allocation5 + $0x8c4] ss:$28 sps:$4 sm:$0xff]   ;;  %v17182_v44 = vld [vmem:[#allocation5 + $0x8cc] ss:$28 sps:$4 sm:$0xff]  }
  0xe7   :  { %8757 = vmatprep.subr.bf16.mxu0 %v17093_v45  ;;  %9249 = vmatprep.subr.bf16.mxu1 %v17096_v46  ;;  %v17177_v45 = vld [vmem:[#allocation5 + $0x8c0] ss:$28 sps:$4 sm:$0xff]   ;;  %v17180_v46 = vld [vmem:[#allocation5 + $0x8c8] ss:$28 sps:$4 sm:$0xff]  }
  0xea   :  { %8758 = vmatpush1.bf16.msra.mxu0 %v17091_v47  ;;  %9250 = vmatpush1.bf16.msra.mxu1 %v17094_v49  ;;  %v17185_v47 = vld [vmem:[#allocation5 + $0x8fc] ss:$28 sps:$4 sm:$0xff]   ;;  %v17188_v49 = vld [vmem:[#allocation5 + $0x904] ss:$28 sps:$4 sm:$0xff]  }
  0xeb   :  { %8759 = vmatprep.subr.bf16.mxu0 %v17099_v50  ;;  %9251 = vmatprep.subr.bf16.mxu1 %v17102_v51  ;;  %v17183_v50 = vld [vmem:[#allocation5 + $0x8f8] ss:$28 sps:$4 sm:$0xff]   ;;  %v17186_v51 = vld [vmem:[#allocation5 + $0x900] ss:$28 sps:$4 sm:$0xff]  }
  0xee   :  { %8760 = vmatpush1.bf16.msra.mxu0 %v17097_v52  ;;  %9252 = vmatpush1.bf16.msra.mxu1 %v17100_v53  ;;  %v17191_v52 = vld [vmem:[#allocation5 + $0x934] ss:$28 sps:$4 sm:$0xff]   ;;  %v17194_v53 = vld [vmem:[#allocation5 + $0x93c] ss:$28 sps:$4 sm:$0xff]  }
  0xef   :  { %8761 = vmatprep.subr.bf16.mxu0 %v17105_v54  ;;  %9253 = vmatprep.subr.bf16.mxu1 %v17108_v55  ;;  %v17189_v54 = vld [vmem:[#allocation5 + $0x930] ss:$28 sps:$4 sm:$0xff]   ;;  %v17192_v55 = vld [vmem:[#allocation5 + $0x938] ss:$28 sps:$4 sm:$0xff]  }
  0xf2   :  { %8762 = vmatpush1.bf16.msra.mxu0 %v17103_v56  ;;  %9254 = vmatpush1.bf16.msra.mxu1 %v17106_v57  ;;  %v17197_v56 = vld [vmem:[#allocation5 + $0x96c] ss:$28 sps:$4 sm:$0xff]   ;;  %v17200_v57 = vld [vmem:[#allocation5 + $0x974] ss:$28 sps:$4 sm:$0xff]  }
  0xf3   :  { %8763 = vmatprep.subr.bf16.mxu0 %v17111_v58  ;;  %9255 = vmatprep.subr.bf16.mxu1 %v17114_v59  ;;  %v17195_v58 = vld [vmem:[#allocation5 + $0x968] ss:$28 sps:$4 sm:$0xff]   ;;  %v17198_v59 = vld [vmem:[#allocation5 + $0x970] ss:$28 sps:$4 sm:$0xff]  }
  0xf6   :  { %8764 = vmatpush1.bf16.msra.mxu0 %v17109_v60  ;;  %9256 = vmatpush1.bf16.msra.mxu1 %v17112_v61  ;;  %v17203_v60 = vld [vmem:[#allocation5 + $0x9a4] ss:$28 sps:$4 sm:$0xff]   ;;  %v17206_v61 = vld [vmem:[#allocation5 + $0x9ac] ss:$28 sps:$4 sm:$0xff]  }
  0xf7   :  { %8765 = vmatprep.subr.bf16.mxu0 %v17117_v62  ;;  %9257 = vmatprep.subr.bf16.mxu1 %v17120_v63  ;;  %v17201_v62 = vld [vmem:[#allocation5 + $0x9a0] ss:$28 sps:$4 sm:$0xff]   ;;  %v17204_v63 = vld [vmem:[#allocation5 + $0x9a8] ss:$28 sps:$4 sm:$0xff]  }
  0xfa   :  { %8766 = vmatpush1.bf16.msra.mxu0 %v17115_v0  ;;  %9258 = vmatpush1.bf16.msra.mxu1 %v17118_v1  ;;  %v17209_v0 = vld [vmem:[#allocation5 + $0x9dc] ss:$28 sps:$4 sm:$0xff]   ;;  %v17212_v1 = vld [vmem:[#allocation5 + $0x9e4] ss:$28 sps:$4 sm:$0xff]  }
  0xfb   :  { %8767 = vmatprep.subr.bf16.mxu0 %v17123_v2  ;;  %9259 = vmatprep.subr.bf16.mxu1 %v17126_v3  ;;  %v17207_v2 = vld [vmem:[#allocation5 + $0x9d8] ss:$28 sps:$4 sm:$0xff]   ;;  %v17210_v3 = vld [vmem:[#allocation5 + $0x9e0] ss:$28 sps:$4 sm:$0xff]  }
  0xfe   :  { %8768 = vmatpush1.bf16.msra.mxu0 %v17121_v4  ;;  %9260 = vmatpush1.bf16.msra.mxu1 %v17124_v6  ;;  %v17215_v4 = vld [vmem:[#allocation5 + $0xa14] ss:$28 sps:$4 sm:$0xff]   ;;  %v17218_v6 = vld [vmem:[#allocation5 + $0xa1c] ss:$28 sps:$4 sm:$0xff]  }
  0xff   :  { %8778 = vmatprep.subr.bf16.mxu0 %v17130_v7  ;;  %9270 = vmatprep.subr.bf16.mxu1 %v17133_v8  ;;  %v17213_v7 = vld [vmem:[#allocation5 + $0xa10] ss:$28 sps:$4 sm:$0xff]   ;;  %v17216_v8 = vld [vmem:[#allocation5 + $0xa18] ss:$28 sps:$4 sm:$0xff]  }
 0x101   :  { %8770 = vmatmul.mubr.bf16.vlgmr.msra.gmra.mrb[0].mxu0 %v19837_v10  ;;  %9262 = vmatmul.mubr.bf16.vlgmr.msra.gmra.mrb[0].mxu1 %v19837_v10 }
 0x102   :  { %8779 = vmatpush1.bf16.msra.mxu0 %v17128_v9  ;;  %9271 = vmatpush1.bf16.msra.mxu1 %v17131_v11  ;;  %v17221_v9 = vld [vmem:[#allocation5 + $0xa4c] ss:$28 sps:$4 sm:$0xff]   ;;  %v17224_v11 = vld [vmem:[#allocation5 + $0xa54] ss:$28 sps:$4 sm:$0xff]  }
 0x103   :  { %8780 = vmatprep.subr.bf16.mxu0 %v17137_v12  ;;  %9272 = vmatprep.subr.bf16.mxu1 %v17140_v14  ;;  %v17219_v12 = vld [vmem:[#allocation5 + $0xa48] ss:$28 sps:$4 sm:$0xff]   ;;  %v17222_v14 = vld [vmem:[#allocation5 + $0xa50] ss:$28 sps:$4 sm:$0xff]  }
 0x104   :  { %8810 = vmatprep.mubr.bf16.mxu0 %v19843_v15  ;;  %9302 = vmatprep.mubr.bf16.mxu1 %v19843_v15 }
 0x106   :  { %8781 = vmatpush1.bf16.msra.mxu0 %v17135_v16  ;;  %9273 = vmatpush1.bf16.msra.mxu1 %v17138_v17  ;;  %v17228_v16 = vld [vmem:[#allocation5 + $0xa84] ss:$28 sps:$4 sm:$0xff]   ;;  %v17231_v17 = vld [vmem:[#allocation5 + $0xa8c] ss:$28 sps:$4 sm:$0xff]  }
 0x107   :  { %8782 = vmatprep.subr.bf16.mxu0 %v17143_v18  ;;  %9274 = vmatprep.subr.bf16.mxu1 %v17146_v19  ;;  %v17226_v18 = vld [vmem:[#allocation5 + $0xa80] ss:$28 sps:$4 sm:$0xff]   ;;  %v17229_v19 = vld [vmem:[#allocation5 + $0xa88] ss:$28 sps:$4 sm:$0xff]  }
 0x10a   :  { %8783 = vmatpush1.bf16.msra.mxu0 %v17141_v20  ;;  %9275 = vmatpush1.bf16.msra.mxu1 %v17144_v21  ;;  %v19851_v20 = vcombine.low %v19839_v13, %v19839_v13  ;;  %v19853_v21 = vld [vmem:[#allocation2 + $0x18] sm:$0xff]  ;;  %v17241_v13 = vld [vmem:[#allocation5 + $0xaf4] ss:$28 sps:$4 sm:$0xff]  }
 0x10b   :  { %8784 = vmatprep.subr.bf16.mxu0 %v17149_v22  ;;  %9276 = vmatprep.subr.bf16.mxu1 %v17152_v23  ;;  %v17235_v22 = vld [vmem:[#allocation5 + $0xabc] ss:$28 sps:$4 sm:$0xff]   ;;  %v17238_v23 = vld [vmem:[#allocation5 + $0xac4] ss:$28 sps:$4 sm:$0xff]  }
 0x10e   :  { %8785 = vmatpush1.bf16.msra.mxu0 %v17147_v24  ;;  %9277 = vmatpush1.bf16.msra.mxu1 %v17150_v25  ;;  %v19857_v24 = vcombine.high %v19853_v21, %v19853_v21  ;;  %v17233_v25 = vld [vmem:[#allocation5 + $0xab8] ss:$28 sps:$4 sm:$0xff]  }
 0x10f   :  { %8786 = vmatprep.subr.bf16.mxu0 %v17155_v26  ;;  %9278 = vmatprep.subr.bf16.mxu1 %v17158_v27  ;;  %v17236_v26 = vld [vmem:[#allocation5 + $0xac0] ss:$28 sps:$4 sm:$0xff]  }
 0x110   :  { %v17244_v27 = vld [vmem:[#allocation5 + $0xafc] ss:$28 sps:$4 sm:$0xff]  }
 0x112   :  { %8787 = vmatpush1.bf16.msra.mxu0 %v17153_v28  ;;  %9279 = vmatpush1.bf16.msra.mxu1 %v17156_v29  ;;  %v17239_v28 = vld [vmem:[#allocation5 + $0xaf0] ss:$28 sps:$4 sm:$0xff]   ;;  %v17242_v29 = vld [vmem:[#allocation5 + $0xaf8] ss:$28 sps:$4 sm:$0xff]  }
 0x113   :  { %8788 = vmatprep.subr.bf16.mxu0 %v17161_v31  ;;  %9280 = vmatprep.subr.bf16.mxu1 %v17164_v32  ;;  %v17247_v31 = vld [vmem:[#allocation5 + $0xb2c] ss:$28 sps:$4 sm:$0xff]   ;;  %v17250_v32 = vld [vmem:[#allocation5 + $0xb34] ss:$28 sps:$4 sm:$0xff]  }
 0x116   :  { %8789 = vmatpush1.bf16.msra.mxu0 %v17159_v33  ;;  %9281 = vmatpush1.bf16.msra.mxu1 %v17162_v34  ;;  %v17245_v33 = vld [vmem:[#allocation5 + $0xb28] ss:$28 sps:$4 sm:$0xff]   ;;  %v17248_v34 = vld [vmem:[#allocation5 + $0xb30] ss:$28 sps:$4 sm:$0xff]  }
 0x117   :  { %8790 = vmatprep.subr.bf16.mxu0 %v17167_v35  ;;  %9282 = vmatprep.subr.bf16.mxu1 %v17170_v36  ;;  %v17253_v35 = vld [vmem:[#allocation5 + $0xb64] ss:$28 sps:$4 sm:$0xff]   ;;  %v17256_v36 = vld [vmem:[#allocation5 + $0xb6c] ss:$28 sps:$4 sm:$0xff]  }
 0x11a   :  { %8791 = vmatpush1.bf16.msra.mxu0 %v17165_v37  ;;  %9283 = vmatpush1.bf16.msra.mxu1 %v17168_v38  ;;  %v17251_v37 = vld [vmem:[#allocation5 + $0xb60] ss:$28 sps:$4 sm:$0xff]   ;;  %v17254_v38 = vld [vmem:[#allocation5 + $0xb68] ss:$28 sps:$4 sm:$0xff]  }
 0x11b   :  { %8792 = vmatprep.subr.bf16.mxu0 %v17173_v39  ;;  %9284 = vmatprep.subr.bf16.mxu1 %v17176_v40  ;;  %v17259_v39 = vld [vmem:[#allocation5 + $0xb9c] ss:$28 sps:$4 sm:$0xff]   ;;  %v17262_v40 = vld [vmem:[#allocation5 + $0xba4] ss:$28 sps:$4 sm:$0xff]  }
 0x11e   :  { %8793 = vmatpush1.bf16.msra.mxu0 %v17171_v41  ;;  %9285 = vmatpush1.bf16.msra.mxu1 %v17174_v42  ;;  %v17257_v41 = vld [vmem:[#allocation5 + $0xb98] ss:$28 sps:$4 sm:$0xff]   ;;  %v17260_v42 = vld [vmem:[#allocation5 + $0xba0] ss:$28 sps:$4 sm:$0xff]  }
 0x11f   :  { %8794 = vmatprep.subr.bf16.mxu0 %v17179_v43  ;;  %9286 = vmatprep.subr.bf16.mxu1 %v17182_v44  ;;  %v17265_v43 = vld [vmem:[#allocation5 + $0xbd4] ss:$28 sps:$4 sm:$0xff]   ;;  %v17268_v44 = vld [vmem:[#allocation5 + $0xbdc] ss:$28 sps:$4 sm:$0xff]  }
 0x122   :  { %8795 = vmatpush1.bf16.msra.mxu0 %v17177_v45  ;;  %9287 = vmatpush1.bf16.msra.mxu1 %v17180_v46  ;;  %v17263_v45 = vld [vmem:[#allocation5 + $0xbd0] ss:$28 sps:$4 sm:$0xff]   ;;  %v17266_v46 = vld [vmem:[#allocation5 + $0xbd8] ss:$28 sps:$4 sm:$0xff]  }
 0x123   :  { %8796 = vmatprep.subr.bf16.mxu0 %v17185_v47  ;;  %9288 = vmatprep.subr.bf16.mxu1 %v17188_v49  ;;  %v17271_v47 = vld [vmem:[#allocation5 + $0xc0c] ss:$28 sps:$4 sm:$0xff]   ;;  %v17274_v49 = vld [vmem:[#allocation5 + $0xc14] ss:$28 sps:$4 sm:$0xff]  }
 0x126   :  { %8797 = vmatpush1.bf16.msra.mxu0 %v17183_v50  ;;  %9289 = vmatpush1.bf16.msra.mxu1 %v17186_v51  ;;  %v17269_v50 = vld [vmem:[#allocation5 + $0xc08] ss:$28 sps:$4 sm:$0xff]   ;;  %v17272_v51 = vld [vmem:[#allocation5 + $0xc10] ss:$28 sps:$4 sm:$0xff]  }
 0x127   :  { %8798 = vmatprep.subr.bf16.mxu0 %v17191_v52  ;;  %9290 = vmatprep.subr.bf16.mxu1 %v17194_v53  ;;  %v17277_v52 = vld [vmem:[#allocation5 + $0xc44] ss:$28 sps:$4 sm:$0xff]   ;;  %v17280_v53 = vld [vmem:[#allocation5 + $0xc4c] ss:$28 sps:$4 sm:$0xff]  }
 0x12a   :  { %8799 = vmatpush1.bf16.msra.mxu0 %v17189_v54  ;;  %9291 = vmatpush1.bf16.msra.mxu1 %v17192_v55  ;;  %v17275_v54 = vld [vmem:[#allocation5 + $0xc40] ss:$28 sps:$4 sm:$0xff]   ;;  %v17278_v55 = vld [vmem:[#allocation5 + $0xc48] ss:$28 sps:$4 sm:$0xff]  }
 0x12b   :  { %8800 = vmatprep.subr.bf16.mxu0 %v17197_v56  ;;  %9292 = vmatprep.subr.bf16.mxu1 %v17200_v57  ;;  %v17283_v56 = vld [vmem:[#allocation5 + $0xc7c] ss:$28 sps:$4 sm:$0xff]   ;;  %v17286_v57 = vld [vmem:[#allocation5 + $0xc84] ss:$28 sps:$4 sm:$0xff]  }
 0x12e   :  { %8801 = vmatpush1.bf16.msra.mxu0 %v17195_v58  ;;  %9293 = vmatpush1.bf16.msra.mxu1 %v17198_v59  ;;  %v17281_v58 = vld [vmem:[#allocation5 + $0xc78] ss:$28 sps:$4 sm:$0xff]   ;;  %v17284_v59 = vld [vmem:[#allocation5 + $0xc80] ss:$28 sps:$4 sm:$0xff]  }
 0x12f   :  { %8802 = vmatprep.subr.bf16.mxu0 %v17203_v60  ;;  %9294 = vmatprep.subr.bf16.mxu1 %v17206_v61  ;;  %v17289_v60 = vld [vmem:[#allocation5 + $0xcb4] ss:$28 sps:$4 sm:$0xff]   ;;  %v17292_v61 = vld [vmem:[#allocation5 + $0xcbc] ss:$28 sps:$4 sm:$0xff]  }
 0x132   :  { %8803 = vmatpush1.bf16.msra.mxu0 %v17201_v62  ;;  %9295 = vmatpush1.bf16.msra.mxu1 %v17204_v63  ;;  %v17287_v62 = vld [vmem:[#allocation5 + $0xcb0] ss:$28 sps:$4 sm:$0xff]   ;;  %v17290_v63 = vld [vmem:[#allocation5 + $0xcb8] ss:$28 sps:$4 sm:$0xff]  }
 0x133   :  { %8804 = vmatprep.subr.bf16.mxu0 %v17209_v0  ;;  %9296 = vmatprep.subr.bf16.mxu1 %v17212_v1  ;;  %v17295_v0 = vld [vmem:[#allocation5 + $0xcec] ss:$28 sps:$4 sm:$0xff]   ;;  %v17298_v1 = vld [vmem:[#allocation5 + $0xcf4] ss:$28 sps:$4 sm:$0xff]  }
 0x136   :  { %8805 = vmatpush1.bf16.msra.mxu0 %v17207_v2  ;;  %9297 = vmatpush1.bf16.msra.mxu1 %v17210_v3  ;;  %v17293_v2 = vld [vmem:[#allocation5 + $0xce8] ss:$28 sps:$4 sm:$0xff]   ;;  %v17296_v3 = vld [vmem:[#allocation5 + $0xcf0] ss:$28 sps:$4 sm:$0xff]  }
 0x137   :  { %8806 = vmatprep.subr.bf16.mxu0 %v17215_v4  ;;  %9298 = vmatprep.subr.bf16.mxu1 %v17218_v6  ;;  %v17301_v4 = vld [vmem:[#allocation5 + $0xd24] ss:$28 sps:$4 sm:$0xff]   ;;  %v17304_v6 = vld [vmem:[#allocation5 + $0xd2c] ss:$28 sps:$4 sm:$0xff]  }
 0x13a   :  { %8807 = vmatpush1.bf16.msra.mxu0 %v17213_v7  ;;  %9299 = vmatpush1.bf16.msra.mxu1 %v17216_v8  ;;  %v17299_v7 = vld [vmem:[#allocation5 + $0xd20] ss:$28 sps:$4 sm:$0xff]   ;;  %v17302_v8 = vld [vmem:[#allocation5 + $0xd28] ss:$28 sps:$4 sm:$0xff]  }
 0x13b   :  { %8808 = vmatprep.subr.bf16.mxu0 %v17221_v9  ;;  %9300 = vmatprep.subr.bf16.mxu1 %v17224_v11  ;;  %v17307_v9 = vld [vmem:[#allocation5 + $0xd5c] ss:$28 sps:$4 sm:$0xff]   ;;  %v17310_v11 = vld [vmem:[#allocation5 + $0xd64] ss:$28 sps:$4 sm:$0xff]  }
 0x13e   :  { %8809 = vmatpush1.bf16.msra.mxu0 %v17219_v12  ;;  %9301 = vmatpush1.bf16.msra.mxu1 %v17222_v14  ;;  %v17305_v12 = vld [vmem:[#allocation5 + $0xd58] ss:$28 sps:$4 sm:$0xff]   ;;  %v17308_v14 = vld [vmem:[#allocation5 + $0xd60] ss:$28 sps:$4 sm:$0xff]  }
 0x13f   :  { %8819 = vmatprep.subr.bf16.mxu0 %v17228_v16  ;;  %9311 = vmatprep.subr.bf16.mxu1 %v17231_v17  ;;  %v17313_v16 = vld [vmem:[#allocation5 + $0xd94] ss:$28 sps:$4 sm:$0xff]   ;;  %v17316_v17 = vld [vmem:[#allocation5 + $0xd9c] ss:$28 sps:$4 sm:$0xff]  }
 0x141   :  { %8811 = vmatmul.mubr.bf16.vlgmr.msra.gmra.mrb[0].mxu0 %v19851_v20  ;;  %9303 = vmatmul.mubr.bf16.vlgmr.msra.gmra.mrb[0].mxu1 %v19851_v20 }
 0x142   :  { %8820 = vmatpush1.bf16.msra.mxu0 %v17226_v18  ;;  %9312 = vmatpush1.bf16.msra.mxu1 %v17229_v19  ;;  %v17311_v18 = vld [vmem:[#allocation5 + $0xd90] ss:$28 sps:$4 sm:$0xff]   ;;  %v17314_v19 = vld [vmem:[#allocation5 + $0xd98] ss:$28 sps:$4 sm:$0xff]  }
 0x143   :  { %8821 = vmatprep.subr.bf16.mxu0 %v17235_v22  ;;  %9313 = vmatprep.subr.bf16.mxu1 %v17238_v23  ;;  %v17319_v22 = vld [vmem:[#allocation5 + $0xdcc] ss:$28 sps:$4 sm:$0xff]   ;;  %v17322_v23 = vld [vmem:[#allocation5 + $0xdd4] ss:$28 sps:$4 sm:$0xff]  }
 0x144   :  { %8851 = vmatprep.mubr.bf16.mxu0 %v19857_v24  ;;  %9343 = vmatprep.mubr.bf16.mxu1 %v19857_v24 }
 0x146   :  { %8822 = vmatpush1.bf16.msra.mxu0 %v17233_v25  ;;  %9314 = vmatpush1.bf16.msra.mxu1 %v17236_v26  ;;  %v17317_v25 = vld [vmem:[#allocation5 + $0xdc8] ss:$28 sps:$4 sm:$0xff]   ;;  %v17320_v26 = vld [vmem:[#allocation5 + $0xdd0] ss:$28 sps:$4 sm:$0xff]  }
 0x147   :  { %8823 = vmatprep.subr.bf16.mxu0 %v17241_v13  ;;  %9315 = vmatprep.subr.bf16.mxu1 %v17244_v27  ;;  %v17326_v13 = vld [vmem:[#allocation5 + $0xe04] ss:$28 sps:$4 sm:$0xff]   ;;  %v17329_v27 = vld [vmem:[#allocation5 + $0xe0c] ss:$28 sps:$4 sm:$0xff]  }
 0x14a   :  { %8824 = vmatpush1.bf16.msra.mxu0 %v17239_v28  ;;  %9316 = vmatpush1.bf16.msra.mxu1 %v17242_v29  ;;  %v17324_v28 = vld [vmem:[#allocation5 + $0xe00] ss:$28 sps:$4 sm:$0xff]   ;;  %v19865_v29 = vcombine.low %v19853_v21, %v19853_v21  ;;  %v17331_v21 = vld [vmem:[#allocation5 + $0xe38] ss:$28 sps:$4 sm:$0xff]  }
 0x14b   :  { %8825 = vmatprep.subr.bf16.mxu0 %v17247_v31  ;;  %9317 = vmatprep.subr.bf16.mxu1 %v17250_v32  ;;  %v19867_v31 = vld [vmem:[#allocation2 + $0x20] sm:$0xff] }
 0x14c   :  { %v17327_v32 = vld [vmem:[#allocation5 + $0xe08] ss:$28 sps:$4 sm:$0xff]  }
 0x14e   :  { %8826 = vmatpush1.bf16.msra.mxu0 %v17245_v33  ;;  %9318 = vmatpush1.bf16.msra.mxu1 %v17248_v34  ;;  %v17333_v33 = vld [vmem:[#allocation5 + $0xe3c] ss:$28 sps:$4 sm:$0xff]   ;;  %v17336_v34 = vld [vmem:[#allocation5 + $0xe44] ss:$28 sps:$4 sm:$0xff]  }
 0x14f   :  { %8827 = vmatprep.subr.bf16.mxu0 %v17253_v35  ;;  %9319 = vmatprep.subr.bf16.mxu1 %v17256_v36  ;;  %v19871_v35 = vcombine.high %v19867_v31, %v19867_v31  ;;  %v17334_v36 = vld [vmem:[#allocation5 + $0xe40] ss:$28 sps:$4 sm:$0xff]  }
 0x152   :  { %8828 = vmatpush1.bf16.msra.mxu0 %v17251_v37  ;;  %9320 = vmatpush1.bf16.msra.mxu1 %v17254_v38  ;;  %v17339_v37 = vld [vmem:[#allocation5 + $0xe74] ss:$28 sps:$4 sm:$0xff]   ;;  %v17342_v38 = vld [vmem:[#allocation5 + $0xe7c] ss:$28 sps:$4 sm:$0xff]  }
 0x153   :  { %8829 = vmatprep.subr.bf16.mxu0 %v17259_v39  ;;  %9321 = vmatprep.subr.bf16.mxu1 %v17262_v40  ;;  %v17337_v39 = vld [vmem:[#allocation5 + $0xe70] ss:$28 sps:$4 sm:$0xff]   ;;  %v17340_v40 = vld [vmem:[#allocation5 + $0xe78] ss:$28 sps:$4 sm:$0xff]  }
 0x156   :  { %8830 = vmatpush1.bf16.msra.mxu0 %v17257_v41  ;;  %9322 = vmatpush1.bf16.msra.mxu1 %v17260_v42  ;;  %v17345_v41 = vld [vmem:[#allocation5 + $0xeac] ss:$28 sps:$4 sm:$0xff]   ;;  %v17348_v42 = vld [vmem:[#allocation5 + $0xeb4] ss:$28 sps:$4 sm:$0xff]  }
 0x157   :  { %8831 = vmatprep.subr.bf16.mxu0 %v17265_v43  ;;  %9323 = vmatprep.subr.bf16.mxu1 %v17268_v44  ;;  %v17343_v43 = vld [vmem:[#allocation5 + $0xea8] ss:$28 sps:$4 sm:$0xff]   ;;  %v17346_v44 = vld [vmem:[#allocation5 + $0xeb0] ss:$28 sps:$4 sm:$0xff]  }
 0x15a   :  { %8832 = vmatpush1.bf16.msra.mxu0 %v17263_v45  ;;  %9324 = vmatpush1.bf16.msra.mxu1 %v17266_v46  ;;  %v17351_v45 = vld [vmem:[#allocation5 + $0xee4] ss:$28 sps:$4 sm:$0xff]   ;;  %v17354_v46 = vld [vmem:[#allocation5 + $0xeec] ss:$28 sps:$4 sm:$0xff]  }
 0x15b   :  { %8833 = vmatprep.subr.bf16.mxu0 %v17271_v47  ;;  %9325 = vmatprep.subr.bf16.mxu1 %v17274_v49  ;;  %v17349_v47 = vld [vmem:[#allocation5 + $0xee0] ss:$28 sps:$4 sm:$0xff]   ;;  %v17352_v49 = vld [vmem:[#allocation5 + $0xee8] ss:$28 sps:$4 sm:$0xff]  }
 0x15e   :  { %8834 = vmatpush1.bf16.msra.mxu0 %v17269_v50  ;;  %9326 = vmatpush1.bf16.msra.mxu1 %v17272_v51  ;;  %v17357_v50 = vld [vmem:[#allocation5 + $0xf1c] ss:$28 sps:$4 sm:$0xff]   ;;  %v17360_v51 = vld [vmem:[#allocation5 + $0xf24] ss:$28 sps:$4 sm:$0xff]  }
 0x15f   :  { %8835 = vmatprep.subr.bf16.mxu0 %v17277_v52  ;;  %9327 = vmatprep.subr.bf16.mxu1 %v17280_v53  ;;  %v17355_v52 = vld [vmem:[#allocation5 + $0xf18] ss:$28 sps:$4 sm:$0xff]   ;;  %v17358_v53 = vld [vmem:[#allocation5 + $0xf20] ss:$28 sps:$4 sm:$0xff]  }
 0x162   :  { %8836 = vmatpush1.bf16.msra.mxu0 %v17275_v54  ;;  %9328 = vmatpush1.bf16.msra.mxu1 %v17278_v55  ;;  %v17363_v54 = vld [vmem:[#allocation5 + $0xf54] ss:$28 sps:$4 sm:$0xff]   ;;  %v17366_v55 = vld [vmem:[#allocation5 + $0xf5c] ss:$28 sps:$4 sm:$0xff]  }
 0x163   :  { %8837 = vmatprep.subr.bf16.mxu0 %v17283_v56  ;;  %9329 = vmatprep.subr.bf16.mxu1 %v17286_v57  ;;  %v17361_v56 = vld [vmem:[#allocation5 + $0xf50] ss:$28 sps:$4 sm:$0xff]   ;;  %v17364_v57 = vld [vmem:[#allocation5 + $0xf58] ss:$28 sps:$4 sm:$0xff]  }
 0x166   :  { %8838 = vmatpush1.bf16.msra.mxu0 %v17281_v58  ;;  %9330 = vmatpush1.bf16.msra.mxu1 %v17284_v59  ;;  %v17369_v58 = vld [vmem:[#allocation5 + $0xf8c] ss:$28 sps:$4 sm:$0xff]   ;;  %v17372_v59 = vld [vmem:[#allocation5 + $0xf94] ss:$28 sps:$4 sm:$0xff]  }
 0x167   :  { %8839 = vmatprep.subr.bf16.mxu0 %v17289_v60  ;;  %9331 = vmatprep.subr.bf16.mxu1 %v17292_v61  ;;  %v17367_v60 = vld [vmem:[#allocation5 + $0xf88] ss:$28 sps:$4 sm:$0xff]   ;;  %v17370_v61 = vld [vmem:[#allocation5 + $0xf90] ss:$28 sps:$4 sm:$0xff]  }
 0x16a   :  { %8840 = vmatpush1.bf16.msra.mxu0 %v17287_v62  ;;  %9332 = vmatpush1.bf16.msra.mxu1 %v17290_v63  ;;  %v17375_v62 = vld [vmem:[#allocation5 + $0xfc4] ss:$28 sps:$4 sm:$0xff]   ;;  %v17378_v63 = vld [vmem:[#allocation5 + $0xfcc] ss:$28 sps:$4 sm:$0xff]  }
 0x16b   :  { %8841 = vmatprep.subr.bf16.mxu0 %v17295_v0  ;;  %9333 = vmatprep.subr.bf16.mxu1 %v17298_v1  ;;  %v17373_v0 = vld [vmem:[#allocation5 + $0xfc0] ss:$28 sps:$4 sm:$0xff]   ;;  %v17376_v1 = vld [vmem:[#allocation5 + $0xfc8] ss:$28 sps:$4 sm:$0xff]  }
 0x16e   :  { %8842 = vmatpush1.bf16.msra.mxu0 %v17293_v2  ;;  %9334 = vmatpush1.bf16.msra.mxu1 %v17296_v3  ;;  %v17381_v2 = vld [vmem:[#allocation5 + $0xffc] ss:$28 sps:$4 sm:$0xff]   ;;  %v17384_v3 = vld [vmem:[#allocation5 + $0x1004] ss:$28 sps:$4 sm:$0xff]  }
 0x16f   :  { %8843 = vmatprep.subr.bf16.mxu0 %v17301_v4  ;;  %9335 = vmatprep.subr.bf16.mxu1 %v17304_v6  ;;  %v17379_v4 = vld [vmem:[#allocation5 + $0xff8] ss:$28 sps:$4 sm:$0xff]   ;;  %v17382_v6 = vld [vmem:[#allocation5 + $0x1000] ss:$28 sps:$4 sm:$0xff]  }
 0x172   :  { %8844 = vmatpush1.bf16.msra.mxu0 %v17299_v7  ;;  %9336 = vmatpush1.bf16.msra.mxu1 %v17302_v8  ;;  %v17387_v7 = vld [vmem:[#allocation5 + $0x1034] ss:$28 sps:$4 sm:$0xff]   ;;  %v17390_v8 = vld [vmem:[#allocation5 + $0x103c] ss:$28 sps:$4 sm:$0xff]  }
 0x173   :  { %8845 = vmatprep.subr.bf16.mxu0 %v17307_v9  ;;  %9337 = vmatprep.subr.bf16.mxu1 %v17310_v11  ;;  %v17385_v9 = vld [vmem:[#allocation5 + $0x1030] ss:$28 sps:$4 sm:$0xff]   ;;  %v17388_v11 = vld [vmem:[#allocation5 + $0x1038] ss:$28 sps:$4 sm:$0xff]  }
 0x176   :  { %8846 = vmatpush1.bf16.msra.mxu0 %v17305_v12  ;;  %9338 = vmatpush1.bf16.msra.mxu1 %v17308_v14  ;;  %v17393_v12 = vld [vmem:[#allocation5 + $0x106c] ss:$28 sps:$4 sm:$0xff]   ;;  %v17396_v14 = vld [vmem:[#allocation5 + $0x1074] ss:$28 sps:$4 sm:$0xff]  }
 0x177   :  { %8847 = vmatprep.subr.bf16.mxu0 %v17313_v16  ;;  %9339 = vmatprep.subr.bf16.mxu1 %v17316_v17  ;;  %v17391_v16 = vld [vmem:[#allocation5 + $0x1068] ss:$28 sps:$4 sm:$0xff]   ;;  %v17394_v17 = vld [vmem:[#allocation5 + $0x1070] ss:$28 sps:$4 sm:$0xff]  }
 0x17a   :  { %8848 = vmatpush1.bf16.msra.mxu0 %v17311_v18  ;;  %9340 = vmatpush1.bf16.msra.mxu1 %v17314_v19  ;;  %v17399_v18 = vld [vmem:[#allocation5 + $0x10a4] ss:$28 sps:$4 sm:$0xff]   ;;  %v17402_v19 = vld [vmem:[#allocation5 + $0x10ac] ss:$28 sps:$4 sm:$0xff]  }
 0x17b   :  { %8849 = vmatprep.subr.bf16.mxu0 %v17319_v22  ;;  %9341 = vmatprep.subr.bf16.mxu1 %v17322_v23  ;;  %v17397_v22 = vld [vmem:[#allocation5 + $0x10a0] ss:$28 sps:$4 sm:$0xff]   ;;  %v17400_v23 = vld [vmem:[#allocation5 + $0x10a8] ss:$28 sps:$4 sm:$0xff]  }
 0x17e   :  { %8850 = vmatpush1.bf16.msra.mxu0 %v17317_v25  ;;  %9342 = vmatpush1.bf16.msra.mxu1 %v17320_v26  ;;  %v17405_v25 = vld [vmem:[#allocation5 + $0x10dc] ss:$28 sps:$4 sm:$0xff]   ;;  %v17408_v26 = vld [vmem:[#allocation5 + $0x10e4] ss:$28 sps:$4 sm:$0xff]  }
 0x17f   :  { %8860 = vmatprep.subr.bf16.mxu0 %v17326_v13  ;;  %9352 = vmatprep.subr.bf16.mxu1 %v17329_v27  ;;  %v17403_v13 = vld [vmem:[#allocation5 + $0x10d8] ss:$28 sps:$4 sm:$0xff]   ;;  %v17406_v27 = vld [vmem:[#allocation5 + $0x10e0] ss:$28 sps:$4 sm:$0xff]  }
 0x181   :  { %8852 = vmatmul.mubr.bf16.vlgmr.msra.gmra.mrb[0].mxu0 %v19865_v29  ;;  %9344 = vmatmul.mubr.bf16.vlgmr.msra.gmra.mrb[0].mxu1 %v19865_v29 }
 0x182   :  { %8861 = vmatpush1.bf16.msra.mxu0 %v17324_v28  ;;  %9353 = vmatpush1.bf16.msra.mxu1 %v17327_v32  ;;  %v17411_v28 = vld [vmem:[#allocation5 + $0x1114] ss:$28 sps:$4 sm:$0xff]   ;;  %v17414_v32 = vld [vmem:[#allocation5 + $0x111c] ss:$28 sps:$4 sm:$0xff]  }
 0x183   :  { %8862 = vmatprep.subr.bf16.mxu0 %v17333_v33  ;;  %9354 = vmatprep.subr.bf16.mxu1 %v17336_v34  ;;  %v17409_v33 = vld [vmem:[#allocation5 + $0x1110] ss:$28 sps:$4 sm:$0xff]   ;;  %v17412_v34 = vld [vmem:[#allocation5 + $0x1118] ss:$28 sps:$4 sm:$0xff]  }
 0x184   :  { %8892 = vmatprep.mubr.bf16.mxu0 %v19871_v35  ;;  %9384 = vmatprep.mubr.bf16.mxu1 %v19871_v35 }
 0x186   :  { %8863 = vmatpush1.bf16.msra.mxu0 %v17331_v21  ;;  %9355 = vmatpush1.bf16.msra.mxu1 %v17334_v36  ;;  %v17417_v21 = vld [vmem:[#allocation5 + $0x114c] ss:$28 sps:$4 sm:$0xff]   ;;  %v17420_v36 = vld [vmem:[#allocation5 + $0x1154] ss:$28 sps:$4 sm:$0xff]  }
 0x187   :  { %8864 = vmatprep.subr.bf16.mxu0 %v17339_v37  ;;  %9356 = vmatprep.subr.bf16.mxu1 %v17342_v38  ;;  %v17415_v37 = vld [vmem:[#allocation5 + $0x1148] ss:$28 sps:$4 sm:$0xff]   ;;  %v17418_v38 = vld [vmem:[#allocation5 + $0x1150] ss:$28 sps:$4 sm:$0xff]  }
 0x18a   :  { %8865 = vmatpush1.bf16.msra.mxu0 %v17337_v39  ;;  %9357 = vmatpush1.bf16.msra.mxu1 %v17340_v40  ;;  %v17424_v39 = vld [vmem:[#allocation5 + $0x1184] ss:$28 sps:$4 sm:$0xff]   ;;  %v17427_v40 = vld [vmem:[#allocation5 + $0x118c] ss:$28 sps:$4 sm:$0xff]  }
 0x18b   :  { %8866 = vmatprep.subr.bf16.mxu0 %v17345_v41  ;;  %9358 = vmatprep.subr.bf16.mxu1 %v17348_v42  ;;  %v19877_v41 = vld [vmem:[#allocation2 + $0x28] sm:$0xff]  ;;  %v19881_v42 = vcombine.low %v19867_v31, %v19867_v31  ;;  %v17429_v31 = vld [vmem:[#allocation5 + $0x11b8] ss:$28 sps:$4 sm:$0xff]  }
 0x18e   :  { %8867 = vmatpush1.bf16.msra.mxu0 %v17343_v43  ;;  %9359 = vmatpush1.bf16.msra.mxu1 %v17346_v44  ;;  %v17422_v43 = vld [vmem:[#allocation5 + $0x1180] ss:$28 sps:$4 sm:$0xff]   ;;  %v17425_v44 = vld [vmem:[#allocation5 + $0x1188] ss:$28 sps:$4 sm:$0xff]  }
 0x18f   :  { %8868 = vmatprep.subr.bf16.mxu0 %v17351_v45  ;;  %9360 = vmatprep.subr.bf16.mxu1 %v17354_v46  ;;  %v17431_v45 = vld [vmem:[#allocation5 + $0x11bc] ss:$28 sps:$4 sm:$0xff]   ;;  %v17434_v46 = vld [vmem:[#allocation5 + $0x11c4] ss:$28 sps:$4 sm:$0xff]  }
 0x192   :  { %8869 = vmatpush1.bf16.msra.mxu0 %v17349_v47  ;;  %9361 = vmatpush1.bf16.msra.mxu1 %v17352_v49  ;;  %v19885_v47 = vcombine.high %v19877_v41, %v19877_v41  ;;  %v17432_v49 = vld [vmem:[#allocation5 + $0x11c0] ss:$28 sps:$4 sm:$0xff]  }
 0x193   :  { %8870 = vmatprep.subr.bf16.mxu0 %v17357_v50  ;;  %9362 = vmatprep.subr.bf16.mxu1 %v17360_v51  ;;  %v17437_v50 = vld [vmem:[#allocation5 + $0x11f4] ss:$28 sps:$4 sm:$0xff]   ;;  %v17440_v51 = vld [vmem:[#allocation5 + $0x11fc] ss:$28 sps:$4 sm:$0xff]  }
 0x196   :  { %8871 = vmatpush1.bf16.msra.mxu0 %v17355_v52  ;;  %9363 = vmatpush1.bf16.msra.mxu1 %v17358_v53  ;;  %v17435_v52 = vld [vmem:[#allocation5 + $0x11f0] ss:$28 sps:$4 sm:$0xff]   ;;  %v17438_v53 = vld [vmem:[#allocation5 + $0x11f8] ss:$28 sps:$4 sm:$0xff]  }
 0x197   :  { %8872 = vmatprep.subr.bf16.mxu0 %v17363_v54  ;;  %9364 = vmatprep.subr.bf16.mxu1 %v17366_v55  ;;  %v17443_v54 = vld [vmem:[#allocation5 + $0x122c] ss:$28 sps:$4 sm:$0xff]   ;;  %v17446_v55 = vld [vmem:[#allocation5 + $0x1234] ss:$28 sps:$4 sm:$0xff]  }
 0x19a   :  { %8873 = vmatpush1.bf16.msra.mxu0 %v17361_v56  ;;  %9365 = vmatpush1.bf16.msra.mxu1 %v17364_v57  ;;  %v17441_v56 = vld [vmem:[#allocation5 + $0x1228] ss:$28 sps:$4 sm:$0xff]   ;;  %v17444_v57 = vld [vmem:[#allocation5 + $0x1230] ss:$28 sps:$4 sm:$0xff]  }
 0x19b   :  { %8874 = vmatprep.subr.bf16.mxu0 %v17369_v58  ;;  %9366 = vmatprep.subr.bf16.mxu1 %v17372_v59  ;;  %v17449_v58 = vld [vmem:[#allocation5 + $0x1264] ss:$28 sps:$4 sm:$0xff]   ;;  %v17452_v59 = vld [vmem:[#allocation5 + $0x126c] ss:$28 sps:$4 sm:$0xff]  }
 0x19e   :  { %8875 = vmatpush1.bf16.msra.mxu0 %v17367_v60  ;;  %9367 = vmatpush1.bf16.msra.mxu1 %v17370_v61  ;;  %v17447_v60 = vld [vmem:[#allocation5 + $0x1260] ss:$28 sps:$4 sm:$0xff]   ;;  %v17450_v61 = vld [vmem:[#allocation5 + $0x1268] ss:$28 sps:$4 sm:$0xff]  }
 0x19f   :  { %8876 = vmatprep.subr.bf16.mxu0 %v17375_v62  ;;  %9368 = vmatprep.subr.bf16.mxu1 %v17378_v63  ;;  %v17455_v62 = vld [vmem:[#allocation5 + $0x129c] ss:$28 sps:$4 sm:$0xff]   ;;  %v17458_v63 = vld [vmem:[#allocation5 + $0x12a4] ss:$28 sps:$4 sm:$0xff]  }
 0x1a2   :  { %8877 = vmatpush1.bf16.msra.mxu0 %v17373_v0  ;;  %9369 = vmatpush1.bf16.msra.mxu1 %v17376_v1  ;;  %v17453_v0 = vld [vmem:[#allocation5 + $0x1298] ss:$28 sps:$4 sm:$0xff]   ;;  %v17456_v1 = vld [vmem:[#allocation5 + $0x12a0] ss:$28 sps:$4 sm:$0xff]  }
 0x1a3   :  { %8878 = vmatprep.subr.bf16.mxu0 %v17381_v2  ;;  %9370 = vmatprep.subr.bf16.mxu1 %v17384_v3  ;;  %v17461_v2 = vld [vmem:[#allocation5 + $0x12d4] ss:$28 sps:$4 sm:$0xff]   ;;  %v17464_v3 = vld [vmem:[#allocation5 + $0x12dc] ss:$28 sps:$4 sm:$0xff]  }
 0x1a6   :  { %8879 = vmatpush1.bf16.msra.mxu0 %v17379_v4  ;;  %9371 = vmatpush1.bf16.msra.mxu1 %v17382_v6  ;;  %v17459_v4 = vld [vmem:[#allocation5 + $0x12d0] ss:$28 sps:$4 sm:$0xff]   ;;  %v17462_v6 = vld [vmem:[#allocation5 + $0x12d8] ss:$28 sps:$4 sm:$0xff]  }
 0x1a7   :  { %8880 = vmatprep.subr.bf16.mxu0 %v17387_v7  ;;  %9372 = vmatprep.subr.bf16.mxu1 %v17390_v8  ;;  %v17467_v7 = vld [vmem:[#allocation5 + $0x130c] ss:$28 sps:$4 sm:$0xff]   ;;  %v17470_v8 = vld [vmem:[#allocation5 + $0x1314] ss:$28 sps:$4 sm:$0xff]  }
 0x1aa   :  { %8881 = vmatpush1.bf16.msra.mxu0 %v17385_v9  ;;  %9373 = vmatpush1.bf16.msra.mxu1 %v17388_v11  ;;  %v17465_v9 = vld [vmem:[#allocation5 + $0x1308] ss:$28 sps:$4 sm:$0xff]   ;;  %v17468_v11 = vld [vmem:[#allocation5 + $0x1310] ss:$28 sps:$4 sm:$0xff]  }
 0x1ab   :  { %8882 = vmatprep.subr.bf16.mxu0 %v17393_v12  ;;  %9374 = vmatprep.subr.bf16.mxu1 %v17396_v14  ;;  %v17473_v12 = vld [vmem:[#allocation5 + $0x1344] ss:$28 sps:$4 sm:$0xff]   ;;  %v17476_v14 = vld [vmem:[#allocation5 + $0x134c] ss:$28 sps:$4 sm:$0xff]  }
 0x1ae   :  { %8883 = vmatpush1.bf16.msra.mxu0 %v17391_v16  ;;  %9375 = vmatpush1.bf16.msra.mxu1 %v17394_v17  ;;  %v17471_v16 = vld [vmem:[#allocation5 + $0x1340] ss:$28 sps:$4 sm:$0xff]   ;;  %v17474_v17 = vld [vmem:[#allocation5 + $0x1348] ss:$28 sps:$4 sm:$0xff]  }
 0x1af   :  { %8884 = vmatprep.subr.bf16.mxu0 %v17399_v18  ;;  %9376 = vmatprep.subr.bf16.mxu1 %v17402_v19  ;;  %v17479_v18 = vld [vmem:[#allocation5 + $0x137c] ss:$28 sps:$4 sm:$0xff]   ;;  %v17482_v19 = vld [vmem:[#allocation5 + $0x1384] ss:$28 sps:$4 sm:$0xff]  }
 0x1b2   :  { %8885 = vmatpush1.bf16.msra.mxu0 %v17397_v22  ;;  %9377 = vmatpush1.bf16.msra.mxu1 %v17400_v23  ;;  %v17477_v22 = vld [vmem:[#allocation5 + $0x1378] ss:$28 sps:$4 sm:$0xff]   ;;  %v17480_v23 = vld [vmem:[#allocation5 + $0x1380] ss:$28 sps:$4 sm:$0xff]  }
 0x1b3   :  { %8886 = vmatprep.subr.bf16.mxu0 %v17405_v25  ;;  %9378 = vmatprep.subr.bf16.mxu1 %v17408_v26  ;;  %v17485_v25 = vld [vmem:[#allocation5 + $0x13b4] ss:$28 sps:$4 sm:$0xff]   ;;  %v17488_v26 = vld [vmem:[#allocation5 + $0x13bc] ss:$28 sps:$4 sm:$0xff]  }
 0x1b6   :  { %8887 = vmatpush1.bf16.msra.mxu0 %v17403_v13  ;;  %9379 = vmatpush1.bf16.msra.mxu1 %v17406_v27  ;;  %v17483_v13 = vld [vmem:[#allocation5 + $0x13b0] ss:$28 sps:$4 sm:$0xff]   ;;  %v17486_v27 = vld [vmem:[#allocation5 + $0x13b8] ss:$28 sps:$4 sm:$0xff]  }
 0x1b7   :  { %8888 = vmatprep.subr.bf16.mxu0 %v17411_v28  ;;  %9380 = vmatprep.subr.bf16.mxu1 %v17414_v32  ;;  %v17491_v28 = vld [vmem:[#allocation5 + $0x13ec] ss:$28 sps:$4 sm:$0xff]   ;;  %v17494_v32 = vld [vmem:[#allocation5 + $0x13f4] ss:$28 sps:$4 sm:$0xff]  }
 0x1ba   :  { %8889 = vmatpush1.bf16.msra.mxu0 %v17409_v33  ;;  %9381 = vmatpush1.bf16.msra.mxu1 %v17412_v34  ;;  %v17489_v33 = vld [vmem:[#allocation5 + $0x13e8] ss:$28 sps:$4 sm:$0xff]   ;;  %v17492_v34 = vld [vmem:[#allocation5 + $0x13f0] ss:$28 sps:$4 sm:$0xff]  }
 0x1bb   :  { %8890 = vmatprep.subr.bf16.mxu0 %v17417_v21  ;;  %9382 = vmatprep.subr.bf16.mxu1 %v17420_v36  ;;  %v17497_v21 = vld [vmem:[#allocation5 + $0x1424] ss:$28 sps:$4 sm:$0xff]   ;;  %v17500_v36 = vld [vmem:[#allocation5 + $0x142c] ss:$28 sps:$4 sm:$0xff]  }
 0x1be   :  { %8891 = vmatpush1.bf16.msra.mxu0 %v17415_v37  ;;  %9383 = vmatpush1.bf16.msra.mxu1 %v17418_v38  ;;  %v17495_v37 = vld [vmem:[#allocation5 + $0x1420] ss:$28 sps:$4 sm:$0xff]   ;;  %v17498_v38 = vld [vmem:[#allocation5 + $0x1428] ss:$28 sps:$4 sm:$0xff]  }
 0x1bf   :  { %8901 = vmatprep.subr.bf16.mxu0 %v17424_v39  ;;  %9393 = vmatprep.subr.bf16.mxu1 %v17427_v40  ;;  %v17503_v39 = vld [vmem:[#allocation5 + $0x145c] ss:$28 sps:$4 sm:$0xff]   ;;  %v17506_v40 = vld [vmem:[#allocation5 + $0x1464] ss:$28 sps:$4 sm:$0xff]  }
 0x1c1   :  { %8893 = vmatmul.mubr.bf16.vlgmr.msra.gmra.mrb[0].mxu0 %v19881_v42  ;;  %9385 = vmatmul.mubr.bf16.vlgmr.msra.gmra.mrb[0].mxu1 %v19881_v42 }
 0x1c2   :  { %8902 = vmatpush1.bf16.msra.mxu0 %v17422_v43  ;;  %9394 = vmatpush1.bf16.msra.mxu1 %v17425_v44  ;;  %v17501_v43 = vld [vmem:[#allocation5 + $0x1458] ss:$28 sps:$4 sm:$0xff]   ;;  %v17504_v44 = vld [vmem:[#allocation5 + $0x1460] ss:$28 sps:$4 sm:$0xff]  }
 0x1c3   :  { %8903 = vmatprep.subr.bf16.mxu0 %v17431_v45  ;;  %9395 = vmatprep.subr.bf16.mxu1 %v17434_v46  ;;  %v17509_v45 = vld [vmem:[#allocation5 + $0x1494] ss:$28 sps:$4 sm:$0xff]   ;;  %v17512_v46 = vld [vmem:[#allocation5 + $0x149c] ss:$28 sps:$4 sm:$0xff]  }
 0x1c4   :  { %8933 = vmatprep.mubr.bf16.mxu0 %v19885_v47  ;;  %9425 = vmatprep.mubr.bf16.mxu1 %v19885_v47 }
 0x1c6   :  { %8904 = vmatpush1.bf16.msra.mxu0 %v17429_v31  ;;  %9396 = vmatpush1.bf16.msra.mxu1 %v17432_v49  ;;  %v17507_v31 = vld [vmem:[#allocation5 + $0x1490] ss:$28 sps:$4 sm:$0xff]   ;;  %v17510_v49 = vld [vmem:[#allocation5 + $0x1498] ss:$28 sps:$4 sm:$0xff]  }
 0x1c7   :  { %8905 = vmatprep.subr.bf16.mxu0 %v17437_v50  ;;  %9397 = vmatprep.subr.bf16.mxu1 %v17440_v51  ;;  %v17515_v50 = vld [vmem:[#allocation5 + $0x14cc] ss:$28 sps:$4 sm:$0xff]   ;;  %v17518_v51 = vld [vmem:[#allocation5 + $0x14d4] ss:$28 sps:$4 sm:$0xff]  }
 0x1ca   :  { %8906 = vmatpush1.bf16.msra.mxu0 %v17435_v52  ;;  %9398 = vmatpush1.bf16.msra.mxu1 %v17438_v53  ;;  %v17513_v52 = vld [vmem:[#allocation5 + $0x14c8] ss:$28 sps:$4 sm:$0xff]   ;;  %v17516_v53 = vld [vmem:[#allocation5 + $0x14d0] ss:$28 sps:$4 sm:$0xff]  }
 0x1cb   :  { %8907 = vmatprep.subr.bf16.mxu0 %v17443_v54  ;;  %9399 = vmatprep.subr.bf16.mxu1 %v17446_v55  ;;  %v17522_v54 = vld [vmem:[#allocation5 + $0x1504] ss:$28 sps:$4 sm:$0xff]   ;;  %v17525_v55 = vld [vmem:[#allocation5 + $0x150c] ss:$28 sps:$4 sm:$0xff]  }
 0x1ce   :  { %8908 = vmatpush1.bf16.msra.mxu0 %v17441_v56  ;;  %9400 = vmatpush1.bf16.msra.mxu1 %v17444_v57  ;;  %v19891_v56 = vld [vmem:[#allocation2 + $0x30] sm:$0xff]  ;;  %v19895_v57 = vcombine.low %v19877_v41, %v19877_v41 }
 0x1cf   :  { %8909 = vmatprep.subr.bf16.mxu0 %v17449_v58  ;;  %9401 = vmatprep.subr.bf16.mxu1 %v17452_v59  ;;  %v17520_v58 = vld [vmem:[#allocation5 + $0x1500] ss:$28 sps:$4 sm:$0xff]   ;;  %v17523_v59 = vld [vmem:[#allocation5 + $0x1508] ss:$28 sps:$4 sm:$0xff]   ;;  %v17527_v41 = vld [vmem:[#allocation5 + $0x1538] ss:$28 sps:$4 sm:$0xff]  }
 0x1d2   :  { %8910 = vmatpush1.bf16.msra.mxu0 %v17447_v60  ;;  %9402 = vmatpush1.bf16.msra.mxu1 %v17450_v61  ;;  %v17529_v60 = vld [vmem:[#allocation5 + $0x153c] ss:$28 sps:$4 sm:$0xff]   ;;  %v17532_v61 = vld [vmem:[#allocation5 + $0x1544] ss:$28 sps:$4 sm:$0xff]  }
 0x1d3   :  { %8911 = vmatprep.subr.bf16.mxu0 %v17455_v62  ;;  %9403 = vmatprep.subr.bf16.mxu1 %v17458_v63  ;;  %v19899_v62 = vcombine.high %v19891_v56, %v19891_v56  ;;  %v17530_v63 = vld [vmem:[#allocation5 + $0x1540] ss:$28 sps:$4 sm:$0xff]  }
 0x1d6   :  { %8912 = vmatpush1.bf16.msra.mxu0 %v17453_v0  ;;  %9404 = vmatpush1.bf16.msra.mxu1 %v17456_v1  ;;  %v17535_v0 = vld [vmem:[#allocation5 + $0x1574] ss:$28 sps:$4 sm:$0xff]   ;;  %v17538_v1 = vld [vmem:[#allocation5 + $0x157c] ss:$28 sps:$4 sm:$0xff]  }
 0x1d7   :  { %8913 = vmatprep.subr.bf16.mxu0 %v17461_v2  ;;  %9405 = vmatprep.subr.bf16.mxu1 %v17464_v3  ;;  %v17533_v2 = vld [vmem:[#allocation5 + $0x1570] ss:$28 sps:$4 sm:$0xff]   ;;  %v17536_v3 = vld [vmem:[#allocation5 + $0x1578] ss:$28 sps:$4 sm:$0xff]  }
 0x1da   :  { %8914 = vmatpush1.bf16.msra.mxu0 %v17459_v4  ;;  %9406 = vmatpush1.bf16.msra.mxu1 %v17462_v6  ;;  %v17541_v4 = vld [vmem:[#allocation5 + $0x15ac] ss:$28 sps:$4 sm:$0xff]   ;;  %v17544_v6 = vld [vmem:[#allocation5 + $0x15b4] ss:$28 sps:$4 sm:$0xff]  }
 0x1db   :  { %8915 = vmatprep.subr.bf16.mxu0 %v17467_v7  ;;  %9407 = vmatprep.subr.bf16.mxu1 %v17470_v8  ;;  %v17539_v7 = vld [vmem:[#allocation5 + $0x15a8] ss:$28 sps:$4 sm:$0xff]   ;;  %v17542_v8 = vld [vmem:[#allocation5 + $0x15b0] ss:$28 sps:$4 sm:$0xff]  }
 0x1de   :  { %8916 = vmatpush1.bf16.msra.mxu0 %v17465_v9  ;;  %9408 = vmatpush1.bf16.msra.mxu1 %v17468_v11  ;;  %v17547_v9 = vld [vmem:[#allocation5 + $0x15e4] ss:$28 sps:$4 sm:$0xff]   ;;  %v17550_v11 = vld [vmem:[#allocation5 + $0x15ec] ss:$28 sps:$4 sm:$0xff]  }
 0x1df   :  { %8917 = vmatprep.subr.bf16.mxu0 %v17473_v12  ;;  %9409 = vmatprep.subr.bf16.mxu1 %v17476_v14  ;;  %v17545_v12 = vld [vmem:[#allocation5 + $0x15e0] ss:$28 sps:$4 sm:$0xff]   ;;  %v17548_v14 = vld [vmem:[#allocation5 + $0x15e8] ss:$28 sps:$4 sm:$0xff]  }
 0x1e2   :  { %8918 = vmatpush1.bf16.msra.mxu0 %v17471_v16  ;;  %9410 = vmatpush1.bf16.msra.mxu1 %v17474_v17  ;;  %v17553_v16 = vld [vmem:[#allocation5 + $0x161c] ss:$28 sps:$4 sm:$0xff]   ;;  %v17556_v17 = vld [vmem:[#allocation5 + $0x1624] ss:$28 sps:$4 sm:$0xff]  }
 0x1e3   :  { %8919 = vmatprep.subr.bf16.mxu0 %v17479_v18  ;;  %9411 = vmatprep.subr.bf16.mxu1 %v17482_v19  ;;  %v17551_v18 = vld [vmem:[#allocation5 + $0x1618] ss:$28 sps:$4 sm:$0xff]   ;;  %v17554_v19 = vld [vmem:[#allocation5 + $0x1620] ss:$28 sps:$4 sm:$0xff]  }
 0x1e6   :  { %8920 = vmatpush1.bf16.msra.mxu0 %v17477_v22  ;;  %9412 = vmatpush1.bf16.msra.mxu1 %v17480_v23  ;;  %v17559_v22 = vld [vmem:[#allocation5 + $0x1654] ss:$28 sps:$4 sm:$0xff]   ;;  %v17562_v23 = vld [vmem:[#allocation5 + $0x165c] ss:$28 sps:$4 sm:$0xff]  }
 0x1e7   :  { %8921 = vmatprep.subr.bf16.mxu0 %v17485_v25  ;;  %9413 = vmatprep.subr.bf16.mxu1 %v17488_v26  ;;  %v17557_v25 = vld [vmem:[#allocation5 + $0x1650] ss:$28 sps:$4 sm:$0xff]   ;;  %v17560_v26 = vld [vmem:[#allocation5 + $0x1658] ss:$28 sps:$4 sm:$0xff]  }
 0x1ea   :  { %8922 = vmatpush1.bf16.msra.mxu0 %v17483_v13  ;;  %9414 = vmatpush1.bf16.msra.mxu1 %v17486_v27  ;;  %v17565_v13 = vld [vmem:[#allocation5 + $0x168c] ss:$28 sps:$4 sm:$0xff]   ;;  %v17568_v27 = vld [vmem:[#allocation5 + $0x1694] ss:$28 sps:$4 sm:$0xff]  }
 0x1eb   :  { %8923 = vmatprep.subr.bf16.mxu0 %v17491_v28  ;;  %9415 = vmatprep.subr.bf16.mxu1 %v17494_v32  ;;  %v17563_v28 = vld [vmem:[#allocation5 + $0x1688] ss:$28 sps:$4 sm:$0xff]   ;;  %v17566_v32 = vld [vmem:[#allocation5 + $0x1690] ss:$28 sps:$4 sm:$0xff]  }
 0x1ee   :  { %8924 = vmatpush1.bf16.msra.mxu0 %v17489_v33  ;;  %9416 = vmatpush1.bf16.msra.mxu1 %v17492_v34  ;;  %v17571_v33 = vld [vmem:[#allocation5 + $0x16c4] ss:$28 sps:$4 sm:$0xff]   ;;  %v17574_v34 = vld [vmem:[#allocation5 + $0x16cc] ss:$28 sps:$4 sm:$0xff]  }
 0x1ef   :  { %8925 = vmatprep.subr.bf16.mxu0 %v17497_v21  ;;  %9417 = vmatprep.subr.bf16.mxu1 %v17500_v36  ;;  %v17569_v21 = vld [vmem:[#allocation5 + $0x16c0] ss:$28 sps:$4 sm:$0xff]   ;;  %v17572_v36 = vld [vmem:[#allocation5 + $0x16c8] ss:$28 sps:$4 sm:$0xff]  }
 0x1f2   :  { %8926 = vmatpush1.bf16.msra.mxu0 %v17495_v37  ;;  %9418 = vmatpush1.bf16.msra.mxu1 %v17498_v38  ;;  %v17577_v37 = vld [vmem:[#allocation5 + $0x16fc] ss:$28 sps:$4 sm:$0xff]   ;;  %v17580_v38 = vld [vmem:[#allocation5 + $0x1704] ss:$28 sps:$4 sm:$0xff]  }
 0x1f3   :  { %8927 = vmatprep.subr.bf16.mxu0 %v17503_v39  ;;  %9419 = vmatprep.subr.bf16.mxu1 %v17506_v40  ;;  %v17575_v39 = vld [vmem:[#allocation5 + $0x16f8] ss:$28 sps:$4 sm:$0xff]   ;;  %v17578_v40 = vld [vmem:[#allocation5 + $0x1700] ss:$28 sps:$4 sm:$0xff]  }
 0x1f6   :  { %8928 = vmatpush1.bf16.msra.mxu0 %v17501_v43  ;;  %9420 = vmatpush1.bf16.msra.mxu1 %v17504_v44  ;;  %v17583_v43 = vld [vmem:[#allocation5 + $0x1734] ss:$28 sps:$4 sm:$0xff]   ;;  %v17586_v44 = vld [vmem:[#allocation5 + $0x173c] ss:$28 sps:$4 sm:$0xff]  }
 0x1f7   :  { %8929 = vmatprep.subr.bf16.mxu0 %v17509_v45  ;;  %9421 = vmatprep.subr.bf16.mxu1 %v17512_v46  ;;  %v17581_v45 = vld [vmem:[#allocation5 + $0x1730] ss:$28 sps:$4 sm:$0xff]   ;;  %v17584_v46 = vld [vmem:[#allocation5 + $0x1738] ss:$28 sps:$4 sm:$0xff]  }
 0x1fa   :  { %8930 = vmatpush1.bf16.msra.mxu0 %v17507_v31  ;;  %9422 = vmatpush1.bf16.msra.mxu1 %v17510_v49  ;;  %v17589_v31 = vld [vmem:[#allocation5 + $0x176c] ss:$28 sps:$4 sm:$0xff]   ;;  %v17592_v49 = vld [vmem:[#allocation5 + $0x1774] ss:$28 sps:$4 sm:$0xff]  }
 0x1fb   :  { %8931 = vmatprep.subr.bf16.mxu0 %v17515_v50  ;;  %9423 = vmatprep.subr.bf16.mxu1 %v17518_v51  ;;  %v17587_v50 = vld [vmem:[#allocation5 + $0x1768] ss:$28 sps:$4 sm:$0xff]   ;;  %v17590_v51 = vld [vmem:[#allocation5 + $0x1770] ss:$28 sps:$4 sm:$0xff]  }
 0x1fe   :  { %8932 = vmatpush1.bf16.msra.mxu0 %v17513_v52  ;;  %9424 = vmatpush1.bf16.msra.mxu1 %v17516_v53  ;;  %v17595_v52 = vld [vmem:[#allocation5 + $0x17a4] ss:$28 sps:$4 sm:$0xff]   ;;  %v17598_v53 = vld [vmem:[#allocation5 + $0x17ac] ss:$28 sps:$4 sm:$0xff]  }
 0x1ff   :  { %8942 = vmatprep.subr.bf16.mxu0 %v17522_v54  ;;  %9434 = vmatprep.subr.bf16.mxu1 %v17525_v55  ;;  %v17593_v54 = vld [vmem:[#allocation5 + $0x17a0] ss:$28 sps:$4 sm:$0xff]   ;;  %v17596_v55 = vld [vmem:[#allocation5 + $0x17a8] ss:$28 sps:$4 sm:$0xff]  }
 0x201   :  { %8934 = vmatmul.mubr.bf16.vlgmr.msra.gmra.mrb[0].mxu0 %v19895_v57  ;;  %9426 = vmatmul.mubr.bf16.vlgmr.msra.gmra.mrb[0].mxu1 %v19895_v57 }
 0x202   :  { %8943 = vmatpush1.bf16.msra.mxu0 %v17520_v58  ;;  %9435 = vmatpush1.bf16.msra.mxu1 %v17523_v59  ;;  %v17601_v58 = vld [vmem:[#allocation5 + $0x17dc] ss:$28 sps:$4 sm:$0xff]   ;;  %v17604_v59 = vld [vmem:[#allocation5 + $0x17e4] ss:$28 sps:$4 sm:$0xff]  }
 0x203   :  { %8944 = vmatprep.subr.bf16.mxu0 %v17529_v60  ;;  %9436 = vmatprep.subr.bf16.mxu1 %v17532_v61  ;;  %v17599_v60 = vld [vmem:[#allocation5 + $0x17d8] ss:$28 sps:$4 sm:$0xff]   ;;  %v17602_v61 = vld [vmem:[#allocation5 + $0x17e0] ss:$28 sps:$4 sm:$0xff]  }
 0x204   :  { %8974 = vmatprep.mubr.bf16.mxu0 %v19899_v62  ;;  %9466 = vmatprep.mubr.bf16.mxu1 %v19899_v62 }
 0x206   :  { %8945 = vmatpush1.bf16.msra.mxu0 %v17527_v41  ;;  %9437 = vmatpush1.bf16.msra.mxu1 %v17530_v63  ;;  %v17607_v41 = vld [vmem:[#allocation5 + $0x1814] ss:$28 sps:$4 sm:$0xff]   ;;  %v17610_v63 = vld [vmem:[#allocation5 + $0x181c] ss:$28 sps:$4 sm:$0xff]  }
 0x207   :  { %8946 = vmatprep.subr.bf16.mxu0 %v17535_v0  ;;  %9438 = vmatprep.subr.bf16.mxu1 %v17538_v1  ;;  %v17605_v0 = vld [vmem:[#allocation5 + $0x1810] ss:$28 sps:$4 sm:$0xff]   ;;  %v17608_v1 = vld [vmem:[#allocation5 + $0x1818] ss:$28 sps:$4 sm:$0xff]  }
 0x20a   :  { %8947 = vmatpush1.bf16.msra.mxu0 %v17533_v2  ;;  %9439 = vmatpush1.bf16.msra.mxu1 %v17536_v3  ;;  %v17613_v2 = vld [vmem:[#allocation5 + $0x184c] ss:$28 sps:$4 sm:$0xff]   ;;  %v17616_v3 = vld [vmem:[#allocation5 + $0x1854] ss:$28 sps:$4 sm:$0xff]  }
 0x20b   :  { %8948 = vmatprep.subr.bf16.mxu0 %v17541_v4  ;;  %9440 = vmatprep.subr.bf16.mxu1 %v17544_v6  ;;  %v17611_v4 = vld [vmem:[#allocation5 + $0x1848] ss:$28 sps:$4 sm:$0xff]   ;;  %v17614_v6 = vld [vmem:[#allocation5 + $0x1850] ss:$28 sps:$4 sm:$0xff]  }
 0x20e   :  { %8949 = vmatpush1.bf16.msra.mxu0 %v17539_v7  ;;  %9441 = vmatpush1.bf16.msra.mxu1 %v17542_v8  ;;  %v17620_v7 = vld [vmem:[#allocation5 + $0x1884] ss:$28 sps:$4 sm:$0xff]   ;;  %v17623_v8 = vld [vmem:[#allocation5 + $0x188c] ss:$28 sps:$4 sm:$0xff]  }
 0x20f   :  { %8950 = vmatprep.subr.bf16.mxu0 %v17547_v9  ;;  %9442 = vmatprep.subr.bf16.mxu1 %v17550_v11  ;;  %v19905_v9 = vld [vmem:[#allocation2 + $0x38] sm:$0xff]  ;;  %v19909_v11 = vcombine.low %v19891_v56, %v19891_v56 }
 0x210   :  { %v17625_v56 = vld [vmem:[#allocation5 + $0x18b8] ss:$28 sps:$4 sm:$0xff]  }
 0x212   :  { %8951 = vmatpush1.bf16.msra.mxu0 %v17545_v12  ;;  %9443 = vmatpush1.bf16.msra.mxu1 %v17548_v14  ;;  %v17618_v12 = vld [vmem:[#allocation5 + $0x1880] ss:$28 sps:$4 sm:$0xff]   ;;  %v17621_v14 = vld [vmem:[#allocation5 + $0x1888] ss:$28 sps:$4 sm:$0xff]  }
 0x213   :  { %8952 = vmatprep.subr.bf16.mxu0 %v17553_v16  ;;  %9444 = vmatprep.subr.bf16.mxu1 %v17556_v17  ;;  %v17627_v16 = vld [vmem:[#allocation5 + $0x18bc] ss:$28 sps:$4 sm:$0xff]   ;;  %v17630_v17 = vld [vmem:[#allocation5 + $0x18c4] ss:$28 sps:$4 sm:$0xff]  }
 0x216   :  { %8953 = vmatpush1.bf16.msra.mxu0 %v17551_v18  ;;  %9445 = vmatpush1.bf16.msra.mxu1 %v17554_v19  ;;  %v19913_v18 = vcombine.high %v19905_v9, %v19905_v9  ;;  %v17628_v19 = vld [vmem:[#allocation5 + $0x18c0] ss:$28 sps:$4 sm:$0xff]  }
 0x217   :  { %8954 = vmatprep.subr.bf16.mxu0 %v17559_v22  ;;  %9446 = vmatprep.subr.bf16.mxu1 %v17562_v23  ;;  %v17633_v22 = vld [vmem:[#allocation5 + $0x18f4] ss:$28 sps:$4 sm:$0xff]   ;;  %v17636_v23 = vld [vmem:[#allocation5 + $0x18fc] ss:$28 sps:$4 sm:$0xff]  }
 0x21a   :  { %8955 = vmatpush1.bf16.msra.mxu0 %v17557_v25  ;;  %9447 = vmatpush1.bf16.msra.mxu1 %v17560_v26  ;;  %v17631_v25 = vld [vmem:[#allocation5 + $0x18f0] ss:$28 sps:$4 sm:$0xff]   ;;  %v17634_v26 = vld [vmem:[#allocation5 + $0x18f8] ss:$28 sps:$4 sm:$0xff]  }
 0x21b   :  { %8956 = vmatprep.subr.bf16.mxu0 %v17565_v13  ;;  %9448 = vmatprep.subr.bf16.mxu1 %v17568_v27  ;;  %v17639_v13 = vld [vmem:[#allocation5 + $0x192c] ss:$28 sps:$4 sm:$0xff]   ;;  %v17642_v27 = vld [vmem:[#allocation5 + $0x1934] ss:$28 sps:$4 sm:$0xff]  }
 0x21e   :  { %8957 = vmatpush1.bf16.msra.mxu0 %v17563_v28  ;;  %9449 = vmatpush1.bf16.msra.mxu1 %v17566_v32  ;;  %v17637_v28 = vld [vmem:[#allocation5 + $0x1928] ss:$28 sps:$4 sm:$0xff]   ;;  %v17640_v32 = vld [vmem:[#allocation5 + $0x1930] ss:$28 sps:$4 sm:$0xff]  }
 0x21f   :  { %8958 = vmatprep.subr.bf16.mxu0 %v17571_v33  ;;  %9450 = vmatprep.subr.bf16.mxu1 %v17574_v34  ;;  %v17645_v33 = vld [vmem:[#allocation5 + $0x1964] ss:$28 sps:$4 sm:$0xff]   ;;  %v17648_v34 = vld [vmem:[#allocation5 + $0x196c] ss:$28 sps:$4 sm:$0xff]  }
 0x222   :  { %8959 = vmatpush1.bf16.msra.mxu0 %v17569_v21  ;;  %9451 = vmatpush1.bf16.msra.mxu1 %v17572_v36  ;;  %v17643_v21 = vld [vmem:[#allocation5 + $0x1960] ss:$28 sps:$4 sm:$0xff]   ;;  %v17646_v36 = vld [vmem:[#allocation5 + $0x1968] ss:$28 sps:$4 sm:$0xff]  }
 0x223   :  { %8960 = vmatprep.subr.bf16.mxu0 %v17577_v37  ;;  %9452 = vmatprep.subr.bf16.mxu1 %v17580_v38  ;;  %v17651_v37 = vld [vmem:[#allocation5 + $0x199c] ss:$28 sps:$4 sm:$0xff]   ;;  %v17654_v38 = vld [vmem:[#allocation5 + $0x19a4] ss:$28 sps:$4 sm:$0xff]  }
 0x226   :  { %8961 = vmatpush1.bf16.msra.mxu0 %v17575_v39  ;;  %9453 = vmatpush1.bf16.msra.mxu1 %v17578_v40  ;;  %v17649_v39 = vld [vmem:[#allocation5 + $0x1998] ss:$28 sps:$4 sm:$0xff]   ;;  %v17652_v40 = vld [vmem:[#allocation5 + $0x19a0] ss:$28 sps:$4 sm:$0xff]  }
 0x227   :  { %8962 = vmatprep.subr.bf16.mxu0 %v17583_v43  ;;  %9454 = vmatprep.subr.bf16.mxu1 %v17586_v44  ;;  %v17657_v43 = vld [vmem:[#allocation5 + $0x19d4] ss:$28 sps:$4 sm:$0xff]   ;;  %v17660_v44 = vld [vmem:[#allocation5 + $0x19dc] ss:$28 sps:$4 sm:$0xff]  }
 0x22a   :  { %8963 = vmatpush1.bf16.msra.mxu0 %v17581_v45  ;;  %9455 = vmatpush1.bf16.msra.mxu1 %v17584_v46  ;;  %v17655_v45 = vld [vmem:[#allocation5 + $0x19d0] ss:$28 sps:$4 sm:$0xff]   ;;  %v17658_v46 = vld [vmem:[#allocation5 + $0x19d8] ss:$28 sps:$4 sm:$0xff]  }
 0x22b   :  { %8964 = vmatprep.subr.bf16.mxu0 %v17589_v31  ;;  %9456 = vmatprep.subr.bf16.mxu1 %v17592_v49  ;;  %v17663_v31 = vld [vmem:[#allocation5 + $0x1a0c] ss:$28 sps:$4 sm:$0xff]   ;;  %v17666_v49 = vld [vmem:[#allocation5 + $0x1a14] ss:$28 sps:$4 sm:$0xff]  }
 0x22e   :  { %8965 = vmatpush1.bf16.msra.mxu0 %v17587_v50  ;;  %9457 = vmatpush1.bf16.msra.mxu1 %v17590_v51  ;;  %v17661_v50 = vld [vmem:[#allocation5 + $0x1a08] ss:$28 sps:$4 sm:$0xff]   ;;  %v17664_v51 = vld [vmem:[#allocation5 + $0x1a10] ss:$28 sps:$4 sm:$0xff]  }
 0x22f   :  { %8966 = vmatprep.subr.bf16.mxu0 %v17595_v52  ;;  %9458 = vmatprep.subr.bf16.mxu1 %v17598_v53  ;;  %v17669_v52 = vld [vmem:[#allocation5 + $0x1a44] ss:$28 sps:$4 sm:$0xff]   ;;  %v17672_v53 = vld [vmem:[#allocation5 + $0x1a4c] ss:$28 sps:$4 sm:$0xff]  }
 0x232   :  { %8967 = vmatpush1.bf16.msra.mxu0 %v17593_v54  ;;  %9459 = vmatpush1.bf16.msra.mxu1 %v17596_v55  ;;  %v17667_v54 = vld [vmem:[#allocation5 + $0x1a40] ss:$28 sps:$4 sm:$0xff]   ;;  %v17670_v55 = vld [vmem:[#allocation5 + $0x1a48] ss:$28 sps:$4 sm:$0xff]  }
 0x233   :  { %8968 = vmatprep.subr.bf16.mxu0 %v17601_v58  ;;  %9460 = vmatprep.subr.bf16.mxu1 %v17604_v59  ;;  %v17675_v58 = vld [vmem:[#allocation5 + $0x1a7c] ss:$28 sps:$4 sm:$0xff]   ;;  %v17678_v59 = vld [vmem:[#allocation5 + $0x1a84] ss:$28 sps:$4 sm:$0xff]  }
 0x236   :  { %8969 = vmatpush1.bf16.msra.mxu0 %v17599_v60  ;;  %9461 = vmatpush1.bf16.msra.mxu1 %v17602_v61  ;;  %v17673_v60 = vld [vmem:[#allocation5 + $0x1a78] ss:$28 sps:$4 sm:$0xff]   ;;  %v17676_v61 = vld [vmem:[#allocation5 + $0x1a80] ss:$28 sps:$4 sm:$0xff]  }
 0x237   :  { %8970 = vmatprep.subr.bf16.mxu0 %v17607_v41  ;;  %9462 = vmatprep.subr.bf16.mxu1 %v17610_v63  ;;  %v17681_v41 = vld [vmem:[#allocation5 + $0x1ab4] ss:$28 sps:$4 sm:$0xff]   ;;  %v17684_v63 = vld [vmem:[#allocation5 + $0x1abc] ss:$28 sps:$4 sm:$0xff]  }
 0x23a   :  { %8971 = vmatpush1.bf16.msra.mxu0 %v17605_v0  ;;  %9463 = vmatpush1.bf16.msra.mxu1 %v17608_v1  ;;  %v17679_v0 = vld [vmem:[#allocation5 + $0x1ab0] ss:$28 sps:$4 sm:$0xff]   ;;  %v17682_v1 = vld [vmem:[#allocation5 + $0x1ab8] ss:$28 sps:$4 sm:$0xff]  }
 0x23b   :  { %8972 = vmatprep.subr.bf16.mxu0 %v17613_v2  ;;  %9464 = vmatprep.subr.bf16.mxu1 %v17616_v3  ;;  %v17687_v2 = vld [vmem:[#allocation5 + $0x1aec] ss:$28 sps:$4 sm:$0xff]   ;;  %v17690_v3 = vld [vmem:[#allocation5 + $0x1af4] ss:$28 sps:$4 sm:$0xff]  }
 0x23e   :  { %8973 = vmatpush1.bf16.msra.mxu0 %v17611_v4  ;;  %9465 = vmatpush1.bf16.msra.mxu1 %v17614_v6  ;;  %v17685_v4 = vld [vmem:[#allocation5 + $0x1ae8] ss:$28 sps:$4 sm:$0xff]   ;;  %v17688_v6 = vld [vmem:[#allocation5 + $0x1af0] ss:$28 sps:$4 sm:$0xff]  }
 0x23f   :  { %8983 = vmatprep.subr.bf16.mxu0 %v17620_v7  ;;  %9475 = vmatprep.subr.bf16.mxu1 %v17623_v8  ;;  %v17693_v7 = vld [vmem:[#allocation5 + $0x1b24] ss:$28 sps:$4 sm:$0xff]   ;;  %v17696_v8 = vld [vmem:[#allocation5 + $0x1b2c] ss:$28 sps:$4 sm:$0xff]  }
 0x241   :  { %8975 = vmatmul.mubr.bf16.vlgmr.msra.gmra.mrb[0].mxu0 %v19909_v11  ;;  %9467 = vmatmul.mubr.bf16.vlgmr.msra.gmra.mrb[0].mxu1 %v19909_v11 }
 0x242   :  { %8984 = vmatpush1.bf16.msra.mxu0 %v17618_v12  ;;  %9476 = vmatpush1.bf16.msra.mxu1 %v17621_v14  ;;  %v17691_v12 = vld [vmem:[#allocation5 + $0x1b20] ss:$28 sps:$4 sm:$0xff]   ;;  %v17694_v14 = vld [vmem:[#allocation5 + $0x1b28] ss:$28 sps:$4 sm:$0xff]  }
 0x243   :  { %8985 = vmatprep.subr.bf16.mxu0 %v17627_v16  ;;  %9477 = vmatprep.subr.bf16.mxu1 %v17630_v17  ;;  %v17699_v16 = vld [vmem:[#allocation5 + $0x1b5c] ss:$28 sps:$4 sm:$0xff]   ;;  %v17702_v17 = vld [vmem:[#allocation5 + $0x1b64] ss:$28 sps:$4 sm:$0xff]  }
 0x244   :  { %9015 = vmatprep.mubr.bf16.mxu0 %v19913_v18  ;;  %9507 = vmatprep.mubr.bf16.mxu1 %v19913_v18 }
 0x246   :  { %8986 = vmatpush1.bf16.msra.mxu0 %v17625_v56  ;;  %9478 = vmatpush1.bf16.msra.mxu1 %v17628_v19  ;;  %v17697_v56 = vld [vmem:[#allocation5 + $0x1b58] ss:$28 sps:$4 sm:$0xff]   ;;  %v17700_v19 = vld [vmem:[#allocation5 + $0x1b60] ss:$28 sps:$4 sm:$0xff]  }
 0x247   :  { %8987 = vmatprep.subr.bf16.mxu0 %v17633_v22  ;;  %9479 = vmatprep.subr.bf16.mxu1 %v17636_v23  ;;  %v17705_v22 = vld [vmem:[#allocation5 + $0x1b94] ss:$28 sps:$4 sm:$0xff]   ;;  %v17708_v23 = vld [vmem:[#allocation5 + $0x1b9c] ss:$28 sps:$4 sm:$0xff]  }
 0x24a   :  { %8988 = vmatpush1.bf16.msra.mxu0 %v17631_v25  ;;  %9480 = vmatpush1.bf16.msra.mxu1 %v17634_v26  ;;  %v17703_v25 = vld [vmem:[#allocation5 + $0x1b90] ss:$28 sps:$4 sm:$0xff]   ;;  %v17706_v26 = vld [vmem:[#allocation5 + $0x1b98] ss:$28 sps:$4 sm:$0xff]  }
 0x24b   :  { %8989 = vmatprep.subr.bf16.mxu0 %v17639_v13  ;;  %9481 = vmatprep.subr.bf16.mxu1 %v17642_v27  ;;  %v17711_v13 = vld [vmem:[#allocation5 + $0x1bcc] ss:$28 sps:$4 sm:$0xff]   ;;  %v17714_v27 = vld [vmem:[#allocation5 + $0x1bd4] ss:$28 sps:$4 sm:$0xff]  }
 0x24e   :  { %8990 = vmatpush1.bf16.msra.mxu0 %v17637_v28  ;;  %9482 = vmatpush1.bf16.msra.mxu1 %v17640_v32  ;;  %v17709_v28 = vld [vmem:[#allocation5 + $0x1bc8] ss:$28 sps:$4 sm:$0xff]   ;;  %v17712_v32 = vld [vmem:[#allocation5 + $0x1bd0] ss:$28 sps:$4 sm:$0xff]  }
 0x24f   :  { %8991 = vmatprep.subr.bf16.mxu0 %v17645_v33  ;;  %9483 = vmatprep.subr.bf16.mxu1 %v17648_v34  ;;  %v17718_v33 = vld [vmem:[#allocation5 + $0x1c04] ss:$28 sps:$4 sm:$0xff]   ;;  %v17721_v34 = vld [vmem:[#allocation5 + $0x1c0c] ss:$28 sps:$4 sm:$0xff]  }
 0x252   :  { %8992 = vmatpush1.bf16.msra.mxu0 %v17643_v21  ;;  %9484 = vmatpush1.bf16.msra.mxu1 %v17646_v36  ;;  %v19919_v21 = vld [vmem:[#allocation2 + $0x40] sm:$0xff]  ;;  %v19923_v36 = vcombine.low %v19905_v9, %v19905_v9  ;;  %v17723_v9 = vld [vmem:[#allocation5 + $0x1c38] ss:$28 sps:$4 sm:$0xff]  }
 0x253   :  { %8993 = vmatprep.subr.bf16.mxu0 %v17651_v37  ;;  %9485 = vmatprep.subr.bf16.mxu1 %v17654_v38  ;;  %v17716_v37 = vld [vmem:[#allocation5 + $0x1c00] ss:$28 sps:$4 sm:$0xff]   ;;  %v17719_v38 = vld [vmem:[#allocation5 + $0x1c08] ss:$28 sps:$4 sm:$0xff]  }
 0x256   :  { %8994 = vmatpush1.bf16.msra.mxu0 %v17649_v39  ;;  %9486 = vmatpush1.bf16.msra.mxu1 %v17652_v40  ;;  %v17725_v39 = vld [vmem:[#allocation5 + $0x1c3c] ss:$28 sps:$4 sm:$0xff]   ;;  %v17728_v40 = vld [vmem:[#allocation5 + $0x1c44] ss:$28 sps:$4 sm:$0xff]  }
 0x257   :  { %8995 = vmatprep.subr.bf16.mxu0 %v17657_v43  ;;  %9487 = vmatprep.subr.bf16.mxu1 %v17660_v44  ;;  %v19927_v43 = vcombine.high %v19919_v21, %v19919_v21  ;;  %v17726_v44 = vld [vmem:[#allocation5 + $0x1c40] ss:$28 sps:$4 sm:$0xff]  }
 0x25a   :  { %8996 = vmatpush1.bf16.msra.mxu0 %v17655_v45  ;;  %9488 = vmatpush1.bf16.msra.mxu1 %v17658_v46  ;;  %v17731_v45 = vld [vmem:[#allocation5 + $0x1c74] ss:$28 sps:$4 sm:$0xff]   ;;  %v17734_v46 = vld [vmem:[#allocation5 + $0x1c7c] ss:$28 sps:$4 sm:$0xff]  }
 0x25b   :  { %8997 = vmatprep.subr.bf16.mxu0 %v17663_v31  ;;  %9489 = vmatprep.subr.bf16.mxu1 %v17666_v49  ;;  %v17729_v31 = vld [vmem:[#allocation5 + $0x1c70] ss:$28 sps:$4 sm:$0xff]   ;;  %v17732_v49 = vld [vmem:[#allocation5 + $0x1c78] ss:$28 sps:$4 sm:$0xff]  }
 0x25e   :  { %8998 = vmatpush1.bf16.msra.mxu0 %v17661_v50  ;;  %9490 = vmatpush1.bf16.msra.mxu1 %v17664_v51  ;;  %v17737_v50 = vld [vmem:[#allocation5 + $0x1cac] ss:$28 sps:$4 sm:$0xff]   ;;  %v17740_v51 = vld [vmem:[#allocation5 + $0x1cb4] ss:$28 sps:$4 sm:$0xff]  }
 0x25f   :  { %8999 = vmatprep.subr.bf16.mxu0 %v17669_v52  ;;  %9491 = vmatprep.subr.bf16.mxu1 %v17672_v53  ;;  %v17735_v52 = vld [vmem:[#allocation5 + $0x1ca8] ss:$28 sps:$4 sm:$0xff]   ;;  %v17738_v53 = vld [vmem:[#allocation5 + $0x1cb0] ss:$28 sps:$4 sm:$0xff]  }
 0x262   :  { %9000 = vmatpush1.bf16.msra.mxu0 %v17667_v54  ;;  %9492 = vmatpush1.bf16.msra.mxu1 %v17670_v55  ;;  %v17743_v54 = vld [vmem:[#allocation5 + $0x1ce4] ss:$28 sps:$4 sm:$0xff]   ;;  %v17746_v55 = vld [vmem:[#allocation5 + $0x1cec] ss:$28 sps:$4 sm:$0xff]  }
 0x263   :  { %9001 = vmatprep.subr.bf16.mxu0 %v17675_v58  ;;  %9493 = vmatprep.subr.bf16.mxu1 %v17678_v59  ;;  %v17741_v58 = vld [vmem:[#allocation5 + $0x1ce0] ss:$28 sps:$4 sm:$0xff]   ;;  %v17744_v59 = vld [vmem:[#allocation5 + $0x1ce8] ss:$28 sps:$4 sm:$0xff]  }
 0x266   :  { %9002 = vmatpush1.bf16.msra.mxu0 %v17673_v60  ;;  %9494 = vmatpush1.bf16.msra.mxu1 %v17676_v61  ;;  %v17749_v60 = vld [vmem:[#allocation5 + $0x1d1c] ss:$28 sps:$4 sm:$0xff]   ;;  %v17752_v61 = vld [vmem:[#allocation5 + $0x1d24] ss:$28 sps:$4 sm:$0xff]  }
 0x267   :  { %9003 = vmatprep.subr.bf16.mxu0 %v17681_v41  ;;  %9495 = vmatprep.subr.bf16.mxu1 %v17684_v63  ;;  %v17747_v41 = vld [vmem:[#allocation5 + $0x1d18] ss:$28 sps:$4 sm:$0xff]   ;;  %v17750_v63 = vld [vmem:[#allocation5 + $0x1d20] ss:$28 sps:$4 sm:$0xff]  }
 0x26a   :  { %9004 = vmatpush1.bf16.msra.mxu0 %v17679_v0  ;;  %9496 = vmatpush1.bf16.msra.mxu1 %v17682_v1  ;;  %v17755_v0 = vld [vmem:[#allocation5 + $0x1d54] ss:$28 sps:$4 sm:$0xff]   ;;  %v17758_v1 = vld [vmem:[#allocation5 + $0x1d5c] ss:$28 sps:$4 sm:$0xff]  }
 0x26b   :  { %9005 = vmatprep.subr.bf16.mxu0 %v17687_v2  ;;  %9497 = vmatprep.subr.bf16.mxu1 %v17690_v3  ;;  %v17753_v2 = vld [vmem:[#allocation5 + $0x1d50] ss:$28 sps:$4 sm:$0xff]   ;;  %v17756_v3 = vld [vmem:[#allocation5 + $0x1d58] ss:$28 sps:$4 sm:$0xff]  }
 0x26e   :  { %9006 = vmatpush1.bf16.msra.mxu0 %v17685_v4  ;;  %9498 = vmatpush1.bf16.msra.mxu1 %v17688_v6  ;;  %v17761_v4 = vld [vmem:[#allocation5 + $0x1d8c] ss:$28 sps:$4 sm:$0xff]   ;;  %v17764_v6 = vld [vmem:[#allocation5 + $0x1d94] ss:$28 sps:$4 sm:$0xff]  }
 0x26f   :  { %9007 = vmatprep.subr.bf16.mxu0 %v17693_v7  ;;  %9499 = vmatprep.subr.bf16.mxu1 %v17696_v8  ;;  %v17759_v7 = vld [vmem:[#allocation5 + $0x1d88] ss:$28 sps:$4 sm:$0xff]   ;;  %v17762_v8 = vld [vmem:[#allocation5 + $0x1d90] ss:$28 sps:$4 sm:$0xff]  }
 0x272   :  { %9008 = vmatpush1.bf16.msra.mxu0 %v17691_v12  ;;  %9500 = vmatpush1.bf16.msra.mxu1 %v17694_v14  ;;  %v17767_v12 = vld [vmem:[#allocation5 + $0x1dc4] ss:$28 sps:$4 sm:$0xff]   ;;  %v17770_v14 = vld [vmem:[#allocation5 + $0x1dcc] ss:$28 sps:$4 sm:$0xff]  }
 0x273   :  { %9009 = vmatprep.subr.bf16.mxu0 %v17699_v16  ;;  %9501 = vmatprep.subr.bf16.mxu1 %v17702_v17  ;;  %v17765_v16 = vld [vmem:[#allocation5 + $0x1dc0] ss:$28 sps:$4 sm:$0xff]   ;;  %v17768_v17 = vld [vmem:[#allocation5 + $0x1dc8] ss:$28 sps:$4 sm:$0xff]  }
 0x276   :  { %9010 = vmatpush1.bf16.msra.mxu0 %v17697_v56  ;;  %9502 = vmatpush1.bf16.msra.mxu1 %v17700_v19  ;;  %v17773_v56 = vld [vmem:[#allocation5 + $0x1dfc] ss:$28 sps:$4 sm:$0xff]   ;;  %v17776_v19 = vld [vmem:[#allocation5 + $0x1e04] ss:$28 sps:$4 sm:$0xff]  }
 0x277   :  { %9011 = vmatprep.subr.bf16.mxu0 %v17705_v22  ;;  %9503 = vmatprep.subr.bf16.mxu1 %v17708_v23  ;;  %v17771_v22 = vld [vmem:[#allocation5 + $0x1df8] ss:$28 sps:$4 sm:$0xff]   ;;  %v17774_v23 = vld [vmem:[#allocation5 + $0x1e00] ss:$28 sps:$4 sm:$0xff]  }
 0x27a   :  { %9012 = vmatpush1.bf16.msra.mxu0 %v17703_v25  ;;  %9504 = vmatpush1.bf16.msra.mxu1 %v17706_v26  ;;  %v17779_v25 = vld [vmem:[#allocation5 + $0x1e34] ss:$28 sps:$4 sm:$0xff]   ;;  %v17782_v26 = vld [vmem:[#allocation5 + $0x1e3c] ss:$28 sps:$4 sm:$0xff]  }
 0x27b   :  { %9013 = vmatprep.subr.bf16.mxu0 %v17711_v13  ;;  %9505 = vmatprep.subr.bf16.mxu1 %v17714_v27  ;;  %v17777_v13 = vld [vmem:[#allocation5 + $0x1e30] ss:$28 sps:$4 sm:$0xff]   ;;  %v17780_v27 = vld [vmem:[#allocation5 + $0x1e38] ss:$28 sps:$4 sm:$0xff]  }
 0x27e   :  { %9014 = vmatpush1.bf16.msra.mxu0 %v17709_v28  ;;  %9506 = vmatpush1.bf16.msra.mxu1 %v17712_v32  ;;  %v17785_v28 = vld [vmem:[#allocation5 + $0x1e6c] ss:$28 sps:$4 sm:$0xff]   ;;  %v17788_v32 = vld [vmem:[#allocation5 + $0x1e74] ss:$28 sps:$4 sm:$0xff]  }
 0x27f   :  { %9024 = vmatprep.subr.bf16.mxu0 %v17718_v33  ;;  %9516 = vmatprep.subr.bf16.mxu1 %v17721_v34  ;;  %v17783_v33 = vld [vmem:[#allocation5 + $0x1e68] ss:$28 sps:$4 sm:$0xff]   ;;  %v17786_v34 = vld [vmem:[#allocation5 + $0x1e70] ss:$28 sps:$4 sm:$0xff]  }
 0x281   :  { %9016 = vmatmul.mubr.bf16.vlgmr.msra.gmra.mrb[0].mxu0 %v19923_v36  ;;  %9508 = vmatmul.mubr.bf16.vlgmr.msra.gmra.mrb[0].mxu1 %v19923_v36 }
 0x282   :  { %9025 = vmatpush1.bf16.msra.mxu0 %v17716_v37  ;;  %9517 = vmatpush1.bf16.msra.mxu1 %v17719_v38  ;;  %v17791_v37 = vld [vmem:[#allocation5 + $0x1ea4] ss:$28 sps:$4 sm:$0xff]   ;;  %v17794_v38 = vld [vmem:[#allocation5 + $0x1eac] ss:$28 sps:$4 sm:$0xff]  }
 0x283   :  { %9026 = vmatprep.subr.bf16.mxu0 %v17725_v39  ;;  %9518 = vmatprep.subr.bf16.mxu1 %v17728_v40  ;;  %v17789_v39 = vld [vmem:[#allocation5 + $0x1ea0] ss:$28 sps:$4 sm:$0xff]   ;;  %v17792_v40 = vld [vmem:[#allocation5 + $0x1ea8] ss:$28 sps:$4 sm:$0xff]  }
 0x284   :  { %9056 = vmatprep.mubr.bf16.mxu0 %v19927_v43  ;;  %9548 = vmatprep.mubr.bf16.mxu1 %v19927_v43 }
 0x286   :  { %9027 = vmatpush1.bf16.msra.mxu0 %v17723_v9  ;;  %9519 = vmatpush1.bf16.msra.mxu1 %v17726_v44  ;;  %v17797_v9 = vld [vmem:[#allocation5 + $0x1edc] ss:$28 sps:$4 sm:$0xff]   ;;  %v17800_v44 = vld [vmem:[#allocation5 + $0x1ee4] ss:$28 sps:$4 sm:$0xff]  }
 0x287   :  { %9028 = vmatprep.subr.bf16.mxu0 %v17731_v45  ;;  %9520 = vmatprep.subr.bf16.mxu1 %v17734_v46  ;;  %v17795_v45 = vld [vmem:[#allocation5 + $0x1ed8] ss:$28 sps:$4 sm:$0xff]   ;;  %v17798_v46 = vld [vmem:[#allocation5 + $0x1ee0] ss:$28 sps:$4 sm:$0xff]  }
 0x28a   :  { %9029 = vmatpush1.bf16.msra.mxu0 %v17729_v31  ;;  %9521 = vmatpush1.bf16.msra.mxu1 %v17732_v49  ;;  %v17803_v31 = vld [vmem:[#allocation5 + $0x1f14] ss:$28 sps:$4 sm:$0xff]   ;;  %v17806_v49 = vld [vmem:[#allocation5 + $0x1f1c] ss:$28 sps:$4 sm:$0xff]  }
 0x28b   :  { %9030 = vmatprep.subr.bf16.mxu0 %v17737_v50  ;;  %9522 = vmatprep.subr.bf16.mxu1 %v17740_v51  ;;  %v17801_v50 = vld [vmem:[#allocation5 + $0x1f10] ss:$28 sps:$4 sm:$0xff]   ;;  %v17804_v51 = vld [vmem:[#allocation5 + $0x1f18] ss:$28 sps:$4 sm:$0xff]  }
 0x28e   :  { %9031 = vmatpush1.bf16.msra.mxu0 %v17735_v52  ;;  %9523 = vmatpush1.bf16.msra.mxu1 %v17738_v53  ;;  %v17809_v52 = vld [vmem:[#allocation5 + $0x1f4c] ss:$28 sps:$4 sm:$0xff]   ;;  %v17812_v53 = vld [vmem:[#allocation5 + $0x1f54] ss:$28 sps:$4 sm:$0xff]  }
 0x28f   :  { %9032 = vmatprep.subr.bf16.mxu0 %v17743_v54  ;;  %9524 = vmatprep.subr.bf16.mxu1 %v17746_v55  ;;  %v17807_v54 = vld [vmem:[#allocation5 + $0x1f48] ss:$28 sps:$4 sm:$0xff]   ;;  %v17810_v55 = vld [vmem:[#allocation5 + $0x1f50] ss:$28 sps:$4 sm:$0xff]  }
 0x292   :  { %9033 = vmatpush1.bf16.msra.mxu0 %v17741_v58  ;;  %9525 = vmatpush1.bf16.msra.mxu1 %v17744_v59  ;;  %v17816_v58 = vld [vmem:[#allocation5 + $0x1f84] ss:$28 sps:$4 sm:$0xff]   ;;  %v17819_v59 = vld [vmem:[#allocation5 + $0x1f8c] ss:$28 sps:$4 sm:$0xff]  }
 0x293   :  { %9034 = vmatprep.subr.bf16.mxu0 %v17749_v60  ;;  %9526 = vmatprep.subr.bf16.mxu1 %v17752_v61  ;;  %v19933_v60 = vld [vmem:[#allocation2 + $0x48] sm:$0xff]  ;;  %v19937_v61 = vcombine.low %v19919_v21, %v19919_v21  ;;  %v17821_v21 = vld [vmem:[#allocation5 + $0x1fb8] ss:$28 sps:$4 sm:$0xff]  }
 0x296   :  { %9035 = vmatpush1.bf16.msra.mxu0 %v17747_v41  ;;  %9527 = vmatpush1.bf16.msra.mxu1 %v17750_v63  ;;  %v17814_v41 = vld [vmem:[#allocation5 + $0x1f80] ss:$28 sps:$4 sm:$0xff]   ;;  %v17817_v63 = vld [vmem:[#allocation5 + $0x1f88] ss:$28 sps:$4 sm:$0xff]  }
 0x297   :  { %9036 = vmatprep.subr.bf16.mxu0 %v17755_v0  ;;  %9528 = vmatprep.subr.bf16.mxu1 %v17758_v1  ;;  %v17823_v0 = vld [vmem:[#allocation5 + $0x1fbc] ss:$28 sps:$4 sm:$0xff]   ;;  %v17826_v1 = vld [vmem:[#allocation5 + $0x1fc4] ss:$28 sps:$4 sm:$0xff]  }
 0x29a   :  { %9037 = vmatpush1.bf16.msra.mxu0 %v17753_v2  ;;  %9529 = vmatpush1.bf16.msra.mxu1 %v17756_v3  ;;  %v19941_v2 = vcombine.high %v19933_v60, %v19933_v60  ;;  %v17824_v3 = vld [vmem:[#allocation5 + $0x1fc0] ss:$28 sps:$4 sm:$0xff]  }
 0x29b   :  { %9038 = vmatprep.subr.bf16.mxu0 %v17761_v4  ;;  %9530 = vmatprep.subr.bf16.mxu1 %v17764_v6  ;;  %v17829_v4 = vld [vmem:[#allocation5 + $0x1ff4] ss:$28 sps:$4 sm:$0xff]   ;;  %v17832_v6 = vld [vmem:[#allocation5 + $0x1ffc] ss:$28 sps:$4 sm:$0xff]  }
 0x29e   :  { %9039 = vmatpush1.bf16.msra.mxu0 %v17759_v7  ;;  %9531 = vmatpush1.bf16.msra.mxu1 %v17762_v8  ;;  %v17827_v7 = vld [vmem:[#allocation5 + $0x1ff0] ss:$28 sps:$4 sm:$0xff]   ;;  %v17830_v8 = vld [vmem:[#allocation5 + $0x1ff8] ss:$28 sps:$4 sm:$0xff]  }
 0x29f   :  { %9040 = vmatprep.subr.bf16.mxu0 %v17767_v12  ;;  %9532 = vmatprep.subr.bf16.mxu1 %v17770_v14  ;;  %v17835_v12 = vld [vmem:[#allocation5 + $0x202c] ss:$28 sps:$4 sm:$0xff]   ;;  %v17838_v14 = vld [vmem:[#allocation5 + $0x2034] ss:$28 sps:$4 sm:$0xff]  }
 0x2a2   :  { %9041 = vmatpush1.bf16.msra.mxu0 %v17765_v16  ;;  %9533 = vmatpush1.bf16.msra.mxu1 %v17768_v17  ;;  %v17833_v16 = vld [vmem:[#allocation5 + $0x2028] ss:$28 sps:$4 sm:$0xff]   ;;  %v17836_v17 = vld [vmem:[#allocation5 + $0x2030] ss:$28 sps:$4 sm:$0xff]  }
 0x2a3   :  { %9042 = vmatprep.subr.bf16.mxu0 %v17773_v56  ;;  %9534 = vmatprep.subr.bf16.mxu1 %v17776_v19  ;;  %v17841_v56 = vld [vmem:[#allocation5 + $0x2064] ss:$28 sps:$4 sm:$0xff]   ;;  %v17844_v19 = vld [vmem:[#allocation5 + $0x206c] ss:$28 sps:$4 sm:$0xff]  }
 0x2a6   :  { %9043 = vmatpush1.bf16.msra.mxu0 %v17771_v22  ;;  %9535 = vmatpush1.bf16.msra.mxu1 %v17774_v23  ;;  %v17839_v22 = vld [vmem:[#allocation5 + $0x2060] ss:$28 sps:$4 sm:$0xff]   ;;  %v17842_v23 = vld [vmem:[#allocation5 + $0x2068] ss:$28 sps:$4 sm:$0xff]  }
 0x2a7   :  { %9044 = vmatprep.subr.bf16.mxu0 %v17779_v25  ;;  %9536 = vmatprep.subr.bf16.mxu1 %v17782_v26  ;;  %v17847_v25 = vld [vmem:[#allocation5 + $0x209c] ss:$28 sps:$4 sm:$0xff]   ;;  %v17850_v26 = vld [vmem:[#allocation5 + $0x20a4] ss:$28 sps:$4 sm:$0xff]  }
 0x2aa   :  { %9045 = vmatpush1.bf16.msra.mxu0 %v17777_v13  ;;  %9537 = vmatpush1.bf16.msra.mxu1 %v17780_v27  ;;  %v17845_v13 = vld [vmem:[#allocation5 + $0x2098] ss:$28 sps:$4 sm:$0xff]   ;;  %v17848_v27 = vld [vmem:[#allocation5 + $0x20a0] ss:$28 sps:$4 sm:$0xff]  }
 0x2ab   :  { %9046 = vmatprep.subr.bf16.mxu0 %v17785_v28  ;;  %9538 = vmatprep.subr.bf16.mxu1 %v17788_v32  ;;  %v17853_v28 = vld [vmem:[#allocation5 + $0x20d4] ss:$28 sps:$4 sm:$0xff]   ;;  %v17856_v32 = vld [vmem:[#allocation5 + $0x20dc] ss:$28 sps:$4 sm:$0xff]  }
 0x2ae   :  { %9047 = vmatpush1.bf16.msra.mxu0 %v17783_v33  ;;  %9539 = vmatpush1.bf16.msra.mxu1 %v17786_v34  ;;  %v17851_v33 = vld [vmem:[#allocation5 + $0x20d0] ss:$28 sps:$4 sm:$0xff]   ;;  %v17854_v34 = vld [vmem:[#allocation5 + $0x20d8] ss:$28 sps:$4 sm:$0xff]  }
 0x2af   :  { %9048 = vmatprep.subr.bf16.mxu0 %v17791_v37  ;;  %9540 = vmatprep.subr.bf16.mxu1 %v17794_v38  ;;  %v17859_v37 = vld [vmem:[#allocation5 + $0x210c] ss:$28 sps:$4 sm:$0xff]   ;;  %v17862_v38 = vld [vmem:[#allocation5 + $0x2114] ss:$28 sps:$4 sm:$0xff]  }
 0x2b2   :  { %9049 = vmatpush1.bf16.msra.mxu0 %v17789_v39  ;;  %9541 = vmatpush1.bf16.msra.mxu1 %v17792_v40  ;;  %v17857_v39 = vld [vmem:[#allocation5 + $0x2108] ss:$28 sps:$4 sm:$0xff]   ;;  %v17860_v40 = vld [vmem:[#allocation5 + $0x2110] ss:$28 sps:$4 sm:$0xff]  }
 0x2b3   :  { %9050 = vmatprep.subr.bf16.mxu0 %v17797_v9  ;;  %9542 = vmatprep.subr.bf16.mxu1 %v17800_v44  ;;  %v17865_v9 = vld [vmem:[#allocation5 + $0x2144] ss:$28 sps:$4 sm:$0xff]   ;;  %v17868_v44 = vld [vmem:[#allocation5 + $0x214c] ss:$28 sps:$4 sm:$0xff]  }
 0x2b6   :  { %9051 = vmatpush1.bf16.msra.mxu0 %v17795_v45  ;;  %9543 = vmatpush1.bf16.msra.mxu1 %v17798_v46  ;;  %v17863_v45 = vld [vmem:[#allocation5 + $0x2140] ss:$28 sps:$4 sm:$0xff]   ;;  %v17866_v46 = vld [vmem:[#allocation5 + $0x2148] ss:$28 sps:$4 sm:$0xff]  }
 0x2b7   :  { %9052 = vmatprep.subr.bf16.mxu0 %v17803_v31  ;;  %9544 = vmatprep.subr.bf16.mxu1 %v17806_v49  ;;  %v17871_v31 = vld [vmem:[#allocation5 + $0x217c] ss:$28 sps:$4 sm:$0xff]   ;;  %v17874_v49 = vld [vmem:[#allocation5 + $0x2184] ss:$28 sps:$4 sm:$0xff]  }
 0x2ba   :  { %9053 = vmatpush1.bf16.msra.mxu0 %v17801_v50  ;;  %9545 = vmatpush1.bf16.msra.mxu1 %v17804_v51  ;;  %v17869_v50 = vld [vmem:[#allocation5 + $0x2178] ss:$28 sps:$4 sm:$0xff]   ;;  %v17872_v51 = vld [vmem:[#allocation5 + $0x2180] ss:$28 sps:$4 sm:$0xff]  }
 0x2bb   :  { %9054 = vmatprep.subr.bf16.mxu0 %v17809_v52  ;;  %9546 = vmatprep.subr.bf16.mxu1 %v17812_v53  ;;  %v17877_v52 = vld [vmem:[#allocation5 + $0x21b4] ss:$28 sps:$4 sm:$0xff]   ;;  %v17880_v53 = vld [vmem:[#allocation5 + $0x21bc] ss:$28 sps:$4 sm:$0xff]  }
 0x2be   :  { %9055 = vmatpush1.bf16.msra.mxu0 %v17807_v54  ;;  %9547 = vmatpush1.bf16.msra.mxu1 %v17810_v55  ;;  %v17875_v54 = vld [vmem:[#allocation5 + $0x21b0] ss:$28 sps:$4 sm:$0xff]   ;;  %v17878_v55 = vld [vmem:[#allocation5 + $0x21b8] ss:$28 sps:$4 sm:$0xff]  }
 0x2bf   :  { %9065 = vmatprep.subr.bf16.mxu0 %v17816_v58  ;;  %9557 = vmatprep.subr.bf16.mxu1 %v17819_v59  ;;  %v17883_v58 = vld [vmem:[#allocation5 + $0x21ec] ss:$28 sps:$4 sm:$0xff]   ;;  %v17886_v59 = vld [vmem:[#allocation5 + $0x21f4] ss:$28 sps:$4 sm:$0xff]  }
 0x2c1   :  { %9057 = vmatmul.mubr.bf16.vlgmr.msra.gmra.mrb[0].mxu0 %v19937_v61  ;;  %9549 = vmatmul.mubr.bf16.vlgmr.msra.gmra.mrb[0].mxu1 %v19937_v61 }
 0x2c2   :  { %9066 = vmatpush1.bf16.msra.mxu0 %v17814_v41  ;;  %9558 = vmatpush1.bf16.msra.mxu1 %v17817_v63  ;;  %v17881_v41 = vld [vmem:[#allocation5 + $0x21e8] ss:$28 sps:$4 sm:$0xff]   ;;  %v17884_v63 = vld [vmem:[#allocation5 + $0x21f0] ss:$28 sps:$4 sm:$0xff]  }
 0x2c3   :  { %9067 = vmatprep.subr.bf16.mxu0 %v17823_v0  ;;  %9559 = vmatprep.subr.bf16.mxu1 %v17826_v1  ;;  %v17889_v0 = vld [vmem:[#allocation5 + $0x2224] ss:$28 sps:$4 sm:$0xff]   ;;  %v17892_v1 = vld [vmem:[#allocation5 + $0x222c] ss:$28 sps:$4 sm:$0xff]  }
 0x2c4   :  { %9097 = vmatprep.mubr.bf16.mxu0 %v19941_v2  ;;  %9589 = vmatprep.mubr.bf16.mxu1 %v19941_v2 }
 0x2c6   :  { %9068 = vmatpush1.bf16.msra.mxu0 %v17821_v21  ;;  %9560 = vmatpush1.bf16.msra.mxu1 %v17824_v3  ;;  %v17887_v21 = vld [vmem:[#allocation5 + $0x2220] ss:$28 sps:$4 sm:$0xff]   ;;  %v17890_v3 = vld [vmem:[#allocation5 + $0x2228] ss:$28 sps:$4 sm:$0xff]  }
 0x2c7   :  { %9069 = vmatprep.subr.bf16.mxu0 %v17829_v4  ;;  %9561 = vmatprep.subr.bf16.mxu1 %v17832_v6  ;;  %v17895_v4 = vld [vmem:[#allocation5 + $0x225c] ss:$28 sps:$4 sm:$0xff]   ;;  %v17898_v6 = vld [vmem:[#allocation5 + $0x2264] ss:$28 sps:$4 sm:$0xff]  }
 0x2ca   :  { %9070 = vmatpush1.bf16.msra.mxu0 %v17827_v7  ;;  %9562 = vmatpush1.bf16.msra.mxu1 %v17830_v8  ;;  %v17893_v7 = vld [vmem:[#allocation5 + $0x2258] ss:$28 sps:$4 sm:$0xff]   ;;  %v17896_v8 = vld [vmem:[#allocation5 + $0x2260] ss:$28 sps:$4 sm:$0xff]  }
 0x2cb   :  { %9071 = vmatprep.subr.bf16.mxu0 %v17835_v12  ;;  %9563 = vmatprep.subr.bf16.mxu1 %v17838_v14  ;;  %v17901_v12 = vld [vmem:[#allocation5 + $0x2294] ss:$28 sps:$4 sm:$0xff]   ;;  %v17904_v14 = vld [vmem:[#allocation5 + $0x229c] ss:$28 sps:$4 sm:$0xff]  }
 0x2ce   :  { %9072 = vmatpush1.bf16.msra.mxu0 %v17833_v16  ;;  %9564 = vmatpush1.bf16.msra.mxu1 %v17836_v17  ;;  %v17899_v16 = vld [vmem:[#allocation5 + $0x2290] ss:$28 sps:$4 sm:$0xff]   ;;  %v17902_v17 = vld [vmem:[#allocation5 + $0x2298] ss:$28 sps:$4 sm:$0xff]  }
 0x2cf   :  { %9073 = vmatprep.subr.bf16.mxu0 %v17841_v56  ;;  %9565 = vmatprep.subr.bf16.mxu1 %v17844_v19  ;;  %v17907_v56 = vld [vmem:[#allocation5 + $0x22cc] ss:$28 sps:$4 sm:$0xff]   ;;  %v17910_v19 = vld [vmem:[#allocation5 + $0x22d4] ss:$28 sps:$4 sm:$0xff]  }
 0x2d2   :  { %9074 = vmatpush1.bf16.msra.mxu0 %v17839_v22  ;;  %9566 = vmatpush1.bf16.msra.mxu1 %v17842_v23  ;;  %v17905_v22 = vld [vmem:[#allocation5 + $0x22c8] ss:$28 sps:$4 sm:$0xff]   ;;  %v17908_v23 = vld [vmem:[#allocation5 + $0x22d0] ss:$28 sps:$4 sm:$0xff]  }
 0x2d3   :  { %9075 = vmatprep.subr.bf16.mxu0 %v17847_v25  ;;  %9567 = vmatprep.subr.bf16.mxu1 %v17850_v26  ;;  %v17914_v25 = vld [vmem:[#allocation5 + $0x2304] ss:$28 sps:$4 sm:$0xff]   ;;  %v17917_v26 = vld [vmem:[#allocation5 + $0x230c] ss:$28 sps:$4 sm:$0xff]  }
 0x2d6   :  { %9076 = vmatpush1.bf16.msra.mxu0 %v17845_v13  ;;  %9568 = vmatpush1.bf16.msra.mxu1 %v17848_v27  ;;  %v17912_v13 = vld [vmem:[#allocation5 + $0x2300] ss:$28 sps:$4 sm:$0xff]   ;;  %v17915_v27 = vld [vmem:[#allocation5 + $0x2308] ss:$28 sps:$4 sm:$0xff]  }
 0x2d7   :  { %9077 = vmatprep.subr.bf16.mxu0 %v17853_v28  ;;  %9569 = vmatprep.subr.bf16.mxu1 %v17856_v32  ;;  %v19949_v28 = vcombine.low %v19933_v60, %v19933_v60  ;;  %v19951_v32 = vld [vmem:[#allocation2 + $0x50] sm:$0xff]  ;;  %v17922_v60 = vld [vmem:[#allocation5 + $0x2340] ss:$28 sps:$4 sm:$0xff]  }
 0x2da   :  { %9078 = vmatpush1.bf16.msra.mxu0 %v17851_v33  ;;  %9570 = vmatpush1.bf16.msra.mxu1 %v17854_v34  ;;  %v17921_v33 = vld [vmem:[#allocation5 + $0x233c] ss:$28 sps:$4 sm:$0xff]   ;;  %v17924_v34 = vld [vmem:[#allocation5 + $0x2344] ss:$28 sps:$4 sm:$0xff]  }
 0x2db   :  { %9079 = vmatprep.subr.bf16.mxu0 %v17859_v37  ;;  %9571 = vmatprep.subr.bf16.mxu1 %v17862_v38  ;;  %v17919_v37 = vld [vmem:[#allocation5 + $0x2338] ss:$28 sps:$4 sm:$0xff]   ;;  %v19955_v38 = vcombine.high %v19951_v32, %v19951_v32 }
 0x2de   :  { %9080 = vmatpush1.bf16.msra.mxu0 %v17857_v39  ;;  %9572 = vmatpush1.bf16.msra.mxu1 %v17860_v40  ;;  %v17927_v39 = vld [vmem:[#allocation5 + $0x2374] ss:$28 sps:$4 sm:$0xff]   ;;  %v17930_v40 = vld [vmem:[#allocation5 + $0x237c] ss:$28 sps:$4 sm:$0xff]  }
 0x2df   :  { %9081 = vmatprep.subr.bf16.mxu0 %v17865_v9  ;;  %9573 = vmatprep.subr.bf16.mxu1 %v17868_v44  ;;  %v17925_v9 = vld [vmem:[#allocation5 + $0x2370] ss:$28 sps:$4 sm:$0xff]   ;;  %v17928_v44 = vld [vmem:[#allocation5 + $0x2378] ss:$28 sps:$4 sm:$0xff]  }
 0x2e2   :  { %9082 = vmatpush1.bf16.msra.mxu0 %v17863_v45  ;;  %9574 = vmatpush1.bf16.msra.mxu1 %v17866_v46  ;;  %v17933_v45 = vld [vmem:[#allocation5 + $0x23ac] ss:$28 sps:$4 sm:$0xff]   ;;  %v17936_v46 = vld [vmem:[#allocation5 + $0x23b4] ss:$28 sps:$4 sm:$0xff]  }
 0x2e3   :  { %9083 = vmatprep.subr.bf16.mxu0 %v17871_v31  ;;  %9575 = vmatprep.subr.bf16.mxu1 %v17874_v49  ;;  %v17931_v31 = vld [vmem:[#allocation5 + $0x23a8] ss:$28 sps:$4 sm:$0xff]   ;;  %v17934_v49 = vld [vmem:[#allocation5 + $0x23b0] ss:$28 sps:$4 sm:$0xff]  }
 0x2e6   :  { %9084 = vmatpush1.bf16.msra.mxu0 %v17869_v50  ;;  %9576 = vmatpush1.bf16.msra.mxu1 %v17872_v51  ;;  %v17939_v50 = vld [vmem:[#allocation5 + $0x23e4] ss:$28 sps:$4 sm:$0xff]   ;;  %v17942_v51 = vld [vmem:[#allocation5 + $0x23ec] ss:$28 sps:$4 sm:$0xff]  }
 0x2e7   :  { %9085 = vmatprep.subr.bf16.mxu0 %v17877_v52  ;;  %9577 = vmatprep.subr.bf16.mxu1 %v17880_v53  ;;  %v17937_v52 = vld [vmem:[#allocation5 + $0x23e0] ss:$28 sps:$4 sm:$0xff]   ;;  %v17940_v53 = vld [vmem:[#allocation5 + $0x23e8] ss:$28 sps:$4 sm:$0xff]  }
 0x2ea   :  { %9086 = vmatpush1.bf16.msra.mxu0 %v17875_v54  ;;  %9578 = vmatpush1.bf16.msra.mxu1 %v17878_v55  ;;  %v17945_v54 = vld [vmem:[#allocation5 + $0x241c] ss:$28 sps:$4 sm:$0xff]   ;;  %v17948_v55 = vld [vmem:[#allocation5 + $0x2424] ss:$28 sps:$4 sm:$0xff]  }
 0x2eb   :  { %9087 = vmatprep.subr.bf16.mxu0 %v17883_v58  ;;  %9579 = vmatprep.subr.bf16.mxu1 %v17886_v59  ;;  %v17943_v58 = vld [vmem:[#allocation5 + $0x2418] ss:$28 sps:$4 sm:$0xff]   ;;  %v17946_v59 = vld [vmem:[#allocation5 + $0x2420] ss:$28 sps:$4 sm:$0xff]  }
 0x2ee   :  { %9088 = vmatpush1.bf16.msra.mxu0 %v17881_v41  ;;  %9580 = vmatpush1.bf16.msra.mxu1 %v17884_v63  ;;  %v17951_v41 = vld [vmem:[#allocation5 + $0x2454] ss:$28 sps:$4 sm:$0xff]   ;;  %v17954_v63 = vld [vmem:[#allocation5 + $0x245c] ss:$28 sps:$4 sm:$0xff]  }
 0x2ef   :  { %9089 = vmatprep.subr.bf16.mxu0 %v17889_v0  ;;  %9581 = vmatprep.subr.bf16.mxu1 %v17892_v1  ;;  %v17949_v0 = vld [vmem:[#allocation5 + $0x2450] ss:$28 sps:$4 sm:$0xff]   ;;  %v17952_v1 = vld [vmem:[#allocation5 + $0x2458] ss:$28 sps:$4 sm:$0xff]  }
 0x2f2   :  { %9090 = vmatpush1.bf16.msra.mxu0 %v17887_v21  ;;  %9582 = vmatpush1.bf16.msra.mxu1 %v17890_v3  ;;  %v17957_v21 = vld [vmem:[#allocation5 + $0x248c] ss:$28 sps:$4 sm:$0xff]   ;;  %v17960_v3 = vld [vmem:[#allocation5 + $0x2494] ss:$28 sps:$4 sm:$0xff]  }
 0x2f3   :  { %9091 = vmatprep.subr.bf16.mxu0 %v17895_v4  ;;  %9583 = vmatprep.subr.bf16.mxu1 %v17898_v6  ;;  %v17955_v4 = vld [vmem:[#allocation5 + $0x2488] ss:$28 sps:$4 sm:$0xff]   ;;  %v17958_v6 = vld [vmem:[#allocation5 + $0x2490] ss:$28 sps:$4 sm:$0xff]  }
 0x2f6   :  { %9092 = vmatpush1.bf16.msra.mxu0 %v17893_v7  ;;  %9584 = vmatpush1.bf16.msra.mxu1 %v17896_v8  ;;  %v17963_v7 = vld [vmem:[#allocation5 + $0x24c4] ss:$28 sps:$4 sm:$0xff]   ;;  %v17966_v8 = vld [vmem:[#allocation5 + $0x24cc] ss:$28 sps:$4 sm:$0xff]  }
 0x2f7   :  { %9093 = vmatprep.subr.bf16.mxu0 %v17901_v12  ;;  %9585 = vmatprep.subr.bf16.mxu1 %v17904_v14  ;;  %v17961_v12 = vld [vmem:[#allocation5 + $0x24c0] ss:$28 sps:$4 sm:$0xff]   ;;  %v17964_v14 = vld [vmem:[#allocation5 + $0x24c8] ss:$28 sps:$4 sm:$0xff]  }
 0x2fa   :  { %9094 = vmatpush1.bf16.msra.mxu0 %v17899_v16  ;;  %9586 = vmatpush1.bf16.msra.mxu1 %v17902_v17  ;;  %v17969_v16 = vld [vmem:[#allocation5 + $0x24fc] ss:$28 sps:$4 sm:$0xff]   ;;  %v17972_v17 = vld [vmem:[#allocation5 + $0x2504] ss:$28 sps:$4 sm:$0xff]  }
 0x2fb   :  { %9095 = vmatprep.subr.bf16.mxu0 %v17907_v56  ;;  %9587 = vmatprep.subr.bf16.mxu1 %v17910_v19  ;;  %v17967_v56 = vld [vmem:[#allocation5 + $0x24f8] ss:$28 sps:$4 sm:$0xff]   ;;  %v17970_v19 = vld [vmem:[#allocation5 + $0x2500] ss:$28 sps:$4 sm:$0xff]  }
 0x2fe   :  { %9096 = vmatpush1.bf16.msra.mxu0 %v17905_v22  ;;  %9588 = vmatpush1.bf16.msra.mxu1 %v17908_v23  ;;  %v17975_v22 = vld [vmem:[#allocation5 + $0x2534] ss:$28 sps:$4 sm:$0xff]   ;;  %v17978_v23 = vld [vmem:[#allocation5 + $0x253c] ss:$28 sps:$4 sm:$0xff]  }
 0x2ff   :  { %9106 = vmatprep.subr.bf16.mxu0 %v17914_v25  ;;  %9598 = vmatprep.subr.bf16.mxu1 %v17917_v26  ;;  %v17973_v25 = vld [vmem:[#allocation5 + $0x2530] ss:$28 sps:$4 sm:$0xff]   ;;  %v17976_v26 = vld [vmem:[#allocation5 + $0x2538] ss:$28 sps:$4 sm:$0xff]  }
 0x301   :  { %9098 = vmatmul.mubr.bf16.vlgmr.msra.gmra.mrb[0].mxu0 %v19949_v28  ;;  %9590 = vmatmul.mubr.bf16.vlgmr.msra.gmra.mrb[0].mxu1 %v19949_v28 }
 0x302   :  { %9107 = vmatpush1.bf16.msra.mxu0 %v17912_v13  ;;  %9599 = vmatpush1.bf16.msra.mxu1 %v17915_v27  ;;  %v17981_v13 = vld [vmem:[#allocation5 + $0x256c] ss:$28 sps:$4 sm:$0xff]   ;;  %v17984_v27 = vld [vmem:[#allocation5 + $0x2574] ss:$28 sps:$4 sm:$0xff]  }
 0x303   :  { %9108 = vmatprep.subr.bf16.mxu0 %v17921_v33  ;;  %9600 = vmatprep.subr.bf16.mxu1 %v17924_v34  ;;  %v17979_v33 = vld [vmem:[#allocation5 + $0x2568] ss:$28 sps:$4 sm:$0xff]   ;;  %v17982_v34 = vld [vmem:[#allocation5 + $0x2570] ss:$28 sps:$4 sm:$0xff]  }
 0x304   :  { %9138 = vmatprep.mubr.bf16.mxu0 %v19955_v38  ;;  %9630 = vmatprep.mubr.bf16.mxu1 %v19955_v38 }
 0x306   :  { %9109 = vmatpush1.bf16.msra.mxu0 %v17919_v37  ;;  %9601 = vmatpush1.bf16.msra.mxu1 %v17922_v60  ;;  %v17987_v37 = vld [vmem:[#allocation5 + $0x25a4] ss:$28 sps:$4 sm:$0xff]   ;;  %v17990_v60 = vld [vmem:[#allocation5 + $0x25ac] ss:$28 sps:$4 sm:$0xff]  }
 0x307   :  { %9110 = vmatprep.subr.bf16.mxu0 %v17927_v39  ;;  %9602 = vmatprep.subr.bf16.mxu1 %v17930_v40  ;;  %v17985_v39 = vld [vmem:[#allocation5 + $0x25a0] ss:$28 sps:$4 sm:$0xff]   ;;  %v17988_v40 = vld [vmem:[#allocation5 + $0x25a8] ss:$28 sps:$4 sm:$0xff]  }
 0x30a   :  { %9111 = vmatpush1.bf16.msra.mxu0 %v17925_v9  ;;  %9603 = vmatpush1.bf16.msra.mxu1 %v17928_v44  ;;  %v17993_v9 = vld [vmem:[#allocation5 + $0x25dc] ss:$28 sps:$4 sm:$0xff]   ;;  %v17996_v44 = vld [vmem:[#allocation5 + $0x25e4] ss:$28 sps:$4 sm:$0xff]  }
 0x30b   :  { %9112 = vmatprep.subr.bf16.mxu0 %v17933_v45  ;;  %9604 = vmatprep.subr.bf16.mxu1 %v17936_v46  ;;  %v17991_v45 = vld [vmem:[#allocation5 + $0x25d8] ss:$28 sps:$4 sm:$0xff]   ;;  %v17994_v46 = vld [vmem:[#allocation5 + $0x25e0] ss:$28 sps:$4 sm:$0xff]  }
 0x30e   :  { %9113 = vmatpush1.bf16.msra.mxu0 %v17931_v31  ;;  %9605 = vmatpush1.bf16.msra.mxu1 %v17934_v49  ;;  %v17999_v31 = vld [vmem:[#allocation5 + $0x2614] ss:$28 sps:$4 sm:$0xff]   ;;  %v18002_v49 = vld [vmem:[#allocation5 + $0x261c] ss:$28 sps:$4 sm:$0xff]  }
 0x30f   :  { %9114 = vmatprep.subr.bf16.mxu0 %v17939_v50  ;;  %9606 = vmatprep.subr.bf16.mxu1 %v17942_v51  ;;  %v17997_v50 = vld [vmem:[#allocation5 + $0x2610] ss:$28 sps:$4 sm:$0xff]   ;;  %v18000_v51 = vld [vmem:[#allocation5 + $0x2618] ss:$28 sps:$4 sm:$0xff]  }
 0x312   :  { %9115 = vmatpush1.bf16.msra.mxu0 %v17937_v52  ;;  %9607 = vmatpush1.bf16.msra.mxu1 %v17940_v53  ;;  %v18005_v52 = vld [vmem:[#allocation5 + $0x264c] ss:$28 sps:$4 sm:$0xff]   ;;  %v18008_v53 = vld [vmem:[#allocation5 + $0x2654] ss:$28 sps:$4 sm:$0xff]  }
 0x313   :  { %9116 = vmatprep.subr.bf16.mxu0 %v17945_v54  ;;  %9608 = vmatprep.subr.bf16.mxu1 %v17948_v55  ;;  %v18003_v54 = vld [vmem:[#allocation5 + $0x2648] ss:$28 sps:$4 sm:$0xff]   ;;  %v18006_v55 = vld [vmem:[#allocation5 + $0x2650] ss:$28 sps:$4 sm:$0xff]  }
 0x316   :  { %9117 = vmatpush1.bf16.msra.mxu0 %v17943_v58  ;;  %9609 = vmatpush1.bf16.msra.mxu1 %v17946_v59  ;;  %v18012_v58 = vld [vmem:[#allocation5 + $0x2684] ss:$28 sps:$4 sm:$0xff]   ;;  %v18015_v59 = vld [vmem:[#allocation5 + $0x268c] ss:$28 sps:$4 sm:$0xff]  }
 0x317   :  { %9118 = vmatprep.subr.bf16.mxu0 %v17951_v41  ;;  %9610 = vmatprep.subr.bf16.mxu1 %v17954_v63  ;;  %v18010_v41 = vld [vmem:[#allocation5 + $0x2680] ss:$28 sps:$4 sm:$0xff]  }
 0x318   :  { %v19961_v63 = vld [vmem:[#allocation2 + $0x58] sm:$0xff] }
 0x31a   :  { %9119 = vmatpush1.bf16.msra.mxu0 %v17949_v0  ;;  %9611 = vmatpush1.bf16.msra.mxu1 %v17952_v1  ;;  %v19965_v0 = vcombine.low %v19951_v32, %v19951_v32  ;;  %v18013_v1 = vld [vmem:[#allocation5 + $0x2688] ss:$28 sps:$4 sm:$0xff]   ;;  %v18020_v32 = vld [vmem:[#allocation5 + $0x26c0] ss:$28 sps:$4 sm:$0xff]  }
 0x31b   :  { %9120 = vmatprep.subr.bf16.mxu0 %v17957_v21  ;;  %9612 = vmatprep.subr.bf16.mxu1 %v17960_v3  ;;  %v18019_v21 = vld [vmem:[#allocation5 + $0x26bc] ss:$28 sps:$4 sm:$0xff]   ;;  %v18022_v3 = vld [vmem:[#allocation5 + $0x26c4] ss:$28 sps:$4 sm:$0xff]  }
 0x31e   :  { %9121 = vmatpush1.bf16.msra.mxu0 %v17955_v4  ;;  %9613 = vmatpush1.bf16.msra.mxu1 %v17958_v6  ;;  %v18017_v4 = vld [vmem:[#allocation5 + $0x26b8] ss:$28 sps:$4 sm:$0xff]   ;;  %v19969_v6 = vcombine.high %v19961_v63, %v19961_v63 }
 0x31f   :  { %9122 = vmatprep.subr.bf16.mxu0 %v17963_v7  ;;  %9614 = vmatprep.subr.bf16.mxu1 %v17966_v8  ;;  %v18025_v7 = vld [vmem:[#allocation5 + $0x26f4] ss:$28 sps:$4 sm:$0xff]   ;;  %v18028_v8 = vld [vmem:[#allocation5 + $0x26fc] ss:$28 sps:$4 sm:$0xff]  }
 0x322   :  { %9123 = vmatpush1.bf16.msra.mxu0 %v17961_v12  ;;  %9615 = vmatpush1.bf16.msra.mxu1 %v17964_v14  ;;  %v18023_v12 = vld [vmem:[#allocation5 + $0x26f0] ss:$28 sps:$4 sm:$0xff]   ;;  %v18026_v14 = vld [vmem:[#allocation5 + $0x26f8] ss:$28 sps:$4 sm:$0xff]  }
 0x323   :  { %9124 = vmatprep.subr.bf16.mxu0 %v17969_v16  ;;  %9616 = vmatprep.subr.bf16.mxu1 %v17972_v17  ;;  %v18031_v16 = vld [vmem:[#allocation5 + $0x272c] ss:$28 sps:$4 sm:$0xff]   ;;  %v18034_v17 = vld [vmem:[#allocation5 + $0x2734] ss:$28 sps:$4 sm:$0xff]  }
 0x326   :  { %9125 = vmatpush1.bf16.msra.mxu0 %v17967_v56  ;;  %9617 = vmatpush1.bf16.msra.mxu1 %v17970_v19  ;;  %v18029_v56 = vld [vmem:[#allocation5 + $0x2728] ss:$28 sps:$4 sm:$0xff]   ;;  %v18032_v19 = vld [vmem:[#allocation5 + $0x2730] ss:$28 sps:$4 sm:$0xff]  }
 0x327   :  { %9126 = vmatprep.subr.bf16.mxu0 %v17975_v22  ;;  %9618 = vmatprep.subr.bf16.mxu1 %v17978_v23  ;;  %v18037_v22 = vld [vmem:[#allocation5 + $0x2764] ss:$28 sps:$4 sm:$0xff]   ;;  %v18040_v23 = vld [vmem:[#allocation5 + $0x276c] ss:$28 sps:$4 sm:$0xff]  }
 0x32a   :  { %9127 = vmatpush1.bf16.msra.mxu0 %v17973_v25  ;;  %9619 = vmatpush1.bf16.msra.mxu1 %v17976_v26  ;;  %v18035_v25 = vld [vmem:[#allocation5 + $0x2760] ss:$28 sps:$4 sm:$0xff]   ;;  %v18038_v26 = vld [vmem:[#allocation5 + $0x2768] ss:$28 sps:$4 sm:$0xff]  }
 0x32b   :  { %9128 = vmatprep.subr.bf16.mxu0 %v17981_v13  ;;  %9620 = vmatprep.subr.bf16.mxu1 %v17984_v27  ;;  %v18043_v13 = vld [vmem:[#allocation5 + $0x279c] ss:$28 sps:$4 sm:$0xff]   ;;  %v18046_v27 = vld [vmem:[#allocation5 + $0x27a4] ss:$28 sps:$4 sm:$0xff]  }
 0x32e   :  { %9129 = vmatpush1.bf16.msra.mxu0 %v17979_v33  ;;  %9621 = vmatpush1.bf16.msra.mxu1 %v17982_v34  ;;  %v18041_v33 = vld [vmem:[#allocation5 + $0x2798] ss:$28 sps:$4 sm:$0xff]   ;;  %v18044_v34 = vld [vmem:[#allocation5 + $0x27a0] ss:$28 sps:$4 sm:$0xff]  }
 0x32f   :  { %9130 = vmatprep.subr.bf16.mxu0 %v17987_v37  ;;  %9622 = vmatprep.subr.bf16.mxu1 %v17990_v60  ;;  %v18049_v37 = vld [vmem:[#allocation5 + $0x27d4] ss:$28 sps:$4 sm:$0xff]   ;;  %v18052_v60 = vld [vmem:[#allocation5 + $0x27dc] ss:$28 sps:$4 sm:$0xff]  }
 0x332   :  { %9131 = vmatpush1.bf16.msra.mxu0 %v17985_v39  ;;  %9623 = vmatpush1.bf16.msra.mxu1 %v17988_v40  ;;  %v18047_v39 = vld [vmem:[#allocation5 + $0x27d0] ss:$28 sps:$4 sm:$0xff]   ;;  %v18050_v40 = vld [vmem:[#allocation5 + $0x27d8] ss:$28 sps:$4 sm:$0xff]  }
 0x333   :  { %9132 = vmatprep.subr.bf16.mxu0 %v17993_v9  ;;  %9624 = vmatprep.subr.bf16.mxu1 %v17996_v44  ;;  %v18055_v9 = vld [vmem:[#allocation5 + $0x280c] ss:$28 sps:$4 sm:$0xff]   ;;  %v18058_v44 = vld [vmem:[#allocation5 + $0x2814] ss:$28 sps:$4 sm:$0xff]  }
 0x336   :  { %9133 = vmatpush1.bf16.msra.mxu0 %v17991_v45  ;;  %9625 = vmatpush1.bf16.msra.mxu1 %v17994_v46  ;;  %v18053_v45 = vld [vmem:[#allocation5 + $0x2808] ss:$28 sps:$4 sm:$0xff]   ;;  %v18056_v46 = vld [vmem:[#allocation5 + $0x2810] ss:$28 sps:$4 sm:$0xff]  }
 0x337   :  { %9134 = vmatprep.subr.bf16.mxu0 %v17999_v31  ;;  %9626 = vmatprep.subr.bf16.mxu1 %v18002_v49  ;;  %v18061_v31 = vld [vmem:[#allocation5 + $0x2844] ss:$28 sps:$4 sm:$0xff]   ;;  %v18064_v49 = vld [vmem:[#allocation5 + $0x284c] ss:$28 sps:$4 sm:$0xff]  }
 0x33a   :  { %9135 = vmatpush1.bf16.msra.mxu0 %v17997_v50  ;;  %9627 = vmatpush1.bf16.msra.mxu1 %v18000_v51  ;;  %v18059_v50 = vld [vmem:[#allocation5 + $0x2840] ss:$28 sps:$4 sm:$0xff]   ;;  %v18062_v51 = vld [vmem:[#allocation5 + $0x2848] ss:$28 sps:$4 sm:$0xff]  }
 0x33b   :  { %9136 = vmatprep.subr.bf16.mxu0 %v18005_v52  ;;  %9628 = vmatprep.subr.bf16.mxu1 %v18008_v53  ;;  %v18067_v52 = vld [vmem:[#allocation5 + $0x287c] ss:$28 sps:$4 sm:$0xff]   ;;  %v18070_v53 = vld [vmem:[#allocation5 + $0x2884] ss:$28 sps:$4 sm:$0xff]  }
 0x33e   :  { %9137 = vmatpush1.bf16.msra.mxu0 %v18003_v54  ;;  %9629 = vmatpush1.bf16.msra.mxu1 %v18006_v55  ;;  %v18065_v54 = vld [vmem:[#allocation5 + $0x2878] ss:$28 sps:$4 sm:$0xff]   ;;  %v18068_v55 = vld [vmem:[#allocation5 + $0x2880] ss:$28 sps:$4 sm:$0xff]  }
 0x33f   :  { %9147 = vmatprep.subr.bf16.mxu0 %v18012_v58  ;;  %9639 = vmatprep.subr.bf16.mxu1 %v18015_v59  ;;  %v18073_v58 = vld [vmem:[#allocation5 + $0x28b4] ss:$28 sps:$4 sm:$0xff]   ;;  %v18076_v59 = vld [vmem:[#allocation5 + $0x28bc] ss:$28 sps:$4 sm:$0xff]  }
 0x341   :  { %9139 = vmatmul.mubr.bf16.vlgmr.msra.gmra.mrb[0].mxu0 %v19965_v0  ;;  %9631 = vmatmul.mubr.bf16.vlgmr.msra.gmra.mrb[0].mxu1 %v19965_v0 }
 0x342   :  { %9148 = vmatpush1.bf16.msra.mxu0 %v18010_v41  ;;  %9640 = vmatpush1.bf16.msra.mxu1 %v18013_v1  ;;  %v18071_v41 = vld [vmem:[#allocation5 + $0x28b0] ss:$28 sps:$4 sm:$0xff]   ;;  %v18074_v1 = vld [vmem:[#allocation5 + $0x28b8] ss:$28 sps:$4 sm:$0xff]  }
 0x343   :  { %9149 = vmatprep.subr.bf16.mxu0 %v18019_v21  ;;  %9641 = vmatprep.subr.bf16.mxu1 %v18022_v3  ;;  %v18079_v21 = vld [vmem:[#allocation5 + $0x28ec] ss:$28 sps:$4 sm:$0xff]   ;;  %v18082_v3 = vld [vmem:[#allocation5 + $0x28f4] ss:$28 sps:$4 sm:$0xff]  }
 0x344   :  { %9179 = vmatprep.mubr.bf16.mxu0 %v19969_v6  ;;  %9671 = vmatprep.mubr.bf16.mxu1 %v19969_v6 }
 0x346   :  { %9150 = vmatpush1.bf16.msra.mxu0 %v18017_v4  ;;  %9642 = vmatpush1.bf16.msra.mxu1 %v18020_v32  ;;  %v18077_v4 = vld [vmem:[#allocation5 + $0x28e8] ss:$28 sps:$4 sm:$0xff]   ;;  %v18080_v32 = vld [vmem:[#allocation5 + $0x28f0] ss:$28 sps:$4 sm:$0xff]  }
 0x347   :  { %9151 = vmatprep.subr.bf16.mxu0 %v18025_v7  ;;  %9643 = vmatprep.subr.bf16.mxu1 %v18028_v8  ;;  %v18085_v7 = vld [vmem:[#allocation5 + $0x2924] ss:$28 sps:$4 sm:$0xff]   ;;  %v18088_v8 = vld [vmem:[#allocation5 + $0x292c] ss:$28 sps:$4 sm:$0xff]  }
 0x34a   :  { %9152 = vmatpush1.bf16.msra.mxu0 %v18023_v12  ;;  %9644 = vmatpush1.bf16.msra.mxu1 %v18026_v14  ;;  %v18083_v12 = vld [vmem:[#allocation5 + $0x2920] ss:$28 sps:$4 sm:$0xff]   ;;  %v18086_v14 = vld [vmem:[#allocation5 + $0x2928] ss:$28 sps:$4 sm:$0xff]  }
 0x34b   :  { %9153 = vmatprep.subr.bf16.mxu0 %v18031_v16  ;;  %9645 = vmatprep.subr.bf16.mxu1 %v18034_v17  ;;  %v18091_v16 = vld [vmem:[#allocation5 + $0x295c] ss:$28 sps:$4 sm:$0xff]   ;;  %v18094_v17 = vld [vmem:[#allocation5 + $0x2964] ss:$28 sps:$4 sm:$0xff]  }
 0x34e   :  { %9154 = vmatpush1.bf16.msra.mxu0 %v18029_v56  ;;  %9646 = vmatpush1.bf16.msra.mxu1 %v18032_v19  ;;  %v18089_v56 = vld [vmem:[#allocation5 + $0x2958] ss:$28 sps:$4 sm:$0xff]   ;;  %v18092_v19 = vld [vmem:[#allocation5 + $0x2960] ss:$28 sps:$4 sm:$0xff]  }
 0x34f   :  { %9155 = vmatprep.subr.bf16.mxu0 %v18037_v22  ;;  %9647 = vmatprep.subr.bf16.mxu1 %v18040_v23  ;;  %v18097_v22 = vld [vmem:[#allocation5 + $0x2994] ss:$28 sps:$4 sm:$0xff]   ;;  %v18100_v23 = vld [vmem:[#allocation5 + $0x299c] ss:$28 sps:$4 sm:$0xff]  }
 0x352   :  { %9156 = vmatpush1.bf16.msra.mxu0 %v18035_v25  ;;  %9648 = vmatpush1.bf16.msra.mxu1 %v18038_v26  ;;  %v18095_v25 = vld [vmem:[#allocation5 + $0x2990] ss:$28 sps:$4 sm:$0xff]   ;;  %v18098_v26 = vld [vmem:[#allocation5 + $0x2998] ss:$28 sps:$4 sm:$0xff]  }
 0x353   :  { %9157 = vmatprep.subr.bf16.mxu0 %v18043_v13  ;;  %9649 = vmatprep.subr.bf16.mxu1 %v18046_v27  ;;  %v18103_v13 = vld [vmem:[#allocation5 + $0x29cc] ss:$28 sps:$4 sm:$0xff]   ;;  %v18106_v27 = vld [vmem:[#allocation5 + $0x29d4] ss:$28 sps:$4 sm:$0xff]  }
 0x356   :  { %9158 = vmatpush1.bf16.msra.mxu0 %v18041_v33  ;;  %9650 = vmatpush1.bf16.msra.mxu1 %v18044_v34  ;;  %v18101_v33 = vld [vmem:[#allocation5 + $0x29c8] ss:$28 sps:$4 sm:$0xff]   ;;  %v18104_v34 = vld [vmem:[#allocation5 + $0x29d0] ss:$28 sps:$4 sm:$0xff]  }
 0x357   :  { %9159 = vmatprep.subr.bf16.mxu0 %v18049_v37  ;;  %9651 = vmatprep.subr.bf16.mxu1 %v18052_v60  ;;  %v18111_v37 = vld [vmem:[#allocation5 + $0x14] ss:$28 sps:$4 sm:$0xff]  }
 0x358   :  { %v18112_v60 = vld [vmem:[#allocation5 + $0x1d8] ss:$28 sps:$4 sm:$0xff]  }
 0x35a   :  { %9160 = vmatpush1.bf16.msra.mxu0 %v18047_v39  ;;  %9652 = vmatpush1.bf16.msra.mxu1 %v18050_v40  ;;  %v18109_v39 = vld [vmem:[#allocation5 + $0x10] ss:$28 sps:$4 sm:$0xff]   ;;  %v19977_v40 = vcombine.low %v19961_v63, %v19961_v63  ;;  %v18122_v63 = vld [vmem:[#allocation5 + $0x248] ss:$28 sps:$4 sm:$0xff]  }
 0x35b   :  { %9161 = vmatprep.subr.bf16.mxu0 %v18055_v9  ;;  %9653 = vmatprep.subr.bf16.mxu1 %v18058_v44  ;;  %v18113_v9 = vld [vmem:[#allocation5 + $0x18] ss:$28 sps:$4 sm:$0xff]   ;;  %v18116_v44 = vld [vmem:[#allocation5 + $0x4c] ss:$28 sps:$4 sm:$0xff]  }
 0x35e   :  { %9162 = vmatpush1.bf16.msra.mxu0 %v18053_v45  ;;  %9654 = vmatpush1.bf16.msra.mxu1 %v18056_v46  ;;  %v18117_v45 = vld [vmem:[#allocation5 + $0x210] ss:$28 sps:$4 sm:$0xff]   ;;  %v18114_v46 = vld [vmem:[#allocation5 + $0x48] ss:$28 sps:$4 sm:$0xff]  }
 0x35f   :  { %9163 = vmatprep.subr.bf16.mxu0 %v18061_v31  ;;  %9655 = vmatprep.subr.bf16.mxu1 %v18064_v49  ;;  %v18118_v31 = vld [vmem:[#allocation5 + $0x50] ss:$28 sps:$4 sm:$0xff]   ;;  %v18121_v49 = vld [vmem:[#allocation5 + $0x84] ss:$28 sps:$4 sm:$0xff]  }
 0x362   :  { %9164 = vmatpush1.bf16.msra.mxu0 %v18059_v50  ;;  %9656 = vmatpush1.bf16.msra.mxu1 %v18062_v51  ;;  %v18119_v50 = vld [vmem:[#allocation5 + $0x80] ss:$28 sps:$4 sm:$0xff]   ;;  %v18123_v51 = vld [vmem:[#allocation5 + $0x88] ss:$28 sps:$4 sm:$0xff]  }
 0x363   :  { %9165 = vmatprep.subr.bf16.mxu0 %v18067_v52  ;;  %9657 = vmatprep.subr.bf16.mxu1 %v18070_v53  ;;  %v18126_v52 = vld [vmem:[#allocation5 + $0xbc] ss:$28 sps:$4 sm:$0xff]  }
 0x364   :  { %v18127_v53 = vld [vmem:[#allocation5 + $0x280] ss:$28 sps:$4 sm:$0xff]  }
 0x366   :  { %9166 = vmatpush1.bf16.msra.mxu0 %v18065_v54  ;;  %9658 = vmatpush1.bf16.msra.mxu1 %v18068_v55  ;;  %v18124_v54 = vld [vmem:[#allocation5 + $0xb8] ss:$28 sps:$4 sm:$0xff]   ;;  %v18128_v55 = vld [vmem:[#allocation5 + $0xc0] ss:$28 sps:$4 sm:$0xff]  }
 0x367   :  { %9167 = vmatprep.subr.bf16.mxu0 %v18073_v58  ;;  %9659 = vmatprep.subr.bf16.mxu1 %v18076_v59  ;;  %v18131_v58 = vld [vmem:[#allocation5 + $0xf4] ss:$28 sps:$4 sm:$0xff]  }
 0x368   :  { %v18132_v59 = vld [vmem:[#allocation5 + $0x2b8] ss:$28 sps:$4 sm:$0xff]  }
 0x36a   :  { %9168 = vmatpush1.bf16.msra.mxu0 %v18071_v41  ;;  %9660 = vmatpush1.bf16.msra.mxu1 %v18074_v1  ;;  %v18129_v41 = vld [vmem:[#allocation5 + $0xf0] ss:$28 sps:$4 sm:$0xff]   ;;  %v18133_v1 = vld [vmem:[#allocation5 + $0xf8] ss:$28 sps:$4 sm:$0xff]  }
 0x36b   :  { %9169 = vmatprep.subr.bf16.mxu0 %v18079_v21  ;;  %9661 = vmatprep.subr.bf16.mxu1 %v18082_v3  ;;  %v18137_v21 = vld [vmem:[#allocation5 + $0x2f0] ss:$28 sps:$4 sm:$0xff]   ;;  %v18134_v3 = vld [vmem:[#allocation5 + $0x128] ss:$28 sps:$4 sm:$0xff]  }
 0x36e   :  { %9170 = vmatpush1.bf16.msra.mxu0 %v18077_v4  ;;  %9662 = vmatpush1.bf16.msra.mxu1 %v18080_v32  ;;  %v18138_v4 = vld [vmem:[#allocation5 + $0x130] ss:$28 sps:$4 sm:$0xff]   ;;  %v18141_v32 = vld [vmem:[#allocation5 + $0x164] ss:$28 sps:$4 sm:$0xff]  }
 0x36f   :  { %9171 = vmatprep.subr.bf16.mxu0 %v18085_v7  ;;  %9663 = vmatprep.subr.bf16.mxu1 %v18088_v8  ;;  %v18142_v7 = vld [vmem:[#allocation5 + $0x328] ss:$28 sps:$4 sm:$0xff]   ;;  %v18139_v8 = vld [vmem:[#allocation5 + $0x160] ss:$28 sps:$4 sm:$0xff]  }
 0x372   :  { %9172 = vmatpush1.bf16.msra.mxu0 %v18083_v12  ;;  %9664 = vmatpush1.bf16.msra.mxu1 %v18086_v14  ;;  %v18143_v12 = vld [vmem:[#allocation5 + $0x168] ss:$28 sps:$4 sm:$0xff]   ;;  %v18146_v14 = vld [vmem:[#allocation5 + $0x19c] ss:$28 sps:$4 sm:$0xff]  }
 0x373   :  { %9173 = vmatprep.subr.bf16.mxu0 %v18091_v16  ;;  %9665 = vmatprep.subr.bf16.mxu1 %v18094_v17  ;;  %v18147_v16 = vld [vmem:[#allocation5 + $0x360] ss:$28 sps:$4 sm:$0xff]   ;;  %v18144_v17 = vld [vmem:[#allocation5 + $0x198] ss:$28 sps:$4 sm:$0xff]  }
 0x376   :  { %9174 = vmatpush1.bf16.msra.mxu0 %v18089_v56  ;;  %9666 = vmatpush1.bf16.msra.mxu1 %v18092_v19  ;;  %v18148_v56 = vld [vmem:[#allocation5 + $0x1a0] ss:$28 sps:$4 sm:$0xff]   ;;  %v18151_v19 = vld [vmem:[#allocation5 + $0x1d4] ss:$28 sps:$4 sm:$0xff]  }
 0x377   :  { %9175 = vmatprep.subr.bf16.mxu0 %v18097_v22  ;;  %9667 = vmatprep.subr.bf16.mxu1 %v18100_v23  ;;  %v18152_v22 = vld [vmem:[#allocation5 + $0x558] ss:$28 sps:$4 sm:$0xff]   ;;  %v18149_v23 = vld [vmem:[#allocation5 + $0x1d0] ss:$28 sps:$4 sm:$0xff]  }
 0x37a   :  { %9176 = vmatpush1.bf16.msra.mxu0 %v18095_v25  ;;  %9668 = vmatpush1.bf16.msra.mxu1 %v18098_v26  ;;  %v18153_v25 = vld [vmem:[#allocation5 + $0x398] ss:$28 sps:$4 sm:$0xff]   ;;  %v18156_v26 = vld [vmem:[#allocation5 + $0x20c] ss:$28 sps:$4 sm:$0xff]  }
 0x37b   :  { %9177 = vmatprep.subr.bf16.mxu0 %v18103_v13  ;;  %9669 = vmatprep.subr.bf16.mxu1 %v18106_v27  ;;  %v18157_v13 = vld [vmem:[#allocation5 + $0x590] ss:$28 sps:$4 sm:$0xff]   ;;  %v18154_v27 = vld [vmem:[#allocation5 + $0x208] ss:$28 sps:$4 sm:$0xff]  }
 0x37e   :  { %9178 = vmatpush1.bf16.msra.mxu0 %v18101_v33  ;;  %9670 = vmatpush1.bf16.msra.mxu1 %v18104_v34  ;;  %v18158_v33 = vld [vmem:[#allocation5 + $0x3d0] ss:$28 sps:$4 sm:$0xff]   ;;  %v18161_v34 = vld [vmem:[#allocation5 + $0x244] ss:$28 sps:$4 sm:$0xff]  }
 0x37f   :  { %9680 = vmatprep.subr.bf16.mxu0 %v18111_v37  ;;  %16284 = vmatprep.subr.bf16.mxu1 %v18112_v60  ;;  %v18162_v37 = vld [vmem:[#allocation5 + $0x5c8] ss:$28 sps:$4 sm:$0xff]   ;;  %v18159_v60 = vld [vmem:[#allocation5 + $0x240] ss:$28 sps:$4 sm:$0xff]  }
 0x381   :  { %9180 = vmatmul.mubr.bf16.vlgmr.msra.gmra.mrb[0].mxu0 %v19977_v40  ;;  %9672 = vmatmul.mubr.bf16.vlgmr.msra.gmra.mrb[0].mxu1 %v19977_v40 }
 0x382   :  { %9681 = vmatpush1.bf16.msra.mxu0 %v18109_v39  ;;  %16285 = vmatpush3.bf16.msra.mxu1 %v18113_v9  ;;  %v18163_v39 = vld [vmem:[#allocation5 + $0x408] ss:$28 sps:$4 sm:$0xff]   ;;  %v18166_v9 = vld [vmem:[#allocation5 + $0x27c] ss:$28 sps:$4 sm:$0xff]  }
 0x383   :  { %9682 = vmatprep.subr.bf16.mxu0 %v18116_v44  ;;  %16286 = vmatprep.subr.bf16.mxu1 %v18117_v45  ;;  %v18167_v44 = vld [vmem:[#allocation5 + $0x600] ss:$28 sps:$4 sm:$0xff]   ;;  %v18164_v45 = vld [vmem:[#allocation5 + $0x278] ss:$28 sps:$4 sm:$0xff]  }
 0x384   :  { %10204 = vmatprep.mubr.bf16.mxu1 %v19819_v48  ;;  %9712 = vmatprep.mubr.bf16.mxu0 %v19819_v48  ;;  %v18136_v48 = vld [vmem:[#allocation5 + $0x12c] ss:$28 sps:$4 sm:$0xff]  }
 0x386   :  { %9683 = vmatpush1.bf16.msra.mxu0 %v18114_v46  ;;  %16287 = vmatpush3.bf16.msra.mxu1 %v18118_v31  ;;  %v18168_v46 = vld [vmem:[#allocation5 + $0x440] ss:$28 sps:$4 sm:$0xff]   ;;  %v18171_v31 = vld [vmem:[#allocation5 + $0x2b4] ss:$28 sps:$4 sm:$0xff]  }
 0x387   :  { %9684 = vmatprep.subr.bf16.mxu0 %v18121_v49  ;;  %16288 = vmatprep.subr.bf16.mxu1 %v18122_v63  ;;  %v18172_v49 = vld [vmem:[#allocation5 + $0x638] ss:$28 sps:$4 sm:$0xff]   ;;  %v18169_v63 = vld [vmem:[#allocation5 + $0x2b0] ss:$28 sps:$4 sm:$0xff]  }
 0x38a   :  { %9685 = vmatpush1.bf16.msra.mxu0 %v18119_v50  ;;  %16289 = vmatpush3.bf16.msra.mxu1 %v18123_v51  ;;  %v18173_v50 = vld [vmem:[#allocation5 + $0x478] ss:$28 sps:$4 sm:$0xff]   ;;  %v18176_v51 = vld [vmem:[#allocation5 + $0x2ec] ss:$28 sps:$4 sm:$0xff]  }
 0x38b   :  { %9686 = vmatprep.subr.bf16.mxu0 %v18126_v52  ;;  %16290 = vmatprep.subr.bf16.mxu1 %v18127_v53  ;;  %v18177_v52 = vld [vmem:[#allocation5 + $0x670] ss:$28 sps:$4 sm:$0xff]   ;;  %v18174_v53 = vld [vmem:[#allocation5 + $0x2e8] ss:$28 sps:$4 sm:$0xff]  }
 0x38e   :  { %9687 = vmatpush1.bf16.msra.mxu0 %v18124_v54  ;;  %16291 = vmatpush3.bf16.msra.mxu1 %v18128_v55  ;;  %v18178_v54 = vld [vmem:[#allocation5 + $0x4b0] ss:$28 sps:$4 sm:$0xff]   ;;  %v18181_v55 = vld [vmem:[#allocation5 + $0x324] ss:$28 sps:$4 sm:$0xff]  }
 0x38f   :  { %9688 = vmatprep.subr.bf16.mxu0 %v18131_v58  ;;  %16292 = vmatprep.subr.bf16.mxu1 %v18132_v59  ;;  %v18182_v58 = vld [vmem:[#allocation5 + $0x6a8] ss:$28 sps:$4 sm:$0xff]   ;;  %v18179_v59 = vld [vmem:[#allocation5 + $0x320] ss:$28 sps:$4 sm:$0xff]  }
 0x392   :  { %9689 = vmatpush1.bf16.msra.mxu0 %v18129_v41  ;;  %16293 = vmatpush3.bf16.msra.mxu1 %v18133_v1  ;;  %v18183_v41 = vld [vmem:[#allocation5 + $0x4e8] ss:$28 sps:$4 sm:$0xff]   ;;  %v18186_v1 = vld [vmem:[#allocation5 + $0x35c] ss:$28 sps:$4 sm:$0xff]  }
 0x393   :  { %9690 = vmatprep.subr.bf16.mxu0 %v18136_v48  ;;  %16294 = vmatprep.subr.bf16.mxu1 %v18137_v21  ;;  %v18187_v48 = vld [vmem:[#allocation5 + $0x6e0] ss:$28 sps:$4 sm:$0xff]   ;;  %v18184_v21 = vld [vmem:[#allocation5 + $0x358] ss:$28 sps:$4 sm:$0xff]  }
 0x396   :  { %9691 = vmatpush1.bf16.msra.mxu0 %v18134_v3  ;;  %16295 = vmatpush3.bf16.msra.mxu1 %v18138_v4  ;;  %v18188_v3 = vld [vmem:[#allocation5 + $0x520] ss:$28 sps:$4 sm:$0xff]   ;;  %v18191_v4 = vld [vmem:[#allocation5 + $0x394] ss:$28 sps:$4 sm:$0xff]  }
 0x397   :  { %9692 = vmatprep.subr.bf16.mxu0 %v18141_v32  ;;  %16296 = vmatprep.subr.bf16.mxu1 %v18142_v7  ;;  %v18192_v32 = vld [vmem:[#allocation5 + $0x8d8] ss:$28 sps:$4 sm:$0xff]   ;;  %v18189_v7 = vld [vmem:[#allocation5 + $0x390] ss:$28 sps:$4 sm:$0xff]  }
 0x39a   :  { %9693 = vmatpush1.bf16.msra.mxu0 %v18139_v8  ;;  %16297 = vmatpush3.bf16.msra.mxu1 %v18143_v12  ;;  %v18193_v8 = vld [vmem:[#allocation5 + $0x718] ss:$28 sps:$4 sm:$0xff]   ;;  %v18196_v12 = vld [vmem:[#allocation5 + $0x3cc] ss:$28 sps:$4 sm:$0xff]  }
 0x39b   :  { %9694 = vmatprep.subr.bf16.mxu0 %v18146_v14  ;;  %16298 = vmatprep.subr.bf16.mxu1 %v18147_v16  ;;  %v18197_v14 = vld [vmem:[#allocation5 + $0x910] ss:$28 sps:$4 sm:$0xff]   ;;  %v18194_v16 = vld [vmem:[#allocation5 + $0x3c8] ss:$28 sps:$4 sm:$0xff]  }
 0x39e   :  { %9695 = vmatpush1.bf16.msra.mxu0 %v18144_v17  ;;  %16299 = vmatpush3.bf16.msra.mxu1 %v18148_v56  ;;  %v18198_v17 = vld [vmem:[#allocation5 + $0x750] ss:$28 sps:$4 sm:$0xff]   ;;  %v18201_v56 = vld [vmem:[#allocation5 + $0x404] ss:$28 sps:$4 sm:$0xff]  }
 0x39f   :  { %9696 = vmatprep.subr.bf16.mxu0 %v18151_v19  ;;  %16306 = vmatprep.subr.bf16.mxu1 %v18152_v22  ;;  %v18202_v19 = vld [vmem:[#allocation5 + $0x948] ss:$28 sps:$4 sm:$0xff]   ;;  %v18199_v22 = vld [vmem:[#allocation5 + $0x400] ss:$28 sps:$4 sm:$0xff]  }
 0x3a1   :  { %10205 = vmatmul.mubr.bf16.vlgmr.msra.gmra.mrb[4].mxu1 %v19823_v5 }
 0x3a2   :  { %9697 = vmatpush1.bf16.msra.mxu0 %v18149_v23  ;;  %16307 = vmatpush3.bf16.msra.mxu1 %v18153_v25  ;;  %v18203_v23 = vld [vmem:[#allocation5 + $0x788] ss:$28 sps:$4 sm:$0xff]   ;;  %v18206_v25 = vld [vmem:[#allocation5 + $0x43c] ss:$28 sps:$4 sm:$0xff]  }
 0x3a3   :  { %9698 = vmatprep.subr.bf16.mxu0 %v18156_v26  ;;  %16308 = vmatprep.subr.bf16.mxu1 %v18157_v13  ;;  %v18204_v26 = vld [vmem:[#allocation5 + $0x438] ss:$28 sps:$4 sm:$0xff]   ;;  %v18208_v13 = vld [vmem:[#allocation5 + $0x7c0] ss:$28 sps:$4 sm:$0xff]  }
 0x3a4   :  { %10244 = vmatprep.mubr.bf16.mxu1 %v19831_v30 }
 0x3a6   :  { %9699 = vmatpush1.bf16.msra.mxu0 %v18154_v27  ;;  %16309 = vmatpush3.bf16.msra.mxu1 %v18158_v33  ;;  %v18211_v27 = vld [vmem:[#allocation5 + $0x474] ss:$28 sps:$4 sm:$0xff]  }
 0x3a7   :  { %9700 = vmatprep.subr.bf16.mxu0 %v18161_v34  ;;  %16310 = vmatprep.subr.bf16.mxu1 %v18162_v37  ;;  %v18212_v33 = vld [vmem:[#allocation5 + $0x9b8] ss:$28 sps:$4 sm:$0xff]   ;;  %v18209_v34 = vld [vmem:[#allocation5 + $0x470] ss:$28 sps:$4 sm:$0xff]  }
 0x3a8   :  { %v18213_v37 = vld [vmem:[#allocation5 + $0x7f8] ss:$28 sps:$4 sm:$0xff]  }
 0x3aa   :  { %9701 = vmatpush1.bf16.msra.mxu0 %v18159_v60  ;;  %16311 = vmatpush3.bf16.msra.mxu1 %v18163_v39  ;;  %v18217_v60 = vld [vmem:[#allocation5 + $0x9f0] ss:$28 sps:$4 sm:$0xff]   ;;  %v18214_v39 = vld [vmem:[#allocation5 + $0x4a8] ss:$28 sps:$4 sm:$0xff]  }
 0x3ab   :  { %9702 = vmatprep.subr.bf16.mxu0 %v18166_v9  ;;  %16312 = vmatprep.subr.bf16.mxu1 %v18167_v44  ;;  %v18218_v9 = vld [vmem:[#allocation5 + $0x830] ss:$28 sps:$4 sm:$0xff]   ;;  %v18221_v44 = vld [vmem:[#allocation5 + $0x4e4] ss:$28 sps:$4 sm:$0xff]  }
 0x3ae   :  { %9703 = vmatpush1.bf16.msra.mxu0 %v18164_v45  ;;  %16313 = vmatpush3.bf16.msra.mxu1 %v18168_v46  ;;  %v18222_v45 = vld [vmem:[#allocation5 + $0xa28] ss:$28 sps:$4 sm:$0xff]   ;;  %v18219_v46 = vld [vmem:[#allocation5 + $0x4e0] ss:$28 sps:$4 sm:$0xff]  }
 0x3af   :  { %9704 = vmatprep.subr.bf16.mxu0 %v18171_v31  ;;  %16314 = vmatprep.subr.bf16.mxu1 %v18172_v49  ;;  %v18223_v31 = vld [vmem:[#allocation5 + $0x868] ss:$28 sps:$4 sm:$0xff]   ;;  %v18226_v49 = vld [vmem:[#allocation5 + $0x51c] ss:$28 sps:$4 sm:$0xff]  }
 0x3b2   :  { %9705 = vmatpush1.bf16.msra.mxu0 %v18169_v63  ;;  %16315 = vmatpush3.bf16.msra.mxu1 %v18173_v50  ;;  %v18227_v63 = vld [vmem:[#allocation5 + $0xa60] ss:$28 sps:$4 sm:$0xff]   ;;  %v18224_v50 = vld [vmem:[#allocation5 + $0x518] ss:$28 sps:$4 sm:$0xff]  }
 0x3b3   :  { %9706 = vmatprep.subr.bf16.mxu0 %v18176_v51  ;;  %16316 = vmatprep.subr.bf16.mxu1 %v18177_v52  ;;  %v18228_v51 = vld [vmem:[#allocation5 + $0x8a0] ss:$28 sps:$4 sm:$0xff]   ;;  %v18231_v52 = vld [vmem:[#allocation5 + $0x554] ss:$28 sps:$4 sm:$0xff]  }
 0x3b6   :  { %9707 = vmatpush1.bf16.msra.mxu0 %v18174_v53  ;;  %16317 = vmatpush3.bf16.msra.mxu1 %v18178_v54  ;;  %v18232_v53 = vld [vmem:[#allocation5 + $0xc58] ss:$28 sps:$4 sm:$0xff]   ;;  %v18229_v54 = vld [vmem:[#allocation5 + $0x550] ss:$28 sps:$4 sm:$0xff]  }
 0x3b7   :  { %9708 = vmatprep.subr.bf16.mxu0 %v18181_v55  ;;  %16318 = vmatprep.subr.bf16.mxu1 %v18182_v58  ;;  %v18233_v55 = vld [vmem:[#allocation5 + $0xa98] ss:$28 sps:$4 sm:$0xff]   ;;  %v18236_v58 = vld [vmem:[#allocation5 + $0x58c] ss:$28 sps:$4 sm:$0xff]  }
 0x3ba   :  { %9709 = vmatpush1.bf16.msra.mxu0 %v18179_v59  ;;  %16319 = vmatpush3.bf16.msra.mxu1 %v18183_v41  ;;  %v18237_v59 = vld [vmem:[#allocation5 + $0xc90] ss:$28 sps:$4 sm:$0xff]   ;;  %v18234_v41 = vld [vmem:[#allocation5 + $0x588] ss:$28 sps:$4 sm:$0xff]  }
 0x3bb   :  { %9710 = vmatprep.subr.bf16.mxu0 %v18186_v1  ;;  %16320 = vmatprep.subr.bf16.mxu1 %v18187_v48  ;;  %v18238_v1 = vld [vmem:[#allocation5 + $0xad0] ss:$28 sps:$4 sm:$0xff]   ;;  %v18241_v48 = vld [vmem:[#allocation5 + $0x5c4] ss:$28 sps:$4 sm:$0xff]  }
 0x3be   :  { %9711 = vmatpush1.bf16.msra.mxu0 %v18184_v21  ;;  %16321 = vmatpush3.bf16.msra.mxu1 %v18188_v3  ;;  %v18242_v21 = vld [vmem:[#allocation5 + $0xcc8] ss:$28 sps:$4 sm:$0xff]   ;;  %v18239_v3 = vld [vmem:[#allocation5 + $0x5c0] ss:$28 sps:$4 sm:$0xff]  }
 0x3bf   :  { %9721 = vmatprep.subr.bf16.mxu0 %v18191_v4  ;;  %16328 = vmatprep.subr.bf16.mxu1 %v18192_v32  ;;  %v18243_v4 = vld [vmem:[#allocation5 + $0xb08] ss:$28 sps:$4 sm:$0xff]   ;;  %v18246_v32 = vld [vmem:[#allocation5 + $0x5fc] ss:$28 sps:$4 sm:$0xff]  }
 0x3c1   :  { %9713 = vmatmul.mubr.bf16.vlgmr.msra.gmra.mrb[4].mxu0 %v19823_v5  ;;  %10245 = vmatmul.mubr.bf16.vlgmr.msra.gmra.mrb[8].mxu1 %v19837_v10  ;;  %v18207_v5 = vld [vmem:[#allocation5 + $0x980] ss:$28 sps:$4 sm:$0xff]  }
 0x3c2   :  { %9722 = vmatpush1.bf16.msra.mxu0 %v18189_v7  ;;  %16329 = vmatpush3.bf16.msra.mxu1 %v18193_v8  ;;  %v18247_v7 = vld [vmem:[#allocation5 + $0xd00] ss:$28 sps:$4 sm:$0xff]   ;;  %v18244_v8 = vld [vmem:[#allocation5 + $0x5f8] ss:$28 sps:$4 sm:$0xff]  }
 0x3c3   :  { %9723 = vmatprep.subr.bf16.mxu0 %v18196_v12  ;;  %16330 = vmatprep.subr.bf16.mxu1 %v18197_v14  ;;  %v18248_v12 = vld [vmem:[#allocation5 + $0xb40] ss:$28 sps:$4 sm:$0xff]   ;;  %v18251_v14 = vld [vmem:[#allocation5 + $0x634] ss:$28 sps:$4 sm:$0xff]  }
 0x3c4   :  { %10284 = vmatprep.mubr.bf16.mxu1 %v19843_v15  ;;  %9753 = vmatprep.mubr.bf16.mxu0 %v19831_v30  ;;  %v18216_v30 = vld [vmem:[#allocation5 + $0x4ac] ss:$28 sps:$4 sm:$0xff]  }
 0x3c6   :  { %9724 = vmatpush1.bf16.msra.mxu0 %v18194_v16  ;;  %16331 = vmatpush3.bf16.msra.mxu1 %v18198_v17  ;;  %v18252_v16 = vld [vmem:[#allocation5 + $0xd38] ss:$28 sps:$4 sm:$0xff]   ;;  %v18249_v17 = vld [vmem:[#allocation5 + $0x630] ss:$28 sps:$4 sm:$0xff]  }
 0x3c7   :  { %9725 = vmatprep.subr.bf16.mxu0 %v18201_v56  ;;  %16332 = vmatprep.subr.bf16.mxu1 %v18202_v19  ;;  %v18253_v56 = vld [vmem:[#allocation5 + $0xb78] ss:$28 sps:$4 sm:$0xff]   ;;  %v18256_v19 = vld [vmem:[#allocation5 + $0x66c] ss:$28 sps:$4 sm:$0xff]  }
 0x3ca   :  { %9726 = vmatpush1.bf16.msra.mxu0 %v18199_v22  ;;  %16333 = vmatpush3.bf16.msra.mxu1 %v18203_v23  ;;  %v18257_v22 = vld [vmem:[#allocation5 + $0xd70] ss:$28 sps:$4 sm:$0xff]   ;;  %v18254_v23 = vld [vmem:[#allocation5 + $0x668] ss:$28 sps:$4 sm:$0xff]  }
 0x3cb   :  { %9727 = vmatprep.subr.bf16.mxu0 %v18206_v25  ;;  %16334 = vmatprep.subr.bf16.mxu1 %v18207_v5  ;;  %v18258_v25 = vld [vmem:[#allocation5 + $0xbb0] ss:$28 sps:$4 sm:$0xff]   ;;  %v18261_v5 = vld [vmem:[#allocation5 + $0x6a4] ss:$28 sps:$4 sm:$0xff]  }
 0x3ce   :  { %9728 = vmatpush1.bf16.msra.mxu0 %v18204_v26  ;;  %16335 = vmatpush3.bf16.msra.mxu1 %v18208_v13  ;;  %v18262_v26 = vld [vmem:[#allocation5 + $0xda8] ss:$28 sps:$4 sm:$0xff]   ;;  %v18259_v13 = vld [vmem:[#allocation5 + $0x6a0] ss:$28 sps:$4 sm:$0xff]  }
 0x3cf   :  { %9729 = vmatprep.subr.bf16.mxu0 %v18211_v27  ;;  %16336 = vmatprep.subr.bf16.mxu1 %v18212_v33  ;;  %v18263_v27 = vld [vmem:[#allocation5 + $0xbe8] ss:$28 sps:$4 sm:$0xff]   ;;  %v18266_v33 = vld [vmem:[#allocation5 + $0x6dc] ss:$28 sps:$4 sm:$0xff]  }
 0x3d2   :  { %9730 = vmatpush1.bf16.msra.mxu0 %v18209_v34  ;;  %16337 = vmatpush3.bf16.msra.mxu1 %v18213_v37  ;;  %v18267_v34 = vld [vmem:[#allocation5 + $0xde0] ss:$28 sps:$4 sm:$0xff]   ;;  %v18264_v37 = vld [vmem:[#allocation5 + $0x6d8] ss:$28 sps:$4 sm:$0xff]  }
 0x3d3   :  { %9731 = vmatprep.subr.bf16.mxu0 %v18216_v30  ;;  %16338 = vmatprep.subr.bf16.mxu1 %v18217_v60  ;;  %v18268_v30 = vld [vmem:[#allocation5 + $0xc20] ss:$28 sps:$4 sm:$0xff]   ;;  %v18271_v60 = vld [vmem:[#allocation5 + $0x714] ss:$28 sps:$4 sm:$0xff]  }
 0x3d6   :  { %9732 = vmatpush1.bf16.msra.mxu0 %v18214_v39  ;;  %16339 = vmatpush3.bf16.msra.mxu1 %v18218_v9  ;;  %v18272_v39 = vld [vmem:[#allocation5 + $0xfd8] ss:$28 sps:$4 sm:$0xff]   ;;  %v18269_v9 = vld [vmem:[#allocation5 + $0x710] ss:$28 sps:$4 sm:$0xff]  }
 0x3d7   :  { %9733 = vmatprep.subr.bf16.mxu0 %v18221_v44  ;;  %16340 = vmatprep.subr.bf16.mxu1 %v18222_v45  ;;  %v18273_v44 = vld [vmem:[#allocation5 + $0xe18] ss:$28 sps:$4 sm:$0xff]   ;;  %v18276_v45 = vld [vmem:[#allocation5 + $0x74c] ss:$28 sps:$4 sm:$0xff]  }
 0x3da   :  { %9734 = vmatpush1.bf16.msra.mxu0 %v18219_v46  ;;  %16341 = vmatpush3.bf16.msra.mxu1 %v18223_v31  ;;  %v18277_v46 = vld [vmem:[#allocation5 + $0x1010] ss:$28 sps:$4 sm:$0xff]   ;;  %v18274_v31 = vld [vmem:[#allocation5 + $0x748] ss:$28 sps:$4 sm:$0xff]  }
 0x3db   :  { %9735 = vmatprep.subr.bf16.mxu0 %v18226_v49  ;;  %16342 = vmatprep.subr.bf16.mxu1 %v18227_v63  ;;  %v18278_v49 = vld [vmem:[#allocation5 + $0xe50] ss:$28 sps:$4 sm:$0xff]   ;;  %v18281_v63 = vld [vmem:[#allocation5 + $0x784] ss:$28 sps:$4 sm:$0xff]  }
 0x3de   :  { %9736 = vmatpush1.bf16.msra.mxu0 %v18224_v50  ;;  %16343 = vmatpush3.bf16.msra.mxu1 %v18228_v51  ;;  %v18282_v50 = vld [vmem:[#allocation5 + $0x1048] ss:$28 sps:$4 sm:$0xff]   ;;  %v18279_v51 = vld [vmem:[#allocation5 + $0x780] ss:$28 sps:$4 sm:$0xff]  }
 0x3df   :  { %9737 = vmatprep.subr.bf16.mxu0 %v18231_v52  ;;  %16350 = vmatprep.subr.bf16.mxu1 %v18232_v53  ;;  %v18283_v52 = vld [vmem:[#allocation5 + $0xe88] ss:$28 sps:$4 sm:$0xff]   ;;  %v18286_v53 = vld [vmem:[#allocation5 + $0x7bc] ss:$28 sps:$4 sm:$0xff]  }
 0x3e1   :  { %10285 = vmatmul.mubr.bf16.vlgmr.msra.gmra.mrb[12].mxu1 %v19851_v20 }
 0x3e2   :  { %9738 = vmatpush1.bf16.msra.mxu0 %v18229_v54  ;;  %16351 = vmatpush3.bf16.msra.mxu1 %v18233_v55  ;;  %v18284_v54 = vld [vmem:[#allocation5 + $0x7b8] ss:$28 sps:$4 sm:$0xff]   ;;  %v18288_v55 = vld [vmem:[#allocation5 + $0xec0] ss:$28 sps:$4 sm:$0xff]  }
 0x3e3   :  { %9739 = vmatprep.subr.bf16.mxu0 %v18236_v58  ;;  %16352 = vmatprep.subr.bf16.mxu1 %v18237_v59  ;;  %v18291_v58 = vld [vmem:[#allocation5 + $0x7f4] ss:$28 sps:$4 sm:$0xff]  }
 0x3e4   :  { %10324 = vmatprep.mubr.bf16.mxu1 %v19857_v24  ;;  %v18292_v59 = vld [vmem:[#allocation5 + $0x10b8] ss:$28 sps:$4 sm:$0xff]  }
 0x3e6   :  { %9740 = vmatpush1.bf16.msra.mxu0 %v18234_v41  ;;  %16353 = vmatpush3.bf16.msra.mxu1 %v18238_v1  ;;  %v18289_v41 = vld [vmem:[#allocation5 + $0x7f0] ss:$28 sps:$4 sm:$0xff]   ;;  %v18293_v1 = vld [vmem:[#allocation5 + $0xef8] ss:$28 sps:$4 sm:$0xff]  }
 0x3e7   :  { %9741 = vmatprep.subr.bf16.mxu0 %v18241_v48  ;;  %16354 = vmatprep.subr.bf16.mxu1 %v18242_v21  ;;  %v18297_v48 = vld [vmem:[#allocation5 + $0x10f0] ss:$28 sps:$4 sm:$0xff]   ;;  %v18294_v21 = vld [vmem:[#allocation5 + $0x828] ss:$28 sps:$4 sm:$0xff]  }
 0x3ea   :  { %9742 = vmatpush1.bf16.msra.mxu0 %v18239_v3  ;;  %16355 = vmatpush3.bf16.msra.mxu1 %v18243_v4  ;;  %v18298_v3 = vld [vmem:[#allocation5 + $0xf30] ss:$28 sps:$4 sm:$0xff]   ;;  %v18301_v4 = vld [vmem:[#allocation5 + $0x864] ss:$28 sps:$4 sm:$0xff]  }
 0x3eb   :  { %9743 = vmatprep.subr.bf16.mxu0 %v18246_v32  ;;  %16356 = vmatprep.subr.bf16.mxu1 %v18247_v7  ;;  %v18302_v32 = vld [vmem:[#allocation5 + $0x1128] ss:$28 sps:$4 sm:$0xff]   ;;  %v18299_v7 = vld [vmem:[#allocation5 + $0x860] ss:$28 sps:$4 sm:$0xff]  }
 0x3ee   :  { %9744 = vmatpush1.bf16.msra.mxu0 %v18244_v8  ;;  %16357 = vmatpush3.bf16.msra.mxu1 %v18248_v12  ;;  %v18303_v8 = vld [vmem:[#allocation5 + $0xf68] ss:$28 sps:$4 sm:$0xff]   ;;  %v18306_v12 = vld [vmem:[#allocation5 + $0x89c] ss:$28 sps:$4 sm:$0xff]  }
 0x3ef   :  { %9745 = vmatprep.subr.bf16.mxu0 %v18251_v14  ;;  %16358 = vmatprep.subr.bf16.mxu1 %v18252_v16  ;;  %v18307_v14 = vld [vmem:[#allocation5 + $0x1160] ss:$28 sps:$4 sm:$0xff]   ;;  %v18304_v16 = vld [vmem:[#allocation5 + $0x898] ss:$28 sps:$4 sm:$0xff]  }
 0x3f2   :  { %9746 = vmatpush1.bf16.msra.mxu0 %v18249_v17  ;;  %16359 = vmatpush3.bf16.msra.mxu1 %v18253_v56  ;;  %v18308_v17 = vld [vmem:[#allocation5 + $0xfa0] ss:$28 sps:$4 sm:$0xff]   ;;  %v18311_v56 = vld [vmem:[#allocation5 + $0x8d4] ss:$28 sps:$4 sm:$0xff]  }
 0x3f3   :  { %9747 = vmatprep.subr.bf16.mxu0 %v18256_v19  ;;  %16360 = vmatprep.subr.bf16.mxu1 %v18257_v22  ;;  %v18312_v19 = vld [vmem:[#allocation5 + $0x1358] ss:$28 sps:$4 sm:$0xff]   ;;  %v18309_v22 = vld [vmem:[#allocation5 + $0x8d0] ss:$28 sps:$4 sm:$0xff]  }
 0x3f6   :  { %9748 = vmatpush1.bf16.msra.mxu0 %v18254_v23  ;;  %16361 = vmatpush3.bf16.msra.mxu1 %v18258_v25  ;;  %v18313_v23 = vld [vmem:[#allocation5 + $0x1198] ss:$28 sps:$4 sm:$0xff]   ;;  %v18316_v25 = vld [vmem:[#allocation5 + $0x90c] ss:$28 sps:$4 sm:$0xff]  }
 0x3f7   :  { %9749 = vmatprep.subr.bf16.mxu0 %v18261_v5  ;;  %16362 = vmatprep.subr.bf16.mxu1 %v18262_v26  ;;  %v18317_v5 = vld [vmem:[#allocation5 + $0x1390] ss:$28 sps:$4 sm:$0xff]   ;;  %v18314_v26 = vld [vmem:[#allocation5 + $0x908] ss:$28 sps:$4 sm:$0xff]  }
 0x3fa   :  { %9750 = vmatpush1.bf16.msra.mxu0 %v18259_v13  ;;  %16363 = vmatpush3.bf16.msra.mxu1 %v18263_v27  ;;  %v18318_v13 = vld [vmem:[#allocation5 + $0x11d0] ss:$28 sps:$4 sm:$0xff]   ;;  %v18321_v27 = vld [vmem:[#allocation5 + $0x944] ss:$28 sps:$4 sm:$0xff]  }
 0x3fb   :  { %9751 = vmatprep.subr.bf16.mxu0 %v18266_v33  ;;  %16364 = vmatprep.subr.bf16.mxu1 %v18267_v34  ;;  %v18322_v33 = vld [vmem:[#allocation5 + $0x13c8] ss:$28 sps:$4 sm:$0xff]   ;;  %v18319_v34 = vld [vmem:[#allocation5 + $0x940] ss:$28 sps:$4 sm:$0xff]  }
 0x3fe   :  { %9752 = vmatpush1.bf16.msra.mxu0 %v18264_v37  ;;  %16365 = vmatpush3.bf16.msra.mxu1 %v18268_v30  ;;  %v18323_v37 = vld [vmem:[#allocation5 + $0x1208] ss:$28 sps:$4 sm:$0xff]   ;;  %v18326_v30 = vld [vmem:[#allocation5 + $0x97c] ss:$28 sps:$4 sm:$0xff]  }
 0x3ff   :  { %9762 = vmatprep.subr.bf16.mxu0 %v18271_v60  ;;  %16372 = vmatprep.subr.bf16.mxu1 %v18272_v39  ;;  %v18327_v60 = vld [vmem:[#allocation5 + $0x1400] ss:$28 sps:$4 sm:$0xff]   ;;  %v18324_v39 = vld [vmem:[#allocation5 + $0x978] ss:$28 sps:$4 sm:$0xff]  }
 0x401   :  { %9754 = vmatmul.mubr.bf16.vlgmr.msra.gmra.mrb[4].mxu0 %v19837_v10  ;;  %10325 = vmatmul.mubr.bf16.vlgmr.msra.gmra.mrb[16].mxu1 %v19865_v29  ;;  %v18287_v10 = vld [vmem:[#allocation5 + $0x1080] ss:$28 sps:$4 sm:$0xff]  }
 0x402   :  { %9763 = vmatpush1.bf16.msra.mxu0 %v18269_v9  ;;  %16373 = vmatpush3.bf16.msra.mxu1 %v18273_v44  ;;  %v18328_v9 = vld [vmem:[#allocation5 + $0x1240] ss:$28 sps:$4 sm:$0xff]   ;;  %v18331_v44 = vld [vmem:[#allocation5 + $0x9b4] ss:$28 sps:$4 sm:$0xff]  }
 0x403   :  { %9764 = vmatprep.subr.bf16.mxu0 %v18276_v45  ;;  %16374 = vmatprep.subr.bf16.mxu1 %v18277_v46  ;;  %v18332_v45 = vld [vmem:[#allocation5 + $0x1438] ss:$28 sps:$4 sm:$0xff]   ;;  %v18329_v46 = vld [vmem:[#allocation5 + $0x9b0] ss:$28 sps:$4 sm:$0xff]  }
 0x404   :  { %10364 = vmatprep.mubr.bf16.mxu1 %v19871_v35  ;;  %9794 = vmatprep.mubr.bf16.mxu0 %v19843_v15  ;;  %v18296_v15 = vld [vmem:[#allocation5 + $0x82c] ss:$28 sps:$4 sm:$0xff]  }
 0x406   :  { %9765 = vmatpush1.bf16.msra.mxu0 %v18274_v31  ;;  %16375 = vmatpush3.bf16.msra.mxu1 %v18278_v49  ;;  %v18333_v31 = vld [vmem:[#allocation5 + $0x1278] ss:$28 sps:$4 sm:$0xff]   ;;  %v18336_v49 = vld [vmem:[#allocation5 + $0x9ec] ss:$28 sps:$4 sm:$0xff]  }
 0x407   :  { %9766 = vmatprep.subr.bf16.mxu0 %v18281_v63  ;;  %16376 = vmatprep.subr.bf16.mxu1 %v18282_v50  ;;  %v18337_v63 = vld [vmem:[#allocation5 + $0x1470] ss:$28 sps:$4 sm:$0xff]   ;;  %v18334_v50 = vld [vmem:[#allocation5 + $0x9e8] ss:$28 sps:$4 sm:$0xff]  }
 0x40a   :  { %9767 = vmatpush1.bf16.msra.mxu0 %v18279_v51  ;;  %16377 = vmatpush3.bf16.msra.mxu1 %v18283_v52  ;;  %v18338_v51 = vld [vmem:[#allocation5 + $0x12b0] ss:$28 sps:$4 sm:$0xff]   ;;  %v18341_v52 = vld [vmem:[#allocation5 + $0xa24] ss:$28 sps:$4 sm:$0xff]  }
 0x40b   :  { %9768 = vmatprep.subr.bf16.mxu0 %v18286_v53  ;;  %16378 = vmatprep.subr.bf16.mxu1 %v18287_v10  ;;  %v18342_v53 = vld [vmem:[#allocation5 + $0x14a8] ss:$28 sps:$4 sm:$0xff]   ;;  %v18339_v10 = vld [vmem:[#allocation5 + $0xa20] ss:$28 sps:$4 sm:$0xff]  }
 0x40e   :  { %9769 = vmatpush1.bf16.msra.mxu0 %v18284_v54  ;;  %16379 = vmatpush3.bf16.msra.mxu1 %v18288_v55  ;;  %v18343_v54 = vld [vmem:[#allocation5 + $0x12e8] ss:$28 sps:$4 sm:$0xff]   ;;  %v18346_v55 = vld [vmem:[#allocation5 + $0xa5c] ss:$28 sps:$4 sm:$0xff]  }
 0x40f   :  { %9770 = vmatprep.subr.bf16.mxu0 %v18291_v58  ;;  %16380 = vmatprep.subr.bf16.mxu1 %v18292_v59  ;;  %v18347_v58 = vld [vmem:[#allocation5 + $0x14e0] ss:$28 sps:$4 sm:$0xff]   ;;  %v18344_v59 = vld [vmem:[#allocation5 + $0xa58] ss:$28 sps:$4 sm:$0xff]  }
 0x412   :  { %9771 = vmatpush1.bf16.msra.mxu0 %v18289_v41  ;;  %16381 = vmatpush3.bf16.msra.mxu1 %v18293_v1  ;;  %v18348_v41 = vld [vmem:[#allocation5 + $0x1320] ss:$28 sps:$4 sm:$0xff]   ;;  %v18351_v1 = vld [vmem:[#allocation5 + $0xa94] ss:$28 sps:$4 sm:$0xff]  }
 0x413   :  { %9772 = vmatprep.subr.bf16.mxu0 %v18296_v15  ;;  %16382 = vmatprep.subr.bf16.mxu1 %v18297_v48  ;;  %v18352_v15 = vld [vmem:[#allocation5 + $0x16d8] ss:$28 sps:$4 sm:$0xff]   ;;  %v18349_v48 = vld [vmem:[#allocation5 + $0xa90] ss:$28 sps:$4 sm:$0xff]  }
 0x416   :  { %9773 = vmatpush1.bf16.msra.mxu0 %v18294_v21  ;;  %16383 = vmatpush3.bf16.msra.mxu1 %v18298_v3  ;;  %v18353_v21 = vld [vmem:[#allocation5 + $0x1518] ss:$28 sps:$4 sm:$0xff]   ;;  %v18356_v3 = vld [vmem:[#allocation5 + $0xacc] ss:$28 sps:$4 sm:$0xff]  }
 0x417   :  { %9774 = vmatprep.subr.bf16.mxu0 %v18301_v4  ;;  %16384 = vmatprep.subr.bf16.mxu1 %v18302_v32  ;;  %v18357_v4 = vld [vmem:[#allocation5 + $0x1710] ss:$28 sps:$4 sm:$0xff]   ;;  %v18354_v32 = vld [vmem:[#allocation5 + $0xac8] ss:$28 sps:$4 sm:$0xff]  }
 0x41a   :  { %9775 = vmatpush1.bf16.msra.mxu0 %v18299_v7  ;;  %16385 = vmatpush3.bf16.msra.mxu1 %v18303_v8  ;;  %v18358_v7 = vld [vmem:[#allocation5 + $0x1550] ss:$28 sps:$4 sm:$0xff]   ;;  %v18361_v8 = vld [vmem:[#allocation5 + $0xb04] ss:$28 sps:$4 sm:$0xff]  }
 0x41b   :  { %9776 = vmatprep.subr.bf16.mxu0 %v18306_v12  ;;  %16386 = vmatprep.subr.bf16.mxu1 %v18307_v14  ;;  %v18362_v12 = vld [vmem:[#allocation5 + $0x1748] ss:$28 sps:$4 sm:$0xff]   ;;  %v18359_v14 = vld [vmem:[#allocation5 + $0xb00] ss:$28 sps:$4 sm:$0xff]  }
 0x41e   :  { %9777 = vmatpush1.bf16.msra.mxu0 %v18304_v16  ;;  %16387 = vmatpush3.bf16.msra.mxu1 %v18308_v17  ;;  %v18363_v16 = vld [vmem:[#allocation5 + $0x1588] ss:$28 sps:$4 sm:$0xff]   ;;  %v18366_v17 = vld [vmem:[#allocation5 + $0xb3c] ss:$28 sps:$4 sm:$0xff]  }
 0x41f   :  { %9778 = vmatprep.subr.bf16.mxu0 %v18311_v56  ;;  %16394 = vmatprep.subr.bf16.mxu1 %v18312_v19  ;;  %v18364_v56 = vld [vmem:[#allocation5 + $0xb38] ss:$28 sps:$4 sm:$0xff]   ;;  %v18368_v19 = vld [vmem:[#allocation5 + $0x15c0] ss:$28 sps:$4 sm:$0xff]  }
 0x421   :  { %10365 = vmatmul.mubr.bf16.vlgmr.msra.gmra.mrb[20].mxu1 %v19881_v42 }
 0x422   :  { %9779 = vmatpush1.bf16.msra.mxu0 %v18309_v22  ;;  %16395 = vmatpush3.bf16.msra.mxu1 %v18313_v23  ;;  %v18371_v22 = vld [vmem:[#allocation5 + $0xb74] ss:$28 sps:$4 sm:$0xff]  }
 0x423   :  { %9780 = vmatprep.subr.bf16.mxu0 %v18316_v25  ;;  %16396 = vmatprep.subr.bf16.mxu1 %v18317_v5  ;;  %v18372_v23 = vld [vmem:[#allocation5 + $0x17b8] ss:$28 sps:$4 sm:$0xff]   ;;  %v18369_v25 = vld [vmem:[#allocation5 + $0xb70] ss:$28 sps:$4 sm:$0xff]  }
 0x424   :  { %10404 = vmatprep.mubr.bf16.mxu1 %v19885_v47  ;;  %v18373_v5 = vld [vmem:[#allocation5 + $0x15f8] ss:$28 sps:$4 sm:$0xff]  }
 0x426   :  { %9781 = vmatpush1.bf16.msra.mxu0 %v18314_v26  ;;  %16397 = vmatpush3.bf16.msra.mxu1 %v18318_v13  ;;  %v18377_v26 = vld [vmem:[#allocation5 + $0x17f0] ss:$28 sps:$4 sm:$0xff]   ;;  %v18374_v13 = vld [vmem:[#allocation5 + $0xba8] ss:$28 sps:$4 sm:$0xff]  }
 0x427   :  { %9782 = vmatprep.subr.bf16.mxu0 %v18321_v27  ;;  %16398 = vmatprep.subr.bf16.mxu1 %v18322_v33  ;;  %v18378_v27 = vld [vmem:[#allocation5 + $0x1630] ss:$28 sps:$4 sm:$0xff]   ;;  %v18381_v33 = vld [vmem:[#allocation5 + $0xbe4] ss:$28 sps:$4 sm:$0xff]  }
 0x42a   :  { %9783 = vmatpush1.bf16.msra.mxu0 %v18319_v34  ;;  %16399 = vmatpush3.bf16.msra.mxu1 %v18323_v37  ;;  %v18382_v34 = vld [vmem:[#allocation5 + $0x1828] ss:$28 sps:$4 sm:$0xff]  }
 0x42b   :  { %9784 = vmatprep.subr.bf16.mxu0 %v18326_v30  ;;  %16400 = vmatprep.subr.bf16.mxu1 %v18327_v60 }
 0x42e   :  { %9785 = vmatpush1.bf16.msra.mxu0 %v18324_v39  ;;  %16401 = vmatpush3.bf16.msra.mxu1 %v18328_v9 }
 0x42f   :  { %9786 = vmatprep.subr.bf16.mxu0 %v18331_v44  ;;  %16402 = vmatprep.subr.bf16.mxu1 %v18332_v45  ;;  %v18379_v45 = vld [vmem:[#allocation5 + $0xbe0] ss:$28 sps:$4 sm:$0xff]  }
 0x432   :  { %9787 = vmatpush1.bf16.msra.mxu0 %v18329_v46  ;;  %16403 = vmatpush3.bf16.msra.mxu1 %v18333_v31  ;;  %v18383_v46 = vld [vmem:[#allocation5 + $0x1668] ss:$28 sps:$4 sm:$0xff]  }
 0x433   :  { %9788 = vmatprep.subr.bf16.mxu0 %v18336_v49  ;;  %16404 = vmatprep.subr.bf16.mxu1 %v18337_v63  ;;  %v18386_v63 = vld [vmem:[#allocation5 + $0xc1c] ss:$28 sps:$4 sm:$0xff]  }
 0x436   :  { %9789 = vmatpush1.bf16.msra.mxu0 %v18334_v50  ;;  %16405 = vmatpush3.bf16.msra.mxu1 %v18338_v51  ;;  %v18387_v50 = vld [vmem:[#allocation5 + $0x1860] ss:$28 sps:$4 sm:$0xff]   ;;  %v18384_v51 = vld [vmem:[#allocation5 + $0xc18] ss:$28 sps:$4 sm:$0xff]  }
 0x437   :  { %9790 = vmatprep.subr.bf16.mxu0 %v18341_v52  ;;  %16406 = vmatprep.subr.bf16.mxu1 %v18342_v53  ;;  %v18388_v52 = vld [vmem:[#allocation5 + $0x16a0] ss:$28 sps:$4 sm:$0xff]   ;;  %v18391_v53 = vld [vmem:[#allocation5 + $0xc54] ss:$28 sps:$4 sm:$0xff]  }
 0x43a   :  { %9791 = vmatpush1.bf16.msra.mxu0 %v18339_v10  ;;  %16407 = vmatpush3.bf16.msra.mxu1 %v18343_v54  ;;  %v18392_v10 = vld [vmem:[#allocation5 + $0x1a58] ss:$28 sps:$4 sm:$0xff]   ;;  %v18389_v54 = vld [vmem:[#allocation5 + $0xc50] ss:$28 sps:$4 sm:$0xff]  }
 0x43b   :  { %9792 = vmatprep.subr.bf16.mxu0 %v18346_v55  ;;  %16408 = vmatprep.subr.bf16.mxu1 %v18347_v58  ;;  %v18393_v55 = vld [vmem:[#allocation5 + $0x1898] ss:$28 sps:$4 sm:$0xff]   ;;  %v18396_v58 = vld [vmem:[#allocation5 + $0xc8c] ss:$28 sps:$4 sm:$0xff]  }
 0x43e   :  { %9793 = vmatpush1.bf16.msra.mxu0 %v18344_v59  ;;  %16409 = vmatpush3.bf16.msra.mxu1 %v18348_v41  ;;  %v18397_v59 = vld [vmem:[#allocation5 + $0x1a90] ss:$28 sps:$4 sm:$0xff]   ;;  %v18394_v41 = vld [vmem:[#allocation5 + $0xc88] ss:$28 sps:$4 sm:$0xff]  }
 0x43f   :  { %9803 = vmatprep.subr.bf16.mxu0 %v18351_v1  ;;  %16416 = vmatprep.subr.bf16.mxu1 %v18352_v15  ;;  %v18398_v1 = vld [vmem:[#allocation5 + $0x18d0] ss:$28 sps:$4 sm:$0xff]   ;;  %v18401_v15 = vld [vmem:[#allocation5 + $0xcc4] ss:$28 sps:$4 sm:$0xff]  }
 0x441   :  { %9795 = vmatmul.mubr.bf16.vlgmr.msra.gmra.mrb[4].mxu0 %v19851_v20  ;;  %10405 = vmatmul.mubr.bf16.vlgmr.msra.gmra.mrb[24].mxu1 %v19895_v57  ;;  %v18367_v20 = vld [vmem:[#allocation5 + $0x1780] ss:$28 sps:$4 sm:$0xff]  }
 0x442   :  { %9804 = vmatpush1.bf16.msra.mxu0 %v18349_v48  ;;  %16417 = vmatpush3.bf16.msra.mxu1 %v18353_v21  ;;  %v18402_v48 = vld [vmem:[#allocation5 + $0x1ac8] ss:$28 sps:$4 sm:$0xff]   ;;  %v18399_v21 = vld [vmem:[#allocation5 + $0xcc0] ss:$28 sps:$4 sm:$0xff]  }
 0x443   :  { %9805 = vmatprep.subr.bf16.mxu0 %v18356_v3  ;;  %16418 = vmatprep.subr.bf16.mxu1 %v18357_v4  ;;  %v18403_v3 = vld [vmem:[#allocation5 + $0x1908] ss:$28 sps:$4 sm:$0xff]   ;;  %v18406_v4 = vld [vmem:[#allocation5 + $0xcfc] ss:$28 sps:$4 sm:$0xff]  }
 0x444   :  { %10444 = vmatprep.mubr.bf16.mxu1 %v19899_v62  ;;  %9835 = vmatprep.mubr.bf16.mxu0 %v19857_v24  ;;  %v18376_v24 = vld [vmem:[#allocation5 + $0xbac] ss:$28 sps:$4 sm:$0xff]  }
 0x446   :  { %9806 = vmatpush1.bf16.msra.mxu0 %v18354_v32  ;;  %16419 = vmatpush3.bf16.msra.mxu1 %v18358_v7  ;;  %v18407_v32 = vld [vmem:[#allocation5 + $0x1b00] ss:$28 sps:$4 sm:$0xff]   ;;  %v18404_v7 = vld [vmem:[#allocation5 + $0xcf8] ss:$28 sps:$4 sm:$0xff]  }
 0x447   :  { %9807 = vmatprep.subr.bf16.mxu0 %v18361_v8  ;;  %16420 = vmatprep.subr.bf16.mxu1 %v18362_v12  ;;  %v18408_v8 = vld [vmem:[#allocation5 + $0x1940] ss:$28 sps:$4 sm:$0xff]   ;;  %v18411_v12 = vld [vmem:[#allocation5 + $0xd34] ss:$28 sps:$4 sm:$0xff]  }
 0x44a   :  { %9808 = vmatpush1.bf16.msra.mxu0 %v18359_v14  ;;  %16421 = vmatpush3.bf16.msra.mxu1 %v18363_v16  ;;  %v18412_v14 = vld [vmem:[#allocation5 + $0x1b38] ss:$28 sps:$4 sm:$0xff]   ;;  %v18409_v16 = vld [vmem:[#allocation5 + $0xd30] ss:$28 sps:$4 sm:$0xff]  }
 0x44b   :  { %9809 = vmatprep.subr.bf16.mxu0 %v18366_v17  ;;  %16422 = vmatprep.subr.bf16.mxu1 %v18367_v20  ;;  %v18413_v17 = vld [vmem:[#allocation5 + $0x1978] ss:$28 sps:$4 sm:$0xff]   ;;  %v18416_v20 = vld [vmem:[#allocation5 + $0xd6c] ss:$28 sps:$4 sm:$0xff]  }
 0x44e   :  { %9810 = vmatpush1.bf16.msra.mxu0 %v18364_v56  ;;  %16423 = vmatpush3.bf16.msra.mxu1 %v18368_v19  ;;  %v18417_v56 = vld [vmem:[#allocation5 + $0x1b70] ss:$28 sps:$4 sm:$0xff]   ;;  %v18414_v19 = vld [vmem:[#allocation5 + $0xd68] ss:$28 sps:$4 sm:$0xff]  }
 0x44f   :  { %9811 = vmatprep.subr.bf16.mxu0 %v18371_v22  ;;  %16424 = vmatprep.subr.bf16.mxu1 %v18372_v23  ;;  %v18418_v22 = vld [vmem:[#allocation5 + $0x19b0] ss:$28 sps:$4 sm:$0xff]   ;;  %v18421_v23 = vld [vmem:[#allocation5 + $0xda4] ss:$28 sps:$4 sm:$0xff]  }
 0x452   :  { %9812 = vmatpush1.bf16.msra.mxu0 %v18369_v25  ;;  %16425 = vmatpush3.bf16.msra.mxu1 %v18373_v5  ;;  %v18422_v25 = vld [vmem:[#allocation5 + $0x1ba8] ss:$28 sps:$4 sm:$0xff]   ;;  %v18419_v5 = vld [vmem:[#allocation5 + $0xda0] ss:$28 sps:$4 sm:$0xff]  }
 0x453   :  { %9813 = vmatprep.subr.bf16.mxu0 %v18376_v24  ;;  %16426 = vmatprep.subr.bf16.mxu1 %v18377_v26  ;;  %v18423_v24 = vld [vmem:[#allocation5 + $0x19e8] ss:$28 sps:$4 sm:$0xff]   ;;  %v18426_v26 = vld [vmem:[#allocation5 + $0xddc] ss:$28 sps:$4 sm:$0xff]  }
 0x454   :  { %v20001_v37 = vpop.f32.mrb[0].mxu0  ;;  %v20003_v30 = vpop.f32.mrb[0].mxu1 }
 0x455   :  { %v20005_v60 = vpop.f32.mrb[1].mxu0  ;;  %v20007_v39 = vpop.f32.mrb[1].mxu1 }
 0x456   :  { %v9185_v9 = vpop.f32.mrb[2].mxu0  ;;  %v9677_v44 = vpop.f32.mrb[2].mxu1  ;;  %9814 = vmatpush1.bf16.msra.mxu0 %v18374_v13  ;;  %16427 = vmatpush3.bf16.msra.mxu1 %v18378_v27  ;;  %v18427_v13 = vld [vmem:[#allocation5 + $0x1be0] ss:$28 sps:$4 sm:$0xff]   ;;  %v18424_v27 = vld [vmem:[#allocation5 + $0xdd8] ss:$28 sps:$4 sm:$0xff]  }
 0x457   :  { %v9186_v31 = vpop.f32.mrb[3].mxu0  ;;  %v9678_v49 = vpop.f32.mrb[3].mxu1  ;;  %9815 = vmatprep.subr.bf16.mxu0 %v18381_v33  ;;  %16428 = vmatprep.subr.bf16.mxu1 %v18382_v34  ;;  %v18428_v33 = vld [vmem:[#allocation5 + $0x1a20] ss:$28 sps:$4 sm:$0xff]   ;;  %v18431_v34 = vld [vmem:[#allocation5 + $0xe14] ss:$28 sps:$4 sm:$0xff]  }
 0x458   :  { %v18432_v9 = vld [vmem:[#allocation5 + $0x1dd8] ss:$28 sps:$4 sm:$0xff]   ;;  %v18429_v44 = vld [vmem:[#allocation5 + $0xe10] ss:$28 sps:$4 sm:$0xff]   ;;  %v18434_v49 = vld [vmem:[#allocation5 + $0xe48] ss:$28 sps:$4 sm:$0xff]  }
 0x459   :  { %v18437_v31 = vld [vmem:[#allocation5 + $0x1e10] ss:$28 sps:$4 sm:$0xff]  }
 0x45a   :  { %9816 = vmatpush1.bf16.msra.mxu0 %v18379_v45  ;;  %16429 = vmatpush3.bf16.msra.mxu1 %v18383_v46  ;;  %v18433_v45 = vld [vmem:[#allocation5 + $0x1c18] ss:$28 sps:$4 sm:$0xff]   ;;  %v18436_v46 = vld [vmem:[#allocation5 + $0xe4c] ss:$28 sps:$4 sm:$0xff]  }
 0x45b   :  { %9817 = vmatprep.subr.bf16.mxu0 %v18386_v63  ;;  %16430 = vmatprep.subr.bf16.mxu1 %v18387_v50  ;;  %v18438_v63 = vld [vmem:[#allocation5 + $0x1c50] ss:$28 sps:$4 sm:$0xff]   ;;  %v18441_v50 = vld [vmem:[#allocation5 + $0xe84] ss:$28 sps:$4 sm:$0xff]  }
 0x45e   :  { %9818 = vmatpush1.bf16.msra.mxu0 %v18384_v51  ;;  %16431 = vmatpush3.bf16.msra.mxu1 %v18388_v52  ;;  %v18442_v51 = vld [vmem:[#allocation5 + $0x1e48] ss:$28 sps:$4 sm:$0xff]   ;;  %v18439_v52 = vld [vmem:[#allocation5 + $0xe80] ss:$28 sps:$4 sm:$0xff]  }
 0x45f   :  { %9819 = vmatprep.subr.bf16.mxu0 %v18391_v53  ;;  %16438 = vmatprep.subr.bf16.mxu1 %v18392_v10  ;;  %v18443_v53 = vld [vmem:[#allocation5 + $0x1c88] ss:$28 sps:$4 sm:$0xff]   ;;  %v18446_v10 = vld [vmem:[#allocation5 + $0xebc] ss:$28 sps:$4 sm:$0xff]  }
 0x461   :  { %10445 = vmatmul.mubr.bf16.vlgmr.msra.gmra.mrb[28].mxu1 %v19909_v11 }
 0x462   :  { %9820 = vmatpush1.bf16.msra.mxu0 %v18389_v54  ;;  %16439 = vmatpush3.bf16.msra.mxu1 %v18393_v55  ;;  %v18444_v54 = vld [vmem:[#allocation5 + $0xeb8] ss:$28 sps:$4 sm:$0xff]   ;;  %v18448_v55 = vld [vmem:[#allocation5 + $0x1cc0] ss:$28 sps:$4 sm:$0xff]  }
 0x463   :  { %9821 = vmatprep.subr.bf16.mxu0 %v18396_v58  ;;  %16440 = vmatprep.subr.bf16.mxu1 %v18397_v59  ;;  %v18451_v58 = vld [vmem:[#allocation5 + $0xef4] ss:$28 sps:$4 sm:$0xff]  }
 0x464   :  { %10484 = vmatprep.mubr.bf16.mxu1 %v19913_v18  ;;  %v18452_v59 = vld [vmem:[#allocation5 + $0x1eb8] ss:$28 sps:$4 sm:$0xff]  }
 0x466   :  { %9822 = vmatpush1.bf16.msra.mxu0 %v18394_v41  ;;  %16441 = vmatpush3.bf16.msra.mxu1 %v18398_v1  ;;  %v18449_v41 = vld [vmem:[#allocation5 + $0xef0] ss:$28 sps:$4 sm:$0xff]  }
 0x467   :  { %9823 = vmatprep.subr.bf16.mxu0 %v18401_v15  ;;  %16442 = vmatprep.subr.bf16.mxu1 %v18402_v48  ;;  %v18456_v1 = vld [vmem:[#allocation5 + $0xf2c] ss:$28 sps:$4 sm:$0xff]  }
 0x468   :  { %v18457_v15 = vld [vmem:[#allocation5 + $0x1ef0] ss:$28 sps:$4 sm:$0xff]   ;;  %v18454_v48 = vld [vmem:[#allocation5 + $0xf28] ss:$28 sps:$4 sm:$0xff]  }
 0x46a   :  { %9824 = vmatpush1.bf16.msra.mxu0 %v18399_v21  ;;  %16443 = vmatpush3.bf16.msra.mxu1 %v18403_v3  ;;  %v18458_v21 = vld [vmem:[#allocation5 + $0x1d30] ss:$28 sps:$4 sm:$0xff]   ;;  %v18461_v3 = vld [vmem:[#allocation5 + $0xf64] ss:$28 sps:$4 sm:$0xff]  }
 0x46b   :  { %9825 = vmatprep.subr.bf16.mxu0 %v18406_v4  ;;  %16444 = vmatprep.subr.bf16.mxu1 %v18407_v32  ;;  %v18462_v4 = vld [vmem:[#allocation5 + $0x1f28] ss:$28 sps:$4 sm:$0xff]   ;;  %v18459_v32 = vld [vmem:[#allocation5 + $0xf60] ss:$28 sps:$4 sm:$0xff]  }
 0x46e   :  { %9826 = vmatpush1.bf16.msra.mxu0 %v18404_v7  ;;  %16445 = vmatpush3.bf16.msra.mxu1 %v18408_v8  ;;  %v18463_v7 = vld [vmem:[#allocation5 + $0x1d68] ss:$28 sps:$4 sm:$0xff]   ;;  %v18466_v8 = vld [vmem:[#allocation5 + $0xf9c] ss:$28 sps:$4 sm:$0xff]  }
 0x46f   :  { %9827 = vmatprep.subr.bf16.mxu0 %v18411_v12  ;;  %16446 = vmatprep.subr.bf16.mxu1 %v18412_v14  ;;  %v18467_v12 = vld [vmem:[#allocation5 + $0x1f60] ss:$28 sps:$4 sm:$0xff]   ;;  %v18464_v14 = vld [vmem:[#allocation5 + $0xf98] ss:$28 sps:$4 sm:$0xff]  }
 0x472   :  { %9828 = vmatpush1.bf16.msra.mxu0 %v18409_v16  ;;  %16447 = vmatpush3.bf16.msra.mxu1 %v18413_v17  ;;  %v18468_v16 = vld [vmem:[#allocation5 + $0x1da0] ss:$28 sps:$4 sm:$0xff]   ;;  %v18471_v17 = vld [vmem:[#allocation5 + $0xfd4] ss:$28 sps:$4 sm:$0xff]  }
 0x473   :  { %9829 = vmatprep.subr.bf16.mxu0 %v18416_v20  ;;  %16448 = vmatprep.subr.bf16.mxu1 %v18417_v56  ;;  %v18472_v20 = vld [vmem:[#allocation5 + $0x2158] ss:$28 sps:$4 sm:$0xff]   ;;  %v18469_v56 = vld [vmem:[#allocation5 + $0xfd0] ss:$28 sps:$4 sm:$0xff]  }
 0x476   :  { %9830 = vmatpush1.bf16.msra.mxu0 %v18414_v19  ;;  %16449 = vmatpush3.bf16.msra.mxu1 %v18418_v22  ;;  %v18473_v19 = vld [vmem:[#allocation5 + $0x1f98] ss:$28 sps:$4 sm:$0xff]   ;;  %v18476_v22 = vld [vmem:[#allocation5 + $0x100c] ss:$28 sps:$4 sm:$0xff]  }
 0x477   :  { %9831 = vmatprep.subr.bf16.mxu0 %v18421_v23  ;;  %16450 = vmatprep.subr.bf16.mxu1 %v18422_v25  ;;  %v18477_v23 = vld [vmem:[#allocation5 + $0x2190] ss:$28 sps:$4 sm:$0xff]   ;;  %v18474_v25 = vld [vmem:[#allocation5 + $0x1008] ss:$28 sps:$4 sm:$0xff]  }
 0x47a   :  { %9832 = vmatpush1.bf16.msra.mxu0 %v18419_v5  ;;  %16451 = vmatpush3.bf16.msra.mxu1 %v18423_v24  ;;  %v18478_v5 = vld [vmem:[#allocation5 + $0x1fd0] ss:$28 sps:$4 sm:$0xff]   ;;  %v18481_v24 = vld [vmem:[#allocation5 + $0x1044] ss:$28 sps:$4 sm:$0xff]  }
 0x47b   :  { %9833 = vmatprep.subr.bf16.mxu0 %v18426_v26  ;;  %16452 = vmatprep.subr.bf16.mxu1 %v18427_v13  ;;  %v18482_v26 = vld [vmem:[#allocation5 + $0x21c8] ss:$28 sps:$4 sm:$0xff]   ;;  %v18479_v13 = vld [vmem:[#allocation5 + $0x1040] ss:$28 sps:$4 sm:$0xff]  }
 0x47e   :  { %9834 = vmatpush1.bf16.msra.mxu0 %v18424_v27  ;;  %16453 = vmatpush3.bf16.msra.mxu1 %v18428_v33  ;;  %v18483_v27 = vld [vmem:[#allocation5 + $0x2008] ss:$28 sps:$4 sm:$0xff]   ;;  %v18486_v33 = vld [vmem:[#allocation5 + $0x107c] ss:$28 sps:$4 sm:$0xff]  }
 0x47f   :  { %9844 = vmatprep.subr.bf16.mxu0 %v18431_v34  ;;  %16460 = vmatprep.subr.bf16.mxu1 %v18432_v9  ;;  %v18487_v34 = vld [vmem:[#allocation5 + $0x2200] ss:$28 sps:$4 sm:$0xff]   ;;  %v18484_v9 = vld [vmem:[#allocation5 + $0x1078] ss:$28 sps:$4 sm:$0xff]  }
 0x481   :  { %9836 = vmatmul.mubr.bf16.vlgmr.msra.gmra.mrb[4].mxu0 %v19865_v29  ;;  %10485 = vmatmul.mubr.bf16.vlgmr.msra.gmra.mrb[32].mxu1 %v19923_v36  ;;  %v18447_v29 = vld [vmem:[#allocation5 + $0x1e80] ss:$28 sps:$4 sm:$0xff]  }
 0x482   :  { %9845 = vmatpush1.bf16.msra.mxu0 %v18429_v44  ;;  %16461 = vmatpush3.bf16.msra.mxu1 %v18433_v45  ;;  %v18488_v44 = vld [vmem:[#allocation5 + $0x2040] ss:$28 sps:$4 sm:$0xff]   ;;  %v18491_v45 = vld [vmem:[#allocation5 + $0x10b4] ss:$28 sps:$4 sm:$0xff]  }
 0x483   :  { %9846 = vmatprep.subr.bf16.mxu0 %v18436_v46  ;;  %16462 = vmatprep.subr.bf16.mxu1 %v18437_v31  ;;  %v18492_v46 = vld [vmem:[#allocation5 + $0x2238] ss:$28 sps:$4 sm:$0xff]   ;;  %v18489_v31 = vld [vmem:[#allocation5 + $0x10b0] ss:$28 sps:$4 sm:$0xff]  }
 0x484   :  { %10524 = vmatprep.mubr.bf16.mxu1 %v19927_v43  ;;  %9876 = vmatprep.mubr.bf16.mxu0 %v19871_v35  ;;  %v18453_v35 = vld [vmem:[#allocation5 + $0x1cf8] ss:$28 sps:$4 sm:$0xff]  }
 0x486   :  { %9847 = vmatpush1.bf16.msra.mxu0 %v18434_v49  ;;  %16463 = vmatpush3.bf16.msra.mxu1 %v18438_v63  ;;  %v18493_v49 = vld [vmem:[#allocation5 + $0x2078] ss:$28 sps:$4 sm:$0xff]   ;;  %v18496_v63 = vld [vmem:[#allocation5 + $0x10ec] ss:$28 sps:$4 sm:$0xff]  }
 0x487   :  { %9848 = vmatprep.subr.bf16.mxu0 %v18441_v50  ;;  %16464 = vmatprep.subr.bf16.mxu1 %v18442_v51  ;;  %v18497_v50 = vld [vmem:[#allocation5 + $0x2270] ss:$28 sps:$4 sm:$0xff]   ;;  %v18494_v51 = vld [vmem:[#allocation5 + $0x10e8] ss:$28 sps:$4 sm:$0xff]  }
 0x48a   :  { %9849 = vmatpush1.bf16.msra.mxu0 %v18439_v52  ;;  %16465 = vmatpush3.bf16.msra.mxu1 %v18443_v53  ;;  %v18498_v52 = vld [vmem:[#allocation5 + $0x20b0] ss:$28 sps:$4 sm:$0xff]   ;;  %v18501_v53 = vld [vmem:[#allocation5 + $0x1124] ss:$28 sps:$4 sm:$0xff]  }
 0x48b   :  { %9850 = vmatprep.subr.bf16.mxu0 %v18446_v10  ;;  %16466 = vmatprep.subr.bf16.mxu1 %v18447_v29  ;;  %v18502_v10 = vld [vmem:[#allocation5 + $0x22a8] ss:$28 sps:$4 sm:$0xff]   ;;  %v18499_v29 = vld [vmem:[#allocation5 + $0x1120] ss:$28 sps:$4 sm:$0xff]  }
 0x48e   :  { %9851 = vmatpush1.bf16.msra.mxu0 %v18444_v54  ;;  %16467 = vmatpush3.bf16.msra.mxu1 %v18448_v55  ;;  %v18503_v54 = vld [vmem:[#allocation5 + $0x20e8] ss:$28 sps:$4 sm:$0xff]   ;;  %v18506_v55 = vld [vmem:[#allocation5 + $0x115c] ss:$28 sps:$4 sm:$0xff]  }
 0x48f   :  { %9852 = vmatprep.subr.bf16.mxu0 %v18451_v58  ;;  %16468 = vmatprep.subr.bf16.mxu1 %v18452_v59  ;;  %v18507_v58 = vld [vmem:[#allocation5 + $0x22e0] ss:$28 sps:$4 sm:$0xff]   ;;  %v18504_v59 = vld [vmem:[#allocation5 + $0x1158] ss:$28 sps:$4 sm:$0xff]  }
 0x492   :  { %9853 = vmatpush1.bf16.msra.mxu0 %v18449_v41  ;;  %16469 = vmatpush3.bf16.msra.mxu1 %v18453_v35  ;;  %v18508_v41 = vld [vmem:[#allocation5 + $0x2120] ss:$28 sps:$4 sm:$0xff]   ;;  %v18511_v35 = vld [vmem:[#allocation5 + $0x1194] ss:$28 sps:$4 sm:$0xff]  }
 0x493   :  { %9854 = vmatprep.subr.bf16.mxu0 %v18456_v1  ;;  %16470 = vmatprep.subr.bf16.mxu1 %v18457_v15  ;;  %v18512_v1 = vld [vmem:[#allocation5 + $0x24d8] ss:$28 sps:$4 sm:$0xff]   ;;  %v18509_v15 = vld [vmem:[#allocation5 + $0x1190] ss:$28 sps:$4 sm:$0xff]  }
 0x496   :  { %9855 = vmatpush1.bf16.msra.mxu0 %v18454_v48  ;;  %16471 = vmatpush3.bf16.msra.mxu1 %v18458_v21  ;;  %v18513_v48 = vld [vmem:[#allocation5 + $0x2318] ss:$28 sps:$4 sm:$0xff]   ;;  %v18516_v21 = vld [vmem:[#allocation5 + $0x11cc] ss:$28 sps:$4 sm:$0xff]  }
 0x497   :  { %9856 = vmatprep.subr.bf16.mxu0 %v18461_v3  ;;  %16472 = vmatprep.subr.bf16.mxu1 %v18462_v4  ;;  %v18517_v3 = vld [vmem:[#allocation5 + $0x2510] ss:$28 sps:$4 sm:$0xff]   ;;  %v18514_v4 = vld [vmem:[#allocation5 + $0x11c8] ss:$28 sps:$4 sm:$0xff]  }
 0x49a   :  { %9857 = vmatpush1.bf16.msra.mxu0 %v18459_v32  ;;  %16473 = vmatpush3.bf16.msra.mxu1 %v18463_v7  ;;  %v18518_v32 = vld [vmem:[#allocation5 + $0x2350] ss:$28 sps:$4 sm:$0xff]   ;;  %v18521_v7 = vld [vmem:[#allocation5 + $0x1204] ss:$28 sps:$4 sm:$0xff]  }
 0x49b   :  { %9858 = vmatprep.subr.bf16.mxu0 %v18466_v8  ;;  %16474 = vmatprep.subr.bf16.mxu1 %v18467_v12  ;;  %v18522_v8 = vld [vmem:[#allocation5 + $0x2548] ss:$28 sps:$4 sm:$0xff]   ;;  %v18519_v12 = vld [vmem:[#allocation5 + $0x1200] ss:$28 sps:$4 sm:$0xff]  }
 0x49e   :  { %9859 = vmatpush1.bf16.msra.mxu0 %v18464_v14  ;;  %16475 = vmatpush3.bf16.msra.mxu1 %v18468_v16  ;;  %v18523_v14 = vld [vmem:[#allocation5 + $0x2388] ss:$28 sps:$4 sm:$0xff]   ;;  %v18527_v16 = vld [vmem:[#allocation5 + $0x2580] ss:$28 sps:$4 sm:$0xff]  }
 0x49f   :  { %9860 = vmatprep.subr.bf16.mxu0 %v18471_v17  ;;  %16482 = vmatprep.subr.bf16.mxu1 %v18472_v20  ;;  %v18524_v17 = vld [vmem:[#allocation5 + $0x1238] ss:$28 sps:$4 sm:$0xff]   ;;  %v18528_v20 = vld [vmem:[#allocation5 + $0x23c0] ss:$28 sps:$4 sm:$0xff]  }
 0x4a1   :  { %10525 = vmatmul.mubr.bf16.vlgmr.msra.gmra.mrb[36].mxu1 %v19937_v61 }
 0x4a2   :  { %9861 = vmatpush1.bf16.msra.mxu0 %v18469_v56  ;;  %16483 = vmatpush3.bf16.msra.mxu1 %v18473_v19  ;;  %v18531_v56 = vld [vmem:[#allocation5 + $0x1274] ss:$28 sps:$4 sm:$0xff]  }
 0x4a3   :  { %9862 = vmatprep.subr.bf16.mxu0 %v18476_v22  ;;  %16484 = vmatprep.subr.bf16.mxu1 %v18477_v23  ;;  %v18532_v19 = vld [vmem:[#allocation5 + $0x25b8] ss:$28 sps:$4 sm:$0xff]   ;;  %v18529_v22 = vld [vmem:[#allocation5 + $0x1270] ss:$28 sps:$4 sm:$0xff]  }
 0x4a4   :  { %10564 = vmatprep.mubr.bf16.mxu1 %v19941_v2  ;;  %v18536_v23 = vld [vmem:[#allocation5 + $0x12ac] ss:$28 sps:$4 sm:$0xff]  }
 0x4a6   :  { %9863 = vmatpush1.bf16.msra.mxu0 %v18474_v25  ;;  %16485 = vmatpush3.bf16.msra.mxu1 %v18478_v5  ;;  %v18537_v25 = vld [vmem:[#allocation5 + $0x25f0] ss:$28 sps:$4 sm:$0xff]   ;;  %v18534_v5 = vld [vmem:[#allocation5 + $0x12a8] ss:$28 sps:$4 sm:$0xff]  }
 0x4a7   :  { %9864 = vmatprep.subr.bf16.mxu0 %v18481_v24  ;;  %16486 = vmatprep.subr.bf16.mxu1 %v18482_v26  ;;  %v18538_v24 = vld [vmem:[#allocation5 + $0x2430] ss:$28 sps:$4 sm:$0xff]   ;;  %v18541_v26 = vld [vmem:[#allocation5 + $0x12e4] ss:$28 sps:$4 sm:$0xff]  }
 0x4aa   :  { %9865 = vmatpush1.bf16.msra.mxu0 %v18479_v13  ;;  %16487 = vmatpush3.bf16.msra.mxu1 %v18483_v27  ;;  %v18542_v13 = vld [vmem:[#allocation5 + $0x2628] ss:$28 sps:$4 sm:$0xff]   ;;  %v18539_v27 = vld [vmem:[#allocation5 + $0x12e0] ss:$28 sps:$4 sm:$0xff]  }
 0x4ab   :  { %9866 = vmatprep.subr.bf16.mxu0 %v18486_v33  ;;  %16488 = vmatprep.subr.bf16.mxu1 %v18487_v34  ;;  %v18543_v33 = vld [vmem:[#allocation5 + $0x2468] ss:$28 sps:$4 sm:$0xff]   ;;  %v18546_v34 = vld [vmem:[#allocation5 + $0x131c] ss:$28 sps:$4 sm:$0xff]  }
 0x4ae   :  { %9867 = vmatpush1.bf16.msra.mxu0 %v18484_v9  ;;  %16489 = vmatpush3.bf16.msra.mxu1 %v18488_v44  ;;  %v18547_v9 = vld [vmem:[#allocation5 + $0x2660] ss:$28 sps:$4 sm:$0xff]   ;;  %v18544_v44 = vld [vmem:[#allocation5 + $0x1318] ss:$28 sps:$4 sm:$0xff]  }
 0x4af   :  { %9868 = vmatprep.subr.bf16.mxu0 %v18491_v45  ;;  %16490 = vmatprep.subr.bf16.mxu1 %v18492_v46  ;;  %v18548_v45 = vld [vmem:[#allocation5 + $0x24a0] ss:$28 sps:$4 sm:$0xff]   ;;  %v18551_v46 = vld [vmem:[#allocation5 + $0x1354] ss:$28 sps:$4 sm:$0xff]  }
 0x4b2   :  { %9869 = vmatpush1.bf16.msra.mxu0 %v18489_v31  ;;  %16491 = vmatpush3.bf16.msra.mxu1 %v18493_v49  ;;  %v18552_v31 = vld [vmem:[#allocation5 + $0x2858] ss:$28 sps:$4 sm:$0xff]   ;;  %v18549_v49 = vld [vmem:[#allocation5 + $0x1350] ss:$28 sps:$4 sm:$0xff]  }
 0x4b3   :  { %9870 = vmatprep.subr.bf16.mxu0 %v18496_v63  ;;  %16492 = vmatprep.subr.bf16.mxu1 %v18497_v50  ;;  %v18553_v63 = vld [vmem:[#allocation5 + $0x2698] ss:$28 sps:$4 sm:$0xff]   ;;  %v18556_v50 = vld [vmem:[#allocation5 + $0x138c] ss:$28 sps:$4 sm:$0xff]  }
 0x4b6   :  { %9871 = vmatpush1.bf16.msra.mxu0 %v18494_v51  ;;  %16493 = vmatpush3.bf16.msra.mxu1 %v18498_v52  ;;  %v18557_v51 = vld [vmem:[#allocation5 + $0x2890] ss:$28 sps:$4 sm:$0xff]   ;;  %v18554_v52 = vld [vmem:[#allocation5 + $0x1388] ss:$28 sps:$4 sm:$0xff]  }
 0x4b7   :  { %9872 = vmatprep.subr.bf16.mxu0 %v18501_v53  ;;  %16494 = vmatprep.subr.bf16.mxu1 %v18502_v10  ;;  %v18558_v53 = vld [vmem:[#allocation5 + $0x26d0] ss:$28 sps:$4 sm:$0xff]   ;;  %v18561_v10 = vld [vmem:[#allocation5 + $0x13c4] ss:$28 sps:$4 sm:$0xff]  }
 0x4ba   :  { %9873 = vmatpush1.bf16.msra.mxu0 %v18499_v29  ;;  %16495 = vmatpush3.bf16.msra.mxu1 %v18503_v54  ;;  %v18562_v29 = vld [vmem:[#allocation5 + $0x28c8] ss:$28 sps:$4 sm:$0xff]   ;;  %v18559_v54 = vld [vmem:[#allocation5 + $0x13c0] ss:$28 sps:$4 sm:$0xff]  }
 0x4bb   :  { %9874 = vmatprep.subr.bf16.mxu0 %v18506_v55  ;;  %16496 = vmatprep.subr.bf16.mxu1 %v18507_v58  ;;  %v18563_v55 = vld [vmem:[#allocation5 + $0x2708] ss:$28 sps:$4 sm:$0xff]   ;;  %v18566_v58 = vld [vmem:[#allocation5 + $0x13fc] ss:$28 sps:$4 sm:$0xff]  }
 0x4be   :  { %9875 = vmatpush1.bf16.msra.mxu0 %v18504_v59  ;;  %16497 = vmatpush3.bf16.msra.mxu1 %v18508_v41  ;;  %v18567_v59 = vld [vmem:[#allocation5 + $0x2900] ss:$28 sps:$4 sm:$0xff]   ;;  %v1665_v41 = vlaneseq }
 0x4bf   :  { %9885 = vmatprep.subr.bf16.mxu0 %v18511_v35  ;;  %16504 = vmatprep.subr.bf16.mxu1 %v18512_v1  ;;  %v18564_v35 = vld [vmem:[#allocation5 + $0x13f8] ss:$28 sps:$4 sm:$0xff]   ;;  %v18568_v1 = vld [vmem:[#allocation5 + $0x2740] ss:$28 sps:$4 sm:$0xff]  }
 0x4c1   :  { %9877 = vmatmul.mubr.bf16.vlgmr.msra.gmra.mrb[4].mxu0 %v19881_v42  ;;  %10565 = vmatmul.mubr.bf16.vlgmr.msra.gmra.mrb[40].mxu1 %v19949_v28  ;;  %v18526_v42 = vld [vmem:[#allocation5 + $0x123c] ss:$28 sps:$4 sm:$0xff]  }
 0x4c2   :  { %9886 = vmatpush1.bf16.msra.mxu0 %v18509_v15  ;;  %16505 = vmatpush3.bf16.msra.mxu1 %v18513_v48  ;;  %v18571_v15 = vld [vmem:[#allocation5 + $0x1434] ss:$28 sps:$4 sm:$0xff]  }
 0x4c3   :  { %9887 = vmatprep.subr.bf16.mxu0 %v18516_v21  ;;  %16506 = vmatprep.subr.bf16.mxu1 %v18517_v3  ;;  %v18572_v48 = vld [vmem:[#allocation5 + $0x2938] ss:$28 sps:$4 sm:$0xff]   ;;  %v20023_v21 = vshrl.u32 %v1665_v41, 7  ;;  %v18569_v3 = vld [vmem:[#allocation5 + $0x1430] ss:$28 sps:$4 sm:$0xff]  }
 0x4c4   :  { %10604 = vmatprep.mubr.bf16.mxu1 %v19955_v38  ;;  %9917 = vmatprep.mubr.bf16.mxu0 %v19885_v47  ;;  %v18533_v47 = vld [vmem:[#allocation5 + $0x23f8] ss:$28 sps:$4 sm:$0xff]   ;;  %v18627_v41 = vld [vmem:[#allocation5 + $0x1664] ss:$28 sps:$4 sm:$0xff]  }
 0x4c6   :  { %9888 = vmatpush1.bf16.msra.mxu0 %v18514_v4  ;;  %16507 = vmatpush3.bf16.msra.mxu1 %v18518_v32  ;;  %v18573_v4 = vld [vmem:[#allocation5 + $0x2778] ss:$28 sps:$4 sm:$0xff]   ;;  %v18576_v32 = vld [vmem:[#allocation5 + $0x146c] ss:$28 sps:$4 sm:$0xff]  }
 0x4c7   :  { %9889 = vmatprep.subr.bf16.mxu0 %v18521_v7  ;;  %16508 = vmatprep.subr.bf16.mxu1 %v18522_v8  ;;  %v18577_v7 = vld [vmem:[#allocation5 + $0x2970] ss:$28 sps:$4 sm:$0xff]   ;;  %v1671_v8 = vsub.s32 1, %v20023_v21 }
 0x4ca   :  { %9890 = vmatpush1.bf16.msra.mxu0 %v18519_v12  ;;  %16509 = vmatpush3.bf16.msra.mxu1 %v18523_v14  ;;  %v20026_v12 = vld [vmem:[#allocation7] sm:$0xff] }
 0x4cb   :  { %9891 = vmatprep.subr.bf16.mxu0 %v18526_v42  ;;  %16510 = vmatprep.subr.bf16.mxu1 %v18527_v16  ;;  %v18574_v14 = vld [vmem:[#allocation5 + $0x1468] ss:$28 sps:$4 sm:$0xff]   ;;  %v18578_v42 = vld [vmem:[#allocation5 + $0x27b0] ss:$28 sps:$4 sm:$0xff]  }
 0x4cc   :  { %v18581_v16 = vld [vmem:[#allocation5 + $0x14a4] ss:$28 sps:$4 sm:$0xff]  }
 0x4ce   :  { %9892 = vmatpush1.bf16.msra.mxu0 %v18524_v17  ;;  %16511 = vmatpush3.bf16.msra.mxu1 %v18528_v20  ;;  %v18582_v17 = vld [vmem:[#allocation5 + $0x29a8] ss:$28 sps:$4 sm:$0xff]   ;;  %v1672_v20 = vrot.slane %v20026_v12, %v1671_v8 }
 0x4cf   :  { %9893 = vmatprep.subr.bf16.mxu0 %v18531_v56  ;;  %16512 = vmatprep.subr.bf16.mxu1 %v18532_v19  ;;  %v18579_v56 = vld [vmem:[#allocation5 + $0x14a0] ss:$28 sps:$4 sm:$0xff]   ;;  %v18583_v19 = vld [vmem:[#allocation5 + $0x27e8] ss:$28 sps:$4 sm:$0xff]  }
 0x4d2   :  { %9894 = vmatpush1.bf16.msra.mxu0 %v18529_v22  ;;  %16513 = vmatpush3.bf16.msra.mxu1 %v18533_v47  ;;  %v18586_v22 = vld [vmem:[#allocation5 + $0x14dc] ss:$28 sps:$4 sm:$0xff]  }
 0x4d3   :  { %9895 = vmatprep.subr.bf16.mxu0 %v18536_v23  ;;  %16514 = vmatprep.subr.bf16.mxu1 %v18537_v25  ;;  %v18587_v47 = vld [vmem:[#allocation5 + $0x29e0] ss:$28 sps:$4 sm:$0xff]   ;;  %v16739_v23 = vadd.f32 %v20005_v60, %v1672_v20  ;;  %v18584_v25 = vld [vmem:[#allocation5 + $0x14d8] ss:$28 sps:$4 sm:$0xff]   ;;  %v18595_v60 = vld [vmem:[#allocation5 + $0x1548] ss:$28 sps:$4 sm:$0xff]  }
 0x4d4   :  { %v18648_v20 = vld [vmem:[#allocation8 + $0x1fc] ss:$28 sps:$4 sm:$0xff]  }
 0x4d6   :  { %9896 = vmatpush1.bf16.msra.mxu0 %v18534_v5  ;;  %16515 = vmatpush3.bf16.msra.mxu1 %v18538_v24  ;;  %v18588_v5 = vld [vmem:[#allocation5 + $0x2820] ss:$28 sps:$4 sm:$0xff]   ;;  %v18591_v24 = vld [vmem:[#allocation5 + $0x1514] ss:$28 sps:$4 sm:$0xff]  }
 0x4d7   :  { %9897 = vmatprep.subr.bf16.mxu0 %v18541_v26  ;;  %16516 = vmatprep.subr.bf16.mxu1 %v18542_v13  ;;  %v18594_v26 = vld [vmem:[#allocation8 + $0x4] ss:$28 sps:$4 sm:$0xff]   ;;  %v10653_v13 = vmax.f32 %v16739_v23, 0.0  ;;  %v18649_v23 = vld [vmem:[#allocation5 + $0x1740] ss:$28 sps:$4 sm:$0xff]  }
 0x4da   :  { %9898 = vmatpush1.bf16.msra.mxu0 %v18539_v27  ;;  %16517 = vmatpush3.bf16.msra.mxu1 %v18543_v33  ;;  %v18589_v27 = vld [vmem:[#allocation5 + $0x1510] ss:$28 sps:$4 sm:$0xff]   ;;  %v18592_v33 = vld [vmem:[#allocation8] ss:$28 sps:$4 sm:$0xff]  }
 0x4db   :  { %9899 = vmatprep.subr.bf16.mxu0 %v18546_v34  ;;  %16518 = vmatprep.subr.bf16.mxu1 %v18547_v9  ;;  %v18597_v34 = vld [vmem:[#allocation5 + $0x154c] ss:$28 sps:$4 sm:$0xff]   ;;  %v18600_v9 = vld [vmem:[#allocation8 + $0x3c] ss:$28 sps:$4 sm:$0xff]  }
 0x4de   :  { %9900 = vmatpush1.bf16.msra.mxu0 %v18544_v44  ;;  %16519 = vmatpush3.bf16.msra.mxu1 %v18548_v45  ;;  %v20032_v44 = vpack.c.bf16 %v10653_v13, %v10653_v13  ;;  %v18598_v45 = vld [vmem:[#allocation8 + $0x38] ss:$28 sps:$4 sm:$0xff]   ;;  %v18658_v13 = vld [vmem:[#allocation8 + $0x268] ss:$28 sps:$4 sm:$0xff]  }
 0x4df   :  { %9901 = vmatprep.subr.bf16.mxu0 %v18551_v46  ;;  %16526 = vmatprep.subr.bf16.mxu1 %v18552_v31  ;;  %v18603_v46 = vld [vmem:[#allocation5 + $0x1584] ss:$28 sps:$4 sm:$0xff]   ;;  %v18606_v31 = vld [vmem:[#allocation8 + $0x74] ss:$28 sps:$4 sm:$0xff]  }
 0x4e1   :  { %10605 = vmatmul.mubr.bf16.vlgmr.msra.gmra.mrb[44].mxu1 %v19965_v0 }
 0x4e2   :  { %9902 = vmatpush1.bf16.msra.mxu0 %v18549_v49  ;;  %16527 = vmatpush3.bf16.msra.mxu1 %v18553_v63  ;;  %v18601_v49 = vld [vmem:[#allocation5 + $0x1580] ss:$28 sps:$4 sm:$0xff]   ;;  %v18604_v63 = vld [vmem:[#allocation8 + $0x70] ss:$28 sps:$4 sm:$0xff]  }
 0x4e3   :  { %9903 = vmatprep.subr.bf16.mxu0 %v18556_v50  ;;  %16528 = vmatprep.subr.bf16.mxu1 %v18557_v51  ;;  %v18609_v50 = vld [vmem:[#allocation5 + $0x15bc] ss:$28 sps:$4 sm:$0xff]  }
 0x4e4   :  { %10644 = vmatprep.mubr.bf16.mxu1 %v19969_v6  ;;  %v18607_v51 = vld [vmem:[#allocation5 + $0x15b8] ss:$28 sps:$4 sm:$0xff]  }
 0x4e6   :  { %9904 = vmatpush1.bf16.msra.mxu0 %v18554_v52  ;;  %16529 = vmatpush3.bf16.msra.mxu1 %v18558_v53  ;;  %v18610_v52 = vld [vmem:[#allocation8 + $0xa8] ss:$28 sps:$4 sm:$0xff]  }
 0x4e7   :  { %9905 = vmatprep.subr.bf16.mxu0 %v18561_v10  ;;  %16530 = vmatprep.subr.bf16.mxu1 %v18562_v29  ;;  %v18615_v53 = vld [vmem:[#allocation5 + $0x15f4] ss:$28 sps:$4 sm:$0xff]   ;;  %v18618_v10 = vld [vmem:[#allocation8 + $0xe4] ss:$28 sps:$4 sm:$0xff]  }
 0x4e8   :  { %v18613_v29 = vld [vmem:[#allocation5 + $0x15f0] ss:$28 sps:$4 sm:$0xff]  }
 0x4ea   :  { %9906 = vmatpush1.bf16.msra.mxu0 %v18559_v54  ;;  %16531 = vmatpush3.bf16.msra.mxu1 %v18563_v55  ;;  %v18621_v54 = vld [vmem:[#allocation5 + $0x162c] ss:$28 sps:$4 sm:$0xff]   ;;  %v18624_v55 = vld [vmem:[#allocation8 + $0x11c] ss:$28 sps:$4 sm:$0xff]  }
 0x4eb   :  { %9907 = vmatprep.subr.bf16.mxu0 %v18566_v58  ;;  %16532 = vmatprep.subr.bf16.mxu1 %v18567_v59  ;;  %v18619_v58 = vld [vmem:[#allocation5 + $0x1628] ss:$28 sps:$4 sm:$0xff]   ;;  %v18622_v59 = vld [vmem:[#allocation8 + $0x118] ss:$28 sps:$4 sm:$0xff]  }
 0x4ee   :  { %9908 = vmatpush1.bf16.msra.mxu0 %v18564_v35  ;;  %16533 = vmatpush3.bf16.msra.mxu1 %v18568_v1  ;;  %v18630_v35 = vld [vmem:[#allocation8 + $0x154] ss:$28 sps:$4 sm:$0xff]  }
 0x4ef   :  { %9909 = vmatprep.subr.bf16.mxu0 %v18571_v15  ;;  %16534 = vmatprep.subr.bf16.mxu1 %v18572_v48  ;;  %v18625_v1 = vld [vmem:[#allocation5 + $0x1660] ss:$28 sps:$4 sm:$0xff]   ;;  %v18628_v15 = vld [vmem:[#allocation8 + $0x150] ss:$28 sps:$4 sm:$0xff]  }
 0x4f0   :  { %v18633_v48 = vld [vmem:[#allocation5 + $0x169c] ss:$28 sps:$4 sm:$0xff]  }
 0x4f2   :  { %9910 = vmatpush1.bf16.msra.mxu0 %v18569_v3  ;;  %16535 = vmatpush3.bf16.msra.mxu1 %v18573_v4  ;;  %v18636_v3 = vld [vmem:[#allocation8 + $0x18c] ss:$28 sps:$4 sm:$0xff]  }
 0x4f3   :  { %9911 = vmatprep.subr.bf16.mxu0 %v18576_v32  ;;  %16536 = vmatprep.subr.bf16.mxu1 %v18577_v7  ;;  %v18631_v4 = vld [vmem:[#allocation5 + $0x1698] ss:$28 sps:$4 sm:$0xff]   ;;  %v18634_v32 = vld [vmem:[#allocation8 + $0x188] ss:$28 sps:$4 sm:$0xff]  }
 0x4f4   :  { %v18639_v7 = vld [vmem:[#allocation5 + $0x16d4] ss:$28 sps:$4 sm:$0xff]  }
 0x4f6   :  { %9912 = vmatpush1.bf16.msra.mxu0 %v18574_v14  ;;  %16537 = vmatpush3.bf16.msra.mxu1 %v18578_v42  ;;  %v18642_v14 = vld [vmem:[#allocation8 + $0x1c4] ss:$28 sps:$4 sm:$0xff]  }
 0x4f7   :  { %9913 = vmatprep.subr.bf16.mxu0 %v18581_v16  ;;  %16538 = vmatprep.subr.bf16.mxu1 %v18582_v17  ;;  %v18637_v42 = vld [vmem:[#allocation5 + $0x16d0] ss:$28 sps:$4 sm:$0xff]   ;;  %v18640_v16 = vld [vmem:[#allocation8 + $0x1c0] ss:$28 sps:$4 sm:$0xff]  }
 0x4f8   :  { %v18645_v17 = vld [vmem:[#allocation5 + $0x170c] ss:$28 sps:$4 sm:$0xff]  }
 0x4fa   :  { %9914 = vmatpush1.bf16.msra.mxu0 %v18579_v56  ;;  %16539 = vmatpush3.bf16.msra.mxu1 %v18583_v19  ;;  %v18643_v56 = vld [vmem:[#allocation5 + $0x1708] ss:$28 sps:$4 sm:$0xff]   ;;  %v18646_v19 = vld [vmem:[#allocation8 + $0x1f8] ss:$28 sps:$4 sm:$0xff]  }
 0x4fb   :  { %9915 = vmatprep.subr.bf16.mxu0 %v18586_v22  ;;  %16540 = vmatprep.subr.bf16.mxu1 %v18587_v47  ;;  %v18651_v22 = vld [vmem:[#allocation5 + $0x1744] ss:$28 sps:$4 sm:$0xff]   ;;  %v18654_v47 = vld [vmem:[#allocation8 + $0x234] ss:$28 sps:$4 sm:$0xff]  }
 0x4fe   :  { %9916 = vmatpush1.bf16.msra.mxu0 %v18584_v25  ;;  %16541 = vmatpush3.bf16.msra.mxu1 %v18588_v5  ;;  %v18652_v25 = vld [vmem:[#allocation8 + $0x230] ss:$28 sps:$4 sm:$0xff]  }
 0x4ff   :  { %9926 = vmatprep.subr.bf16.mxu0 %v18591_v24  ;;  %13167 = vmatprep.subr.bf16.mxu1 %v18594_v26  ;;  %v18657_v5 = vld [vmem:[#allocation5 + $0x177c] ss:$28 sps:$4 sm:$0xff]   ;;  %v18660_v24 = vld [vmem:[#allocation8 + $0x26c] ss:$28 sps:$4 sm:$0xff]  }
 0x500   :  { %v18655_v26 = vld [vmem:[#allocation5 + $0x1778] ss:$28 sps:$4 sm:$0xff]  }
 0x501   :  { %10645 = vmatmul.mubr.bf16.vlgmr.msra.gmra.mrb[48].mxu1 %v19977_v40  ;;  %9918 = vmatmul.mubr.bf16.vlgmr.msra.gmra.mrb[4].mxu0 %v19895_v57  ;;  %v18612_v57 = vld [vmem:[#allocation8 + $0xac] ss:$28 sps:$4 sm:$0xff]  }
 0x502   :  { %9927 = vmatpush1.bf16.msra.mxu0 %v18589_v27  ;;  %13168 = vmatpush1.bf16.msra.mxu1 %v18592_v33  ;;  %v18663_v27 = vld [vmem:[#allocation5 + $0x17b4] ss:$28 sps:$4 sm:$0xff]   ;;  %v18666_v33 = vld [vmem:[#allocation8 + $0x2a4] ss:$28 sps:$4 sm:$0xff]  }
 0x503   :  { %13199 = vmatprep.mubr.bf16.mxu1 %v20032_v44  ;;  %9928 = vmatprep.subr.bf16.mxu0 %v18597_v34  ;;  %v18661_v34 = vld [vmem:[#allocation5 + $0x17b0] ss:$28 sps:$4 sm:$0xff]  }
 0x504   :  { %13169 = vmatprep.subr.bf16.mxu1 %v18600_v9  ;;  %9958 = vmatprep.mubr.bf16.mxu0 %v19899_v62  ;;  %v18616_v62 = vld [vmem:[#allocation8 + $0xe0] ss:$28 sps:$4 sm:$0xff]  }
 0x505   :  { %v18664_v9 = vld [vmem:[#allocation8 + $0x2a0] ss:$28 sps:$4 sm:$0xff]  }
 0x506   :  { %9929 = vmatpush1.bf16.msra.mxu0 %v18595_v60  ;;  %13170 = vmatpush1.bf16.msra.mxu1 %v18598_v45  ;;  %v1667_v60 = vsub.s32 0, %v20023_v21  ;;  %v18669_v45 = vld [vmem:[#allocation5 + $0x17ec] ss:$28 sps:$4 sm:$0xff]  }
 0x507   :  { %9930 = vmatprep.subr.bf16.mxu0 %v18603_v46  ;;  %13171 = vmatprep.subr.bf16.mxu1 %v18606_v31  ;;  %v18672_v46 = vld [vmem:[#allocation8 + $0x2dc] ss:$28 sps:$4 sm:$0xff]   ;;  %v1679_v31 = vsub.s32 3, %v20023_v21 }
 0x50a   :  { %9931 = vmatpush1.bf16.msra.mxu0 %v18601_v49  ;;  %13172 = vmatpush1.bf16.msra.mxu1 %v18604_v63  ;;  %v18667_v49 = vld [vmem:[#allocation5 + $0x17e8] ss:$28 sps:$4 sm:$0xff]   ;;  %v18670_v63 = vld [vmem:[#allocation8 + $0x2d8] ss:$28 sps:$4 sm:$0xff]  }
 0x50b   :  { %9932 = vmatprep.subr.bf16.mxu0 %v18609_v50  ;;  %13173 = vmatprep.subr.bf16.mxu1 %v18612_v57  ;;  %v1668_v50 = vrot.slane %v20026_v12, %v1667_v60  ;;  %v18675_v57 = vld [vmem:[#allocation5 + $0x1824] ss:$28 sps:$4 sm:$0xff]  }
 0x50e   :  { %9933 = vmatpush1.bf16.msra.mxu0 %v18607_v51  ;;  %13174 = vmatpush1.bf16.msra.mxu1 %v18610_v52  ;;  %v18678_v51 = vld [vmem:[#allocation8 + $0x314] ss:$28 sps:$4 sm:$0xff]   ;;  %v1680_v52 = vrot.slane %v20026_v12, %v1679_v31 }
 0x50f   :  { %9934 = vmatprep.subr.bf16.mxu0 %v18615_v53  ;;  %13175 = vmatprep.subr.bf16.mxu1 %v18618_v10  ;;  %v18673_v53 = vld [vmem:[#allocation5 + $0x1820] ss:$28 sps:$4 sm:$0xff]   ;;  %v18676_v10 = vld [vmem:[#allocation8 + $0x310] ss:$28 sps:$4 sm:$0xff]  }
 0x512   :  { %9935 = vmatpush1.bf16.msra.mxu0 %v18613_v29  ;;  %13176 = vmatpush1.bf16.msra.mxu1 %v18616_v62  ;;  %v16738_v29 = vadd.f32 %v20001_v37, %v1668_v50  ;;  %v18681_v62 = vld [vmem:[#allocation5 + $0x185c] ss:$28 sps:$4 sm:$0xff]   ;;  %v18688_v37 = vld [vmem:[#allocation8 + $0x380] ss:$28 sps:$4 sm:$0xff]   ;;  %v18735_v50 = vld [vmem:[#allocation5 + $0x1a54] ss:$28 sps:$4 sm:$0xff]  }
 0x513   :  { %9936 = vmatprep.subr.bf16.mxu0 %v18621_v54  ;;  %13177 = vmatprep.subr.bf16.mxu1 %v18624_v55  ;;  %v18684_v54 = vld [vmem:[#allocation8 + $0x34c] ss:$28 sps:$4 sm:$0xff]   ;;  %v16741_v55 = vadd.f32 %v20007_v39, %v1680_v52  ;;  %v18696_v39 = vld [vmem:[#allocation8 + $0x3bc] ss:$28 sps:$4 sm:$0xff]  }
 0x514   :  { %v18736_v52 = vld [vmem:[#allocation8 + $0x540] ss:$28 sps:$4 sm:$0xff]  }
 0x516   :  { %9937 = vmatpush1.bf16.msra.mxu0 %v18619_v58  ;;  %13178 = vmatpush1.bf16.msra.mxu1 %v18622_v59  ;;  %v18679_v58 = vld [vmem:[#allocation5 + $0x1858] ss:$28 sps:$4 sm:$0xff]   ;;  %v18682_v59 = vld [vmem:[#allocation8 + $0x348] ss:$28 sps:$4 sm:$0xff]  }
 0x517   :  { %9938 = vmatprep.subr.bf16.mxu0 %v18627_v41  ;;  %13179 = vmatprep.subr.bf16.mxu1 %v18630_v35  ;;  %v10652_v41 = vmax.f32 %v16738_v29, 0.0  ;;  %v18687_v35 = vld [vmem:[#allocation5 + $0x1894] ss:$28 sps:$4 sm:$0xff]   ;;  %v18739_v29 = vld [vmem:[#allocation5 + $0x1a88] ss:$28 sps:$4 sm:$0xff]  }
 0x51a   :  { %9939 = vmatpush1.bf16.msra.mxu0 %v18625_v1  ;;  %13180 = vmatpush1.bf16.msra.mxu1 %v18628_v15  ;;  %v18690_v1 = vld [vmem:[#allocation8 + $0x384] ss:$28 sps:$4 sm:$0xff]   ;;  %v10655_v15 = vmax.f32 %v16741_v55, 0.0  ;;  %v18750_v55 = vld [vmem:[#allocation8 + $0x5b4] ss:$28 sps:$4 sm:$0xff]  }
 0x51b   :  { %9940 = vmatprep.subr.bf16.mxu0 %v18633_v48  ;;  %13181 = vmatprep.subr.bf16.mxu1 %v18636_v3  ;;  %v18685_v48 = vld [vmem:[#allocation5 + $0x1890] ss:$28 sps:$4 sm:$0xff]   ;;  %v20048_v3 = vpack.c.bf16 %v10652_v41, %v10652_v41  ;;  %v18753_v41 = vld [vmem:[#allocation5 + $0x1afc] ss:$28 sps:$4 sm:$0xff]  }
 0x51e   :  { %9941 = vmatpush1.bf16.msra.mxu0 %v18631_v4  ;;  %13182 = vmatpush1.bf16.msra.mxu1 %v18634_v32  ;;  %v18693_v4 = vld [vmem:[#allocation5 + $0x18cc] ss:$28 sps:$4 sm:$0xff]   ;;  %v20050_v32 = vpack.c.bf16 %v10655_v15, %v10655_v15 }
 0x51f   :  { %9942 = vmatprep.subr.bf16.mxu0 %v18639_v7  ;;  %13183 = vmatprep.subr.bf16.mxu1 %v18642_v14  ;;  %v18691_v7 = vld [vmem:[#allocation5 + $0x18c8] ss:$28 sps:$4 sm:$0xff]   ;;  %v18694_v14 = vld [vmem:[#allocation8 + $0x3b8] ss:$28 sps:$4 sm:$0xff]   ;;  %v18754_v15 = vld [vmem:[#allocation8 + $0x5e8] ss:$28 sps:$4 sm:$0xff]  }
 0x522   :  { %9943 = vmatpush1.bf16.msra.mxu0 %v18637_v42  ;;  %13184 = vmatpush1.bf16.msra.mxu1 %v18640_v16  ;;  %v18699_v42 = vld [vmem:[#allocation5 + $0x1904] ss:$28 sps:$4 sm:$0xff]   ;;  %v18702_v16 = vld [vmem:[#allocation8 + $0x3f4] ss:$28 sps:$4 sm:$0xff]  }
 0x523   :  { %9944 = vmatprep.subr.bf16.mxu0 %v18645_v17  ;;  %13185 = vmatprep.subr.bf16.mxu1 %v18648_v20  ;;  %v18697_v17 = vld [vmem:[#allocation5 + $0x1900] ss:$28 sps:$4 sm:$0xff]   ;;  %v18700_v20 = vld [vmem:[#allocation8 + $0x3f0] ss:$28 sps:$4 sm:$0xff]  }
 0x526   :  { %9945 = vmatpush1.bf16.msra.mxu0 %v18643_v56  ;;  %13186 = vmatpush1.bf16.msra.mxu1 %v18646_v19  ;;  %v18705_v56 = vld [vmem:[#allocation5 + $0x193c] ss:$28 sps:$4 sm:$0xff]  }
 0x527   :  { %9946 = vmatprep.subr.bf16.mxu0 %v18651_v22  ;;  %13187 = vmatprep.subr.bf16.mxu1 %v18654_v47  ;;  %v18703_v19 = vld [vmem:[#allocation5 + $0x1938] ss:$28 sps:$4 sm:$0xff]   ;;  %v18706_v22 = vld [vmem:[#allocation8 + $0x428] ss:$28 sps:$4 sm:$0xff]  }
 0x528   :  { %v18711_v47 = vld [vmem:[#allocation5 + $0x1974] ss:$28 sps:$4 sm:$0xff]  }
 0x52a   :  { %9947 = vmatpush1.bf16.msra.mxu0 %v18649_v23  ;;  %13188 = vmatpush1.bf16.msra.mxu1 %v18652_v25  ;;  %v18714_v23 = vld [vmem:[#allocation8 + $0x464] ss:$28 sps:$4 sm:$0xff]  }
 0x52b   :  { %9948 = vmatprep.subr.bf16.mxu0 %v18657_v5  ;;  %13189 = vmatprep.subr.bf16.mxu1 %v18660_v24  ;;  %v18709_v25 = vld [vmem:[#allocation5 + $0x1970] ss:$28 sps:$4 sm:$0xff]   ;;  %v18720_v24 = vld [vmem:[#allocation8 + $0x49c] ss:$28 sps:$4 sm:$0xff]  }
 0x52c   :  { %v18717_v5 = vld [vmem:[#allocation5 + $0x19ac] ss:$28 sps:$4 sm:$0xff]  }
 0x52e   :  { %9949 = vmatpush1.bf16.msra.mxu0 %v18655_v26  ;;  %13190 = vmatpush1.bf16.msra.mxu1 %v18658_v13  ;;  %v18715_v26 = vld [vmem:[#allocation5 + $0x19a8] ss:$28 sps:$4 sm:$0xff]   ;;  %v18718_v13 = vld [vmem:[#allocation8 + $0x498] ss:$28 sps:$4 sm:$0xff]  }
 0x52f   :  { %9950 = vmatprep.subr.bf16.mxu0 %v18663_v27  ;;  %13191 = vmatprep.subr.bf16.mxu1 %v18666_v33  ;;  %v18723_v27 = vld [vmem:[#allocation5 + $0x19e4] ss:$28 sps:$4 sm:$0xff]   ;;  %v18726_v33 = vld [vmem:[#allocation8 + $0x4d4] ss:$28 sps:$4 sm:$0xff]  }
 0x532   :  { %9951 = vmatpush1.bf16.msra.mxu0 %v18661_v34  ;;  %13192 = vmatpush1.bf16.msra.mxu1 %v18664_v9  ;;  %v18721_v34 = vld [vmem:[#allocation5 + $0x19e0] ss:$28 sps:$4 sm:$0xff]   ;;  %v18724_v9 = vld [vmem:[#allocation8 + $0x4d0] ss:$28 sps:$4 sm:$0xff]  }
 0x533   :  { %9952 = vmatprep.subr.bf16.mxu0 %v18669_v45  ;;  %13193 = vmatprep.subr.bf16.mxu1 %v18672_v46  ;;  %v18729_v45 = vld [vmem:[#allocation5 + $0x1a1c] ss:$28 sps:$4 sm:$0xff]   ;;  %v18732_v46 = vld [vmem:[#allocation8 + $0x50c] ss:$28 sps:$4 sm:$0xff]  }
 0x536   :  { %9953 = vmatpush1.bf16.msra.mxu0 %v18667_v49  ;;  %13194 = vmatpush1.bf16.msra.mxu1 %v18670_v63  ;;  %v18727_v49 = vld [vmem:[#allocation5 + $0x1a18] ss:$28 sps:$4 sm:$0xff]   ;;  %v18730_v63 = vld [vmem:[#allocation8 + $0x508] ss:$28 sps:$4 sm:$0xff]  }
 0x537   :  { %9954 = vmatprep.subr.bf16.mxu0 %v18675_v57  ;;  %13195 = vmatprep.subr.bf16.mxu1 %v18678_v51  ;;  %v18738_v57 = vld [vmem:[#allocation8 + $0x544] ss:$28 sps:$4 sm:$0xff]  }
 0x538   :  { %v18733_v51 = vld [vmem:[#allocation5 + $0x1a50] ss:$28 sps:$4 sm:$0xff]  }
 0x53a   :  { %9955 = vmatpush1.bf16.msra.mxu0 %v18673_v53  ;;  %13196 = vmatpush1.bf16.msra.mxu1 %v18676_v10  ;;  %v18741_v53 = vld [vmem:[#allocation5 + $0x1a8c] ss:$28 sps:$4 sm:$0xff]   ;;  %v18744_v10 = vld [vmem:[#allocation8 + $0x57c] ss:$28 sps:$4 sm:$0xff]  }
 0x53b   :  { %9956 = vmatprep.subr.bf16.mxu0 %v18681_v62  ;;  %13197 = vmatprep.subr.bf16.mxu1 %v18684_v54  ;;  %v18742_v62 = vld [vmem:[#allocation8 + $0x578] ss:$28 sps:$4 sm:$0xff]  }
 0x53c   :  { %v18747_v54 = vld [vmem:[#allocation5 + $0x1ac4] ss:$28 sps:$4 sm:$0xff]  }
 0x53e   :  { %9957 = vmatpush1.bf16.msra.mxu0 %v18679_v58  ;;  %13198 = vmatpush1.bf16.msra.mxu1 %v18682_v59  ;;  %v18745_v58 = vld [vmem:[#allocation5 + $0x1ac0] ss:$28 sps:$4 sm:$0xff]   ;;  %v18748_v59 = vld [vmem:[#allocation8 + $0x5b0] ss:$28 sps:$4 sm:$0xff]  }
 0x53f   :  { %9967 = vmatprep.subr.bf16.mxu0 %v18687_v35  ;;  %13208 = vmatprep.subr.bf16.mxu1 %v18690_v1  ;;  %v18756_v35 = vld [vmem:[#allocation8 + $0x5ec] ss:$28 sps:$4 sm:$0xff]  }
 0x540   :  { %v18751_v1 = vld [vmem:[#allocation5 + $0x1af8] ss:$28 sps:$4 sm:$0xff]  }
 0x541   :  { %13200 = vmatmul.mubr.bf16.vlgmr.msra.gmra.mrb[52].mxu1 %v20048_v3  ;;  %9959 = vmatmul.mubr.bf16.vlgmr.msra.gmra.mrb[4].mxu0 %v19909_v11  ;;  %v18708_v11 = vld [vmem:[#allocation8 + $0x42c] ss:$28 sps:$4 sm:$0xff]  }
 0x542   :  { %9968 = vmatpush1.bf16.msra.mxu0 %v18685_v48  ;;  %13209 = vmatpush1.bf16.msra.mxu1 %v18688_v37  ;;  %v18759_v48 = vld [vmem:[#allocation5 + $0x1b34] ss:$28 sps:$4 sm:$0xff]   ;;  %v18762_v37 = vld [vmem:[#allocation8 + $0x624] ss:$28 sps:$4 sm:$0xff]  }
 0x543   :  { %13240 = vmatprep.mubr.bf16.mxu1 %v20050_v32  ;;  %9969 = vmatprep.subr.bf16.mxu0 %v18693_v4  ;;  %v18757_v4 = vld [vmem:[#allocation5 + $0x1b30] ss:$28 sps:$4 sm:$0xff]  }
 0x544   :  { %13210 = vmatprep.subr.bf16.mxu1 %v18696_v39  ;;  %9999 = vmatprep.mubr.bf16.mxu0 %v19913_v18  ;;  %v18712_v18 = vld [vmem:[#allocation8 + $0x460] ss:$28 sps:$4 sm:$0xff]  }
 0x545   :  { %v18760_v39 = vld [vmem:[#allocation8 + $0x620] ss:$28 sps:$4 sm:$0xff]  }
 0x546   :  { %9970 = vmatpush1.bf16.msra.mxu0 %v18691_v7  ;;  %13211 = vmatpush1.bf16.msra.mxu1 %v18694_v14  ;;  %v1675_v7 = vsub.s32 2, %v20023_v21  ;;  %v18765_v14 = vld [vmem:[#allocation5 + $0x1b6c] ss:$28 sps:$4 sm:$0xff]  }
 0x547   :  { %9971 = vmatprep.subr.bf16.mxu0 %v18699_v42  ;;  %13212 = vmatprep.subr.bf16.mxu1 %v18702_v16  ;;  %v18768_v42 = vld [vmem:[#allocation8 + $0x65c] ss:$28 sps:$4 sm:$0xff]  }
 0x548   :  { %v18763_v16 = vld [vmem:[#allocation5 + $0x1b68] ss:$28 sps:$4 sm:$0xff]  }
 0x54a   :  { %9972 = vmatpush1.bf16.msra.mxu0 %v18697_v17  ;;  %13213 = vmatpush1.bf16.msra.mxu1 %v18700_v20  ;;  %v18766_v17 = vld [vmem:[#allocation8 + $0x658] ss:$28 sps:$4 sm:$0xff]   ;;  %v1676_v20 = vrot.slane %v20026_v12, %v1675_v7 }
 0x54b   :  { %9973 = vmatprep.subr.bf16.mxu0 %v18705_v56  ;;  %13214 = vmatprep.subr.bf16.mxu1 %v18708_v11  ;;  %v18771_v56 = vld [vmem:[#allocation5 + $0x1ba4] ss:$28 sps:$4 sm:$0xff]   ;;  %v18774_v11 = vld [vmem:[#allocation8 + $0x694] ss:$28 sps:$4 sm:$0xff]  }
 0x54e   :  { %9974 = vmatpush1.bf16.msra.mxu0 %v18703_v19  ;;  %13215 = vmatpush1.bf16.msra.mxu1 %v18706_v22  ;;  %v18769_v19 = vld [vmem:[#allocation5 + $0x1ba0] ss:$28 sps:$4 sm:$0xff]   ;;  %v18772_v22 = vld [vmem:[#allocation8 + $0x690] ss:$28 sps:$4 sm:$0xff]  }
 0x54f   :  { %9975 = vmatprep.subr.bf16.mxu0 %v18711_v47  ;;  %13216 = vmatprep.subr.bf16.mxu1 %v18714_v23  ;;  %v16740_v47 = vadd.f32 %v20003_v30, %v1676_v20  ;;  %v18777_v23 = vld [vmem:[#allocation5 + $0x1bdc] ss:$28 sps:$4 sm:$0xff]  }
 0x552   :  { %9976 = vmatpush1.bf16.msra.mxu0 %v18709_v25  ;;  %13217 = vmatpush1.bf16.msra.mxu1 %v18712_v18  ;;  %v18780_v25 = vld [vmem:[#allocation8 + $0x6cc] ss:$28 sps:$4 sm:$0xff]   ;;  %v16300_v18 = vpop.f32.mrb[4].mxu1 }
 0x553   :  { %9977 = vmatprep.subr.bf16.mxu0 %v18717_v5  ;;  %13218 = vmatprep.subr.bf16.mxu1 %v18720_v24  ;;  %v18775_v5 = vld [vmem:[#allocation5 + $0x1bd8] ss:$28 sps:$4 sm:$0xff]   ;;  %v18778_v24 = vld [vmem:[#allocation8 + $0x6c8] ss:$28 sps:$4 sm:$0xff]  }
 0x556   :  { %9978 = vmatpush1.bf16.msra.mxu0 %v18715_v26  ;;  %13219 = vmatpush1.bf16.msra.mxu1 %v18718_v13  ;;  %v1691_v26 = vsub.s32 6, %v20023_v21  ;;  %v16301_v13 = vpop.f32.mrb[5].mxu1 }
 0x557   :  { %9979 = vmatprep.subr.bf16.mxu0 %v18723_v27  ;;  %13220 = vmatprep.subr.bf16.mxu1 %v18726_v33  ;;  %v10654_v27 = vmax.f32 %v16740_v47, 0.0  ;;  %v18783_v33 = vld [vmem:[#allocation5 + $0x1c14] ss:$28 sps:$4 sm:$0xff]  }
 0x558   :  { %v1692_v30 = vrot.slane %v20026_v12, %v1691_v26  ;;  %v18793_v47 = vld [vmem:[#allocation5 + $0x1cf0] ss:$28 sps:$4 sm:$0xff]  }
 0x55a   :  { %9980 = vmatpush1.bf16.msra.mxu0 %v18721_v34  ;;  %13221 = vmatpush1.bf16.msra.mxu1 %v18724_v9  ;;  %v16302_v34 = vadd.f32 %v16301_v13, %v16300_v18  ;;  %v16303_v9 = vpop.f32.mrb[6].mxu1 }
 0x55b   :  { %9981 = vmatprep.subr.bf16.mxu0 %v18729_v45  ;;  %13222 = vmatprep.subr.bf16.mxu1 %v18732_v46  ;;  %v16304_v45 = vpop.f32.mrb[7].mxu1  ;;  %v18801_v9 = vld [vmem:[#allocation5 + $0x1d64] ss:$28 sps:$4 sm:$0xff]  }
 0x55c   :  { %v16322_v46 = vpop.f32.mrb[8].mxu1 }
 0x55e   :  { %9982 = vmatpush1.bf16.msra.mxu0 %v18727_v49  ;;  %13223 = vmatpush1.bf16.msra.mxu1 %v18730_v63  ;;  %v18781_v49 = vld [vmem:[#allocation5 + $0x1c10] ss:$28 sps:$4 sm:$0xff]   ;;  %v10207_v63 = vadd.f32 %v16302_v34, %v1692_v30 }
 0x55f   :  { %9983 = vmatprep.subr.bf16.mxu0 %v18735_v50  ;;  %13224 = vmatprep.subr.bf16.mxu1 %v18738_v57  ;;  %v16323_v50 = vpop.f32.mrb[9].mxu1  ;;  %v20065_v57 = vpack.c.bf16 %v10654_v27, %v10654_v27 }
 0x562   :  { %9984 = vmatpush1.bf16.msra.mxu0 %v18733_v51  ;;  %13225 = vmatpush1.bf16.msra.mxu1 %v18736_v52  ;;  %v18786_v51 = vld [vmem:[#allocation5 + $0x1c4c] ss:$28 sps:$4 sm:$0xff]   ;;  %v16324_v52 = vadd.f32 %v16323_v50, %v16322_v46  ;;  %v18799_v50 = vld [vmem:[#allocation5 + $0x1d60] ss:$28 sps:$4 sm:$0xff]  }
 0x563   :  { %9985 = vmatprep.subr.bf16.mxu0 %v18741_v53  ;;  %13226 = vmatprep.subr.bf16.mxu1 %v18744_v10  ;;  %v16325_v53 = vpop.f32.mrb[10].mxu1 }
 0x564   :  { %v16326_v10 = vpop.f32.mrb[11].mxu1 }
 0x565   :  { %v16344_v12 = vpop.f32.mrb[12].mxu1 }
 0x566   :  { %9986 = vmatpush1.bf16.msra.mxu0 %v18739_v29  ;;  %13227 = vmatpush1.bf16.msra.mxu1 %v18742_v62  ;;  %v10247_v29 = vadd.f32 %v16324_v52, %v10207_v63  ;;  %v18784_v62 = vld [vmem:[#allocation5 + $0x1c48] ss:$28 sps:$4 sm:$0xff]   ;;  %v18804_v52 = vld [vmem:[#allocation5 + $0x1d9c] ss:$28 sps:$4 sm:$0xff]  }
 0x567   :  { %9987 = vmatprep.subr.bf16.mxu0 %v18747_v54  ;;  %13228 = vmatprep.subr.bf16.mxu1 %v18750_v55  ;;  %v16345_v54 = vpop.f32.mrb[13].mxu1  ;;  %v18789_v55 = vld [vmem:[#allocation5 + $0x1c84] ss:$28 sps:$4 sm:$0xff]  }
 0x56a   :  { %9988 = vmatpush1.bf16.msra.mxu0 %v18745_v58  ;;  %13229 = vmatpush1.bf16.msra.mxu1 %v18748_v59  ;;  %v16346_v58 = vadd.f32 %v16345_v54, %v16344_v12  ;;  %v16347_v59 = vpop.f32.mrb[14].mxu1  ;;  %v18802_v54 = vld [vmem:[#allocation5 + $0x1d98] ss:$28 sps:$4 sm:$0xff]  }
 0x56b   :  { %9989 = vmatprep.subr.bf16.mxu0 %v18753_v41  ;;  %13230 = vmatprep.subr.bf16.mxu1 %v18756_v35  ;;  %v16348_v41 = vpop.f32.mrb[15].mxu1 }
 0x56c   :  { %v10287_v35 = vadd.f32 %v16346_v58, %v10247_v29  ;;  %v18807_v58 = vld [vmem:[#allocation5 + $0x1dd4] ss:$28 sps:$4 sm:$0xff]  }
 0x56e   :  { %9990 = vmatpush1.bf16.msra.mxu0 %v18751_v1  ;;  %13231 = vmatpush1.bf16.msra.mxu1 %v18754_v15  ;;  %v16366_v1 = vpop.f32.mrb[16].mxu1  ;;  %v18787_v15 = vld [vmem:[#allocation5 + $0x1c80] ss:$28 sps:$4 sm:$0xff]  }
 0x56f   :  { %9991 = vmatprep.subr.bf16.mxu0 %v18759_v48  ;;  %13232 = vmatprep.subr.bf16.mxu1 %v18762_v37  ;;  %v16367_v48 = vpop.f32.mrb[17].mxu1  ;;  %v18792_v37 = vld [vmem:[#allocation5 + $0x1cbc] ss:$28 sps:$4 sm:$0xff]  }
 0x572   :  { %9992 = vmatpush1.bf16.msra.mxu0 %v18757_v4  ;;  %13233 = vmatpush1.bf16.msra.mxu1 %v18760_v39  ;;  %v16369_v4 = vpop.f32.mrb[18].mxu1 }
 0x573   :  { %9993 = vmatprep.subr.bf16.mxu0 %v18765_v14  ;;  %13234 = vmatprep.subr.bf16.mxu1 %v18768_v42  ;;  %v16370_v39 = vpop.f32.mrb[19].mxu1 }
 0x574   :  { %v16388_v42 = vpop.f32.mrb[20].mxu1 }
 0x576   :  { %9994 = vmatpush1.bf16.msra.mxu0 %v18763_v16  ;;  %13235 = vmatpush1.bf16.msra.mxu1 %v18766_v17  ;;  %v16389_v16 = vpop.f32.mrb[21].mxu1  ;;  %v18795_v17 = vld [vmem:[#allocation5 + $0x1cf4] ss:$28 sps:$4 sm:$0xff]  }
 0x577   :  { %9995 = vmatprep.subr.bf16.mxu0 %v18771_v56  ;;  %13236 = vmatprep.subr.bf16.mxu1 %v18774_v11  ;;  %v16390_v20 = vadd.f32 %v16389_v16, %v16388_v42  ;;  %v16391_v56 = vpop.f32.mrb[22].mxu1  ;;  %v18813_v16 = vld [vmem:[#allocation5 + $0x1e44] ss:$28 sps:$4 sm:$0xff]  }
 0x578   :  { %v16392_v11 = vpop.f32.mrb[23].mxu1  ;;  %v18814_v56 = vld [vmem:[#allocation5 + $0x1e78] ss:$28 sps:$4 sm:$0xff]  }
 0x579   :  { %v18819_v11 = vld [vmem:[#allocation5 + $0x1eb4] ss:$28 sps:$4 sm:$0xff]  }
 0x57a   :  { %9996 = vmatpush1.bf16.msra.mxu0 %v18769_v19  ;;  %13237 = vmatpush1.bf16.msra.mxu1 %v18772_v22  ;;  %v16410_v22 = vpop.f32.mrb[24].mxu1 }
 0x57b   :  { %9997 = vmatprep.subr.bf16.mxu0 %v18777_v23  ;;  %13238 = vmatprep.subr.bf16.mxu1 %v18780_v25  ;;  %v16411_v23 = vpop.f32.mrb[25].mxu1  ;;  %v18798_v25 = vld [vmem:[#allocation5 + $0x1d2c] ss:$28 sps:$4 sm:$0xff]  }
 0x57c   :  { %v16412_v18 = vadd.f32 %v16411_v23, %v16410_v22  ;;  %v18822_v22 = vld [vmem:[#allocation5 + $0x1eec] ss:$28 sps:$4 sm:$0xff]   ;;  %v18825_v23 = vld [vmem:[#allocation5 + $0x1f24] ss:$28 sps:$4 sm:$0xff]  }
 0x57e   :  { %9998 = vmatpush1.bf16.msra.mxu0 %v18775_v5  ;;  %13239 = vmatpush1.bf16.msra.mxu1 %v18778_v24  ;;  %v16413_v5 = vpop.f32.mrb[26].mxu1 }
 0x57f   :  { %10008 = vmatprep.subr.bf16.mxu0 %v18783_v33  ;;  %v16414_v24 = vpop.f32.mrb[27].mxu1  ;;  %v18796_v33 = vld [vmem:[#allocation5 + $0x1d28] ss:$28 sps:$4 sm:$0xff]   ;;  %v18823_v5 = vld [vmem:[#allocation5 + $0x1f20] ss:$28 sps:$4 sm:$0xff]  }
 0x580   :  { %v16432_v27 = vpop.f32.mrb[28].mxu1 }
 0x581   :  { %13241 = vmatmul.mubr.bf16.vlgmr.msra.gmra.mrb[52].mxu1 %v20065_v57  ;;  %10000 = vmatmul.mubr.bf16.vlgmr.msra.gmra.mrb[4].mxu0 %v19923_v36  ;;  %v16368_v36 = vadd.f32 %v16367_v48, %v16366_v1  ;;  %v16433_v34 = vpop.f32.mrb[29].mxu1  ;;  %v18805_v48 = vld [vmem:[#allocation5 + $0x1dd0] ss:$28 sps:$4 sm:$0xff]  }
 0x582   :  { %10009 = vmatpush1.bf16.msra.mxu0 %v18781_v49  ;;  %10040 = vmatprep.mubr.bf16.mxu0 %v19927_v43  ;;  %v18790_v43 = vld [vmem:[#allocation5 + $0x1cb8] ss:$28 sps:$4 sm:$0xff]   ;;  %v16434_v30 = vadd.f32 %v16433_v34, %v16432_v27  ;;  %v16435_v45 = vpop.f32.mrb[30].mxu1 }
 0x583   :  { %10010 = vmatprep.subr.bf16.mxu0 %v18786_v51  ;;  %v10327_v14 = vadd.f32 %v16368_v36, %v10287_v35  ;;  %v16436_v46 = vpop.f32.mrb[31].mxu1  ;;  %v18810_v36 = vld [vmem:[#allocation5 + $0x1e0c] ss:$28 sps:$4 sm:$0xff]   ;;  %v18828_v27 = vld [vmem:[#allocation5 + $0x1f5c] ss:$28 sps:$4 sm:$0xff]  }
 0x584   :  { %v16454_v63 = vpop.f32.mrb[32].mxu1  ;;  %v18829_v45 = vld [vmem:[#allocation5 + $0x1f90] ss:$28 sps:$4 sm:$0xff]  }
 0x585   :  { %v10367_v19 = vadd.f32 %v16390_v20, %v10327_v14  ;;  %v16455_v51 = vpop.f32.mrb[33].mxu1  ;;  %v18816_v20 = vld [vmem:[#allocation5 + $0x1e7c] ss:$28 sps:$4 sm:$0xff]   ;;  %v18834_v46 = vld [vmem:[#allocation5 + $0x1fcc] ss:$28 sps:$4 sm:$0xff]  }
 0x586   :  { %10011 = vmatpush1.bf16.msra.mxu0 %v18784_v62  ;;  %v16456_v53 = vadd.f32 %v16455_v51, %v16454_v63  ;;  %v16457_v10 = vpop.f32.mrb[34].mxu1  ;;  %v18837_v63 = vld [vmem:[#allocation5 + $0x2004] ss:$28 sps:$4 sm:$0xff]   ;;  %v18840_v51 = vld [vmem:[#allocation5 + $0x203c] ss:$28 sps:$4 sm:$0xff]  }
 0x587   :  { %10012 = vmatprep.subr.bf16.mxu0 %v18789_v55  ;;  %v10407_v13 = vadd.f32 %v16412_v18, %v10367_v19  ;;  %v16458_v29 = vpop.f32.mrb[35].mxu1  ;;  %v18817_v19 = vld [vmem:[#allocation5 + $0x1eb0] ss:$28 sps:$4 sm:$0xff]  }
 0x588   :  { %v16476_v62 = vpop.f32.mrb[36].mxu1  ;;  %v18841_v10 = vld [vmem:[#allocation5 + $0x2070] ss:$28 sps:$4 sm:$0xff]  }
 0x589   :  { %v10447_v49 = vadd.f32 %v16434_v30, %v10407_v13  ;;  %v16477_v55 = vpop.f32.mrb[37].mxu1  ;;  %v18831_v30 = vld [vmem:[#allocation5 + $0x1f94] ss:$28 sps:$4 sm:$0xff]   ;;  %v18846_v29 = vld [vmem:[#allocation5 + $0x20ac] ss:$28 sps:$4 sm:$0xff]  }
 0x58a   :  { %10013 = vmatpush1.bf16.msra.mxu0 %v18787_v15  ;;  %v16478_v59 = vadd.f32 %v16477_v55, %v16476_v62  ;;  %v16479_v41 = vpop.f32.mrb[38].mxu1 }
 0x58b   :  { %10014 = vmatprep.subr.bf16.mxu0 %v18792_v37  ;;  %v10487_v12 = vadd.f32 %v16456_v53, %v10447_v49  ;;  %v16480_v35 = vpop.f32.mrb[39].mxu1  ;;  %v18832_v49 = vld [vmem:[#allocation5 + $0x1fc8] ss:$28 sps:$4 sm:$0xff]   ;;  %v18843_v53 = vld [vmem:[#allocation5 + $0x2074] ss:$28 sps:$4 sm:$0xff]  }
 0x58d   :  { %v10527_v1 = vadd.f32 %v16478_v59, %v10487_v12  ;;  %v18849_v12 = vld [vmem:[#allocation5 + $0x20e4] ss:$28 sps:$4 sm:$0xff]   ;;  %v18852_v59 = vld [vmem:[#allocation5 + $0x211c] ss:$28 sps:$4 sm:$0xff]  }
 0x58e   :  { %10015 = vmatpush1.bf16.msra.mxu0 %v18790_v43  ;;  %v18808_v43 = vld [vmem:[#allocation5 + $0x1e08] ss:$28 sps:$4 sm:$0xff]  }
 0x58f   :  { %10016 = vmatprep.subr.bf16.mxu0 %v18795_v17  ;;  %v18811_v17 = vld [vmem:[#allocation5 + $0x1e40] ss:$28 sps:$4 sm:$0xff]  }
 0x592   :  { %10017 = vmatpush1.bf16.msra.mxu0 %v18793_v47  ;;  %v18820_v47 = vld [vmem:[#allocation5 + $0x1ee8] ss:$28 sps:$4 sm:$0xff]  }
 0x593   :  { %10018 = vmatprep.subr.bf16.mxu0 %v18798_v25 }
 0x594   :  { %v16498_v15 = vpop.f32.mrb[40].mxu1 }
 0x595   :  { %v16499_v37 = vpop.f32.mrb[41].mxu1 }
 0x596   :  { %10019 = vmatpush1.bf16.msra.mxu0 %v18796_v33  ;;  %v16500_v4 = vadd.f32 %v16499_v37, %v16498_v15  ;;  %v16501_v39 = vpop.f32.mrb[42].mxu1  ;;  %v18855_v15 = vld [vmem:[#allocation5 + $0x2154] ss:$28 sps:$4 sm:$0xff]   ;;  %v18858_v37 = vld [vmem:[#allocation5 + $0x218c] ss:$28 sps:$4 sm:$0xff]  }
 0x597   :  { %10020 = vmatprep.subr.bf16.mxu0 %v18801_v9  ;;  %v16502_v14 = vpop.f32.mrb[43].mxu1  ;;  %v18826_v9 = vld [vmem:[#allocation5 + $0x1f58] ss:$28 sps:$4 sm:$0xff]   ;;  %v18859_v39 = vld [vmem:[#allocation5 + $0x21c0] ss:$28 sps:$4 sm:$0xff]  }
 0x598   :  { %v10567_v42 = vadd.f32 %v16500_v4, %v10527_v1  ;;  %v18850_v1 = vld [vmem:[#allocation5 + $0x2118] ss:$28 sps:$4 sm:$0xff]   ;;  %v18861_v4 = vld [vmem:[#allocation5 + $0x21c4] ss:$28 sps:$4 sm:$0xff]  }
 0x599   :  { %v18864_v14 = vld [vmem:[#allocation5 + $0x21fc] ss:$28 sps:$4 sm:$0xff]  }
 0x59a   :  { %10021 = vmatpush1.bf16.msra.mxu0 %v18799_v50  ;;  %v18835_v50 = vld [vmem:[#allocation5 + $0x2000] ss:$28 sps:$4 sm:$0xff]  }
 0x59b   :  { %10022 = vmatprep.subr.bf16.mxu0 %v18804_v52  ;;  %v18838_v52 = vld [vmem:[#allocation5 + $0x2038] ss:$28 sps:$4 sm:$0xff]  }
 0x59e   :  { %10023 = vmatpush1.bf16.msra.mxu0 %v18802_v54  ;;  %v18847_v54 = vld [vmem:[#allocation5 + $0x20e0] ss:$28 sps:$4 sm:$0xff]  }
 0x59f   :  { %10024 = vmatprep.subr.bf16.mxu0 %v18807_v58 }
 0x5a2   :  { %10025 = vmatpush1.bf16.msra.mxu0 %v18805_v48  ;;  %v18853_v48 = vld [vmem:[#allocation5 + $0x2150] ss:$28 sps:$4 sm:$0xff]  }
 0x5a3   :  { %10026 = vmatprep.subr.bf16.mxu0 %v18810_v36  ;;  %v18856_v36 = vld [vmem:[#allocation5 + $0x2188] ss:$28 sps:$4 sm:$0xff]  }
 0x5a6   :  { %10027 = vmatpush1.bf16.msra.mxu0 %v18808_v43  ;;  %v18867_v43 = vld [vmem:[#allocation5 + $0x2234] ss:$28 sps:$4 sm:$0xff]  }
 0x5a7   :  { %10028 = vmatprep.subr.bf16.mxu0 %v18813_v16  ;;  %v18865_v16 = vld [vmem:[#allocation5 + $0x2230] ss:$28 sps:$4 sm:$0xff]  }
 0x5aa   :  { %10029 = vmatpush1.bf16.msra.mxu0 %v18811_v17  ;;  %v18870_v17 = vld [vmem:[#allocation5 + $0x226c] ss:$28 sps:$4 sm:$0xff]  }
 0x5ab   :  { %10030 = vmatprep.subr.bf16.mxu0 %v18816_v20  ;;  %v18868_v20 = vld [vmem:[#allocation5 + $0x2268] ss:$28 sps:$4 sm:$0xff]  }
 0x5ae   :  { %10031 = vmatpush1.bf16.msra.mxu0 %v18814_v56  ;;  %v18873_v56 = vld [vmem:[#allocation5 + $0x22a4] ss:$28 sps:$4 sm:$0xff]  }
 0x5af   :  { %10032 = vmatprep.subr.bf16.mxu0 %v18819_v11  ;;  %v18871_v11 = vld [vmem:[#allocation5 + $0x22a0] ss:$28 sps:$4 sm:$0xff]  }
 0x5b2   :  { %10033 = vmatpush1.bf16.msra.mxu0 %v18817_v19  ;;  %v18876_v19 = vld [vmem:[#allocation5 + $0x22dc] ss:$28 sps:$4 sm:$0xff]  }
 0x5b3   :  { %10034 = vmatprep.subr.bf16.mxu0 %v18822_v22  ;;  %v18874_v22 = vld [vmem:[#allocation5 + $0x22d8] ss:$28 sps:$4 sm:$0xff]  }
 0x5b4   :  { %v16520_v25 = vpop.f32.mrb[44].mxu1 }
 0x5b5   :  { %v16521_v18 = vpop.f32.mrb[45].mxu1 }
 0x5b6   :  { %10035 = vmatpush1.bf16.msra.mxu0 %v18820_v47  ;;  %v16522_v24 = vadd.f32 %v16521_v18, %v16520_v25  ;;  %v16523_v13 = vpop.f32.mrb[46].mxu1  ;;  %v18879_v47 = vld [vmem:[#allocation5 + $0x2314] ss:$28 sps:$4 sm:$0xff]   ;;  %v18882_v25 = vld [vmem:[#allocation5 + $0x234c] ss:$28 sps:$4 sm:$0xff]  }
 0x5b7   :  { %10036 = vmatprep.subr.bf16.mxu0 %v18825_v23  ;;  %v16524_v33 = vpop.f32.mrb[47].mxu1  ;;  %v18877_v23 = vld [vmem:[#allocation5 + $0x2310] ss:$28 sps:$4 sm:$0xff]   ;;  %v18880_v18 = vld [vmem:[#allocation5 + $0x2348] ss:$28 sps:$4 sm:$0xff]  }
 0x5b8   :  { %v10607_v34 = vadd.f32 %v16522_v24, %v10567_v42  ;;  %v18862_v42 = vld [vmem:[#allocation5 + $0x21f8] ss:$28 sps:$4 sm:$0xff]   ;;  %v18883_v24 = vld [vmem:[#allocation5 + $0x2380] ss:$28 sps:$4 sm:$0xff]  }
 0x5b9   :  { %v18888_v13 = vld [vmem:[#allocation5 + $0x23bc] ss:$28 sps:$4 sm:$0xff]   ;;  %v18891_v33 = vld [vmem:[#allocation5 + $0x23f4] ss:$28 sps:$4 sm:$0xff]  }
 0x5ba   :  { %10037 = vmatpush1.bf16.msra.mxu0 %v18823_v5  ;;  %v18885_v5 = vld [vmem:[#allocation5 + $0x2384] ss:$28 sps:$4 sm:$0xff]  }
 0x5bb   :  { %10038 = vmatprep.subr.bf16.mxu0 %v18828_v27  ;;  %v18886_v27 = vld [vmem:[#allocation5 + $0x23b8] ss:$28 sps:$4 sm:$0xff]  }
 0x5be   :  { %10039 = vmatpush1.bf16.msra.mxu0 %v18826_v9  ;;  %v18894_v9 = vld [vmem:[#allocation5 + $0x242c] ss:$28 sps:$4 sm:$0xff]  }
 0x5bf   :  { %10049 = vmatprep.subr.bf16.mxu0 %v18831_v30  ;;  %v18897_v30 = vld [vmem:[#allocation5 + $0x2464] ss:$28 sps:$4 sm:$0xff]  }
 0x5c1   :  { %10041 = vmatmul.mubr.bf16.vlgmr.msra.gmra.mrb[4].mxu0 %v19937_v61  ;;  %v18844_v61 = vld [vmem:[#allocation5 + $0x20a8] ss:$28 sps:$4 sm:$0xff]  }
 0x5c2   :  { %10050 = vmatpush1.bf16.msra.mxu0 %v18829_v45  ;;  %10081 = vmatprep.mubr.bf16.mxu0 %v19941_v2  ;;  %v18900_v45 = vld [vmem:[#allocation5 + $0x249c] ss:$28 sps:$4 sm:$0xff]  }
 0x5c3   :  { %10051 = vmatprep.subr.bf16.mxu0 %v18834_v46  ;;  %v18898_v46 = vld [vmem:[#allocation5 + $0x2498] ss:$28 sps:$4 sm:$0xff]  }
 0x5c6   :  { %10052 = vmatpush1.bf16.msra.mxu0 %v18832_v49  ;;  %v18903_v49 = vld [vmem:[#allocation5 + $0x24d4] ss:$28 sps:$4 sm:$0xff]  }
 0x5c7   :  { %10053 = vmatprep.subr.bf16.mxu0 %v18837_v63  ;;  %v18901_v63 = vld [vmem:[#allocation5 + $0x24d0] ss:$28 sps:$4 sm:$0xff]  }
 0x5ca   :  { %10054 = vmatpush1.bf16.msra.mxu0 %v18835_v50  ;;  %v18906_v50 = vld [vmem:[#allocation5 + $0x250c] ss:$28 sps:$4 sm:$0xff]  }
 0x5cb   :  { %10055 = vmatprep.subr.bf16.mxu0 %v18840_v51  ;;  %v18904_v51 = vld [vmem:[#allocation5 + $0x2508] ss:$28 sps:$4 sm:$0xff]  }
 0x5ce   :  { %10056 = vmatpush1.bf16.msra.mxu0 %v18838_v52  ;;  %v18909_v52 = vld [vmem:[#allocation5 + $0x2544] ss:$28 sps:$4 sm:$0xff]  }
 0x5cf   :  { %10057 = vmatprep.subr.bf16.mxu0 %v18843_v53  ;;  %v18907_v53 = vld [vmem:[#allocation5 + $0x2540] ss:$28 sps:$4 sm:$0xff]  }
 0x5d2   :  { %10058 = vmatpush1.bf16.msra.mxu0 %v18841_v10  ;;  %v18912_v10 = vld [vmem:[#allocation5 + $0x257c] ss:$28 sps:$4 sm:$0xff]  }
 0x5d3   :  { %10059 = vmatprep.subr.bf16.mxu0 %v18846_v29  ;;  %v18910_v29 = vld [vmem:[#allocation5 + $0x2578] ss:$28 sps:$4 sm:$0xff]  }
 0x5d4   :  { %v16542_v62 = vpop.f32.mrb[48].mxu1 }
 0x5d5   :  { %v16543_v2 = vpop.f32.mrb[49].mxu1 }
 0x5d6   :  { %10060 = vmatpush1.bf16.msra.mxu0 %v18844_v61  ;;  %v16544_v55 = vadd.f32 %v16543_v2, %v16542_v62  ;;  %v16545_v58 = vpop.f32.mrb[50].mxu1  ;;  %v18915_v61 = vld [vmem:[#allocation5 + $0x25b4] ss:$28 sps:$4 sm:$0xff]   ;;  %v18918_v62 = vld [vmem:[#allocation5 + $0x25ec] ss:$28 sps:$4 sm:$0xff]  }
 0x5d7   :  { %10061 = vmatprep.subr.bf16.mxu0 %v18849_v12  ;;  %v16546_v41 = vpop.f32.mrb[51].mxu1  ;;  %v18913_v12 = vld [vmem:[#allocation5 + $0x25b0] ss:$28 sps:$4 sm:$0xff]   ;;  %v18916_v2 = vld [vmem:[#allocation5 + $0x25e8] ss:$28 sps:$4 sm:$0xff]  }
 0x5d8   :  { %v20072_v35 = vadd.f32 %v16544_v55, %v10607_v34  ;;  %v18889_v34 = vld [vmem:[#allocation5 + $0x23f0] ss:$28 sps:$4 sm:$0xff]   ;;  %v18919_v55 = vld [vmem:[#allocation5 + $0x2620] ss:$28 sps:$4 sm:$0xff]  }
 0x5d9   :  { %v18924_v58 = vld [vmem:[#allocation5 + $0x265c] ss:$28 sps:$4 sm:$0xff]   ;;  %v18927_v41 = vld [vmem:[#allocation5 + $0x2694] ss:$28 sps:$4 sm:$0xff]  }
 0x5da   :  { %10062 = vmatpush1.bf16.msra.mxu0 %v18847_v54  ;;  %v18921_v54 = vld [vmem:[#allocation5 + $0x2624] ss:$28 sps:$4 sm:$0xff]  }
 0x5db   :  { %10063 = vmatprep.subr.bf16.mxu0 %v18852_v59  ;;  %v18922_v59 = vld [vmem:[#allocation5 + $0x2658] ss:$28 sps:$4 sm:$0xff]  }
 0x5de   :  { %10064 = vmatpush1.bf16.msra.mxu0 %v18850_v1  ;;  %v18925_v1 = vld [vmem:[#allocation5 + $0x2690] ss:$28 sps:$4 sm:$0xff]  }
 0x5df   :  { %10065 = vmatprep.subr.bf16.mxu0 %v18855_v15  ;;  %v18930_v15 = vld [vmem:[#allocation5 + $0x26cc] ss:$28 sps:$4 sm:$0xff]  }
 0x5e2   :  { %10066 = vmatpush1.bf16.msra.mxu0 %v18853_v48  ;;  %v18928_v48 = vld [vmem:[#allocation5 + $0x26c8] ss:$28 sps:$4 sm:$0xff]  }
 0x5e3   :  { %10067 = vmatprep.subr.bf16.mxu0 %v18858_v37  ;;  %v18933_v37 = vld [vmem:[#allocation5 + $0x2704] ss:$28 sps:$4 sm:$0xff]  }
 0x5e6   :  { %10068 = vmatpush1.bf16.msra.mxu0 %v18856_v36  ;;  %v18931_v36 = vld [vmem:[#allocation5 + $0x2700] ss:$28 sps:$4 sm:$0xff]  }
 0x5e7   :  { %10069 = vmatprep.subr.bf16.mxu0 %v18861_v4  ;;  %v18936_v4 = vld [vmem:[#allocation5 + $0x273c] ss:$28 sps:$4 sm:$0xff]  }
 0x5ea   :  { %10070 = vmatpush1.bf16.msra.mxu0 %v18859_v39  ;;  %v18934_v39 = vld [vmem:[#allocation5 + $0x2738] ss:$28 sps:$4 sm:$0xff]  }
 0x5eb   :  { %10071 = vmatprep.subr.bf16.mxu0 %v18864_v14  ;;  %v18939_v14 = vld [vmem:[#allocation5 + $0x2774] ss:$28 sps:$4 sm:$0xff]  }
 0x5ee   :  { %10072 = vmatpush1.bf16.msra.mxu0 %v18862_v42  ;;  %v18937_v42 = vld [vmem:[#allocation5 + $0x2770] ss:$28 sps:$4 sm:$0xff]  }
 0x5ef   :  { %10073 = vmatprep.subr.bf16.mxu0 %v18867_v43  ;;  %v18942_v43 = vld [vmem:[#allocation5 + $0x27ac] ss:$28 sps:$4 sm:$0xff]  }
 0x5f2   :  { %10074 = vmatpush1.bf16.msra.mxu0 %v18865_v16  ;;  %v18945_v16 = vld [vmem:[#allocation5 + $0x27e4] ss:$28 sps:$4 sm:$0xff]  }
 0x5f3   :  { %10075 = vmatprep.subr.bf16.mxu0 %v18870_v17  ;;  %v18948_v17 = vld [vmem:[#allocation5 + $0x281c] ss:$28 sps:$4 sm:$0xff]  }
 0x5f6   :  { %10076 = vmatpush1.bf16.msra.mxu0 %v18868_v20  ;;  %v18946_v20 = vld [vmem:[#allocation5 + $0x2818] ss:$28 sps:$4 sm:$0xff]  }
 0x5f7   :  { %10077 = vmatprep.subr.bf16.mxu0 %v18873_v56  ;;  %v18951_v56 = vld [vmem:[#allocation5 + $0x2854] ss:$28 sps:$4 sm:$0xff]  }
 0x5fa   :  { %10078 = vmatpush1.bf16.msra.mxu0 %v18871_v11  ;;  %v18949_v11 = vld [vmem:[#allocation5 + $0x2850] ss:$28 sps:$4 sm:$0xff]  }
 0x5fb   :  { %10079 = vmatprep.subr.bf16.mxu0 %v18876_v19  ;;  %v18954_v19 = vld [vmem:[#allocation5 + $0x288c] ss:$28 sps:$4 sm:$0xff]  }
 0x5fe   :  { %10080 = vmatpush1.bf16.msra.mxu0 %v18874_v22  ;;  %v18952_v22 = vld [vmem:[#allocation5 + $0x2888] ss:$28 sps:$4 sm:$0xff]  }
 0x5ff   :  { %10090 = vmatprep.subr.bf16.mxu0 %v18879_v47  ;;  %v18957_v47 = vld [vmem:[#allocation5 + $0x28c4] ss:$28 sps:$4 sm:$0xff]  }
 0x601   :  { %10082 = vmatmul.mubr.bf16.vlgmr.msra.gmra.mrb[4].mxu0 %v19949_v28  ;;  %v18892_v28 = vld [vmem:[#allocation5 + $0x2428] ss:$28 sps:$4 sm:$0xff]  }
 0x602   :  { %10091 = vmatpush1.bf16.msra.mxu0 %v18877_v23  ;;  %10122 = vmatprep.mubr.bf16.mxu0 %v19955_v38  ;;  %v18895_v38 = vld [vmem:[#allocation5 + $0x2460] ss:$28 sps:$4 sm:$0xff]  }
 0x603   :  { %10092 = vmatprep.subr.bf16.mxu0 %v18882_v25  ;;  %v18955_v23 = vld [vmem:[#allocation5 + $0x28c0] ss:$28 sps:$4 sm:$0xff]  }
 0x604   :  { %v18960_v25 = vld [vmem:[#allocation5 + $0x28fc] ss:$28 sps:$4 sm:$0xff]  }
 0x606   :  { %10093 = vmatpush1.bf16.msra.mxu0 %v18880_v18  ;;  %v18958_v18 = vld [vmem:[#allocation5 + $0x28f8] ss:$28 sps:$4 sm:$0xff]  }
 0x607   :  { %10094 = vmatprep.subr.bf16.mxu0 %v18885_v5  ;;  %v18963_v5 = vld [vmem:[#allocation5 + $0x2934] ss:$28 sps:$4 sm:$0xff]  }
 0x60a   :  { %10095 = vmatpush1.bf16.msra.mxu0 %v18883_v24  ;;  %v18961_v24 = vld [vmem:[#allocation5 + $0x2930] ss:$28 sps:$4 sm:$0xff]  }
 0x60b   :  { %10096 = vmatprep.subr.bf16.mxu0 %v18888_v13  ;;  %v18966_v13 = vld [vmem:[#allocation5 + $0x296c] ss:$28 sps:$4 sm:$0xff]  }
 0x60e   :  { %10097 = vmatpush1.bf16.msra.mxu0 %v18886_v27  ;;  %v18964_v27 = vld [vmem:[#allocation5 + $0x2968] ss:$28 sps:$4 sm:$0xff]  }
 0x60f   :  { %10098 = vmatprep.subr.bf16.mxu0 %v18891_v33  ;;  %v18969_v33 = vld [vmem:[#allocation5 + $0x29a4] ss:$28 sps:$4 sm:$0xff]  }
 0x612   :  { %10099 = vmatpush1.bf16.msra.mxu0 %v18889_v34  ;;  %v18967_v34 = vld [vmem:[#allocation5 + $0x29a0] ss:$28 sps:$4 sm:$0xff]  }
 0x613   :  { %10100 = vmatprep.subr.bf16.mxu0 %v18894_v9  ;;  %v18972_v9 = vld [vmem:[#allocation5 + $0x29dc] ss:$28 sps:$4 sm:$0xff]  }
 0x616   :  { %10101 = vmatpush1.bf16.msra.mxu0 %v18892_v28  ;;  %v18970_v28 = vld [vmem:[#allocation5 + $0x29d8] ss:$28 sps:$4 sm:$0xff]  }
 0x617   :  { %10102 = vmatprep.subr.bf16.mxu0 %v18897_v30  ;;  %v18975_v30 = vld [vmem:[#allocation8 + $0x14] ss:$28 sps:$4 sm:$0xff]  }
 0x61a   :  { %10103 = vmatpush1.bf16.msra.mxu0 %v18895_v38  ;;  %v18973_v38 = vld [vmem:[#allocation8 + $0x10] ss:$28 sps:$4 sm:$0xff]  }
 0x61b   :  { %10104 = vmatprep.subr.bf16.mxu0 %v18900_v45  ;;  %v18978_v45 = vld [vmem:[#allocation8 + $0x4c] ss:$28 sps:$4 sm:$0xff]  }
 0x61e   :  { %10105 = vmatpush1.bf16.msra.mxu0 %v18898_v46  ;;  %v19069_v46 = vld [vmem:[#allocation8 + $0x700] ss:$28 sps:$4 sm:$0xff]  }
 0x61f   :  { %10106 = vmatprep.subr.bf16.mxu0 %v18903_v49  ;;  %v19071_v49 = vld [vmem:[#allocation8 + $0x704] ss:$28 sps:$4 sm:$0xff]  }
 0x620   :  { %13249 = vmatprep.subr.bf16.mxu1 %v19071_v49  ;;  %v19015_v49 = vld [vmem:[#allocation8 + $0x320] ss:$28 sps:$4 sm:$0xff]  }
 0x621   :  { %13250 = vmatpush1.bf16.msra.mxu1 %v19069_v46  ;;  %v19147_v46 = vld [vmem:[#allocation8 + $0x9d8] ss:$28 sps:$4 sm:$0xff]  }
 0x622   :  { %10107 = vmatpush1.bf16.msra.mxu0 %v18901_v63  ;;  %v18976_v63 = vld [vmem:[#allocation8 + $0x48] ss:$28 sps:$4 sm:$0xff]  }
 0x623   :  { %10108 = vmatprep.subr.bf16.mxu0 %v18906_v50  ;;  %v19077_v50 = vld [vmem:[#allocation8 + $0x73c] ss:$28 sps:$4 sm:$0xff]  }
 0x624   :  { %13251 = vmatprep.subr.bf16.mxu1 %v19077_v50  ;;  %v19018_v50 = vld [vmem:[#allocation8 + $0x358] ss:$28 sps:$4 sm:$0xff]  }
 0x626   :  { %10109 = vmatpush1.bf16.msra.mxu0 %v18904_v51  ;;  %v18981_v51 = vld [vmem:[#allocation8 + $0x84] ss:$28 sps:$4 sm:$0xff]  }
 0x627   :  { %10110 = vmatprep.subr.bf16.mxu0 %v18909_v52  ;;  %v19075_v52 = vld [vmem:[#allocation8 + $0x738] ss:$28 sps:$4 sm:$0xff]  }
 0x628   :  { %13252 = vmatpush1.bf16.msra.mxu1 %v19075_v52  ;;  %v19021_v52 = vld [vmem:[#allocation8 + $0x390] ss:$28 sps:$4 sm:$0xff]  }
 0x62a   :  { %10111 = vmatpush1.bf16.msra.mxu0 %v18907_v53  ;;  %v18979_v53 = vld [vmem:[#allocation8 + $0x80] ss:$28 sps:$4 sm:$0xff]  }
 0x62b   :  { %10112 = vmatprep.subr.bf16.mxu0 %v18912_v10  ;;  %v19083_v10 = vld [vmem:[#allocation8 + $0x774] ss:$28 sps:$4 sm:$0xff]  }
 0x62c   :  { %13253 = vmatprep.subr.bf16.mxu1 %v19083_v10  ;;  %v19024_v10 = vld [vmem:[#allocation8 + $0x3c8] ss:$28 sps:$4 sm:$0xff]  }
 0x62e   :  { %10113 = vmatpush1.bf16.msra.mxu0 %v18910_v29  ;;  %v18984_v29 = vld [vmem:[#allocation8 + $0xbc] ss:$28 sps:$4 sm:$0xff]  }
 0x62f   :  { %10114 = vmatprep.subr.bf16.mxu0 %v18915_v61  ;;  %v18982_v61 = vld [vmem:[#allocation8 + $0xb8] ss:$28 sps:$4 sm:$0xff]  }
 0x632   :  { %10115 = vmatpush1.bf16.msra.mxu0 %v18913_v12  ;;  %v19089_v12 = vld [vmem:[#allocation8 + $0x7ac] ss:$28 sps:$4 sm:$0xff]  }
 0x633   :  { %10116 = vmatprep.subr.bf16.mxu0 %v18918_v62  ;;  %v18987_v62 = vld [vmem:[#allocation8 + $0xf4] ss:$28 sps:$4 sm:$0xff]  }
 0x636   :  { %10117 = vmatpush1.bf16.msra.mxu0 %v18916_v2  ;;  %v19087_v2 = vld [vmem:[#allocation8 + $0x7a8] ss:$28 sps:$4 sm:$0xff]  }
 0x637   :  { %10118 = vmatprep.subr.bf16.mxu0 %v18921_v54  ;;  %v18985_v54 = vld [vmem:[#allocation8 + $0xf0] ss:$28 sps:$4 sm:$0xff]  }
 0x63a   :  { %10119 = vmatpush1.bf16.msra.mxu0 %v18919_v55  ;;  %v19095_v55 = vld [vmem:[#allocation8 + $0x7e4] ss:$28 sps:$4 sm:$0xff]  }
 0x63b   :  { %10120 = vmatprep.subr.bf16.mxu0 %v18924_v58  ;;  %v18990_v58 = vld [vmem:[#allocation8 + $0x12c] ss:$28 sps:$4 sm:$0xff]  }
 0x63e   :  { %10121 = vmatpush1.bf16.msra.mxu0 %v18922_v59  ;;  %v19093_v59 = vld [vmem:[#allocation8 + $0x7e0] ss:$28 sps:$4 sm:$0xff]  }
 0x63f   :  { %10131 = vmatprep.subr.bf16.mxu0 %v18927_v41  ;;  %v18988_v41 = vld [vmem:[#allocation8 + $0x128] ss:$28 sps:$4 sm:$0xff]  }
 0x641   :  { %10123 = vmatmul.mubr.bf16.vlgmr.msra.gmra.mrb[4].mxu0 %v19965_v0  ;;  %v18940_v0 = vld [vmem:[#allocation5 + $0x27a8] ss:$28 sps:$4 sm:$0xff]  }
 0x642   :  { %10132 = vmatpush1.bf16.msra.mxu0 %v18925_v1  ;;  %10163 = vmatprep.mubr.bf16.mxu0 %v19969_v6  ;;  %v18943_v6 = vld [vmem:[#allocation5 + $0x27e0] ss:$28 sps:$4 sm:$0xff]  }
 0x643   :  { %10133 = vmatprep.subr.bf16.mxu0 %v18930_v15  ;;  %v19101_v1 = vld [vmem:[#allocation8 + $0x81c] ss:$28 sps:$4 sm:$0xff]   ;;  %v18993_v15 = vld [vmem:[#allocation8 + $0x164] ss:$28 sps:$4 sm:$0xff]  }
 0x646   :  { %10134 = vmatpush1.bf16.msra.mxu0 %v18928_v48  ;;  %v19099_v48 = vld [vmem:[#allocation8 + $0x818] ss:$28 sps:$4 sm:$0xff]  }
 0x647   :  { %10135 = vmatprep.subr.bf16.mxu0 %v18933_v37  ;;  %v18991_v37 = vld [vmem:[#allocation8 + $0x160] ss:$28 sps:$4 sm:$0xff]  }
 0x64a   :  { %10136 = vmatpush1.bf16.msra.mxu0 %v18931_v36  ;;  %v19107_v36 = vld [vmem:[#allocation8 + $0x854] ss:$28 sps:$4 sm:$0xff]  }
 0x64b   :  { %10137 = vmatprep.subr.bf16.mxu0 %v18936_v4  ;;  %v18996_v4 = vld [vmem:[#allocation8 + $0x19c] ss:$28 sps:$4 sm:$0xff]  }
 0x64e   :  { %10138 = vmatpush1.bf16.msra.mxu0 %v18934_v39  ;;  %v19105_v39 = vld [vmem:[#allocation8 + $0x850] ss:$28 sps:$4 sm:$0xff]  }
 0x64f   :  { %10139 = vmatprep.subr.bf16.mxu0 %v18939_v14  ;;  %v18994_v14 = vld [vmem:[#allocation8 + $0x198] ss:$28 sps:$4 sm:$0xff]  }
 0x652   :  { %10140 = vmatpush1.bf16.msra.mxu0 %v18937_v42  ;;  %v19113_v42 = vld [vmem:[#allocation8 + $0x88c] ss:$28 sps:$4 sm:$0xff]  }
 0x653   :  { %10141 = vmatprep.subr.bf16.mxu0 %v18942_v43  ;;  %v18999_v43 = vld [vmem:[#allocation8 + $0x1d4] ss:$28 sps:$4 sm:$0xff]  }
 0x656   :  { %10142 = vmatpush1.bf16.msra.mxu0 %v18940_v0  ;;  %v19111_v0 = vld [vmem:[#allocation8 + $0x888] ss:$28 sps:$4 sm:$0xff]  }
 0x657   :  { %10143 = vmatprep.subr.bf16.mxu0 %v18945_v16  ;;  %v18997_v16 = vld [vmem:[#allocation8 + $0x1d0] ss:$28 sps:$4 sm:$0xff]  }
 0x65a   :  { %10144 = vmatpush1.bf16.msra.mxu0 %v18943_v6  ;;  %v19119_v6 = vld [vmem:[#allocation8 + $0x8c4] ss:$28 sps:$4 sm:$0xff]  }
 0x65b   :  { %10145 = vmatprep.subr.bf16.mxu0 %v18948_v17  ;;  %v19002_v17 = vld [vmem:[#allocation8 + $0x20c] ss:$28 sps:$4 sm:$0xff]  }
 0x65e   :  { %10146 = vmatpush1.bf16.msra.mxu0 %v18946_v20  ;;  %v19117_v20 = vld [vmem:[#allocation8 + $0x8c0] ss:$28 sps:$4 sm:$0xff]  }
 0x65f   :  { %10147 = vmatprep.subr.bf16.mxu0 %v18951_v56  ;;  %v19000_v56 = vld [vmem:[#allocation8 + $0x208] ss:$28 sps:$4 sm:$0xff]  }
 0x662   :  { %10148 = vmatpush1.bf16.msra.mxu0 %v18949_v11  ;;  %v19125_v11 = vld [vmem:[#allocation8 + $0x8fc] ss:$28 sps:$4 sm:$0xff]  }
 0x663   :  { %10149 = vmatprep.subr.bf16.mxu0 %v18954_v19  ;;  %v19005_v19 = vld [vmem:[#allocation8 + $0x244] ss:$28 sps:$4 sm:$0xff]  }
 0x666   :  { %10150 = vmatpush1.bf16.msra.mxu0 %v18952_v22  ;;  %v19123_v22 = vld [vmem:[#allocation8 + $0x8f8] ss:$28 sps:$4 sm:$0xff]  }
 0x667   :  { %10151 = vmatprep.subr.bf16.mxu0 %v18957_v47  ;;  %v19003_v47 = vld [vmem:[#allocation8 + $0x240] ss:$28 sps:$4 sm:$0xff]  }
 0x66a   :  { %10152 = vmatpush1.bf16.msra.mxu0 %v18955_v23  ;;  %v19131_v23 = vld [vmem:[#allocation8 + $0x934] ss:$28 sps:$4 sm:$0xff]  }
 0x66b   :  { %10153 = vmatprep.subr.bf16.mxu0 %v18960_v25  ;;  %v19008_v25 = vld [vmem:[#allocation8 + $0x27c] ss:$28 sps:$4 sm:$0xff]  }
 0x66e   :  { %10154 = vmatpush1.bf16.msra.mxu0 %v18958_v18  ;;  %v19129_v18 = vld [vmem:[#allocation8 + $0x930] ss:$28 sps:$4 sm:$0xff]  }
 0x66f   :  { %10155 = vmatprep.subr.bf16.mxu0 %v18963_v5  ;;  %v19006_v5 = vld [vmem:[#allocation8 + $0x278] ss:$28 sps:$4 sm:$0xff]  }
 0x672   :  { %10156 = vmatpush1.bf16.msra.mxu0 %v18961_v24  ;;  %v19137_v24 = vld [vmem:[#allocation8 + $0x96c] ss:$28 sps:$4 sm:$0xff]  }
 0x673   :  { %10157 = vmatprep.subr.bf16.mxu0 %v18966_v13  ;;  %v19011_v13 = vld [vmem:[#allocation8 + $0x2b4] ss:$28 sps:$4 sm:$0xff]  }
 0x676   :  { %10158 = vmatpush1.bf16.msra.mxu0 %v18964_v27  ;;  %v19135_v27 = vld [vmem:[#allocation8 + $0x968] ss:$28 sps:$4 sm:$0xff]  }
 0x677   :  { %10159 = vmatprep.subr.bf16.mxu0 %v18969_v33  ;;  %v19009_v33 = vld [vmem:[#allocation8 + $0x2b0] ss:$28 sps:$4 sm:$0xff]  }
 0x67a   :  { %10160 = vmatpush1.bf16.msra.mxu0 %v18967_v34  ;;  %v19143_v34 = vld [vmem:[#allocation8 + $0x9a4] ss:$28 sps:$4 sm:$0xff]  }
 0x67b   :  { %10161 = vmatprep.subr.bf16.mxu0 %v18972_v9  ;;  %v19014_v9 = vld [vmem:[#allocation8 + $0x2ec] ss:$28 sps:$4 sm:$0xff]  }
 0x67e   :  { %10162 = vmatpush1.bf16.msra.mxu0 %v18970_v28  ;;  %v19141_v28 = vld [vmem:[#allocation8 + $0x9a0] ss:$28 sps:$4 sm:$0xff]  }
 0x67f   :  { %13495 = vmatprep.subr.bf16.mxu0 %v18975_v30  ;;  %v19012_v30 = vld [vmem:[#allocation8 + $0x2e8] ss:$28 sps:$4 sm:$0xff]  }
 0x681   :  { %10164 = vmatmul.mubr.bf16.vlgmr.msra.gmra.mrb[4].mxu0 %v19977_v40  ;;  %v19081_v40 = vld [vmem:[#allocation8 + $0x770] ss:$28 sps:$4 sm:$0xff]  }
 0x682   :  { %13496 = vmatpush1.bf16.msra.mxu0 %v18973_v38  ;;  %13527 = vmatprep.mubr.bf16.mxu0 %v20032_v44  ;;  %v19149_v38 = vld [vmem:[#allocation8 + $0x9dc] ss:$28 sps:$4 sm:$0xff]  }
 0x683   :  { %13497 = vmatprep.subr.bf16.mxu0 %v18978_v45  ;;  %13254 = vmatpush1.bf16.msra.mxu1 %v19081_v40  ;;  %v19017_v45 = vld [vmem:[#allocation8 + $0x324] ss:$28 sps:$4 sm:$0xff]  }
 0x684   :  { %13255 = vmatprep.subr.bf16.mxu1 %v19089_v12  ;;  %v19027_v40 = vld [vmem:[#allocation8 + $0x400] ss:$28 sps:$4 sm:$0xff]   ;;  %v19030_v12 = vld [vmem:[#allocation8 + $0x438] ss:$28 sps:$4 sm:$0xff]  }
 0x686   :  { %13498 = vmatpush1.bf16.msra.mxu0 %v18976_v63  ;;  %v19020_v63 = vld [vmem:[#allocation8 + $0x35c] ss:$28 sps:$4 sm:$0xff]  }
 0x687   :  { %13499 = vmatprep.subr.bf16.mxu0 %v18981_v51  ;;  %13256 = vmatpush1.bf16.msra.mxu1 %v19087_v2  ;;  %v19023_v51 = vld [vmem:[#allocation8 + $0x394] ss:$28 sps:$4 sm:$0xff]  }
 0x688   :  { %13257 = vmatprep.subr.bf16.mxu1 %v19095_v55  ;;  %v19033_v2 = vld [vmem:[#allocation8 + $0x470] ss:$28 sps:$4 sm:$0xff]   ;;  %v19036_v55 = vld [vmem:[#allocation8 + $0x4a8] ss:$28 sps:$4 sm:$0xff]  }
 0x68a   :  { %13500 = vmatpush1.bf16.msra.mxu0 %v18979_v53  ;;  %v19026_v53 = vld [vmem:[#allocation8 + $0x3cc] ss:$28 sps:$4 sm:$0xff]  }
 0x68b   :  { %13501 = vmatprep.subr.bf16.mxu0 %v18984_v29  ;;  %13258 = vmatpush1.bf16.msra.mxu1 %v19093_v59  ;;  %v19029_v29 = vld [vmem:[#allocation8 + $0x404] ss:$28 sps:$4 sm:$0xff]   ;;  %v19155_v59 = vld [vmem:[#allocation8 + $0xa14] ss:$28 sps:$4 sm:$0xff]  }
 0x68c   :  { %13259 = vmatprep.subr.bf16.mxu1 %v19101_v1  ;;  %v19039_v1 = vld [vmem:[#allocation8 + $0x4e0] ss:$28 sps:$4 sm:$0xff]  }
 0x68e   :  { %13502 = vmatpush1.bf16.msra.mxu0 %v18982_v61  ;;  %v19032_v61 = vld [vmem:[#allocation8 + $0x43c] ss:$28 sps:$4 sm:$0xff]  }
 0x68f   :  { %13503 = vmatprep.subr.bf16.mxu0 %v18987_v62  ;;  %13260 = vmatpush1.bf16.msra.mxu1 %v19099_v48  ;;  %v19035_v62 = vld [vmem:[#allocation8 + $0x474] ss:$28 sps:$4 sm:$0xff]   ;;  %v19161_v48 = vld [vmem:[#allocation8 + $0xa4c] ss:$28 sps:$4 sm:$0xff]  }
 0x690   :  { %13261 = vmatprep.subr.bf16.mxu1 %v19107_v36  ;;  %v19042_v36 = vld [vmem:[#allocation8 + $0x518] ss:$28 sps:$4 sm:$0xff]  }
 0x692   :  { %13504 = vmatpush1.bf16.msra.mxu0 %v18985_v54  ;;  %v19038_v54 = vld [vmem:[#allocation8 + $0x4ac] ss:$28 sps:$4 sm:$0xff]  }
 0x693   :  { %13505 = vmatprep.subr.bf16.mxu0 %v18990_v58  ;;  %13262 = vmatpush1.bf16.msra.mxu1 %v19105_v39  ;;  %v19041_v58 = vld [vmem:[#allocation8 + $0x4e4] ss:$28 sps:$4 sm:$0xff]  }
 0x694   :  { %13263 = vmatprep.subr.bf16.mxu1 %v19113_v42  ;;  %v19167_v39 = vld [vmem:[#allocation8 + $0xa84] ss:$28 sps:$4 sm:$0xff]   ;;  %v19050_v42 = vld [vmem:[#allocation8 + $0x58c] ss:$28 sps:$4 sm:$0xff]  }
 0x696   :  { %13506 = vmatpush1.bf16.msra.mxu0 %v18988_v41  ;;  %v19153_v41 = vld [vmem:[#allocation8 + $0xa10] ss:$28 sps:$4 sm:$0xff]  }
 0x697   :  { %13507 = vmatprep.subr.bf16.mxu0 %v18993_v15  ;;  %13264 = vmatpush1.bf16.msra.mxu1 %v19111_v0  ;;  %v19044_v15 = vld [vmem:[#allocation8 + $0x51c] ss:$28 sps:$4 sm:$0xff]   ;;  %v19053_v0 = vld [vmem:[#allocation8 + $0x5c4] ss:$28 sps:$4 sm:$0xff]  }
 0x698   :  { %13265 = vmatprep.subr.bf16.mxu1 %v19119_v6  ;;  %v19056_v6 = vld [vmem:[#allocation8 + $0x5fc] ss:$28 sps:$4 sm:$0xff]  }
 0x69a   :  { %13508 = vmatpush1.bf16.msra.mxu0 %v18991_v37  ;;  %v19159_v37 = vld [vmem:[#allocation8 + $0xa48] ss:$28 sps:$4 sm:$0xff]  }
 0x69b   :  { %13509 = vmatprep.subr.bf16.mxu0 %v18996_v4  ;;  %13266 = vmatpush1.bf16.msra.mxu1 %v19117_v20  ;;  %v19047_v4 = vld [vmem:[#allocation8 + $0x554] ss:$28 sps:$4 sm:$0xff]  }
 0x69c   :  { %13267 = vmatprep.subr.bf16.mxu1 %v19125_v11  ;;  %v19059_v20 = vld [vmem:[#allocation8 + $0x634] ss:$28 sps:$4 sm:$0xff]   ;;  %v19062_v11 = vld [vmem:[#allocation8 + $0x66c] ss:$28 sps:$4 sm:$0xff]  }
 0x69e   :  { %13510 = vmatpush1.bf16.msra.mxu0 %v18994_v14  ;;  %v19045_v14 = vld [vmem:[#allocation8 + $0x550] ss:$28 sps:$4 sm:$0xff]  }
 0x69f   :  { %13511 = vmatprep.subr.bf16.mxu0 %v18999_v43  ;;  %13268 = vmatpush1.bf16.msra.mxu1 %v19123_v22  ;;  %v19048_v43 = vld [vmem:[#allocation8 + $0x588] ss:$28 sps:$4 sm:$0xff]  }
 0x6a0   :  { %13269 = vmatprep.subr.bf16.mxu1 %v19131_v23  ;;  %v19065_v22 = vld [vmem:[#allocation8 + $0x6a4] ss:$28 sps:$4 sm:$0xff]   ;;  %v19068_v23 = vld [vmem:[#allocation8 + $0x6dc] ss:$28 sps:$4 sm:$0xff]  }
 0x6a2   :  { %13512 = vmatpush1.bf16.msra.mxu0 %v18997_v16  ;;  %v19051_v16 = vld [vmem:[#allocation8 + $0x5c0] ss:$28 sps:$4 sm:$0xff]  }
 0x6a3   :  { %13513 = vmatprep.subr.bf16.mxu0 %v19002_v17  ;;  %13270 = vmatpush1.bf16.msra.mxu1 %v19129_v18  ;;  %v19054_v17 = vld [vmem:[#allocation8 + $0x5f8] ss:$28 sps:$4 sm:$0xff]  }
 0x6a4   :  { %13271 = vmatprep.subr.bf16.mxu1 %v19137_v24  ;;  %v19074_v18 = vld [vmem:[#allocation8 + $0x714] ss:$28 sps:$4 sm:$0xff]   ;;  %v19080_v24 = vld [vmem:[#allocation8 + $0x74c] ss:$28 sps:$4 sm:$0xff]  }
 0x6a6   :  { %13514 = vmatpush1.bf16.msra.mxu0 %v19000_v56  ;;  %v19057_v56 = vld [vmem:[#allocation8 + $0x630] ss:$28 sps:$4 sm:$0xff]  }
 0x6a7   :  { %13515 = vmatprep.subr.bf16.mxu0 %v19005_v19  ;;  %13272 = vmatpush1.bf16.msra.mxu1 %v19135_v27  ;;  %v19060_v19 = vld [vmem:[#allocation8 + $0x668] ss:$28 sps:$4 sm:$0xff]  }
 0x6a8   :  { %13273 = vmatprep.subr.bf16.mxu1 %v19143_v34  ;;  %v19086_v27 = vld [vmem:[#allocation8 + $0x784] ss:$28 sps:$4 sm:$0xff]   ;;  %v19092_v34 = vld [vmem:[#allocation8 + $0x7bc] ss:$28 sps:$4 sm:$0xff]  }
 0x6aa   :  { %13516 = vmatpush1.bf16.msra.mxu0 %v19003_v47  ;;  %v19063_v47 = vld [vmem:[#allocation8 + $0x6a0] ss:$28 sps:$4 sm:$0xff]  }
 0x6ab   :  { %13517 = vmatprep.subr.bf16.mxu0 %v19008_v25  ;;  %13274 = vmatpush1.bf16.msra.mxu1 %v19141_v28  ;;  %v19066_v25 = vld [vmem:[#allocation8 + $0x6d8] ss:$28 sps:$4 sm:$0xff]  }
 0x6ac   :  { %13275 = vmatprep.subr.bf16.mxu1 %v19149_v38  ;;  %v19098_v28 = vld [vmem:[#allocation8 + $0x7f4] ss:$28 sps:$4 sm:$0xff]   ;;  %v19104_v38 = vld [vmem:[#allocation8 + $0x82c] ss:$28 sps:$4 sm:$0xff]  }
 0x6ae   :  { %13518 = vmatpush1.bf16.msra.mxu0 %v19006_v5  ;;  %v19072_v5 = vld [vmem:[#allocation8 + $0x710] ss:$28 sps:$4 sm:$0xff]  }
 0x6af   :  { %13519 = vmatprep.subr.bf16.mxu0 %v19011_v13  ;;  %13276 = vmatpush1.bf16.msra.mxu1 %v19147_v46  ;;  %v19078_v13 = vld [vmem:[#allocation8 + $0x748] ss:$28 sps:$4 sm:$0xff]  }
 0x6b0   :  { %13277 = vmatprep.subr.bf16.mxu1 %v19155_v59  ;;  %v19110_v46 = vld [vmem:[#allocation8 + $0x864] ss:$28 sps:$4 sm:$0xff]  }
 0x6b1   :  { %v19156_v59 = vld [vmem:[#allocation8 + $0xa20] ss:$28 sps:$4 sm:$0xff]  }
 0x6b2   :  { %13520 = vmatpush1.bf16.msra.mxu0 %v19009_v33  ;;  %v19084_v33 = vld [vmem:[#allocation8 + $0x780] ss:$28 sps:$4 sm:$0xff]  }
 0x6b3   :  { %13521 = vmatprep.subr.bf16.mxu0 %v19014_v9  ;;  %13278 = vmatpush1.bf16.msra.mxu1 %v19153_v41  ;;  %v19090_v9 = vld [vmem:[#allocation8 + $0x7b8] ss:$28 sps:$4 sm:$0xff]  }
 0x6b4   :  { %13279 = vmatprep.subr.bf16.mxu1 %v19161_v48  ;;  %v19164_v41 = vld [vmem:[#allocation8 + $0xa5c] ss:$28 sps:$4 sm:$0xff]   ;;  %v1683_v48 = vsub.s32 4, %v20023_v21 }
 0x6b6   :  { %13522 = vmatpush1.bf16.msra.mxu0 %v19012_v30  ;;  %v19096_v30 = vld [vmem:[#allocation8 + $0x7f0] ss:$28 sps:$4 sm:$0xff]  }
 0x6b7   :  { %13523 = vmatprep.subr.bf16.mxu0 %v19017_v45  ;;  %13280 = vmatpush1.bf16.msra.mxu1 %v19159_v37  ;;  %v19102_v45 = vld [vmem:[#allocation8 + $0x828] ss:$28 sps:$4 sm:$0xff]   ;;  %v1687_v37 = vsub.s32 5, %v20023_v21 }
 0x6b8   :  { %13290 = vmatprep.subr.bf16.mxu1 %v19167_v39 }
 0x6ba   :  { %13524 = vmatpush1.bf16.msra.mxu0 %v19015_v49  ;;  %v19108_v49 = vld [vmem:[#allocation8 + $0x860] ss:$28 sps:$4 sm:$0xff]  }
 0x6bb   :  { %13525 = vmatprep.subr.bf16.mxu0 %v19020_v63  ;;  %v19116_v63 = vld [vmem:[#allocation8 + $0x89c] ss:$28 sps:$4 sm:$0xff]  }
 0x6be   :  { %13526 = vmatpush1.bf16.msra.mxu0 %v19018_v50  ;;  %v19114_v50 = vld [vmem:[#allocation8 + $0x898] ss:$28 sps:$4 sm:$0xff]  }
 0x6bf   :  { %13536 = vmatprep.subr.bf16.mxu0 %v19023_v51  ;;  %v19122_v51 = vld [vmem:[#allocation8 + $0x8d4] ss:$28 sps:$4 sm:$0xff]  }
 0x6c1   :  { %13528 = vmatmul.mubr.bf16.vlgmr.msra.gmra.mrb[8].mxu0 %v20048_v3 }
 0x6c2   :  { %13537 = vmatpush1.bf16.msra.mxu0 %v19021_v52  ;;  %13568 = vmatprep.mubr.bf16.mxu0 %v20050_v32  ;;  %v19120_v52 = vld [vmem:[#allocation8 + $0x8d0] ss:$28 sps:$4 sm:$0xff]  }
 0x6c3   :  { %13538 = vmatprep.subr.bf16.mxu0 %v19026_v53  ;;  %v19128_v53 = vld [vmem:[#allocation8 + $0x90c] ss:$28 sps:$4 sm:$0xff]  }
 0x6c6   :  { %13539 = vmatpush1.bf16.msra.mxu0 %v19024_v10  ;;  %v19126_v10 = vld [vmem:[#allocation8 + $0x908] ss:$28 sps:$4 sm:$0xff]  }
 0x6c7   :  { %13540 = vmatprep.subr.bf16.mxu0 %v19029_v29  ;;  %v19134_v29 = vld [vmem:[#allocation8 + $0x944] ss:$28 sps:$4 sm:$0xff]  }
 0x6ca   :  { %13541 = vmatpush1.bf16.msra.mxu0 %v19027_v40  ;;  %v19132_v40 = vld [vmem:[#allocation8 + $0x940] ss:$28 sps:$4 sm:$0xff]  }
 0x6cb   :  { %13542 = vmatprep.subr.bf16.mxu0 %v19032_v61  ;;  %v19140_v61 = vld [vmem:[#allocation8 + $0x97c] ss:$28 sps:$4 sm:$0xff]  }
 0x6ce   :  { %13543 = vmatpush1.bf16.msra.mxu0 %v19030_v12  ;;  %v19138_v12 = vld [vmem:[#allocation8 + $0x978] ss:$28 sps:$4 sm:$0xff]  }
 0x6cf   :  { %13544 = vmatprep.subr.bf16.mxu0 %v19035_v62  ;;  %v19146_v62 = vld [vmem:[#allocation8 + $0x9b4] ss:$28 sps:$4 sm:$0xff]  }
 0x6d2   :  { %13545 = vmatpush1.bf16.msra.mxu0 %v19033_v2  ;;  %v19144_v2 = vld [vmem:[#allocation8 + $0x9b0] ss:$28 sps:$4 sm:$0xff]  }
 0x6d3   :  { %13546 = vmatprep.subr.bf16.mxu0 %v19038_v54  ;;  %v19152_v54 = vld [vmem:[#allocation8 + $0x9ec] ss:$28 sps:$4 sm:$0xff]  }
 0x6d6   :  { %13547 = vmatpush1.bf16.msra.mxu0 %v19036_v55  ;;  %v19150_v55 = vld [vmem:[#allocation8 + $0x9e8] ss:$28 sps:$4 sm:$0xff]  }
 0x6d7   :  { %13548 = vmatprep.subr.bf16.mxu0 %v19041_v58  ;;  %v19158_v58 = vld [vmem:[#allocation8 + $0xa24] ss:$28 sps:$4 sm:$0xff]  }
 0x6da   :  { %13549 = vmatpush1.bf16.msra.mxu0 %v19039_v1  ;;  %v19162_v1 = vld [vmem:[#allocation8 + $0xa58] ss:$28 sps:$4 sm:$0xff]  }
 0x6db   :  { %13550 = vmatprep.subr.bf16.mxu0 %v19044_v15  ;;  %v19170_v15 = vld [vmem:[#allocation8 + $0xa94] ss:$28 sps:$4 sm:$0xff]  }
 0x6de   :  { %13551 = vmatpush1.bf16.msra.mxu0 %v19042_v36  ;;  %v19493_v36 = vld [vmem:[#allocation7] sm:$0xff] }
 0x6df   :  { %13552 = vmatprep.subr.bf16.mxu0 %v19047_v4  ;;  %v1684_v4 = vrot.slane %v19493_v36, %v1683_v48  ;;  %v1688_v39 = vrot.slane %v19493_v36, %v1687_v37  ;;  %v19224_v36 = vld [vmem:[#allocation8 + $0xb4] ss:$28 sps:$4 sm:$0xff]  }
 0x6e2   :  { %13553 = vmatpush1.bf16.msra.mxu0 %v19045_v14 }
 0x6e3   :  { %13554 = vmatprep.subr.bf16.mxu0 %v19050_v42 }
 0x6e6   :  { %13555 = vmatpush1.bf16.msra.mxu0 %v19048_v43 }
 0x6e7   :  { %13556 = vmatprep.subr.bf16.mxu0 %v19053_v0 }
 0x6ea   :  { %13557 = vmatpush1.bf16.msra.mxu0 %v19051_v16 }
 0x6eb   :  { %13558 = vmatprep.subr.bf16.mxu0 %v19056_v6 }
 0x6ee   :  { %13559 = vmatpush1.bf16.msra.mxu0 %v19054_v17 }
 0x6ef   :  { %13560 = vmatprep.subr.bf16.mxu0 %v19059_v20 }
 0x6f2   :  { %13561 = vmatpush1.bf16.msra.mxu0 %v19057_v56 }
 0x6f3   :  { %13562 = vmatprep.subr.bf16.mxu0 %v19062_v11  ;;  %v19165_v11 = vld [vmem:[#allocation8 + $0xa80] ss:$28 sps:$4 sm:$0xff]  }
 0x6f6   :  { %13563 = vmatpush1.bf16.msra.mxu0 %v19060_v19  ;;  %v19168_v19 = vld [vmem:[#allocation8 + $0xa90] ss:$28 sps:$4 sm:$0xff]  }
 0x6f7   :  { %13564 = vmatprep.subr.bf16.mxu0 %v19065_v22 }
 0x6fa   :  { %13565 = vmatpush1.bf16.msra.mxu0 %v19063_v47  ;;  %v19173_v47 = vld [vmem:[#allocation8 + $0xabc] ss:$28 sps:$4 sm:$0xff]  }
 0x6fb   :  { %13566 = vmatprep.subr.bf16.mxu0 %v19068_v23  ;;  %v19176_v23 = vld [vmem:[#allocation8 + $0xacc] ss:$28 sps:$4 sm:$0xff]  }
 0x6fe   :  { %13567 = vmatpush1.bf16.msra.mxu0 %v19066_v25  ;;  %v19171_v25 = vld [vmem:[#allocation8 + $0xab8] ss:$28 sps:$4 sm:$0xff]  }
 0x6ff   :  { %13577 = vmatprep.subr.bf16.mxu0 %v19074_v18  ;;  %v19174_v18 = vld [vmem:[#allocation8 + $0xac8] ss:$28 sps:$4 sm:$0xff]  }
 0x701   :  { %13569 = vmatmul.mubr.bf16.vlgmr.msra.gmra.mrb[8].mxu0 %v20065_v57 }
 0x702   :  { %13578 = vmatpush1.bf16.msra.mxu0 %v19072_v5  ;;  %v19179_v5 = vld [vmem:[#allocation8 + $0xaf4] ss:$28 sps:$4 sm:$0xff]  }
 0x703   :  { %13579 = vmatprep.subr.bf16.mxu0 %v19080_v24  ;;  %v19182_v24 = vld [vmem:[#allocation8 + $0xb04] ss:$28 sps:$4 sm:$0xff]  }
 0x706   :  { %13580 = vmatpush1.bf16.msra.mxu0 %v19078_v13  ;;  %v19691_v13 = vmov 0  }
 0x707   :  { %13581 = vmatprep.subr.bf16.mxu0 %v19086_v27  ;;  %v19177_v27 = vld [vmem:[#allocation8 + $0xaf0] ss:$28 sps:$4 sm:$0xff]  }
 0x70a   :  { %13582 = vmatpush1.bf16.msra.mxu0 %v19084_v33  ;;  %v19180_v33 = vld [vmem:[#allocation8 + $0xb00] ss:$28 sps:$4 sm:$0xff]  }
 0x70b   :  { %13583 = vmatprep.subr.bf16.mxu0 %v19092_v34  ;;  %v19185_v34 = vld [vmem:[#allocation8 + $0xb2c] ss:$28 sps:$4 sm:$0xff]  }
 0x70e   :  { %13584 = vmatpush1.bf16.msra.mxu0 %v19090_v9  ;;  %v19188_v9 = vld [vmem:[#allocation8 + $0xb3c] ss:$28 sps:$4 sm:$0xff]  }
 0x70f   :  { %13585 = vmatprep.subr.bf16.mxu0 %v19098_v28  ;;  %v19183_v28 = vld [vmem:[#allocation8 + $0xb28] ss:$28 sps:$4 sm:$0xff]  }
 0x712   :  { %13586 = vmatpush1.bf16.msra.mxu0 %v19096_v30  ;;  %v19186_v30 = vld [vmem:[#allocation8 + $0xb38] ss:$28 sps:$4 sm:$0xff]  }
 0x713   :  { %13587 = vmatprep.subr.bf16.mxu0 %v19104_v38  ;;  %v19191_v38 = vld [vmem:[#allocation8 + $0xb64] ss:$28 sps:$4 sm:$0xff]  }
 0x716   :  { %13588 = vmatpush1.bf16.msra.mxu0 %v19102_v45  ;;  %v19194_v45 = vld [vmem:[#allocation8 + $0xb74] ss:$28 sps:$4 sm:$0xff]  }
 0x717   :  { %13589 = vmatprep.subr.bf16.mxu0 %v19110_v46  ;;  %v19189_v46 = vld [vmem:[#allocation8 + $0xb60] ss:$28 sps:$4 sm:$0xff]  }
 0x71a   :  { %13590 = vmatpush1.bf16.msra.mxu0 %v19108_v49  ;;  %v19192_v49 = vld [vmem:[#allocation8 + $0xb70] ss:$28 sps:$4 sm:$0xff]  }
 0x71b   :  { %13591 = vmatprep.subr.bf16.mxu0 %v19116_v63  ;;  %v19197_v63 = vld [vmem:[#allocation8 + $0xb9c] ss:$28 sps:$4 sm:$0xff]  }
 0x71e   :  { %13592 = vmatpush1.bf16.msra.mxu0 %v19114_v50  ;;  %v19200_v50 = vld [vmem:[#allocation8 + $0xbac] ss:$28 sps:$4 sm:$0xff]  }
 0x71f   :  { %13593 = vmatprep.subr.bf16.mxu0 %v19122_v51  ;;  %v19195_v51 = vld [vmem:[#allocation8 + $0xb98] ss:$28 sps:$4 sm:$0xff]  }
 0x722   :  { %13594 = vmatpush1.bf16.msra.mxu0 %v19120_v52  ;;  %v19198_v52 = vld [vmem:[#allocation8 + $0xba8] ss:$28 sps:$4 sm:$0xff]  }
 0x723   :  { %13595 = vmatprep.subr.bf16.mxu0 %v19128_v53  ;;  %v19203_v53 = vld [vmem:[#allocation8 + $0xbd4] ss:$28 sps:$4 sm:$0xff]  }
 0x726   :  { %13596 = vmatpush1.bf16.msra.mxu0 %v19126_v10  ;;  %v19206_v10 = vld [vmem:[#allocation8 + $0xbe4] ss:$28 sps:$4 sm:$0xff]  }
 0x727   :  { %13597 = vmatprep.subr.bf16.mxu0 %v19134_v29  ;;  %v19201_v29 = vld [vmem:[#allocation8 + $0xbd0] ss:$28 sps:$4 sm:$0xff]  }
 0x72a   :  { %13598 = vmatpush1.bf16.msra.mxu0 %v19132_v40  ;;  %v19204_v40 = vld [vmem:[#allocation8 + $0xbe0] ss:$28 sps:$4 sm:$0xff]  }
 0x72b   :  { %13599 = vmatprep.subr.bf16.mxu0 %v19140_v61  ;;  %v19209_v61 = vld [vmem:[#allocation8 + $0xc0c] ss:$28 sps:$4 sm:$0xff]  }
 0x72e   :  { %13600 = vmatpush1.bf16.msra.mxu0 %v19138_v12  ;;  %v19212_v12 = vld [vmem:[#allocation8 + $0xc1c] ss:$28 sps:$4 sm:$0xff]  }
 0x72f   :  { %13601 = vmatprep.subr.bf16.mxu0 %v19146_v62  ;;  %v19207_v62 = vld [vmem:[#allocation8 + $0xc08] ss:$28 sps:$4 sm:$0xff]  }
 0x732   :  { %13602 = vmatpush1.bf16.msra.mxu0 %v19144_v2  ;;  %v19210_v2 = vld [vmem:[#allocation8 + $0xc18] ss:$28 sps:$4 sm:$0xff]  }
 0x733   :  { %13603 = vmatprep.subr.bf16.mxu0 %v19152_v54  ;;  %v10658_v54 = vmax.f32 %v20072_v35, 0.0  ;;  %v19221_v35 = vld [vmem:[#allocation8 + $0x7c] ss:$28 sps:$4 sm:$0xff]  }
 0x736   :  { %13604 = vmatpush1.bf16.msra.mxu0 %v19150_v55  ;;  %v19215_v55 = vld [vmem:[#allocation8 + $0xc] ss:$28 sps:$4 sm:$0xff]  }
 0x737   :  { %13605 = vmatprep.subr.bf16.mxu0 %v19158_v58  ;;  %v19213_v58 = vld [vmem:[#allocation8 + $0x8] ss:$28 sps:$4 sm:$0xff]  }
 0x73a   :  { %13606 = vmatpush1.bf16.msra.mxu0 %v19156_v59  ;;  %v20100_v59 = vpack.c.bf16 %v10658_v54, %v10658_v54  ;;  %v19282_v54 = vld [vmem:[#allocation8 + $0x510] ss:$28 sps:$4 sm:$0xff]  }
 0x73b   :  { %13607 = vmatprep.subr.bf16.mxu0 %v19164_v41  ;;  %v19218_v41 = vld [vmem:[#allocation8 + $0x44] ss:$28 sps:$4 sm:$0xff]  }
 0x73e   :  { %13608 = vmatpush1.bf16.msra.mxu0 %v19162_v1  ;;  %v19216_v1 = vld [vmem:[#allocation8 + $0x40] ss:$28 sps:$4 sm:$0xff]  }
 0x73f   :  { %13618 = vmatprep.subr.bf16.mxu0 %v19170_v15  ;;  %v19219_v15 = vld [vmem:[#allocation8 + $0x78] ss:$28 sps:$4 sm:$0xff]  }
 0x754   :  { %v10165_v14 = vpop.f32.mrb[4].mxu0 }
 0x755   :  { %v16742_v42 = vadd.f32 %v10165_v14, %v1684_v4  ;;  %v10167_v43 = vpop.f32.mrb[5].mxu0  ;;  %v19222_v4 = vld [vmem:[#allocation8 + $0xb0] ss:$28 sps:$4 sm:$0xff]   ;;  %v19225_v14 = vld [vmem:[#allocation8 + $0xe8] ss:$28 sps:$4 sm:$0xff]  }
 0x756   :  { %v16743_v0 = vadd.f32 %v10167_v43, %v1688_v39  ;;  %v10169_v16 = vpop.f32.mrb[6].mxu0  ;;  %v19227_v39 = vld [vmem:[#allocation8 + $0xec] ss:$28 sps:$4 sm:$0xff]   ;;  %v19228_v43 = vld [vmem:[#allocation8 + $0x120] ss:$28 sps:$4 sm:$0xff]  }
 0x757   :  { %v10656_v6 = vmax.f32 %v16742_v42, 0.0  ;;  %v10170_v17 = vpop.f32.mrb[7].mxu0  ;;  %v19230_v42 = vld [vmem:[#allocation8 + $0x124] ss:$28 sps:$4 sm:$0xff]   ;;  %v19231_v16 = vld [vmem:[#allocation8 + $0x158] ss:$28 sps:$4 sm:$0xff]  }
 0x758   :  { %v10657_v20 = vmax.f32 %v16743_v0, 0.0  ;;  %v19233_v0 = vld [vmem:[#allocation8 + $0x15c] ss:$28 sps:$4 sm:$0xff]   ;;  %v19234_v17 = vld [vmem:[#allocation8 + $0x190] ss:$28 sps:$4 sm:$0xff]  }
 0x759   :  { %v20091_v22 = vpack.c.bf16 %v10656_v6, %v10656_v6  ;;  %v19236_v6 = vld [vmem:[#allocation8 + $0x194] ss:$28 sps:$4 sm:$0xff]  }
 0x75a   :  { %v20089_v56 = vpack.c.bf16 %v10657_v20, %v10657_v20  ;;  %v19239_v20 = vld [vmem:[#allocation8 + $0x1cc] ss:$28 sps:$4 sm:$0xff]  }
 0x75c   :  { %13281 = vmatprep.mubr.bf16.mxu1 %v20089_v56  ;;  %13609 = vmatprep.mubr.bf16.mxu0 %v20089_v56 }
 0x75d   :  { %13282 = vmatmul.mubr.bf16.vlgmr.msra.gmra.mrb[52].mxu1 %v20091_v22  ;;  %13610 = vmatmul.mubr.bf16.vlgmr.msra.gmra.mrb[8].mxu0 %v20091_v22 }
 0x75e   :  { %13291 = vmatpush1.bf16.msra.mxu1 %v19165_v11  ;;  %13619 = vmatpush1.bf16.msra.mxu0 %v19168_v19  ;;  %v19237_v11 = vld [vmem:[#allocation8 + $0x1c8] ss:$28 sps:$4 sm:$0xff]  }
 0x75f   :  { %13292 = vmatprep.subr.bf16.mxu1 %v19173_v47  ;;  %13620 = vmatprep.subr.bf16.mxu0 %v19176_v23  ;;  %v19242_v19 = vld [vmem:[#allocation8 + $0x204] ss:$28 sps:$4 sm:$0xff]   ;;  %v19245_v23 = vld [vmem:[#allocation8 + $0x23c] ss:$28 sps:$4 sm:$0xff]  }
 0x760   :  { %13322 = vmatprep.mubr.bf16.mxu1 %v19691_v13  ;;  %13650 = vmatprep.mubr.bf16.mxu0 %v19691_v13  ;;  %v19240_v47 = vld [vmem:[#allocation8 + $0x200] ss:$28 sps:$4 sm:$0xff]  }
 0x762   :  { %13293 = vmatpush1.bf16.msra.mxu1 %v19171_v25  ;;  %13621 = vmatpush1.bf16.msra.mxu0 %v19174_v18  ;;  %v19243_v25 = vld [vmem:[#allocation8 + $0x238] ss:$28 sps:$4 sm:$0xff]  }
 0x763   :  { %13294 = vmatprep.subr.bf16.mxu1 %v19179_v5  ;;  %13622 = vmatprep.subr.bf16.mxu0 %v19182_v24  ;;  %v19248_v18 = vld [vmem:[#allocation8 + $0x274] ss:$28 sps:$4 sm:$0xff]   ;;  %v19251_v24 = vld [vmem:[#allocation8 + $0x2ac] ss:$28 sps:$4 sm:$0xff]  }
 0x764   :  { %v19246_v5 = vld [vmem:[#allocation8 + $0x270] ss:$28 sps:$4 sm:$0xff]  }
 0x766   :  { %13295 = vmatpush1.bf16.msra.mxu1 %v19177_v27  ;;  %13623 = vmatpush1.bf16.msra.mxu0 %v19180_v33  ;;  %v19249_v27 = vld [vmem:[#allocation8 + $0x2a8] ss:$28 sps:$4 sm:$0xff]  }
 0x767   :  { %13296 = vmatprep.subr.bf16.mxu1 %v19185_v34  ;;  %13624 = vmatprep.subr.bf16.mxu0 %v19188_v9  ;;  %v19254_v33 = vld [vmem:[#allocation8 + $0x2e4] ss:$28 sps:$4 sm:$0xff]   ;;  %v19257_v9 = vld [vmem:[#allocation8 + $0x31c] ss:$28 sps:$4 sm:$0xff]  }
 0x768   :  { %v19252_v34 = vld [vmem:[#allocation8 + $0x2e0] ss:$28 sps:$4 sm:$0xff]  }
 0x76a   :  { %13297 = vmatpush1.bf16.msra.mxu1 %v19183_v28  ;;  %13625 = vmatpush1.bf16.msra.mxu0 %v19186_v30  ;;  %v19255_v28 = vld [vmem:[#allocation8 + $0x318] ss:$28 sps:$4 sm:$0xff]  }
 0x76b   :  { %13298 = vmatprep.subr.bf16.mxu1 %v19191_v38  ;;  %13626 = vmatprep.subr.bf16.mxu0 %v19194_v45  ;;  %v19260_v30 = vld [vmem:[#allocation8 + $0x354] ss:$28 sps:$4 sm:$0xff]   ;;  %v19263_v45 = vld [vmem:[#allocation8 + $0x38c] ss:$28 sps:$4 sm:$0xff]  }
 0x76c   :  { %v19258_v38 = vld [vmem:[#allocation8 + $0x350] ss:$28 sps:$4 sm:$0xff]  }
 0x76e   :  { %13299 = vmatpush1.bf16.msra.mxu1 %v19189_v46  ;;  %13627 = vmatpush1.bf16.msra.mxu0 %v19192_v49  ;;  %v19261_v46 = vld [vmem:[#allocation8 + $0x388] ss:$28 sps:$4 sm:$0xff]  }
 0x76f   :  { %13300 = vmatprep.subr.bf16.mxu1 %v19197_v63  ;;  %13628 = vmatprep.subr.bf16.mxu0 %v19200_v50  ;;  %v19266_v49 = vld [vmem:[#allocation8 + $0x3c4] ss:$28 sps:$4 sm:$0xff]   ;;  %v19269_v50 = vld [vmem:[#allocation8 + $0x3fc] ss:$28 sps:$4 sm:$0xff]  }
 0x770   :  { %v19264_v63 = vld [vmem:[#allocation8 + $0x3c0] ss:$28 sps:$4 sm:$0xff]  }
 0x772   :  { %13301 = vmatpush1.bf16.msra.mxu1 %v19195_v51  ;;  %13629 = vmatpush1.bf16.msra.mxu0 %v19198_v52  ;;  %v19267_v51 = vld [vmem:[#allocation8 + $0x3f8] ss:$28 sps:$4 sm:$0xff]  }
 0x773   :  { %13302 = vmatprep.subr.bf16.mxu1 %v19203_v53  ;;  %13630 = vmatprep.subr.bf16.mxu0 %v19206_v10  ;;  %v19272_v52 = vld [vmem:[#allocation8 + $0x434] ss:$28 sps:$4 sm:$0xff]   ;;  %v19275_v10 = vld [vmem:[#allocation8 + $0x46c] ss:$28 sps:$4 sm:$0xff]  }
 0x774   :  { %v19270_v53 = vld [vmem:[#allocation8 + $0x430] ss:$28 sps:$4 sm:$0xff]  }
 0x776   :  { %13303 = vmatpush1.bf16.msra.mxu1 %v19201_v29  ;;  %13631 = vmatpush1.bf16.msra.mxu0 %v19204_v40  ;;  %v19273_v29 = vld [vmem:[#allocation8 + $0x468] ss:$28 sps:$4 sm:$0xff]  }
 0x777   :  { %13304 = vmatprep.subr.bf16.mxu1 %v19209_v61  ;;  %13632 = vmatprep.subr.bf16.mxu0 %v19212_v12  ;;  %v19278_v40 = vld [vmem:[#allocation8 + $0x4a4] ss:$28 sps:$4 sm:$0xff]   ;;  %v19281_v12 = vld [vmem:[#allocation8 + $0x4dc] ss:$28 sps:$4 sm:$0xff]  }
 0x778   :  { %v19276_v61 = vld [vmem:[#allocation8 + $0x4a0] ss:$28 sps:$4 sm:$0xff]  }
 0x77a   :  { %13305 = vmatpush1.bf16.msra.mxu1 %v19207_v62  ;;  %13633 = vmatpush1.bf16.msra.mxu0 %v19210_v2  ;;  %v19279_v62 = vld [vmem:[#allocation8 + $0x4d8] ss:$28 sps:$4 sm:$0xff]  }
 0x77b   :  { %13331 = vmatprep.subr.bf16.mxu1 %v19215_v55  ;;  %v19284_v2 = vld [vmem:[#allocation8 + $0x514] ss:$28 sps:$4 sm:$0xff]   ;;  %v19287_v55 = vld [vmem:[#allocation8 + $0x54c] ss:$28 sps:$4 sm:$0xff]  }
 0x77d   :  { %13323 = vmatmul.mubr.bf16.vlgmr.msra.gmra.mrb[52].mxu1 %v20100_v59  ;;  %13651 = vmatmul.mubr.bf16.vlgmr.msra.gmra.mrb[8].mxu0 %v20100_v59 }
 0x77e   :  { %13332 = vmatpush1.bf16.msra.mxu1 %v19213_v58  ;;  %13363 = vmatprep.mubr.bf16.mxu1 %v20032_v44  ;;  %v19285_v58 = vld [vmem:[#allocation8 + $0x548] ss:$28 sps:$4 sm:$0xff]  }
 0x77f   :  { %13333 = vmatprep.subr.bf16.mxu1 %v19218_v41  ;;  %v19290_v41 = vld [vmem:[#allocation8 + $0x584] ss:$28 sps:$4 sm:$0xff]  }
 0x782   :  { %13334 = vmatpush1.bf16.msra.mxu1 %v19216_v1  ;;  %v19288_v1 = vld [vmem:[#allocation8 + $0x580] ss:$28 sps:$4 sm:$0xff]  }
 0x783   :  { %13335 = vmatprep.subr.bf16.mxu1 %v19221_v35  ;;  %v19293_v35 = vld [vmem:[#allocation8 + $0x5bc] ss:$28 sps:$4 sm:$0xff]  }
 0x786   :  { %13336 = vmatpush1.bf16.msra.mxu1 %v19219_v15  ;;  %v19291_v15 = vld [vmem:[#allocation8 + $0x5b8] ss:$28 sps:$4 sm:$0xff]  }
 0x787   :  { %13337 = vmatprep.subr.bf16.mxu1 %v19224_v36  ;;  %v19296_v36 = vld [vmem:[#allocation8 + $0x5f4] ss:$28 sps:$4 sm:$0xff]  }
 0x78a   :  { %13338 = vmatpush1.bf16.msra.mxu1 %v19222_v4  ;;  %v19294_v4 = vld [vmem:[#allocation8 + $0x5f0] ss:$28 sps:$4 sm:$0xff]  }
 0x78b   :  { %13339 = vmatprep.subr.bf16.mxu1 %v19227_v39  ;;  %v19299_v39 = vld [vmem:[#allocation8 + $0x62c] ss:$28 sps:$4 sm:$0xff]  }
 0x78e   :  { %13340 = vmatpush1.bf16.msra.mxu1 %v19225_v14  ;;  %v19297_v14 = vld [vmem:[#allocation8 + $0x628] ss:$28 sps:$4 sm:$0xff]  }
 0x78f   :  { %13341 = vmatprep.subr.bf16.mxu1 %v19230_v42  ;;  %v19302_v42 = vld [vmem:[#allocation8 + $0x664] ss:$28 sps:$4 sm:$0xff]  }
 0x792   :  { %13342 = vmatpush1.bf16.msra.mxu1 %v19228_v43  ;;  %v19300_v43 = vld [vmem:[#allocation8 + $0x660] ss:$28 sps:$4 sm:$0xff]  }
 0x793   :  { %13343 = vmatprep.subr.bf16.mxu1 %v19233_v0  ;;  %v19305_v0 = vld [vmem:[#allocation8 + $0x69c] ss:$28 sps:$4 sm:$0xff]  }
 0x796   :  { %13344 = vmatpush1.bf16.msra.mxu1 %v19231_v16  ;;  %v19303_v16 = vld [vmem:[#allocation8 + $0x698] ss:$28 sps:$4 sm:$0xff]  }
 0x797   :  { %13345 = vmatprep.subr.bf16.mxu1 %v19236_v6  ;;  %v19308_v6 = vld [vmem:[#allocation8 + $0x6d4] ss:$28 sps:$4 sm:$0xff]  }
 0x79a   :  { %13346 = vmatpush1.bf16.msra.mxu1 %v19234_v17  ;;  %v19306_v17 = vld [vmem:[#allocation8 + $0x6d0] ss:$28 sps:$4 sm:$0xff]  }
 0x79b   :  { %13347 = vmatprep.subr.bf16.mxu1 %v19239_v20  ;;  %v19311_v20 = vld [vmem:[#allocation8 + $0x70c] ss:$28 sps:$4 sm:$0xff]  }
 0x79e   :  { %13348 = vmatpush1.bf16.msra.mxu1 %v19237_v11  ;;  %v19309_v11 = vld [vmem:[#allocation8 + $0x708] ss:$28 sps:$4 sm:$0xff]  }
 0x79f   :  { %13349 = vmatprep.subr.bf16.mxu1 %v19242_v19  ;;  %v19314_v19 = vld [vmem:[#allocation8 + $0x744] ss:$28 sps:$4 sm:$0xff]  }
 0x7a2   :  { %13350 = vmatpush1.bf16.msra.mxu1 %v19240_v47  ;;  %v19312_v47 = vld [vmem:[#allocation8 + $0x740] ss:$28 sps:$4 sm:$0xff]  }
 0x7a3   :  { %13351 = vmatprep.subr.bf16.mxu1 %v19245_v23  ;;  %v19317_v23 = vld [vmem:[#allocation8 + $0x77c] ss:$28 sps:$4 sm:$0xff]  }
 0x7a6   :  { %13352 = vmatpush1.bf16.msra.mxu1 %v19243_v25  ;;  %v19315_v25 = vld [vmem:[#allocation8 + $0x778] ss:$28 sps:$4 sm:$0xff]  }
 0x7a7   :  { %13353 = vmatprep.subr.bf16.mxu1 %v19248_v18  ;;  %v19320_v18 = vld [vmem:[#allocation8 + $0x7b4] ss:$28 sps:$4 sm:$0xff]  }
 0x7aa   :  { %13354 = vmatpush1.bf16.msra.mxu1 %v19246_v5  ;;  %v19318_v5 = vld [vmem:[#allocation8 + $0x7b0] ss:$28 sps:$4 sm:$0xff]  }
 0x7ab   :  { %13355 = vmatprep.subr.bf16.mxu1 %v19251_v24  ;;  %v19323_v24 = vld [vmem:[#allocation8 + $0x7ec] ss:$28 sps:$4 sm:$0xff]  }
 0x7ae   :  { %13356 = vmatpush1.bf16.msra.mxu1 %v19249_v27  ;;  %v19321_v27 = vld [vmem:[#allocation8 + $0x7e8] ss:$28 sps:$4 sm:$0xff]  }
 0x7af   :  { %13357 = vmatprep.subr.bf16.mxu1 %v19254_v33  ;;  %v19326_v33 = vld [vmem:[#allocation8 + $0x824] ss:$28 sps:$4 sm:$0xff]  }
 0x7b2   :  { %13358 = vmatpush1.bf16.msra.mxu1 %v19252_v34  ;;  %v19324_v34 = vld [vmem:[#allocation8 + $0x820] ss:$28 sps:$4 sm:$0xff]  }
 0x7b3   :  { %13359 = vmatprep.subr.bf16.mxu1 %v19257_v9  ;;  %v19329_v9 = vld [vmem:[#allocation8 + $0x85c] ss:$28 sps:$4 sm:$0xff]  }
 0x7b6   :  { %13360 = vmatpush1.bf16.msra.mxu1 %v19255_v28  ;;  %v19327_v28 = vld [vmem:[#allocation8 + $0x858] ss:$28 sps:$4 sm:$0xff]  }
 0x7b7   :  { %13361 = vmatprep.subr.bf16.mxu1 %v19260_v30  ;;  %v19332_v30 = vld [vmem:[#allocation8 + $0x894] ss:$28 sps:$4 sm:$0xff]  }
 0x7ba   :  { %13362 = vmatpush1.bf16.msra.mxu1 %v19258_v38  ;;  %v19330_v38 = vld [vmem:[#allocation8 + $0x890] ss:$28 sps:$4 sm:$0xff]  }
 0x7bb   :  { %13372 = vmatprep.subr.bf16.mxu1 %v19263_v45  ;;  %v19335_v45 = vld [vmem:[#allocation8 + $0x8cc] ss:$28 sps:$4 sm:$0xff]  }
 0x7bd   :  { %13364 = vmatmul.mubr.bf16.vlgmr.msra.gmra.mrb[56].mxu1 %v20048_v3 }
 0x7be   :  { %13373 = vmatpush1.bf16.msra.mxu1 %v19261_v46  ;;  %13404 = vmatprep.mubr.bf16.mxu1 %v20050_v32  ;;  %v19333_v46 = vld [vmem:[#allocation8 + $0x8c8] ss:$28 sps:$4 sm:$0xff]  }
 0x7bf   :  { %13374 = vmatprep.subr.bf16.mxu1 %v19266_v49  ;;  %v19338_v49 = vld [vmem:[#allocation8 + $0x904] ss:$28 sps:$4 sm:$0xff]  }
 0x7c2   :  { %13375 = vmatpush1.bf16.msra.mxu1 %v19264_v63  ;;  %v19336_v63 = vld [vmem:[#allocation8 + $0x900] ss:$28 sps:$4 sm:$0xff]  }
 0x7c3   :  { %13376 = vmatprep.subr.bf16.mxu1 %v19269_v50  ;;  %v19341_v50 = vld [vmem:[#allocation8 + $0x93c] ss:$28 sps:$4 sm:$0xff]  }
 0x7c6   :  { %13377 = vmatpush1.bf16.msra.mxu1 %v19267_v51  ;;  %v19339_v51 = vld [vmem:[#allocation8 + $0x938] ss:$28 sps:$4 sm:$0xff]  }
 0x7c7   :  { %13378 = vmatprep.subr.bf16.mxu1 %v19272_v52  ;;  %v19344_v52 = vld [vmem:[#allocation8 + $0x974] ss:$28 sps:$4 sm:$0xff]  }
 0x7ca   :  { %13379 = vmatpush1.bf16.msra.mxu1 %v19270_v53  ;;  %v19342_v53 = vld [vmem:[#allocation8 + $0x970] ss:$28 sps:$4 sm:$0xff]  }
 0x7cb   :  { %13380 = vmatprep.subr.bf16.mxu1 %v19275_v10  ;;  %v19347_v10 = vld [vmem:[#allocation8 + $0x9ac] ss:$28 sps:$4 sm:$0xff]  }
 0x7ce   :  { %13381 = vmatpush1.bf16.msra.mxu1 %v19273_v29  ;;  %v19345_v29 = vld [vmem:[#allocation8 + $0x9a8] ss:$28 sps:$4 sm:$0xff]  }
 0x7cf   :  { %13382 = vmatprep.subr.bf16.mxu1 %v19278_v40  ;;  %v19350_v40 = vld [vmem:[#allocation8 + $0x9e4] ss:$28 sps:$4 sm:$0xff]  }
 0x7d2   :  { %13383 = vmatpush1.bf16.msra.mxu1 %v19276_v61  ;;  %v19348_v61 = vld [vmem:[#allocation8 + $0x9e0] ss:$28 sps:$4 sm:$0xff]  }
 0x7d3   :  { %13384 = vmatprep.subr.bf16.mxu1 %v19281_v12  ;;  %v19353_v12 = vld [vmem:[#allocation8 + $0xa1c] ss:$28 sps:$4 sm:$0xff]  }
 0x7d6   :  { %13385 = vmatpush1.bf16.msra.mxu1 %v19279_v62  ;;  %v19351_v62 = vld [vmem:[#allocation8 + $0xa18] ss:$28 sps:$4 sm:$0xff]  }
 0x7d7   :  { %13386 = vmatprep.subr.bf16.mxu1 %v19284_v2  ;;  %v19356_v2 = vld [vmem:[#allocation8 + $0xa54] ss:$28 sps:$4 sm:$0xff]  }
 0x7da   :  { %13387 = vmatpush1.bf16.msra.mxu1 %v19282_v54  ;;  %v19354_v54 = vld [vmem:[#allocation8 + $0xa50] ss:$28 sps:$4 sm:$0xff]  }
 0x7db   :  { %13388 = vmatprep.subr.bf16.mxu1 %v19287_v55  ;;  %v19359_v55 = vld [vmem:[#allocation8 + $0xa8c] ss:$28 sps:$4 sm:$0xff]  }
 0x7de   :  { %13389 = vmatpush1.bf16.msra.mxu1 %v19285_v58  ;;  %v19357_v58 = vld [vmem:[#allocation8 + $0xa88] ss:$28 sps:$4 sm:$0xff]  }
 0x7df   :  { %13390 = vmatprep.subr.bf16.mxu1 %v19290_v41  ;;  %v19362_v41 = vld [vmem:[#allocation8 + $0xac4] ss:$28 sps:$4 sm:$0xff]  }
 0x7e2   :  { %13391 = vmatpush1.bf16.msra.mxu1 %v19288_v1  ;;  %v19360_v1 = vld [vmem:[#allocation8 + $0xac0] ss:$28 sps:$4 sm:$0xff]  }
 0x7e3   :  { %13392 = vmatprep.subr.bf16.mxu1 %v19293_v35  ;;  %v19365_v35 = vld [vmem:[#allocation8 + $0xafc] ss:$28 sps:$4 sm:$0xff]  }
 0x7e6   :  { %13393 = vmatpush1.bf16.msra.mxu1 %v19291_v15  ;;  %v19363_v15 = vld [vmem:[#allocation8 + $0xaf8] ss:$28 sps:$4 sm:$0xff]  }
 0x7e7   :  { %13394 = vmatprep.subr.bf16.mxu1 %v19296_v36  ;;  %v19368_v36 = vld [vmem:[#allocation8 + $0xb34] ss:$28 sps:$4 sm:$0xff]  }
 0x7ea   :  { %13395 = vmatpush1.bf16.msra.mxu1 %v19294_v4  ;;  %v19366_v4 = vld [vmem:[#allocation8 + $0xb30] ss:$28 sps:$4 sm:$0xff]  }
 0x7eb   :  { %13396 = vmatprep.subr.bf16.mxu1 %v19299_v39  ;;  %v19371_v39 = vld [vmem:[#allocation8 + $0xb6c] ss:$28 sps:$4 sm:$0xff]  }
 0x7ee   :  { %13397 = vmatpush1.bf16.msra.mxu1 %v19297_v14  ;;  %v19369_v14 = vld [vmem:[#allocation8 + $0xb68] ss:$28 sps:$4 sm:$0xff]  }
 0x7ef   :  { %13398 = vmatprep.subr.bf16.mxu1 %v19302_v42  ;;  %v19374_v42 = vld [vmem:[#allocation8 + $0xba4] ss:$28 sps:$4 sm:$0xff]  }
 0x7f2   :  { %13399 = vmatpush1.bf16.msra.mxu1 %v19300_v43  ;;  %v19372_v43 = vld [vmem:[#allocation8 + $0xba0] ss:$28 sps:$4 sm:$0xff]  }
 0x7f3   :  { %13400 = vmatprep.subr.bf16.mxu1 %v19305_v0  ;;  %v19377_v0 = vld [vmem:[#allocation8 + $0xbdc] ss:$28 sps:$4 sm:$0xff]  }
 0x7f6   :  { %13401 = vmatpush1.bf16.msra.mxu1 %v19303_v16 }
 0x7f7   :  { %13402 = vmatprep.subr.bf16.mxu1 %v19308_v6 }
 0x7fa   :  { %13403 = vmatpush1.bf16.msra.mxu1 %v19306_v17 }
 0x7fb   :  { %13413 = vmatprep.subr.bf16.mxu1 %v19311_v20 }
 0x7fd   :  { %13405 = vmatmul.mubr.bf16.vlgmr.msra.gmra.mrb[56].mxu1 %v20065_v57 }
 0x7fe   :  { %13414 = vmatpush1.bf16.msra.mxu1 %v19309_v11  ;;  %13445 = vmatprep.mubr.bf16.mxu1 %v20089_v56 }
 0x7ff   :  { %13415 = vmatprep.subr.bf16.mxu1 %v19314_v19  ;;  %v19375_v19 = vld [vmem:[#allocation8 + $0xbd8] ss:$28 sps:$4 sm:$0xff]  }
 0x802   :  { %13416 = vmatpush1.bf16.msra.mxu1 %v19312_v47 }
 0x803   :  { %13417 = vmatprep.subr.bf16.mxu1 %v19317_v23 }
 0x806   :  { %13418 = vmatpush1.bf16.msra.mxu1 %v19315_v25  ;;  %v19380_v25 = vld [vmem:[#allocation8 + $0xc14] ss:$28 sps:$4 sm:$0xff]  }
 0x807   :  { %13419 = vmatprep.subr.bf16.mxu1 %v19320_v18  ;;  %v19378_v18 = vld [vmem:[#allocation8 + $0xc10] ss:$28 sps:$4 sm:$0xff]  }
 0x80a   :  { %13420 = vmatpush1.bf16.msra.mxu1 %v19318_v5  ;;  %v19381_v5 = vld [vmem:[#allocation8 + $0x1d8] ss:$28 sps:$4 sm:$0xff]  }
 0x80b   :  { %13421 = vmatprep.subr.bf16.mxu1 %v19323_v24  ;;  %v19382_v24 = vld [vmem:[#allocation8 + $0x18] ss:$28 sps:$4 sm:$0xff]  }
 0x80e   :  { %13422 = vmatpush1.bf16.msra.mxu1 %v19321_v27  ;;  %v19383_v27 = vld [vmem:[#allocation8 + $0x210] ss:$28 sps:$4 sm:$0xff]  }
 0x80f   :  { %13423 = vmatprep.subr.bf16.mxu1 %v19326_v33  ;;  %v19384_v33 = vld [vmem:[#allocation8 + $0x50] ss:$28 sps:$4 sm:$0xff]  }
 0x812   :  { %13424 = vmatpush1.bf16.msra.mxu1 %v19324_v34  ;;  %v19385_v34 = vld [vmem:[#allocation8 + $0x248] ss:$28 sps:$4 sm:$0xff]  }
 0x813   :  { %13425 = vmatprep.subr.bf16.mxu1 %v19329_v9  ;;  %v19386_v9 = vld [vmem:[#allocation8 + $0x88] ss:$28 sps:$4 sm:$0xff]  }
 0x816   :  { %13426 = vmatpush1.bf16.msra.mxu1 %v19327_v28  ;;  %v19387_v28 = vld [vmem:[#allocation8 + $0x280] ss:$28 sps:$4 sm:$0xff]  }
 0x817   :  { %13427 = vmatprep.subr.bf16.mxu1 %v19332_v30  ;;  %v19388_v30 = vld [vmem:[#allocation8 + $0xc0] ss:$28 sps:$4 sm:$0xff]  }
 0x81a   :  { %13428 = vmatpush1.bf16.msra.mxu1 %v19330_v38  ;;  %v19389_v38 = vld [vmem:[#allocation8 + $0x2b8] ss:$28 sps:$4 sm:$0xff]  }
 0x81b   :  { %13429 = vmatprep.subr.bf16.mxu1 %v19335_v45  ;;  %v19390_v45 = vld [vmem:[#allocation8 + $0xf8] ss:$28 sps:$4 sm:$0xff]  }
 0x81e   :  { %13430 = vmatpush1.bf16.msra.mxu1 %v19333_v46  ;;  %v19391_v46 = vld [vmem:[#allocation8 + $0x2f0] ss:$28 sps:$4 sm:$0xff]  }
 0x81f   :  { %13431 = vmatprep.subr.bf16.mxu1 %v19338_v49  ;;  %v19392_v49 = vld [vmem:[#allocation8 + $0x130] ss:$28 sps:$4 sm:$0xff]  }
 0x822   :  { %13432 = vmatpush1.bf16.msra.mxu1 %v19336_v63  ;;  %v19393_v63 = vld [vmem:[#allocation8 + $0x328] ss:$28 sps:$4 sm:$0xff]  }
 0x823   :  { %13433 = vmatprep.subr.bf16.mxu1 %v19341_v50  ;;  %v19395_v50 = vld [vmem:[#allocation8 + $0x360] ss:$28 sps:$4 sm:$0xff]  }
 0x826   :  { %13434 = vmatpush1.bf16.msra.mxu1 %v19339_v51  ;;  %v19396_v51 = vld [vmem:[#allocation8 + $0x1a0] ss:$28 sps:$4 sm:$0xff]  }
 0x827   :  { %13435 = vmatprep.subr.bf16.mxu1 %v19344_v52  ;;  %v19397_v52 = vld [vmem:[#allocation8 + $0x558] ss:$28 sps:$4 sm:$0xff]  }
 0x82a   :  { %13436 = vmatpush1.bf16.msra.mxu1 %v19342_v53  ;;  %v19398_v53 = vld [vmem:[#allocation8 + $0x398] ss:$28 sps:$4 sm:$0xff]  }
 0x82b   :  { %13437 = vmatprep.subr.bf16.mxu1 %v19347_v10  ;;  %v19399_v10 = vld [vmem:[#allocation8 + $0x590] ss:$28 sps:$4 sm:$0xff]  }
 0x82e   :  { %13438 = vmatpush1.bf16.msra.mxu1 %v19345_v29  ;;  %v19400_v29 = vld [vmem:[#allocation8 + $0x3d0] ss:$28 sps:$4 sm:$0xff]  }
 0x82f   :  { %13439 = vmatprep.subr.bf16.mxu1 %v19350_v40  ;;  %v19401_v40 = vld [vmem:[#allocation8 + $0x5c8] ss:$28 sps:$4 sm:$0xff]  }
 0x832   :  { %13440 = vmatpush1.bf16.msra.mxu1 %v19348_v61  ;;  %v19402_v61 = vld [vmem:[#allocation8 + $0x408] ss:$28 sps:$4 sm:$0xff]  }
 0x833   :  { %13441 = vmatprep.subr.bf16.mxu1 %v19353_v12  ;;  %v19403_v12 = vld [vmem:[#allocation8 + $0x600] ss:$28 sps:$4 sm:$0xff]  }
 0x836   :  { %13442 = vmatpush1.bf16.msra.mxu1 %v19351_v62  ;;  %v19404_v62 = vld [vmem:[#allocation8 + $0x440] ss:$28 sps:$4 sm:$0xff]  }
 0x837   :  { %13443 = vmatprep.subr.bf16.mxu1 %v19356_v2  ;;  %v19405_v2 = vld [vmem:[#allocation8 + $0x638] ss:$28 sps:$4 sm:$0xff]  }
 0x83a   :  { %13444 = vmatpush1.bf16.msra.mxu1 %v19354_v54  ;;  %v19406_v54 = vld [vmem:[#allocation8 + $0x478] ss:$28 sps:$4 sm:$0xff]  }
 0x83b   :  { %13454 = vmatprep.subr.bf16.mxu1 %v19359_v55  ;;  %v19407_v55 = vld [vmem:[#allocation8 + $0x670] ss:$28 sps:$4 sm:$0xff]  }
 0x83d   :  { %13446 = vmatmul.mubr.bf16.vlgmr.msra.gmra.mrb[56].mxu1 %v20091_v22 }
 0x83e   :  { %13455 = vmatpush1.bf16.msra.mxu1 %v19357_v58  ;;  %13486 = vmatprep.mubr.bf16.mxu1 %v19691_v13  ;;  %v19409_v58 = vld [vmem:[#allocation8 + $0x6a8] ss:$28 sps:$4 sm:$0xff]  }
 0x83f   :  { %13456 = vmatprep.subr.bf16.mxu1 %v19362_v41  ;;  %v19411_v41 = vld [vmem:[#allocation8 + $0x6e0] ss:$28 sps:$4 sm:$0xff]  }
 0x842   :  { %13457 = vmatpush1.bf16.msra.mxu1 %v19360_v1  ;;  %v19412_v1 = vld [vmem:[#allocation8 + $0x520] ss:$28 sps:$4 sm:$0xff]  }
 0x843   :  { %13458 = vmatprep.subr.bf16.mxu1 %v19365_v35  ;;  %v19467_v35 = vld [vmem:[#allocation11 + $0xc0] sm:$0xff]  }
 0x844   :  { %16645 = vmatprep.subr.bf16.mxu0 %v19467_v35  ;;  %v19444_v35 = vld [vmem:[#allocation11 + $0x18] sm:$0xff]  }
 0x846   :  { %13459 = vmatpush1.bf16.msra.mxu1 %v19363_v15  ;;  %v19413_v15 = vld [vmem:[#allocation8 + $0x8d8] ss:$28 sps:$4 sm:$0xff]  }
 0x847   :  { %13460 = vmatprep.subr.bf16.mxu1 %v19368_v36  ;;  %v19469_v36 = vld [vmem:[#allocation11 + $0x80] sm:$0xff]  }
 0x848   :  { %16646 = vmatpush3.bf16.msra.mxu0 %v19469_v36  ;;  %v19446_v36 = vld [vmem:[#allocation11 + $0x20] sm:$0xff]  }
 0x84a   :  { %13461 = vmatpush1.bf16.msra.mxu1 %v19366_v4  ;;  %v19414_v4 = vld [vmem:[#allocation8 + $0x718] ss:$28 sps:$4 sm:$0xff]  }
 0x84b   :  { %13462 = vmatprep.subr.bf16.mxu1 %v19371_v39  ;;  %v19471_v39 = vld [vmem:[#allocation11 + $0xc8] sm:$0xff]  }
 0x84c   :  { %16647 = vmatprep.subr.bf16.mxu0 %v19471_v39  ;;  %v19448_v39 = vld [vmem:[#allocation11 + $0x28] sm:$0xff]  }
 0x84e   :  { %13463 = vmatpush1.bf16.msra.mxu1 %v19369_v14  ;;  %v19415_v14 = vld [vmem:[#allocation8 + $0x910] ss:$28 sps:$4 sm:$0xff]  }
 0x84f   :  { %13464 = vmatprep.subr.bf16.mxu1 %v19374_v42  ;;  %v19472_v42 = vld [vmem:[#allocation11 + $0x88] sm:$0xff]  }
 0x850   :  { %v20111_v16 = vpop.f32.mrb[52].mxu1  ;;  %v20113_v13 = vpop.f32.mrb[8].mxu0  ;;  %16648 = vmatpush3.bf16.msra.mxu0 %v19472_v42 }
 0x851   :  { %v20115_v6 = vpop.f32.mrb[53].mxu1  ;;  %v20117_v17 = vpop.f32.mrb[9].mxu0 }
 0x852   :  { %v13328_v20 = vpop.f32.mrb[54].mxu1  ;;  %13465 = vmatpush1.bf16.msra.mxu1 %v19372_v43  ;;  %v13656_v11 = vpop.f32.mrb[10].mxu0  ;;  %v19473_v43 = vld [vmem:[#allocation11 + $0xd0] sm:$0xff]  }
 0x853   :  { %v13329_v47 = vpop.f32.mrb[55].mxu1  ;;  %v13657_v23 = vpop.f32.mrb[11].mxu0  ;;  %13466 = vmatprep.subr.bf16.mxu1 %v19377_v0  ;;  %v19416_v0 = vld [vmem:[#allocation8 + $0x750] ss:$28 sps:$4 sm:$0xff]   ;;  %v19417_v20 = vld [vmem:[#allocation8 + $0x948] ss:$28 sps:$4 sm:$0xff]   ;;  %16649 = vmatprep.subr.bf16.mxu0 %v19473_v43 }
 0x854   :  { %v19474_v11 = vld [vmem:[#allocation11 + $0x90] sm:$0xff]   ;;  %v19418_v47 = vld [vmem:[#allocation8 + $0x788] ss:$28 sps:$4 sm:$0xff]  }
 0x855   :  { %v19419_v23 = vld [vmem:[#allocation8 + $0x980] ss:$28 sps:$4 sm:$0xff]   ;;  %16650 = vmatpush3.bf16.msra.mxu0 %v19474_v11 }
 0x856   :  { %13467 = vmatpush1.bf16.msra.mxu1 %v19375_v19  ;;  %v19475_v19 = vld [vmem:[#allocation11 + $0xd8] sm:$0xff]   ;;  %v19450_v43 = vld [vmem:[#allocation11 + $0x30] sm:$0xff]  }
 0x857   :  { %13468 = vmatprep.subr.bf16.mxu1 %v19380_v25  ;;  %v19476_v25 = vld [vmem:[#allocation11 + $0x98] sm:$0xff]   ;;  %16651 = vmatprep.subr.bf16.mxu0 %v19475_v19 }
 0x858   :  { %v19452_v19 = vld [vmem:[#allocation11 + $0x38] sm:$0xff]  }
 0x859   :  { %16652 = vmatpush3.bf16.msra.mxu0 %v19476_v25  ;;  %v19454_v25 = vld [vmem:[#allocation11 + $0x100] sm:$0xff]  }
 0x85a   :  { %13469 = vmatpush1.bf16.msra.mxu1 %v19378_v18  ;;  %v19477_v18 = vld [vmem:[#allocation11 + $0xe0] sm:$0xff]  }
 0x85b   :  { %16548 = vmatprep.subr.bf16.mxu1 %v19381_v5  ;;  %v19421_v5 = vld [vmem:[#allocation8 + $0x9b8] ss:$28 sps:$4 sm:$0xff]   ;;  %16653 = vmatprep.subr.bf16.mxu0 %v19477_v18 }
 0x85d   :  { %13487 = vmatmul.mubr.bf16.vlgmr.msra.gmra.mrb[56].mxu1 %v20100_v59 }
 0x85e   :  { %16549 = vmatpush3.bf16.msra.mxu1 %v19382_v24  ;;  %13691 = vmatprep.mubr.bf16.mxu1 %v20032_v44  ;;  %v19394_v44 = vld [vmem:[#allocation8 + $0x168] ss:$28 sps:$4 sm:$0xff]   ;;  %v19479_v24 = vld [vmem:[#allocation11 + $0xe8] sm:$0xff]  }
 0x85f   :  { %16550 = vmatprep.subr.bf16.mxu1 %v19383_v27  ;;  %v19422_v27 = vld [vmem:[#allocation8 + $0x7f8] ss:$28 sps:$4 sm:$0xff]  }
 0x862   :  { %16551 = vmatpush3.bf16.msra.mxu1 %v19384_v33  ;;  %v19423_v33 = vld [vmem:[#allocation8 + $0x9f0] ss:$28 sps:$4 sm:$0xff]  }
 0x863   :  { %16552 = vmatprep.subr.bf16.mxu1 %v19385_v34  ;;  %v19480_v34 = vld [vmem:[#allocation11 + $0xa8] sm:$0xff]  }
 0x866   :  { %16553 = vmatpush3.bf16.msra.mxu1 %v19386_v9  ;;  %v19424_v9 = vld [vmem:[#allocation8 + $0x830] ss:$28 sps:$4 sm:$0xff]  }
 0x867   :  { %16554 = vmatprep.subr.bf16.mxu1 %v19387_v28  ;;  %v19425_v28 = vld [vmem:[#allocation8 + $0xa28] ss:$28 sps:$4 sm:$0xff]  }
 0x86a   :  { %16555 = vmatpush3.bf16.msra.mxu1 %v19388_v30  ;;  %v19481_v30 = vld [vmem:[#allocation11 + $0xf0] sm:$0xff]  }
 0x86b   :  { %16556 = vmatprep.subr.bf16.mxu1 %v19389_v38  ;;  %v19482_v38 = vld [vmem:[#allocation11 + $0xb0] sm:$0xff]  }
 0x86e   :  { %16557 = vmatpush3.bf16.msra.mxu1 %v19390_v45  ;;  %v19426_v45 = vld [vmem:[#allocation8 + $0x868] ss:$28 sps:$4 sm:$0xff]  }
 0x86f   :  { %16558 = vmatprep.subr.bf16.mxu1 %v19391_v46  ;;  %v19427_v46 = vld [vmem:[#allocation8 + $0xa60] ss:$28 sps:$4 sm:$0xff]  }
 0x872   :  { %16559 = vmatpush3.bf16.msra.mxu1 %v19392_v49  ;;  %v19483_v49 = vld [vmem:[#allocation11 + $0xf8] sm:$0xff]  }
 0x873   :  { %16560 = vmatprep.subr.bf16.mxu1 %v19393_v63  ;;  %v19484_v63 = vld [vmem:[#allocation11 + $0xb8] sm:$0xff]  }
 0x876   :  { %16561 = vmatpush3.bf16.msra.mxu1 %v19394_v44  ;;  %v19428_v44 = vld [vmem:[#allocation8 + $0x8a0] ss:$28 sps:$4 sm:$0xff]  }
 0x877   :  { %16562 = vmatprep.subr.bf16.mxu1 %v19395_v50  ;;  %v19692_v50 = vmov 0.0  }
 0x87a   :  { %16563 = vmatpush3.bf16.msra.mxu1 %v19396_v51  ;;  %v19429_v51 = vld [vmem:[#allocation8 + $0xa98] ss:$28 sps:$4 sm:$0xff]  }
 0x87b   :  { %16570 = vmatprep.subr.bf16.mxu1 %v19397_v52  ;;  %v19430_v52 = vld [vmem:[#allocation8 + $0xad0] ss:$28 sps:$4 sm:$0xff]  }
 0x87d   :  { %13692 = vmatmul.mubr.bf16.vlgmr.msra.gmra.mrb[60].mxu1 %v20048_v3  ;;  %v19408_v3 = vld [vmem:[#allocation8 + $0x4b0] ss:$28 sps:$4 sm:$0xff]  }
 0x87e   :  { %16571 = vmatpush3.bf16.msra.mxu1 %v19398_v53  ;;  %13731 = vmatprep.mubr.bf16.mxu1 %v20050_v32  ;;  %v19410_v32 = vld [vmem:[#allocation8 + $0x4e8] ss:$28 sps:$4 sm:$0xff]  }
 0x87f   :  { %16572 = vmatprep.subr.bf16.mxu1 %v19399_v10  ;;  %v19431_v53 = vld [vmem:[#allocation8 + $0xb08] ss:$28 sps:$4 sm:$0xff]   ;;  %v19432_v10 = vld [vmem:[#allocation8 + $0xb40] ss:$28 sps:$4 sm:$0xff]  }
 0x882   :  { %16573 = vmatpush3.bf16.msra.mxu1 %v19400_v29  ;;  %v19433_v29 = vld [vmem:[#allocation8 + $0xb78] ss:$28 sps:$4 sm:$0xff]  }
 0x883   :  { %16574 = vmatprep.subr.bf16.mxu1 %v19401_v40  ;;  %v19434_v40 = vld [vmem:[#allocation8 + $0xbb0] ss:$28 sps:$4 sm:$0xff]  }
 0x886   :  { %16575 = vmatpush3.bf16.msra.mxu1 %v19402_v61 }
 0x887   :  { %16576 = vmatprep.subr.bf16.mxu1 %v19403_v12  ;;  %v19435_v12 = vld [vmem:[#allocation8 + $0xbe8] ss:$28 sps:$4 sm:$0xff]  }
 0x88a   :  { %16577 = vmatpush3.bf16.msra.mxu1 %v19404_v62 }
 0x88b   :  { %16578 = vmatprep.subr.bf16.mxu1 %v19405_v2  ;;  %v19436_v2 = vld [vmem:[#allocation8 + $0xc20] ss:$28 sps:$4 sm:$0xff]  }
 0x88e   :  { %16579 = vmatpush3.bf16.msra.mxu1 %v19406_v54  ;;  %v19437_v54 = vld [vmem:[#allocation11 + $0x40] sm:$0xff]  }
 0x88f   :  { %16580 = vmatprep.subr.bf16.mxu1 %v19407_v55 }
 0x892   :  { %16581 = vmatpush3.bf16.msra.mxu1 %v19408_v3  ;;  %v19438_v3 = vld [vmem:[#allocation11] sm:$0xff]  }
 0x893   :  { %16582 = vmatprep.subr.bf16.mxu1 %v19409_v58  ;;  %v19439_v58 = vld [vmem:[#allocation11 + $0x48] sm:$0xff]  }
 0x896   :  { %16583 = vmatpush3.bf16.msra.mxu1 %v19410_v32 }
 0x897   :  { %16584 = vmatprep.subr.bf16.mxu1 %v19411_v41  ;;  %v19441_v41 = vld [vmem:[#allocation11 + $0x50] sm:$0xff]  }
 0x89a   :  { %16585 = vmatpush3.bf16.msra.mxu1 %v19412_v1  ;;  %v19443_v1 = vld [vmem:[#allocation11 + $0x58] sm:$0xff]  }
 0x89b   :  { %16592 = vmatprep.subr.bf16.mxu1 %v19413_v15  ;;  %v19445_v15 = vld [vmem:[#allocation11 + $0x60] sm:$0xff]  }
 0x89d   :  { %13732 = vmatmul.mubr.bf16.vlgmr.msra.gmra.mrb[64].mxu1 %v20065_v57  ;;  %v19420_v57 = vld [vmem:[#allocation8 + $0x7c0] ss:$28 sps:$4 sm:$0xff]  }
 0x89e   :  { %16593 = vmatpush3.bf16.msra.mxu1 %v19414_v4  ;;  %13771 = vmatprep.mubr.bf16.mxu1 %v20089_v56  ;;  %v19478_v56 = vld [vmem:[#allocation11 + $0xa0] sm:$0xff]   ;;  %v19447_v4 = vld [vmem:[#allocation11 + $0x68] sm:$0xff]  }
 0x89f   :  { %16594 = vmatprep.subr.bf16.mxu1 %v19415_v14  ;;  %16654 = vmatpush3.bf16.msra.mxu0 %v19478_v56  ;;  %v19449_v14 = vld [vmem:[#allocation11 + $0x70] sm:$0xff]   ;;  %v19459_v56 = vld [vmem:[#allocation11 + $0x158] sm:$0xff]  }
 0x8a0   :  { %16655 = vmatprep.subr.bf16.mxu0 %v19479_v24  ;;  %v19460_v24 = vld [vmem:[#allocation11 + $0x118] sm:$0xff]  }
 0x8a2   :  { %16595 = vmatpush3.bf16.msra.mxu1 %v19416_v0 }
 0x8a3   :  { %16596 = vmatprep.subr.bf16.mxu1 %v19417_v20  ;;  %16656 = vmatpush3.bf16.msra.mxu0 %v19480_v34  ;;  %v19451_v20 = vld [vmem:[#allocation11 + $0x78] sm:$0xff]   ;;  %v19463_v34 = vld [vmem:[#allocation11 + $0x168] sm:$0xff]  }
 0x8a4   :  { %16657 = vmatprep.subr.bf16.mxu0 %v19481_v30  ;;  %v19465_v30 = vld [vmem:[#allocation11 + $0x170] sm:$0xff]  }
 0x8a6   :  { %16597 = vmatpush3.bf16.msra.mxu1 %v19418_v47 }
 0x8a7   :  { %16598 = vmatprep.subr.bf16.mxu1 %v19419_v23  ;;  %16658 = vmatpush3.bf16.msra.mxu0 %v19482_v38  ;;  %v19453_v23 = vld [vmem:[#allocation11 + $0x140] sm:$0xff]   ;;  %v19466_v38 = vld [vmem:[#allocation11 + $0x130] sm:$0xff]  }
 0x8a8   :  { %16659 = vmatprep.subr.bf16.mxu0 %v19483_v49  ;;  %v19470_v49 = vld [vmem:[#allocation11 + $0x138] sm:$0xff]  }
 0x8aa   :  { %16599 = vmatpush3.bf16.msra.mxu1 %v19420_v57  ;;  %v19455_v57 = vld [vmem:[#allocation11 + $0x148] sm:$0xff]  }
 0x8ab   :  { %16600 = vmatprep.subr.bf16.mxu1 %v19421_v5  ;;  %16660 = vmatpush3.bf16.msra.mxu0 %v19484_v63  ;;  %v19457_v5 = vld [vmem:[#allocation11 + $0x150] sm:$0xff]  }
 0x8ac   :  { %16718 = vmatprep.subr.bf16.mxu0 %v19692_v50 }
 0x8ae   :  { %16601 = vmatpush3.bf16.msra.mxu1 %v19422_v27  ;;  %v19461_v27 = vld [vmem:[#allocation11 + $0x160] sm:$0xff]  }
 0x8af   :  { %16602 = vmatprep.subr.bf16.mxu1 %v19423_v33  ;;  %v19462_v33 = vld [vmem:[#allocation11 + $0x120] sm:$0xff]  }
 0x8b2   :  { %16603 = vmatpush3.bf16.msra.mxu1 %v19424_v9  ;;  %v19464_v9 = vld [vmem:[#allocation11 + $0x128] sm:$0xff]  }
 0x8b3   :  { %16604 = vmatprep.subr.bf16.mxu1 %v19425_v28 }
 0x8b6   :  { %16605 = vmatpush3.bf16.msra.mxu1 %v19426_v45 }
 0x8b7   :  { %16606 = vmatprep.subr.bf16.mxu1 %v19427_v46  ;;  %v19468_v46 = vld [vmem:[#allocation11 + $0x178] sm:$0xff]  }
 0x8ba   :  { %16607 = vmatpush3.bf16.msra.mxu1 %v19428_v44 }
 0x8bb   :  { %16698 = vmatprep.subr.bf16.mxu1 %v19692_v50 }
 0x8bd   :  { %13772 = vmatmul.mubr.bf16.vlgmr.msra.gmra.mrb[68].mxu1 %v20091_v22  ;;  %v20134_v22 = vld [vmem:[#allocation10] sm:$0xff] }
 0x8be   :  { %16699 = vmatpush3.bf16.msra.mxu1 %v19429_v51  ;;  %16714 = vmatprep.mubr.msk.bf16.mxu1 %vm19693_vm0, %v19692_v50  ;;  %v11123_v61 = vrot.slane %v20134_v22, %v1671_v8  ;;  %v19440_v8 = vld [vmem:[#allocation11 + $0x8] sm:$0xff]   ;;  %v11139_v42 = vrot.slane %v20134_v22, %v1687_v37  ;;  %v11135_v28 = vrot.slane %v20134_v22, %v1683_v48 }
 0x8bf   :  { %16700 = vmatprep.subr.bf16.mxu1 %v19692_v50  ;;  %v11127_v51 = vrot.slane %v20134_v22, %v1675_v7  ;;  %v11131_v48 = vrot.slane %v20134_v22, %v1679_v31  ;;  %v19487_v31 = vld [vmem:[#allocation11 + $0x190] sm:$0xff]   ;;  %v19488_v7 = vld [vmem:[#allocation11 + $0x198] sm:$0xff]  }
 0x8c0   :  { %v16745_v62 = vadd.f32 %v20115_v6, %v11123_v61  ;;  %v19442_v6 = vld [vmem:[#allocation11 + $0x10] sm:$0xff]   ;;  %v16749_v11 = vadd.f32 %v20117_v17, %v11139_v42  ;;  %v16748_v45 = vadd.f32 %v20113_v13, %v11135_v28  ;;  %v16227_v28 = vld [vmem:[#allocation13] ss:$0 sm:$0xff] }
 0x8c1   :  { %v19458_v17 = vld [vmem:[#allocation11 + $0x110] sm:$0xff]  }
 0x8c2   :  { %16701 = vmatpush3.bf16.msra.mxu1 %v19430_v52  ;;  %v13820_v55 = vmax.f32 %v16745_v62, 0.0  ;;  %v13823_v63 = vmax.f32 %v16748_v45, 0.0 }
 0x8c3   :  { %16702 = vmatprep.subr.bf16.mxu1 %v19692_v50 }
 0x8c4   :  { %v13827_v32 = vpack.c.bf16 %v13820_v55, %v13820_v55  ;;  %v13830_v44 = vpack.c.bf16 %v13823_v63, %v13823_v63  ;;  %v19486_v55 = vld [vmem:[#allocation11 + $0x188] sm:$0xff]  }
 0x8c6   :  { %16703 = vmatpush3.bf16.msra.mxu1 %v19431_v53 }
 0x8c7   :  { %16704 = vmatprep.subr.bf16.mxu1 %v19692_v50 }
 0x8ca   :  { %16705 = vmatpush3.bf16.msra.mxu1 %v19432_v10 }
 0x8cb   :  { %16706 = vmatprep.subr.bf16.mxu1 %v19692_v50 }
 0x8ce   :  { %16707 = vmatpush3.bf16.msra.mxu1 %v19433_v29 }
 0x8cf   :  { %16708 = vmatprep.subr.bf16.mxu1 %v19692_v50 }
 0x8d2   :  { %16709 = vmatpush3.bf16.msra.mxu1 %v19434_v40 }
 0x8d3   :  { %16710 = vmatprep.subr.bf16.mxu1 %v19692_v50 }
 0x8d6   :  { %16711 = vmatpush3.bf16.msra.mxu1 %v19435_v12 }
 0x8d7   :  { %16712 = vmatprep.subr.bf16.mxu1 %v19692_v50 }
 0x8da   :  { %16713 = vmatpush3.bf16.msra.mxu1 %v19436_v2  ;;  %v19485_v2 = vld [vmem:[#allocation11 + $0x180] sm:$0xff]  }
 0x8db   :  { %16623 = vmatprep.subr.bf16.mxu1 %v19437_v54 }
 0x8dd   :  { %16715 = vmatmul.mubr.bf16.vlgmr.msra.gmra.mrb[72].mxu1 %v20100_v59  ;;  %v11119_v59 = vrot.slane %v20134_v22, %v1667_v60  ;;  %v13824_v60 = vmax.f32 %v16749_v11, 0.0 }
 0x8de   :  { %16624 = vmatpush3.bf16.msra.mxu1 %v19438_v3  ;;  %14320 = vmatprep.mubr.bf16.mxu1 %v13827_v32  ;;  %v19489_v3 = vld [vmem:[#allocation11 + $0x1a0] sm:$0xff]   ;;  %v19491_v32 = vld [vmem:[#allocation11 + $0x1b0] sm:$0xff]  }
 0x8df   :  { %16625 = vmatprep.subr.bf16.mxu1 %v19439_v58  ;;  %v16744_v0 = vadd.f32 %v20111_v16, %v11119_v59  ;;  %v13831_v37 = vpack.c.bf16 %v13824_v60, %v13824_v60  ;;  %v19456_v16 = vld [vmem:[#allocation11 + $0x108] sm:$0xff]  }
 0x8e0   :  { %v19490_v58 = vld [vmem:[#allocation11 + $0x1a8] sm:$0xff]  }
 0x8e1   :  { %v13819_v47 = vmax.f32 %v16744_v0, 0.0 }
 0x8e2   :  { %16626 = vmatpush3.bf16.msra.mxu1 %v19440_v8 }
 0x8e3   :  { %16627 = vmatprep.subr.bf16.mxu1 %v19441_v41  ;;  %v13826_v18 = vpack.c.bf16 %v13819_v47, %v13819_v47 }
 0x8e6   :  { %16628 = vmatpush3.bf16.msra.mxu1 %v19442_v6 }
 0x8e7   :  { %16629 = vmatprep.subr.bf16.mxu1 %v19443_v1 }
 0x8ea   :  { %16630 = vmatpush3.bf16.msra.mxu1 %v19444_v35  ;;  %v19492_v35 = vld [vmem:[#allocation11 + $0x1b8] sm:$0xff]  }
 0x8eb   :  { %16631 = vmatprep.subr.bf16.mxu1 %v19445_v15 }
 0x8ee   :  { %16632 = vmatpush3.bf16.msra.mxu1 %v19446_v36  ;;  %v11143_v36 = vrot.slane %v20134_v22, %v1691_v26 }
 0x8ef   :  { %16633 = vmatprep.subr.bf16.mxu1 %v19447_v4 }
 0x8f2   :  { %16634 = vmatpush3.bf16.msra.mxu1 %v19448_v39 }
 0x8f3   :  { %16635 = vmatprep.subr.bf16.mxu1 %v19449_v14 }
 0x8f6   :  { %16636 = vmatpush3.bf16.msra.mxu1 %v19450_v43 }
 0x8f7   :  { %16637 = vmatprep.subr.bf16.mxu1 %v19451_v20 }
 0x8fa   :  { %16638 = vmatpush3.bf16.msra.mxu1 %v19452_v19 }
 0x8fb   :  { %16667 = vmatprep.subr.bf16.mxu1 %v19453_v23 }
 0x8fd   :  { %14321 = vmatmul.mubr.bf16.vlgmr.msra.gmra.mrb[76].mxu1 %v13826_v18 }
 0x8fe   :  { %16668 = vmatpush3.bf16.msra.mxu1 %v19454_v25  ;;  %14400 = vmatprep.mubr.bf16.mxu1 %v13831_v37 }
 0x8ff   :  { %16669 = vmatprep.subr.bf16.mxu1 %v19455_v57 }
 0x902   :  { %16670 = vmatpush3.bf16.msra.mxu1 %v19456_v16 }
 0x903   :  { %16671 = vmatprep.subr.bf16.mxu1 %v19457_v5 }
 0x906   :  { %16672 = vmatpush3.bf16.msra.mxu1 %v19458_v17 }
 0x907   :  { %16673 = vmatprep.subr.bf16.mxu1 %v19459_v56 }
 0x90a   :  { %16674 = vmatpush3.bf16.msra.mxu1 %v19460_v24 }
 0x90b   :  { %16675 = vmatprep.subr.bf16.mxu1 %v19461_v27 }
 0x90e   :  { %16676 = vmatpush3.bf16.msra.mxu1 %v19462_v33 }
 0x90f   :  { %16677 = vmatprep.subr.bf16.mxu1 %v19463_v34 }
 0x912   :  { %16678 = vmatpush3.bf16.msra.mxu1 %v19464_v9 }
 0x913   :  { %16679 = vmatprep.subr.bf16.mxu1 %v19465_v30 }
 0x916   :  { %16680 = vmatpush3.bf16.msra.mxu1 %v19466_v38 }
 0x917   :  { %16681 = vmatprep.subr.bf16.mxu1 %v19468_v46 }
 0x91a   :  { %16682 = vmatpush3.bf16.msra.mxu1 %v19470_v49 }
 0x91d   :  { %14401 = vmatmul.mubr.bf16.vlgmr.msra.gmra.mrb[80].mxu1 %v13830_v44 }
 0x930   :  { %v13488_v52 = vpop.f32.mrb[56].mxu1 }
 0x931   :  { %v16746_v53 = vadd.f32 %v13488_v52, %v11127_v51  ;;  %v13490_v13 = vpop.f32.mrb[57].mxu1 }
 0x932   :  { %v16747_v10 = vadd.f32 %v13490_v13, %v11131_v48  ;;  %v13492_v29 = vpop.f32.mrb[58].mxu1 }
 0x933   :  { %v13821_v40 = vmax.f32 %v16746_v53, 0.0  ;;  %v13493_v61 = vpop.f32.mrb[59].mxu1 }
 0x934   :  { %v13822_v12 = vmax.f32 %v16747_v10, 0.0 }
 0x935   :  { %v13828_v54 = vpack.c.bf16 %v13821_v40, %v13821_v40 }
 0x936   :  { %v13829_v62 = vpack.c.bf16 %v13822_v12, %v13822_v12 }
 0x938   :  { %14360 = vmatprep.mubr.bf16.mxu0 %v13829_v62 }
 0x939   :  { %14361 = vmatmul.mubr.bf16.vlgmr.msra.gmra.mrb[12].mxu0 %v13828_v54 }
 0x93a   :  { %16719 = vmatpush3.bf16.msra.mxu0 %v19485_v2  ;;  %16734 = vmatprep.mubr.msk.bf16.mxu0 %vm19693_vm0, %v19692_v50 }
 0x93b   :  { %16720 = vmatprep.subr.bf16.mxu0 %v19692_v50 }
 0x93e   :  { %16721 = vmatpush3.bf16.msra.mxu0 %v19486_v55 }
 0x93f   :  { %16722 = vmatprep.subr.bf16.mxu0 %v19692_v50 }
 0x942   :  { %16723 = vmatpush3.bf16.msra.mxu0 %v19487_v31 }
 0x943   :  { %16724 = vmatprep.subr.bf16.mxu0 %v19692_v50 }
 0x946   :  { %16725 = vmatpush3.bf16.msra.mxu0 %v19488_v7 }
 0x947   :  { %16726 = vmatprep.subr.bf16.mxu0 %v19692_v50 }
 0x94a   :  { %16727 = vmatpush3.bf16.msra.mxu0 %v19489_v3 }
 0x94b   :  { %16728 = vmatprep.subr.bf16.mxu0 %v19692_v50 }
 0x94e   :  { %16729 = vmatpush3.bf16.msra.mxu0 %v19490_v58 }
 0x94f   :  { %16730 = vmatprep.subr.bf16.mxu0 %v19692_v50 }
 0x950   :  { %v16564_v8 = vpop.f32.mrb[60].mxu1 }
 0x951   :  { %v16565_v41 = vpop.f32.mrb[61].mxu1 }
 0x952   :  { %v16566_v6 = vadd.f32 %v16565_v41, %v16564_v8  ;;  %v16567_v1 = vpop.f32.mrb[62].mxu1  ;;  %16731 = vmatpush3.bf16.msra.mxu0 %v19491_v32 }
 0x953   :  { %v16568_v15 = vpop.f32.mrb[63].mxu1  ;;  %16732 = vmatprep.subr.bf16.mxu0 %v19692_v50 }
 0x954   :  { %v13694_v59 = vadd.f32 %v16566_v6, %v11143_v36 }
 0x956   :  { %16733 = vmatpush3.bf16.msra.mxu0 %v19492_v35 }
 0x970   :  { %v16586_v4 = vpop.f32.mrb[64].mxu1 }
 0x971   :  { %v16587_v39 = vpop.f32.mrb[65].mxu1 }
 0x972   :  { %v16588_v14 = vadd.f32 %v16587_v39, %v16586_v4  ;;  %v16589_v42 = vpop.f32.mrb[66].mxu1 }
 0x973   :  { %v16590_v43 = vpop.f32.mrb[67].mxu1 }
 0x974   :  { %v13734_v0 = vadd.f32 %v16588_v14, %v13694_v59 }
 0x990   :  { %v16608_v20 = vpop.f32.mrb[68].mxu1 }
 0x991   :  { %v16609_v11 = vpop.f32.mrb[69].mxu1 }
 0x992   :  { %v16610_v19 = vadd.f32 %v16609_v11, %v16608_v20  ;;  %v16611_v47 = vpop.f32.mrb[70].mxu1 }
 0x993   :  { %v16612_v23 = vpop.f32.mrb[71].mxu1 }
 0x994   :  { %v13774_v60 = vadd.f32 %v16610_v19, %v13734_v0 }
 0x9b0   :  { %v13813_v25 = vpop.f32.mrb[72].mxu1 }
 0x9b1   :  { %v13814_v50 = vadd.f32 %v13813_v25, %v13774_v60  ;;  %v16716_v18 = vpop.f32.mrb[73].mxu1 }
 0x9b2   :  { %v13816_v57 = vpop.f32.mrb[74].mxu1 }
 0x9b3   :  { %v13825_v21 = vmax.f32 %v13814_v50, 0.0  ;;  %v16717_v37 = vpop.f32.mrb[75].mxu1 }
 0x9b5   :  { %v13832_v26 = vpack.c.bf16 %v13825_v21, %v13825_v21 }
 0x9b7   :  { %16735 = vmatmul.mubr.bf16.vlgmr.msra.gmra.mrb[16].mxu0 %v13832_v26 }
 0x9d0   :  { %v16639_v22 = vpop.f32.mrb[76].mxu1 }
 0x9d1   :  { %v16640_v16 = vpop.f32.mrb[77].mxu1 }
 0x9d2   :  { %v16641_v5 = vadd.f32 %v16640_v16, %v16639_v22  ;;  %v16642_v17 = vpop.f32.mrb[78].mxu1 }
 0x9d3   :  { %v16643_v56 = vpop.f32.mrb[79].mxu1 }
 0x9d4   :  { %v14323_v45 = vadd.f32 %v16641_v5, %v16227_v28 }
 0x9f0   :  { %v16683_v24 = vpop.f32.mrb[80].mxu1 }
 0x9f1   :  { %v16684_v27 = vpop.f32.mrb[81].mxu1 }
 0x9f2   :  { %v16685_v33 = vadd.f32 %v16684_v27, %v16683_v24  ;;  %v16686_v34 = vpop.f32.mrb[82].mxu1 }
 0x9f3   :  { %v16687_v9 = vpop.f32.mrb[83].mxu1 }
 0xa0c   :  { %v16661_v30 = vpop.f32.mrb[12].mxu0 }
 0xa0d   :  { %v16662_v38 = vpop.f32.mrb[13].mxu0 }
 0xa0e   :  { %v16663_v46 = vadd.f32 %v16662_v38, %v16661_v30  ;;  %v16664_v49 = vpop.f32.mrb[14].mxu0 }
 0xa0f   :  { %v16665_v63 = vpop.f32.mrb[15].mxu0 }
 0xa10   :  { %v14363_v44 = vadd.f32 %v16663_v46, %v14323_v45 }
 0xa12   :  { %v14403_v51 = vadd.f32 %v16685_v33, %v14363_v44 }
 0xa8a   :  { %v14442_v48 = vpop.f32.mrb[16].mxu0 }
 0xa8b   :  { %v14443_v52 = vadd.f32 %v14442_v48, %v14403_v51  ;;  %v16736_v53 = vpop.f32.mrb[17].mxu0 }
 0xa8c   :  { %v14445_v13 = vpop.f32.mrb[18].mxu0 }
 0xa8d   :  { %14448 = vst [vmem:[#allocation14] sm:$0xff] %v14443_v52  ;;  %v16737_v10 = vpop.f32.mrb[19].mxu0 }
 0xa8e   :  { %19659 = shalt.err (!%p19656_p4)
}
 0xa8f   :  { %s19660_s15 = scalar_lea.hbm %s20193_s7, 128 }
 0xa90   :  { %p19661_p5 = scmp.ne.s32.totalorder %s20193_s7, %s19660_s15  ;;  %p19664_p6 = scmp.lt.u32.totalorder %s19660_s15, %s20193_s7 }
 0xa92   :  { %p19666_p7 = pnand %p19664_p6, %p19661_p5 }
 0xa94   :  { %19669 = shalt.err (!%p19666_p7)
}
 0xa95   :  { %14458 = dma.vmem_to_hbm [thread:$0]  %s14456_s3, 128, %s20193_s7, [#allocation4]  }
 0xa96   :  { %19678 = dma.done.wait [#allocation4], 128  }
 0xa97   :  { %19679 = vsyncadd [#allocation4], 4294967168 }
 0xa98   :  { %14462 = vsyncpa [#allocation3], 1 }
 0xa99   :  { %14463 = vsyncpa [#allocation6], 1 }
 0xa9a   :  { %14464 = vsyncpa [#allocation9], 1 }
 0xa9b   :  { %14465 = vsyncpa [#allocation12], 1 }
 0xa9c   :  { %14466 = vsyncpa [#allocation4], 1 }

</bundles_post_ra>
